<compile_context>
chip_gen: v5e
topology: v5e:2x2
jax: 0.10.0
libtpu: 0.0.40
codegen_flags: <defaults>
</compile_context>

<pallas_src>
import jax
import jax.numpy as jnp
from jax.experimental import pallas as pl
from jax.experimental.pallas import tpu as pltpu

INPUT_DIM = 2                      # self.d (also the latent dim)
ENCODE_DIM = 3
HIDDEN_DIM = ENCODE_DIM * 100      # 300
SHARPEN_T = 0.5                    # forward calls sharpen(d_y, T=0.5)
TILE_N = 512                       # batch rows per grid step (lanes)


def _ae2_kernel(x_ref, w1_ref, b1_ref, w2t_ref, b2_ref,
                w3_ref, b3_ref, w4t_ref, b4_ref,
                dec_ref, z_ref):
    """All activations are (features, TILE_N); batch on the lane axis.

    x_ref   : (2, TILE_N)           input tile
    w1_ref  : (300, 2)  b1_ref: (300, 1)   encoder Linear(2, 300)   (PyTorch (out, in))
    w2t_ref : (300, 2)  b2_ref: (2,) SMEM  encoder Linear(300, 2)   (weight transposed)
    w3_ref  : (300, 2)  b3_ref: (300, 1)   decoder Linear(2, 300)
    w4t_ref : (300, 2)  b4_ref: (2,) SMEM  decoder Linear(300, 2)   (weight transposed)
    dec_ref : (2, TILE_N)  z_ref: (2, TILE_N)
    """
    x0 = x_ref[0:1, :]                                   # (1, TN)
    x1 = x_ref[1:2, :]                                   # (1, TN)

    # ---- encoder Linear(2 -> 300): two column-broadcast outer products (VPU) ----
    h1 = w1_ref[:, 0:1] * x0 + w1_ref[:, 1:2] * x1 + b1_ref[...]   # (300, TN)
    h1 = jnp.maximum(h1, 0.0)

    # ---- encoder Linear(300 -> 2): broadcast-multiply + sublane reduction ----
    e0 = jnp.sum(w2t_ref[:, 0:1] * h1, axis=0, keepdims=True) + b2_ref[0]   # (1, TN)
    e1 = jnp.sum(w2t_ref[:, 1:2] * h1, axis=0, keepdims=True) + b2_ref[1]   # (1, TN)

    # ---- softmax over the 2 latent features (fully unrolled, lane-dense) ----
    m = jnp.maximum(e0, e1)
    ex0 = jnp.exp(e0 - m)
    ex1 = jnp.exp(e1 - m)
    s = ex0 + ex1
    p0 = ex0 / s
    p1 = ex1 / s

    # ---- sharpen(p, T): p**(1/T) renormalized.  T is a static Python float. ----
    inv_t = 1.0 / SHARPEN_T
    if inv_t == 1.0:                       # softmax output already sums to 1
        z0, z1 = p0, p1
    else:
        if inv_t == 2.0:                   # T = 0.5 -> plain square, no generic pow
            q0, q1 = p0 * p0, p1 * p1
        else:
            q0, q1 = p0 ** inv_t, p1 ** inv_t
        qs = q0 + q1
        z0 = q0 / qs
        z1 = q1 / qs

    z_ref[0:1, :] = z0
    z_ref[1:2, :] = z1

    # ---- decoder Linear(2 -> 300) + ReLU ----
    h2 = w3_ref[:, 0:1] * z0 + w3_ref[:, 1:2] * z1 + b3_ref[...]   # (300, TN)
    h2 = jnp.maximum(h2, 0.0)

    # ---- decoder Linear(300 -> 2)  (no softmax in the spec's forward) ----
    d0 = jnp.sum(w4t_ref[:, 0:1] * h2, axis=0, keepdims=True) + b4_ref[0]
    d1 = jnp.sum(w4t_ref[:, 1:2] * h2, axis=0, keepdims=True) + b4_ref[1]
    dec_ref[0:1, :] = d0
    dec_ref[1:2, :] = d1


def init_params(key):
    """Mirrors initialize_weights(): Linear weight ~ N(0, 0.01), bias = 0.

    Weights are kept in PyTorch (out, in) layout; the wrapper re-layouts for the kernel.
    """
    ks = jax.random.split(key, 4)

    def linear(k, din, dout):
        w = jax.random.normal(k, (dout, din), jnp.float32) * 0.01
        b = jnp.zeros((dout,), jnp.float32)
        return w, b

    w1, b1 = linear(ks[0], INPUT_DIM, HIDDEN_DIM)   # encoder.0
    w2, b2 = linear(ks[1], HIDDEN_DIM, INPUT_DIM)   # encoder.2
    w3, b3 = linear(ks[2], INPUT_DIM, HIDDEN_DIM)   # decoder.0
    w4, b4 = linear(ks[3], HIDDEN_DIM, INPUT_DIM)   # decoder.2
    return (w1, b1, w2, b2, w3, b3, w4, b4)


def autoencoder2_forward(x, params, tile_n=TILE_N):
    """Returns (decoded, d_y), matching AutoEncoder2.forward()."""
    if x.size % INPUT_DIM != 0:
        raise ValueError("x.view(-1, input_dim) requires x.size divisible by input_dim")
    n = x.size // INPUT_DIM

    w1, b1, w2, b2, w3, b3, w4, b4 = params

    # Transposed, lane-dense working layout: batch on the lane axis.
    xt = x.reshape(n, INPUT_DIM).astype(jnp.float32).T          # (2, N)
    w2t = w2.T                                                  # (300, 2)
    w4t = w4.T                                                  # (300, 2)
    b1c = b1.reshape(HIDDEN_DIM, 1)
    b3c = b3.reshape(HIDDEN_DIM, 1)
    b2s = b2.reshape(INPUT_DIM)                                 # SMEM scalars
    b4s = b4.reshape(INPUT_DIM)

    grid = (pl.cdiv(n, tile_n),)

    act_in_spec = pl.BlockSpec((INPUT_DIM, tile_n), lambda i: (0, i))
    act_out_spec = pl.BlockSpec((INPUT_DIM, tile_n), lambda i: (0, i))

    # Small parameters: whole-array blocks with a constant index map -> resident in
    # VMEM, fetched once, no per-step DMA.
    w_spec = pl.BlockSpec((HIDDEN_DIM, INPUT_DIM), lambda i: (0, 0))
    b_col_spec = pl.BlockSpec((HIDDEN_DIM, 1), lambda i: (0, 0))
    smem_spec = pl.BlockSpec(memory_space=pltpu.MemorySpace.SMEM)

    dec_t, z_t = pl.pallas_call(
        _ae2_kernel,
        grid=grid,
        in_specs=[
            act_in_spec,   # x (2, N)
            w_spec,        # w1  (300, 2)
            b_col_spec,    # b1  (300, 1)
            w_spec,        # w2t (300, 2)
            smem_spec,     # b2  (2,)  SMEM
            w_spec,        # w3  (300, 2)
            b_col_spec,    # b3  (300, 1)
            w_spec,        # w4t (300, 2)
            smem_spec,     # b4  (2,)  SMEM
        ],
        out_specs=(act_out_spec, act_out_spec),
        out_shape=(jax.ShapeDtypeStruct((INPUT_DIM, n), jnp.float32),
                   jax.ShapeDtypeStruct((INPUT_DIM, n), jnp.float32)),
        compiler_params=pltpu.CompilerParams(
            dimension_semantics=("parallel",)),   # batch axis -> both TCs on v7x
    )(xt, w1, b1c, w2t, b2s, w3, b3c, w4t, b4s)

    # Transpose back to the caller-facing (N, features) layout.
    return dec_t.T, z_t.T


def _reference_forward(x, params):
    """Plain-JAX reference (f32-accumulating matmuls) for correctness checking."""
    w1, b1, w2, b2, w3, b3, w4, b4 = params
    hi = jax.lax.Precision.HIGHEST
    x2 = x.reshape(-1, INPUT_DIM).astype(jnp.float32)
    h = jnp.maximum(jnp.matmul(x2, w1.T, precision=hi) + b1, 0.0)
    e = jnp.matmul(h, w2.T, precision=hi) + b2
    p = jax.nn.softmax(e, axis=1)
    q = p ** (1.0 / SHARPEN_T)
    z = q / jnp.sum(q, axis=1, keepdims=True)
    h2 = jnp.maximum(jnp.matmul(z, w3.T, precision=hi) + b3, 0.0)
    dec = jnp.matmul(h2, w4.T, precision=hi) + b4
    return dec, z


if __name__ == "__main__":
    key = jax.random.PRNGKey(0)
    k_params, k_x = jax.random.split(key)

    params = init_params(k_params)
    # Input of shape (8, 128, 2); forward flattens it to (-1, input_dim) = (1024, 2),
    # giving 2 grid steps of 512 lanes each.
    x = jax.random.normal(k_x, (8, 128, INPUT_DIM), jnp.float32)

    decoded, z = jax.block_until_ready(autoencoder2_forward(x, params))
    ref_dec, ref_z = _reference_forward(x, params)

    assert decoded.shape == (1024, INPUT_DIM) and z.shape == (1024, INPUT_DIM)
    assert jnp.allclose(decoded, ref_dec, atol=1e-5, rtol=1e-5)
    assert jnp.allclose(z, ref_z, atol=1e-5, rtol=1e-5)
    print("KERNEL_OK")
</pallas_src>

<mosaic_0001>
module attributes {stable_mosaic.version = 11 : i64} {
  func.func @_ae2_kernel(%arg0: i32, %arg1: memref<2x512xf32, #tpu.memory_space<vmem>>, %arg2: memref<300x2xf32, #tpu.memory_space<vmem>>, %arg3: memref<300x1xf32, #tpu.memory_space<vmem>>, %arg4: memref<300x2xf32, #tpu.memory_space<vmem>>, %arg5: memref<2xf32, #tpu.memory_space<smem>>, %arg6: memref<300x2xf32, #tpu.memory_space<vmem>>, %arg7: memref<300x1xf32, #tpu.memory_space<vmem>>, %arg8: memref<300x2xf32, #tpu.memory_space<vmem>>, %arg9: memref<2xf32, #tpu.memory_space<smem>>, %arg10: memref<2x512xf32, #tpu.memory_space<vmem>>, %arg11: memref<2x512xf32, #tpu.memory_space<vmem>>) attributes {dimension_semantics = [#tpu.dimension_semantics<parallel>], iteration_bounds = array<i64: 2>, scalar_prefetch = 0 : i64, scratch_operands = 0 : i64, tpu.core_type = #tpu.core_type<tc>, window_params = [{transform_indices = @transform_0, window_bounds = array<i64: 2, 512>}, {pipeline_mode = #tpu.pipeline_mode<synchronous>, transform_indices = @transform_1, window_bounds = array<i64: 300, 2>}, {pipeline_mode = #tpu.pipeline_mode<synchronous>, transform_indices = @transform_2, window_bounds = array<i64: 300, 1>}, {pipeline_mode = #tpu.pipeline_mode<synchronous>, transform_indices = @transform_3, window_bounds = array<i64: 300, 2>}, {transform_indices = @transform_4, window_bounds = array<i64: 2>}, {pipeline_mode = #tpu.pipeline_mode<synchronous>, transform_indices = @transform_5, window_bounds = array<i64: 300, 2>}, {pipeline_mode = #tpu.pipeline_mode<synchronous>, transform_indices = @transform_6, window_bounds = array<i64: 300, 1>}, {pipeline_mode = #tpu.pipeline_mode<synchronous>, transform_indices = @transform_7, window_bounds = array<i64: 300, 2>}, {transform_indices = @transform_8, window_bounds = array<i64: 2>}, {transform_indices = @transform_9, window_bounds = array<i64: 2, 512>}, {transform_indices = @transform_10, window_bounds = array<i64: 2, 512>}]} {
    %c0 = arith.constant 0 : index
    %c0_0 = arith.constant 0 : index
    %0 = vector.load %arg1[%c0, %c0_0] : memref<2x512xf32, #tpu.memory_space<vmem>>, vector<1x512xf32>
    %c1 = arith.constant 1 : index
    %c0_1 = arith.constant 0 : index
    %1 = vector.load %arg1[%c1, %c0_1] : memref<2x512xf32, #tpu.memory_space<vmem>>, vector<1x512xf32>
    %c0_2 = arith.constant 0 : index
    %c0_3 = arith.constant 0 : index
    %2 = vector.load %arg2[%c0_2, %c0_3] : memref<300x2xf32, #tpu.memory_space<vmem>>, vector<300x1xf32>
    %3 = vector.broadcast %2 : vector<300x1xf32> to vector<300x512xf32>
    %4 = vector.broadcast %0 : vector<1x512xf32> to vector<300x512xf32>
    %5 = arith.mulf %3, %4 : vector<300x512xf32>
    %c0_4 = arith.constant 0 : index
    %c1_5 = arith.constant 1 : index
    %6 = vector.load %arg2[%c0_4, %c1_5] : memref<300x2xf32, #tpu.memory_space<vmem>>, vector<300x1xf32>
    %7 = vector.broadcast %6 : vector<300x1xf32> to vector<300x512xf32>
    %8 = vector.broadcast %1 : vector<1x512xf32> to vector<300x512xf32>
    %9 = arith.mulf %7, %8 : vector<300x512xf32>
    %10 = arith.addf %5, %9 : vector<300x512xf32>
    %c0_6 = arith.constant 0 : index
    %c0_7 = arith.constant 0 : index
    %11 = vector.load %arg3[%c0_6, %c0_7] : memref<300x1xf32, #tpu.memory_space<vmem>>, vector<300x1xf32>
    %12 = vector.broadcast %11 : vector<300x1xf32> to vector<300x512xf32>
    %13 = arith.addf %10, %12 : vector<300x512xf32>
    %cst = arith.constant 0.000000e+00 : f32
    %14 = vector.broadcast %cst : f32 to vector<300x512xf32>
    %15 = arith.maximumf %13, %14 : vector<300x512xf32>
    %c0_8 = arith.constant 0 : index
    %c0_9 = arith.constant 0 : index
    %16 = vector.load %arg4[%c0_8, %c0_9] : memref<300x2xf32, #tpu.memory_space<vmem>>, vector<300x1xf32>
    %17 = vector.broadcast %16 : vector<300x1xf32> to vector<300x512xf32>
    %18 = arith.mulf %17, %15 : vector<300x512xf32>
    %cst_10 = arith.constant dense<0.000000e+00> : vector<512xf32>
    %19 = vector.multi_reduction <add>, %18, %cst_10 [0] : vector<300x512xf32> to vector<512xf32>
    %20 = vector.shape_cast %19 : vector<512xf32> to vector<1x512xf32>
    %c0_11 = arith.constant 0 : index
    %21 = memref.load %arg5[%c0_11] : memref<2xf32, #tpu.memory_space<smem>>
    %22 = vector.broadcast %21 : f32 to vector<1x512xf32>
    %23 = arith.addf %20, %22 : vector<1x512xf32>
    %c0_12 = arith.constant 0 : index
    %c1_13 = arith.constant 1 : index
    %24 = vector.load %arg4[%c0_12, %c1_13] : memref<300x2xf32, #tpu.memory_space<vmem>>, vector<300x1xf32>
    %25 = vector.broadcast %24 : vector<300x1xf32> to vector<300x512xf32>
    %26 = arith.mulf %25, %15 : vector<300x512xf32>
    %cst_14 = arith.constant dense<0.000000e+00> : vector<512xf32>
    %27 = vector.multi_reduction <add>, %26, %cst_14 [0] : vector<300x512xf32> to vector<512xf32>
    %28 = vector.shape_cast %27 : vector<512xf32> to vector<1x512xf32>
    %c1_15 = arith.constant 1 : index
    %29 = memref.load %arg5[%c1_15] : memref<2xf32, #tpu.memory_space<smem>>
    %30 = vector.broadcast %29 : f32 to vector<1x512xf32>
    %31 = arith.addf %28, %30 : vector<1x512xf32>
    %32 = arith.maximumf %23, %31 : vector<1x512xf32>
    %33 = arith.subf %23, %32 : vector<1x512xf32>
    %34 = math.exp %33 : vector<1x512xf32>
    %35 = arith.subf %31, %32 : vector<1x512xf32>
    %36 = math.exp %35 : vector<1x512xf32>
    %37 = arith.addf %34, %36 : vector<1x512xf32>
    %38 = arith.divf %34, %37 : vector<1x512xf32>
    %39 = arith.divf %36, %37 : vector<1x512xf32>
    %40 = arith.mulf %38, %38 : vector<1x512xf32>
    %41 = arith.mulf %39, %39 : vector<1x512xf32>
    %42 = arith.addf %40, %41 : vector<1x512xf32>
    %43 = arith.divf %40, %42 : vector<1x512xf32>
    %44 = arith.divf %41, %42 : vector<1x512xf32>
    %c0_16 = arith.constant 0 : index
    %c0_17 = arith.constant 0 : index
    %45 = vector.load %arg11[%c0_16, %c0_17] : memref<2x512xf32, #tpu.memory_space<vmem>>, vector<1x512xf32>
    tpu.vector_store %arg11[%c0_16, %c0_17], %43 {strides = array<i32>} : memref<2x512xf32, #tpu.memory_space<vmem>>, vector<1x512xf32>,
    %c1_18 = arith.constant 1 : index
    %c0_19 = arith.constant 0 : index
    %46 = vector.load %arg11[%c1_18, %c0_19] : memref<2x512xf32, #tpu.memory_space<vmem>>, vector<1x512xf32>
    tpu.vector_store %arg11[%c1_18, %c0_19], %44 {strides = array<i32>} : memref<2x512xf32, #tpu.memory_space<vmem>>, vector<1x512xf32>,
    %c0_20 = arith.constant 0 : index
    %c0_21 = arith.constant 0 : index
    %47 = vector.load %arg6[%c0_20, %c0_21] : memref<300x2xf32, #tpu.memory_space<vmem>>, vector<300x1xf32>
    %48 = vector.broadcast %47 : vector<300x1xf32> to vector<300x512xf32>
    %49 = vector.broadcast %43 : vector<1x512xf32> to vector<300x512xf32>
    %50 = arith.mulf %48, %49 : vector<300x512xf32>
    %c0_22 = arith.constant 0 : index
    %c1_23 = arith.constant 1 : index
    %51 = vector.load %arg6[%c0_22, %c1_23] : memref<300x2xf32, #tpu.memory_space<vmem>>, vector<300x1xf32>
    %52 = vector.broadcast %51 : vector<300x1xf32> to vector<300x512xf32>
    %53 = vector.broadcast %44 : vector<1x512xf32> to vector<300x512xf32>
    %54 = arith.mulf %52, %53 : vector<300x512xf32>
    %55 = arith.addf %50, %54 : vector<300x512xf32>
    %c0_24 = arith.constant 0 : index
    %c0_25 = arith.constant 0 : index
    %56 = vector.load %arg7[%c0_24, %c0_25] : memref<300x1xf32, #tpu.memory_space<vmem>>, vector<300x1xf32>
    %57 = vector.broadcast %56 : vector<300x1xf32> to vector<300x512xf32>
    %58 = arith.addf %55, %57 : vector<300x512xf32>
    %cst_26 = arith.constant 0.000000e+00 : f32
    %59 = vector.broadcast %cst_26 : f32 to vector<300x512xf32>
    %60 = arith.maximumf %58, %59 : vector<300x512xf32>
    %c0_27 = arith.constant 0 : index
    %c0_28 = arith.constant 0 : index
    %61 = vector.load %arg8[%c0_27, %c0_28] : memref<300x2xf32, #tpu.memory_space<vmem>>, vector<300x1xf32>
    %62 = vector.broadcast %61 : vector<300x1xf32> to vector<300x512xf32>
    %63 = arith.mulf %62, %60 : vector<300x512xf32>
    %cst_29 = arith.constant dense<0.000000e+00> : vector<512xf32>
    %64 = vector.multi_reduction <add>, %63, %cst_29 [0] : vector<300x512xf32> to vector<512xf32>
    %65 = vector.shape_cast %64 : vector<512xf32> to vector<1x512xf32>
    %c0_30 = arith.constant 0 : index
    %66 = memref.load %arg9[%c0_30] : memref<2xf32, #tpu.memory_space<smem>>
    %67 = vector.broadcast %66 : f32 to vector<1x512xf32>
    %68 = arith.addf %65, %67 : vector<1x512xf32>
    %c0_31 = arith.constant 0 : index
    %c1_32 = arith.constant 1 : index
    %69 = vector.load %arg8[%c0_31, %c1_32] : memref<300x2xf32, #tpu.memory_space<vmem>>, vector<300x1xf32>
    %70 = vector.broadcast %69 : vector<300x1xf32> to vector<300x512xf32>
    %71 = arith.mulf %70, %60 : vector<300x512xf32>
    %cst_33 = arith.constant dense<0.000000e+00> : vector<512xf32>
    %72 = vector.multi_reduction <add>, %71, %cst_33 [0] : vector<300x512xf32> to vector<512xf32>
    %73 = vector.shape_cast %72 : vector<512xf32> to vector<1x512xf32>
    %c1_34 = arith.constant 1 : index
    %74 = memref.load %arg9[%c1_34] : memref<2xf32, #tpu.memory_space<smem>>
    %75 = vector.broadcast %74 : f32 to vector<1x512xf32>
    %76 = arith.addf %73, %75 : vector<1x512xf32>
    %c0_35 = arith.constant 0 : index
    %c0_36 = arith.constant 0 : index
    %77 = vector.load %arg10[%c0_35, %c0_36] : memref<2x512xf32, #tpu.memory_space<vmem>>, vector<1x512xf32>
    tpu.vector_store %arg10[%c0_35, %c0_36], %68 {strides = array<i32>} : memref<2x512xf32, #tpu.memory_space<vmem>>, vector<1x512xf32>,
    %c1_37 = arith.constant 1 : index
    %c0_38 = arith.constant 0 : index
    %78 = vector.load %arg10[%c1_37, %c0_38] : memref<2x512xf32, #tpu.memory_space<vmem>>, vector<1x512xf32>
    tpu.vector_store %arg10[%c1_37, %c0_38], %76 {strides = array<i32>} : memref<2x512xf32, #tpu.memory_space<vmem>>, vector<1x512xf32>,
    return
  }
  func.func @transform_0(%arg0: i32) -> (i32, i32) {
    %c0_i32 = arith.constant 0 : i32
    %c0_i32_0 = arith.constant 0 : i32
    return %c0_i32, %arg0 : i32, i32
  }
  func.func @transform_1(%arg0: i32) -> (i32, i32) {
    %c0_i32 = arith.constant 0 : i32
    %c0_i32_0 = arith.constant 0 : i32
    %c0_i32_1 = arith.constant 0 : i32
    return %c0_i32, %c0_i32_0 : i32, i32
  }
  func.func @transform_2(%arg0: i32) -> (i32, i32) {
    %c0_i32 = arith.constant 0 : i32
    %c0_i32_0 = arith.constant 0 : i32
    %c0_i32_1 = arith.constant 0 : i32
    return %c0_i32, %c0_i32_0 : i32, i32
  }
  func.func @transform_3(%arg0: i32) -> (i32, i32) {
    %c0_i32 = arith.constant 0 : i32
    %c0_i32_0 = arith.constant 0 : i32
    %c0_i32_1 = arith.constant 0 : i32
    return %c0_i32, %c0_i32_0 : i32, i32
  }
  func.func @transform_4(%arg0: i32) -> i32 {
    %c0_i32 = arith.constant 0 : i32
    %c0_i32_0 = arith.constant 0 : i32
    return %c0_i32 : i32
  }
  func.func @transform_5(%arg0: i32) -> (i32, i32) {
    %c0_i32 = arith.constant 0 : i32
    %c0_i32_0 = arith.constant 0 : i32
    %c0_i32_1 = arith.constant 0 : i32
    return %c0_i32, %c0_i32_0 : i32, i32
  }
  func.func @transform_6(%arg0: i32) -> (i32, i32) {
    %c0_i32 = arith.constant 0 : i32
    %c0_i32_0 = arith.constant 0 : i32
    %c0_i32_1 = arith.constant 0 : i32
    return %c0_i32, %c0_i32_0 : i32, i32
  }
  func.func @transform_7(%arg0: i32) -> (i32, i32) {
    %c0_i32 = arith.constant 0 : i32
    %c0_i32_0 = arith.constant 0 : i32
    %c0_i32_1 = arith.constant 0 : i32
    return %c0_i32, %c0_i32_0 : i32, i32
  }
  func.func @transform_8(%arg0: i32) -> i32 {
    %c0_i32 = arith.constant 0 : i32
    %c0_i32_0 = arith.constant 0 : i32
    return %c0_i32 : i32
  }
  func.func @transform_9(%arg0: i32) -> (i32, i32) {
    %c0_i32 = arith.constant 0 : i32
    %c0_i32_0 = arith.constant 0 : i32
    return %c0_i32, %arg0 : i32, i32
  }
  func.func @transform_10(%arg0: i32) -> (i32, i32) {
    %c0_i32 = arith.constant 0 : i32
    %c0_i32_0 = arith.constant 0 : i32
    return %c0_i32, %arg0 : i32, i32
  }
}

</mosaic_0001>

<bundles_post_ra>
// kernel: tpu_custom_call.1
= control target key start
LH: loop header
LB: loop body
LE: loop exit
PB: predicated region body
PF: predicated region fallthrough
CT: control target
= control target key end

     0   :  { %s15357_s0 = inlined_call_operand.vmem [shape: f32[2,1024], index: 0, kind: input, shape index: {}]   ;;  %s15358_s1 = inlined_call_operand.vmem [shape: f32[300,2], index: 1, kind: input, shape index: {}]   ;;  %s15359_s2 = inlined_call_operand.vmem [shape: f32[300,1], index: 2, kind: input, shape index: {}]   ;;  %s15360_s3 = inlined_call_operand.vmem [shape: f32[300,2], index: 3, kind: input, shape index: {}]   ;;  %s15361_s4 = inlined_call_operand.vmem [shape: f32[2], index: 4, kind: input, shape index: {}]   ;;  %s15362_s5 = inlined_call_operand.vmem [shape: f32[300,2], index: 5, kind: input, shape index: {}]   ;;  %s15363_s6 = inlined_call_operand.vmem [shape: f32[300,1], index: 6, kind: input, shape index: {}]   ;;  %s15364_s7 = inlined_call_operand.vmem [shape: f32[300,2], index: 7, kind: input, shape index: {}]   ;;  %s15365_s8 = inlined_call_operand.vmem [shape: f32[2], index: 8, kind: input, shape index: {}]   ;;  %s15366_s9 = inlined_call_operand.hbm [shape: f32[2,1024], index: 9, kind: output, shape index: {0}]   ;;  %s15367_s10 = inlined_call_operand.hbm [shape: f32[2,1024], index: 10, kind: output, shape index: {1}]  }
   0x1   :  { %16007 = sst [smem:[#allocation329_spill]] %s15357_s0 }
   0x2   :  { %16008 = sst [smem:[#allocation330_spill]] %s15358_s1 }
   0x3   :  { %16009 = sst [smem:[#allocation331_spill]] %s15359_s2 }
   0x4   :  { %16 = vsyncpa [#allocation4], 0 }
   0x5   :  { %17 = vsyncpa [#allocation6], 0 }
   0x6   :  { %18 = vsyncpa [#allocation3], 0 }
   0x7   :  { %20 = vsyncpa [#allocation3 + $0x1], 0 }
   0x8   :  { %21 = vsyncpa [#allocation9], 0 }
   0x9   :  { %23 = vsyncpa [#allocation9 + $0x1], 0  ;;  %s6052_s13 = smov 0   ;;  %s6054_s14 = smov 0  }
   0xa   :  { %s6056_s15 = smov 0   ;;  %s6058_s16 = smov 0  }
   0xb LB: > { %s6073_s17 = sadd.s32 4294967295, %s5991_s16   ;;  %s5634_s18 = sadd.s32 4294967294, %s5991_s16   ;;  %s5991_s16 = sphi %s6058_s16, %s18790_s16   ;;  %s5987_s15 = sphi %s6056_s15, %s18789_s15   ;;  %s5983_s14 = sphi %s6054_s14, %s18788_s14   ;;  %s5979_s13 = sphi %s6052_s13, %s18787_s13  }
   0xc   : > { %s6077_s19 = sadd.s32 1, %s5991_s16   ;;  %s230_s20 = sadd.s32 1, %s5987_s15 }
   0xd   : > { %s227_s21 = ssub.s32 %s5991_s16, %s6077_s19  ;;  %p240_p0 = scmp.ne.s32.totalorder %s5987_s15, %s5983_s14 }
   0xe   : > { %p228_p1 = scmp.eq.s32.totalorder %s227_s21, 0  ;;  %p241_p2 = scmp.eq.s32.totalorder %s6073_s17, 1 }
   0xf   : > { %p246_p3 = scmp.ne.s32.totalorder %s5983_s14, %s5979_s13  ;;  %p247_p4 = scmp.eq.s32.totalorder %s5634_s18, 1 }
  0x10   : > { %s6088_s22 = scalar_select %p228_p1, %s5987_s15, %s230_s20  }
  0x11   : > { %p6090_p5 = por %p241_p2, %p240_p0  ;;  %p6094_p6 = por %p247_p4, %p246_p3 }
  0x12   : > { %p5635_p7 = scmp.ge.s32.totalorder %s5991_s16, 1  ;;  %p280_p8 = scmp.lt.s32.totalorder %s5991_s16, 3 }
  0x13   : > { %p5687_p9 = scmp.eq.s32.totalorder %s6073_s17, 0  ;;  %s301_s27 = sshll.u32 %s15361_s4, 4  ;;  %s302_s27 = int_to_ptr.vmem [resolvable:$true] %s301_s27 }
  0x14   : > { %p281_p10 = pnand %p5635_p7, %p280_p8  ;;  %s320_s30 = sshll.u32 %s15365_s8, 4  ;;  %s321_s30 = int_to_ptr.vmem [resolvable:$true] %s320_s30 }
  0x15   : > { %s5993_s11 = smov [#allocation2]   ;;  %s5994_s12 = smov [#allocation5]  }
  0x16   : > { %p5673_p11 = pneg %p281_p10 }
  0x17   : > { %342 = sbr.rel (%p281_p10) target bundleno = 1961 (0x7a9), region = 56 }
  0x18   : > { %p5674_p12 = pnand %p5687_p9, %p5673_p11 }
  0x1a   : > { %5676 = dma.vmem_to_smem (!%p5674_p12), %s302_s27, 16, %s5993_s11, [#allocation4]  }
  0x1b   : > { %5679 = dma.vmem_to_smem (!%p5674_p12), %s321_s30, 16, %s5994_s12, [#allocation6]  }
  0x1c   : > { %5962 = dma.done.wait (%p5687_p9), [#allocation4], 16  }
  0x1d   : > { %5964 = vsyncadd (%p5687_p9), [#allocation4], 4294967280 }
  0x1e   : > { %5966 = dma.done.wait (%p5687_p9), [#allocation6], 16  }
  0x1f   : > { %5968 = vsyncadd (%p5687_p9), [#allocation6], 4294967280 }
  0x20   : > { %354 = sfence }
  0x21   : > { %s16012_s1 = sld [smem:[#allocation330_spill]]  ;;  %v15368_v3 = vmov 0   ;;  %v15370_v40 = vmov 1   ;;  %s5644_s21 = sshll.u32 %s6073_s17, 2  ;;  %vm2205_vm0 = vcmask 1043456  }
  0x22   : > { %5730 = vset.pattern.permute.xlu2 %v15368_v3  ;;  %5729 = vset.pattern.permute.xlu1 %v15368_v3  ;;  %s16013_s2 = sld [smem:[#allocation331_spill]]  ;;  %p393_p13 = scmp.lt.s32.totalorder %s5644_s21, 7 }
  0x23   : > { %5728 = vset.pattern.permute.xlu0 %v15368_v3  ;;  %s16139_s0 = sld [smem:[#allocation329_spill]]  ;;  %s15264_s20 = sand.u32 1, %s5983_s14  }
  0x24   : > { %s18792_s21 = smov (!%p393_p13, %s5644_s21), 7  ;;  %s11051_s11 = sld [smem:[#allocation2]] }
  0x25   : > { %s5645_s25 = sshll.u32 %s18792_s21, 1  ;;  %s5647_s18 = sld [smem:[#allocation2 + $0x1]] }
  0x26   : > { %s15236_s12 = sld [smem:[#allocation5]]  ;;  %s5642_s26 = sshll.u32 %s15264_s20, 3 }
  0x27   : > { %v6120_v0 = vld [vmem:[%s16012_s1 + $0x20] sm:$0xff]  ;;  %v6125_v1 = vld [vmem:[%s16012_s1 + $0x10] sm:$0xff]  ;;  %v6141_v4 = vld [vmem:[%s16012_s1 + $0x28] sm:$0xff]  ;;  %s391_s21 = scalar_lea.vmem [#allocation8], %s5642_s26 }
  0x28   : > { %v6130_v2 = vld [vmem:[%s16012_s1] sm:$0xff]  ;;  %463 = vperm.xlu2 %5730, %v6120_v0   ;;  %453 = vperm.xlu1 %5729, %v6125_v1   ;;  %v6146_v5 = vld [vmem:[%s16012_s1 + $0x18] sm:$0xff]  ;;  %v404_v6 = vld [vmem:[%s16012_s1 + $0x8] sm:$0xff] }
  0x29   : > { %443 = vperm.xlu0 %5728, %v6130_v2   ;;  %v6156_v7 = vld [vmem:[%s16012_s1 + $0x40] sm:$0xff]  ;;  %v6161_v8 = vld [vmem:[%s16012_s1 + $0x38] sm:$0xff]  ;;  %v409_v9 = vld [vmem:[%s16012_s1 + $0x30] sm:$0xff]  ;;  %s7101_s28 = scalar_lea.vmem %s16139_s0, %s5645_s25  ;;  %s5659_s25 = sshll.u32 %s6073_s17, 3 }
  0x2a   : > { %v6171_v10 = vld [vmem:[%s16012_s1 + $0x58] sm:$0xff]  ;;  %v6176_v11 = vld [vmem:[%s16012_s1 + $0x50] sm:$0xff]  ;;  %v412_v12 = vld [vmem:[%s16012_s1 + $0x48] sm:$0xff]  ;;  %s15278_s30 = scalar_lea.hbm %s15367_s10, %s5659_s25  ;;  %s15301_s27 = scalar_lea.hbm %s15366_s9, %s5659_s25 }
  0x2b   : > { %v6186_v13 = vld [vmem:[%s16012_s1 + $0x70] sm:$0xff]  ;;  %v6191_v14 = vld [vmem:[%s16012_s1 + $0x68] sm:$0xff]  ;;  %v415_v15 = vld [vmem:[%s16012_s1 + $0x60] sm:$0xff]  ;;  %s5504_s29 = sshll.u32 %s15301_s27, 4  ;;  %s5489_s25 = scalar_lea.sflag [#allocation9], %s15264_s20  ;;  %s5505_s29 = int_to_ptr.hbm [resolvable:$true] %s5504_s29 }
  0x2c   : > { %v6201_v16 = vld [vmem:[%s16012_s1 + $0x88] sm:$0xff]  ;;  %v6206_v17 = vld [vmem:[%s16012_s1 + $0x80] sm:$0xff]  ;;  %v418_v18 = vld [vmem:[%s16012_s1 + $0x78] sm:$0xff]  ;;  %s5909_s27 = scalar_lea.hbm %s15367_s10, 16 }
  0x2d   : > { %v6216_v19 = vld [vmem:[%s16012_s1 + $0xa0] sm:$0xff]  ;;  %v6221_v20 = vld [vmem:[%s16012_s1 + $0x98] sm:$0xff]  ;;  %v421_v21 = vld [vmem:[%s16012_s1 + $0x90] sm:$0xff] }
  0x2e   : > { %v6231_v22 = vld [vmem:[%s16012_s1 + $0xb8] sm:$0xff]  ;;  %v6236_v23 = vld [vmem:[%s16012_s1 + $0xb0] sm:$0xff]  ;;  %v424_v24 = vld [vmem:[%s16012_s1 + $0xa8] sm:$0xff] }
  0x2f   : > { %v6246_v25 = vld [vmem:[%s16012_s1 + $0xd0] sm:$0xff]  ;;  %v6251_v26 = vld [vmem:[%s16012_s1 + $0xc8] sm:$0xff]  ;;  %v427_v27 = vld [vmem:[%s16012_s1 + $0xc0] sm:$0xff] }
  0x30   : > { %468 = vperm.xlu2 %5730, %v6141_v4   ;;  %458 = vperm.xlu1 %5729, %v6146_v5   ;;  %v6261_v28 = vld [vmem:[%s16012_s1 + $0xe8] sm:$0xff]  ;;  %v6266_v29 = vld [vmem:[%s16012_s1 + $0xe0] sm:$0xff]  ;;  %v430_v30 = vld [vmem:[%s16012_s1 + $0xd8] sm:$0xff] }
  0x31   : > { %448 = vperm.xlu0 %5728, %v404_v6   ;;  %v6276_v31 = vld [vmem:[%s16012_s1 + $0x100] sm:$0xff]  ;;  %v6281_v32 = vld [vmem:[%s16012_s1 + $0xf8] sm:$0xff]  ;;  %v433_v33 = vld [vmem:[%s16012_s1 + $0xf0] sm:$0xff] }
  0x32   : > { %v6291_v34 = vld [vmem:[%s16012_s1 + $0x118] sm:$0xff]  ;;  %v6296_v35 = vld [vmem:[%s16012_s1 + $0x110] sm:$0xff]  ;;  %v436_v36 = vld [vmem:[%s16012_s1 + $0x108] sm:$0xff] }
  0x33   : > { %v6308_v38 = vld [vmem:[%s16012_s1 + $0x128] sm:$0xf]  ;;  %v439_v39 = vld [vmem:[%s16012_s1 + $0x120] sm:$0xff]  ;;  %v1263_v44 = vld [vmem:[%s16013_s2 + $0x30] sm:$0xff] }
  0x34   : > { %v1258_v42 = vld [vmem:[%s16013_s2 + $0x8] sm:$0xff]  ;;  %v1269_v52 = vld [vmem:[%s16013_s2 + $0x60] sm:$0xff]  ;;  %v1272_v56 = vld [vmem:[%s16013_s2 + $0x78] sm:$0xff] }
  0x35   : > { %v1266_v48 = vld [vmem:[%s16013_s2 + $0x48] sm:$0xff]  ;;  %v1275_v60 = vld [vmem:[%s16013_s2 + $0x90] sm:$0xff] }
  0x38   : > { %483 = vperm.xlu2 %5730, %v6156_v7   ;;  %478 = vperm.xlu1 %5729, %v6161_v8  }
  0x39   : > { %473 = vperm.xlu0 %5728, %v409_v9   ;;  %v1284_v9 = vld [vmem:[%s16013_s2 + $0xd8] sm:$0xff] }
  0x40   : > { %498 = vperm.xlu2 %5730, %v6171_v10   ;;  %493 = vperm.xlu1 %5729, %v6176_v11  }
  0x41   : > { %488 = vperm.xlu0 %5728, %v412_v12  }
  0x48   : > { %513 = vperm.xlu2 %5730, %v6186_v13   ;;  %508 = vperm.xlu1 %5729, %v6191_v14  }
  0x49   : > { %503 = vperm.xlu0 %5728, %v415_v15  }
  0x50   : > { %528 = vperm.xlu2 %5730, %v6201_v16   ;;  %523 = vperm.xlu1 %5729, %v6206_v17  }
  0x51   : > { %518 = vperm.xlu0 %5728, %v418_v18  }
  0x58   : > { %543 = vperm.xlu2 %5730, %v6216_v19   ;;  %538 = vperm.xlu1 %5729, %v6221_v20  }
  0x59   : > { %533 = vperm.xlu0 %5728, %v421_v21   ;;  %v1293_v21 = vld [vmem:[%s16013_s2 + $0x120] sm:$0xff] }
  0x60   : > { %558 = vperm.xlu2 %5730, %v6231_v22   ;;  %553 = vperm.xlu1 %5729, %v6236_v23  }
  0x61   : > { %548 = vperm.xlu0 %5728, %v424_v24  }
  0x68   : > { %573 = vperm.xlu2 %5730, %v6246_v25   ;;  %568 = vperm.xlu1 %5729, %v6251_v26  }
  0x69   : > { %563 = vperm.xlu0 %5728, %v427_v27  }
  0x70   : > { %588 = vperm.xlu2 %5730, %v6261_v28   ;;  %583 = vperm.xlu1 %5729, %v6266_v29  }
  0x71   : > { %578 = vperm.xlu0 %5728, %v430_v30   ;;  %v6467_v30 = vld [vmem:[%s15360_s3 + $0x20] sm:$0xff] }
  0x78   : > { %603 = vperm.xlu2 %5730, %v6276_v31   ;;  %598 = vperm.xlu1 %5729, %v6281_v32  }
  0x79   : > { %593 = vperm.xlu0 %5728, %v433_v33  }
  0x80   : > { %618 = vperm.xlu2 %5730, %v6291_v34   ;;  %613 = vperm.xlu1 %5729, %v6296_v35  }
  0x81   : > { %608 = vperm.xlu0 %5728, %v436_v36   ;;  %v1796_v36 = vld [vmem:[%s15360_s3 + $0x38] sm:$0xff] }
  0x82   : > { %v6303_v37 = vpop.permute.xlu2 %463 }
  0x88   : > { %5731 = vset.pattern.permute.xlu2 %v15370_v40  ;;  %628 = vperm.xlu1 %5729, %v6308_v38  }
  0x89   : > { %623 = vperm.xlu0 %5728, %v439_v39   ;;  %793 = vperm.xlu2 %5731, %v6130_v2   ;;  %v1262_v39 = vld [vmem:[%s16013_s2 + $0x28] sm:$0xff] }
  0x8a   : > { %v6316_v41 = vpop.permute.xlu2 %468 }
  0x90   : > { %5732 = vset.pattern.permute.xlu1 %v15370_v40  ;;  %v1276_v40 = vld [vmem:[%s16013_s2 + $0x98] sm:$0xff] }
  0x91   : > { %1302 = vperm.xlu0 %5728, %v1258_v42   ;;  %801 = vperm.xlu1 %5732, %v6125_v1  }
  0x92   : > { %805 = vperm.xlu2 %5731, %v6146_v5   ;;  %v6324_v43 = vpop.permute.xlu2 %483  ;;  %v1281_v5 = vld [vmem:[%s16013_s2 + $0xc0] sm:$0xff] }
  0x99   : > { %1327 = vperm.xlu0 %5728, %v1263_v44   ;;  %809 = vperm.xlu1 %5732, %v6120_v0   ;;  %v1278_v0 = vld [vmem:[%s16013_s2 + $0xa8] sm:$0xff] }
  0x9a   : > { %813 = vperm.xlu2 %5731, %v6141_v4   ;;  %v6331_v45 = vpop.permute.xlu2 %498  ;;  %v6333_v46 = vpop.permute.xlu1 %453 }
  0x9b   : > { %v6335_v47 = vpop.permute.xlu0 %443 }
  0xa1   : > { %1342 = vperm.xlu0 %5728, %v1266_v48   ;;  %821 = vperm.xlu1 %5732, %v6161_v8  }
  0xa2   : > { %825 = vperm.xlu2 %5731, %v6156_v7   ;;  %v6342_v49 = vpop.permute.xlu2 %513  ;;  %v6344_v50 = vpop.permute.xlu1 %458 }
  0xa3   : > { %v6346_v51 = vpop.permute.xlu0 %448 }
  0xa9   : > { %1357 = vperm.xlu0 %5728, %v1269_v52   ;;  %833 = vperm.xlu1 %5732, %v6176_v11   ;;  %v1799_v52 = vld [vmem:[%s15360_s3 + $0x50] sm:$0xff] }
  0xaa   : > { %837 = vperm.xlu2 %5731, %v6171_v10   ;;  %v6353_v53 = vpop.permute.xlu2 %528  ;;  %v6355_v54 = vpop.permute.xlu1 %478 }
  0xab   : > { %v6357_v55 = vpop.permute.xlu0 %473 }
  0xb1   : > { %1372 = vperm.xlu0 %5728, %v1272_v56   ;;  %845 = vperm.xlu1 %5732, %v6191_v14   ;;  %v1264_v56 = vld [vmem:[%s16013_s2 + $0x38] sm:$0xff] }
  0xb2   : > { %849 = vperm.xlu2 %5731, %v6186_v13   ;;  %v6364_v57 = vpop.permute.xlu2 %543  ;;  %v6366_v58 = vpop.permute.xlu1 %493  ;;  %v1287_v13 = vld [vmem:[%s16013_s2 + $0xf0] sm:$0xff] }
  0xb3   : > { %v6368_v59 = vpop.permute.xlu0 %488 }
  0xb9   : > { %1387 = vperm.xlu0 %5728, %v1275_v60   ;;  %857 = vperm.xlu1 %5732, %v6206_v17   ;;  %v1290_v17 = vld [vmem:[%s16013_s2 + $0x108] sm:$0xff]  ;;  %v1265_v60 = vld [vmem:[%s16013_s2 + $0x40] sm:$0xff] }
  0xba   : > { %861 = vperm.xlu2 %5731, %v6201_v16   ;;  %v6375_v61 = vpop.permute.xlu2 %558  ;;  %v6377_v62 = vpop.permute.xlu1 %508 }
  0xbb   : > { %v6379_v63 = vpop.permute.xlu0 %503 }
  0xc1   : > { %1402 = vperm.xlu0 %5728, %v1278_v0   ;;  %869 = vperm.xlu1 %5732, %v6221_v20  }
  0xc2   : > { %873 = vperm.xlu2 %5731, %v6216_v19   ;;  %v6386_v1 = vpop.permute.xlu2 %573  ;;  %v6388_v2 = vpop.permute.xlu1 %523 }
  0xc3   : > { %v6390_v4 = vpop.permute.xlu0 %518 }
  0xc9   : > { %1417 = vperm.xlu0 %5728, %v1281_v5   ;;  %881 = vperm.xlu1 %5732, %v6236_v23  }
  0xca   : > { %885 = vperm.xlu2 %5731, %v6231_v22   ;;  %v6397_v6 = vpop.permute.xlu2 %588  ;;  %v6399_v7 = vpop.permute.xlu1 %538 }
  0xcb   : > { %v6401_v8 = vpop.permute.xlu0 %533 }
  0xd1   : > { %1432 = vperm.xlu0 %5728, %v1284_v9   ;;  %893 = vperm.xlu1 %5732, %v6251_v26   ;;  %v1257_v26 = vld [vmem:[%s16013_s2] sm:$0xff] }
  0xd2   : > { %897 = vperm.xlu2 %5731, %v6246_v25   ;;  %v6408_v10 = vpop.permute.xlu2 %603  ;;  %v6410_v11 = vpop.permute.xlu1 %553  ;;  %v6450_v25 = vld [vmem:[%s15360_s3 + $0x8] sm:$0xff] }
  0xd3   : > { %v6412_v12 = vpop.permute.xlu0 %548 }
  0xd9   : > { %1447 = vperm.xlu0 %5728, %v1287_v13   ;;  %905 = vperm.xlu1 %5732, %v6266_v29   ;;  %v1802_v13 = vld [vmem:[%s15360_s3 + $0x68] sm:$0xff] }
  0xda   : > { %909 = vperm.xlu2 %5731, %v6261_v28   ;;  %v6419_v14 = vpop.permute.xlu2 %618  ;;  %v6421_v15 = vpop.permute.xlu1 %568 }
  0xdb   : > { %v6423_v16 = vpop.permute.xlu0 %563 }
  0xe1   : > { %1462 = vperm.xlu0 %5728, %v1290_v17   ;;  %917 = vperm.xlu1 %5732, %v6281_v32   ;;  %v1260_v32 = vld [vmem:[%s16013_s2 + $0x18] sm:$0xff]  ;;  %v1267_v17 = vld [vmem:[%s16013_s2 + $0x50] sm:$0xff] }
  0xe2   : > { %921 = vperm.xlu2 %5731, %v6276_v31   ;;  %v6430_v18 = vpop.permute.xlu1 %583  ;;  %v1259_v31 = vld [vmem:[%s16013_s2 + $0x10] sm:$0xff] }
  0xe3   : > { %16014 = vst [vmem:[#allocation14_spill] sm:$0xff] %v6430_v18  ;;  %v6432_v19 = vpop.permute.xlu0 %578  ;;  %v6434_v20 = vpop.permute.xlu2 %793 }
  0xe4   : > { %16015 = vst [vmem:[#allocation15_spill] sm:$0xff] %v6432_v19  ;;  %v16090_v19 = vmov 1  }
  0xe9   : > { %1477 = vperm.xlu0 %5728, %v1293_v21   ;;  %929 = vperm.xlu1 %5732, %v6296_v35   ;;  %v1268_v21 = vld [vmem:[%s16013_s2 + $0x58] sm:$0xff] }
  0xea   : > { %933 = vperm.xlu2 %5731, %v6291_v34   ;;  %v6441_v22 = vpop.permute.xlu1 %598 }
  0xeb   : > { %16016 = vst [vmem:[#allocation16_spill] sm:$0xff] %v6441_v22  ;;  %v6443_v23 = vpop.permute.xlu0 %593 }
  0xec   : > { %16017 = vst [vmem:[#allocation17_spill] sm:$0xff] %v6443_v23  ;;  %v6445_v24 = vpop.permute.xlu2 %805  ;;  %v6886_v23 = vld [vmem:[%s15360_s3 + $0x118] sm:$0xff] }
  0xed   : > { %16018 = vst [vmem:[#allocation18_spill] sm:$0xff] %v6445_v24 }
  0xf1   : > { %1834 = vperm.xlu0 %5728, %v6450_v25   ;;  %941 = vperm.xlu1 %5732, %v6308_v38   ;;  %v1261_v38 = vld [vmem:[%s16013_s2 + $0x20] sm:$0xff] }
  0xf2   : > { %5733 = vset.pattern.permute.xlu2 %v15368_v3  ;;  %v6458_v27 = vpop.permute.xlu1 %613 }
  0xf3   : > { %16019 = vst [vmem:[#allocation19_spill] sm:$0xff] %v6458_v27  ;;  %1297 = vperm.xlu2 %5733, %v1257_v26   ;;  %v6460_v28 = vpop.permute.xlu0 %608 }
  0xf4   : > { %16020 = vst [vmem:[#allocation20_spill] sm:$0xff] %v6460_v28  ;;  %v6462_v29 = vpop.permute.xlu2 %813  ;;  %v6846_v28 = vld [vmem:[%s15360_s3 + $0xe8] sm:$0xff] }
  0xf5   : > { %16021 = vst [vmem:[#allocation21_spill] sm:$0xff] %v6462_v29  ;;  %v6867_v29 = vld [vmem:[%s15360_s3 + $0x100] sm:$0xff] }
  0xf9   : > { %1849 = vperm.xlu0 %5728, %v6467_v30   ;;  %5734 = vset.pattern.permute.xlu1 %v15368_v3  ;;  %v1811_v3 = vld [vmem:[%s15360_s3 + $0xb0] sm:$0xff] }
  0xfa   : > { %1307 = vperm.xlu1 %5734, %v1259_v31   ;;  %v6477_v33 = vpop.permute.xlu1 %628 }
  0xfb   : > { %16022 = vst [vmem:[#allocation22_spill] sm:$0xff] %v6477_v33  ;;  %1312 = vperm.xlu2 %5733, %v1260_v32   ;;  %v6479_v34 = vpop.permute.xlu0 %623  ;;  %v3076_v33 = vld [vmem:[%s15362_s5 + $0x110] sm:$0xff] }
  0xfc   : > { %16023 = vst [vmem:[#allocation23_spill] sm:$0xff] %v6479_v34  ;;  %v6481_v35 = vpop.permute.xlu2 %825 }
  0xfd   : > { %16024 = vst [vmem:[#allocation24_spill] sm:$0xff] %v6481_v35 }
 0x101   : > { %1864 = vperm.xlu0 %5728, %v1796_v36   ;;  %v1805_v36 = vld [vmem:[%s15360_s3 + $0x80] sm:$0xff] }
 0x102   : > { %1317 = vperm.xlu1 %5734, %v1261_v38   ;;  %v1270_v38 = vld [vmem:[%s16013_s2 + $0x68] sm:$0xff] }
 0x103   : > { %1322 = vperm.xlu2 %5733, %v1262_v39   ;;  %v6492_v42 = vpop.permute.xlu0 %1302  ;;  %v6494_v44 = vpop.permute.xlu1 %801  ;;  %v1271_v39 = vld [vmem:[%s16013_s2 + $0x70] sm:$0xff] }
 0x104   : > { %16025 = vst [vmem:[#allocation25_spill] sm:$0xff] %v6492_v42  ;;  %v6496_v48 = vpop.permute.xlu2 %837  ;;  %v1282_v42 = vld [vmem:[%s16013_s2 + $0xc8] sm:$0xff] }
 0x105   : > { %16026 = vst [vmem:[#allocation26_spill] sm:$0xff] %v6494_v44  ;;  %v6825_v44 = vld [vmem:[%s15360_s3 + $0xd0] sm:$0xff] }
 0x106   : > { %16027 = vst [vmem:[#allocation27_spill] sm:$0xff] %v6496_v48  ;;  %v6806_v48 = vld [vmem:[%s15360_s3 + $0xb8] sm:$0xff] }
 0x109   : > { %1879 = vperm.xlu0 %5728, %v1799_v52  }
 0x10a   : > { %1332 = vperm.xlu1 %5734, %v1264_v56  }
 0x10b   : > { %1337 = vperm.xlu2 %5733, %v1265_v60   ;;  %v6507_v0 = vpop.permute.xlu0 %1327  ;;  %v6509_v5 = vpop.permute.xlu1 %809 }
 0x10c   : > { %16028 = vst [vmem:[#allocation28_spill] sm:$0xff] %v6507_v0  ;;  %v6511_v9 = vpop.permute.xlu2 %849 }
 0x10d   : > { %16029 = vst [vmem:[#allocation29_spill] sm:$0xff] %v6509_v5 }
 0x10e   : > { %16030 = vst [vmem:[#allocation30_spill] sm:$0xff] %v6511_v9  ;;  %v6785_v9 = vld [vmem:[%s15360_s3 + $0xa0] sm:$0xff] }
 0x111   : > { %1894 = vperm.xlu0 %5728, %v1802_v13   ;;  %v1808_v13 = vld [vmem:[%s15360_s3 + $0x98] sm:$0xff] }
 0x112   : > { %1347 = vperm.xlu1 %5734, %v1267_v17   ;;  %v1273_v17 = vld [vmem:[%s16013_s2 + $0x80] sm:$0xff] }
 0x113   : > { %1352 = vperm.xlu2 %5733, %v1268_v21   ;;  %v6522_v26 = vpop.permute.xlu0 %1342  ;;  %v6524_v31 = vpop.permute.xlu1 %821  ;;  %v1274_v21 = vld [vmem:[%s16013_s2 + $0x88] sm:$0xff] }
 0x114   : > { %16031 = vst [vmem:[#allocation31_spill] sm:$0xff] %v6522_v26  ;;  %v6526_v32 = vpop.permute.xlu2 %861  ;;  %v1279_v26 = vld [vmem:[%s16013_s2 + $0xb0] sm:$0xff] }
 0x115   : > { %16032 = vst [vmem:[#allocation32_spill] sm:$0xff] %v6524_v31  ;;  %v6766_v31 = vld [vmem:[%s15360_s3 + $0x88] sm:$0xff] }
 0x116   : > { %16033 = vst [vmem:[#allocation33_spill] sm:$0xff] %v6526_v32 }
 0x119   : > { %1909 = vperm.xlu0 %5728, %v1805_v36  }
 0x11a   : > { %1362 = vperm.xlu1 %5734, %v1270_v38  }
 0x11b   : > { %1367 = vperm.xlu2 %5733, %v1271_v39   ;;  %v6537_v52 = vpop.permute.xlu0 %1357  ;;  %v6539_v56 = vpop.permute.xlu1 %833 }
 0x11c   : > { %16034 = vst [vmem:[#allocation34_spill] sm:$0xff] %v6537_v52  ;;  %v6541_v60 = vpop.permute.xlu2 %873  ;;  %v1814_v52 = vld [vmem:[%s15360_s3 + $0xc8] sm:$0xff] }
 0x11d   : > { %16035 = vst [vmem:[#allocation35_spill] sm:$0xff] %v6539_v56  ;;  %v6745_v56 = vld [vmem:[%s15360_s3 + $0x70] sm:$0xff] }
 0x11e   : > { %16036 = vst [vmem:[#allocation36_spill] sm:$0xff] %v6541_v60  ;;  %v3061_v60 = vld [vmem:[%s15362_s5 + $0x98] sm:$0xff] }
 0x121   : > { %1924 = vperm.xlu0 %5728, %v1808_v13   ;;  %v1277_v13 = vld [vmem:[%s16013_s2 + $0xa0] sm:$0xff] }
 0x122   : > { %1377 = vperm.xlu1 %5734, %v1273_v17  }
 0x123   : > { %1382 = vperm.xlu2 %5733, %v1274_v21   ;;  %v6552_v36 = vpop.permute.xlu0 %1372  ;;  %v6554_v38 = vpop.permute.xlu1 %845 }
 0x124   : > { %16037 = vst [vmem:[#allocation37_spill] sm:$0xff] %v6552_v36  ;;  %v6556_v39 = vpop.permute.xlu2 %885 }
 0x125   : > { %16038 = vst [vmem:[#allocation38_spill] sm:$0xff] %v6554_v38 }
 0x126   : > { %16039 = vst [vmem:[#allocation39_spill] sm:$0xff] %v6556_v39  ;;  %v6724_v39 = vld [vmem:[%s15360_s3 + $0x58] sm:$0xff] }
 0x129   : > { %1939 = vperm.xlu0 %5728, %v1811_v3   ;;  %v1280_v3 = vld [vmem:[%s16013_s2 + $0xb8] sm:$0xff] }
 0x12a   : > { %1392 = vperm.xlu1 %5734, %v1276_v40  }
 0x12b   : > { %1397 = vperm.xlu2 %5733, %v1277_v13   ;;  %v6567_v17 = vpop.permute.xlu0 %1387  ;;  %v6569_v21 = vpop.permute.xlu1 %857 }
 0x12c   : > { %16040 = vst [vmem:[#allocation40_spill] sm:$0xff] %v6567_v17  ;;  %v6571_v36 = vpop.permute.xlu2 %897  ;;  %v1817_v17 = vld [vmem:[%s15360_s3 + $0xe0] sm:$0xff] }
 0x12d   : > { %16041 = vst [vmem:[#allocation41_spill] sm:$0xff] %v6569_v21  ;;  %v6705_v21 = vld [vmem:[%s15360_s3 + $0x40] sm:$0xff] }
 0x12e   : > { %16042 = vst [vmem:[#allocation42_spill] sm:$0xff] %v6571_v36 }
 0x131   : > { %1954 = vperm.xlu0 %5728, %v1814_v52   ;;  %v1283_v52 = vld [vmem:[%s16013_s2 + $0xd0] sm:$0xff] }
 0x132   : > { %1407 = vperm.xlu1 %5734, %v1279_v26  }
 0x133   : > { %1412 = vperm.xlu2 %5733, %v1280_v3   ;;  %v6582_v40 = vpop.permute.xlu0 %1402  ;;  %v6584_v13 = vpop.permute.xlu1 %869 }
 0x134   : > { %16043 = vst [vmem:[#allocation43_spill] sm:$0xff] %v6582_v40  ;;  %v6589_v0 = vpop.permute.xlu2 %909  ;;  %v1820_v40 = vld [vmem:[%s15360_s3 + $0xf8] sm:$0xff] }
 0x135   : > { %16044 = vst [vmem:[#allocation44_spill] sm:$0xff] %v6584_v13  ;;  %v1286_v13 = vld [vmem:[%s16013_s2 + $0xe8] sm:$0xff] }
 0x136   : > { %16045 = vst [vmem:[#allocation45_spill] sm:$0xff] %v6589_v0  ;;  %v1285_v0 = vld [vmem:[%s16013_s2 + $0xe0] sm:$0xff] }
 0x139   : > { %1969 = vperm.xlu0 %5728, %v1817_v17  }
 0x13a   : > { %1422 = vperm.xlu1 %5734, %v1282_v42  }
 0x13b   : > { %1427 = vperm.xlu2 %5733, %v1283_v52   ;;  %v6597_v26 = vpop.permute.xlu0 %1417  ;;  %v6599_v3 = vpop.permute.xlu1 %881  ;;  %v1823_v52 = vld [vmem:[%s15360_s3 + $0x110] sm:$0xff] }
 0x13c   : > { %16046 = vst [vmem:[#allocation46_spill] sm:$0xff] %v6597_v26  ;;  %v6610_v17 = vpop.permute.xlu2 %921 }
 0x13d   : > { %16047 = vst [vmem:[#allocation47_spill] sm:$0xff] %v6599_v3  ;;  %v1288_v3 = vld [vmem:[%s16013_s2 + $0xf8] sm:$0xff] }
 0x13e   : > { %16048 = vst [vmem:[#allocation48_spill] sm:$0xff] %v6610_v17  ;;  %v1292_v17 = vld [vmem:[%s16013_s2 + $0x118] sm:$0xff] }
 0x141   : > { %1984 = vperm.xlu0 %5728, %v1820_v40   ;;  %v1289_v40 = vld [vmem:[%s16013_s2 + $0x100] sm:$0xff] }
 0x142   : > { %1437 = vperm.xlu1 %5734, %v1285_v0  }
 0x143   : > { %1442 = vperm.xlu2 %5733, %v1286_v13   ;;  %v6612_v42 = vpop.permute.xlu0 %1432  ;;  %v6617_v26 = vpop.permute.xlu1 %893 }
 0x144   : > { %16049 = vst [vmem:[#allocation49_spill] sm:$0xff] %v6612_v42  ;;  %v6627_v13 = vpop.permute.xlu2 %933  ;;  %v1826_v42 = vld [vmem:[%s15360_s3 + $0x128] sm:$0xf] }
 0x145   : > { %16050 = vst [vmem:[#allocation50_spill] sm:$0xff] %v6617_v26  ;;  %v1291_v26 = vld [vmem:[%s16013_s2 + $0x110] sm:$0xff] }
 0x146   : > { %16052 = vst [vmem:[#allocation52_spill] sm:$0xff] %v6627_v13  ;;  %v1294_v13 = vld [vmem:[%s16013_s2 + $0x128] sm:$0xf] }
 0x149   : > { %1999 = vperm.xlu0 %5728, %v1823_v52  }
 0x14a   : > { %1452 = vperm.xlu1 %5734, %v1288_v3  }
 0x14b   : > { %1457 = vperm.xlu2 %5733, %v1289_v40   ;;  %v6625_v0 = vpop.permute.xlu0 %1447  ;;  %v6638_v52 = vpop.permute.xlu1 %905 }
 0x14c   : > { %16051 = vst [vmem:[#allocation51_spill] sm:$0xff] %v6625_v0  ;;  %v3044_v0 = vld [vmem:[%s15362_s5 + $0x10] sm:$0xff] }
 0x14d   : > { %16053 = vst [vmem:[#allocation53_spill] sm:$0xff] %v6638_v52  ;;  %v6642_v40 = vpop.permute.xlu2 %1297 }
 0x14e   : > { %16055 = vst [vmem:[#allocation55_spill] sm:$0xff] %v6642_v40  ;;  %v1791_v40 = vld [vmem:[%s15360_s3 + $0x10] sm:$0xff] }
 0x151   : > { %2014 = vperm.xlu0 %5728, %v1826_v42   ;;  %v6653_v42 = vld [vmem:[%s15360_s3] sm:$0xff] }
 0x152   : > { %1467 = vperm.xlu1 %5734, %v1291_v26  }
 0x153   : > { %1472 = vperm.xlu2 %5733, %v1292_v17   ;;  %v6640_v3 = vpop.permute.xlu0 %1462  ;;  %v6658_v17 = vpop.permute.xlu1 %917 }
 0x154   : > { %16054 = vst [vmem:[#allocation54_spill] sm:$0xff] %v6640_v3  ;;  %v3049_v3 = vld [vmem:[%s15362_s5 + $0x38] sm:$0xff] }
 0x155   : > { %16057 = vst [vmem:[#allocation57_spill] sm:$0xff] %v6658_v17  ;;  %v6663_v52 = vpop.permute.xlu2 %1312  ;;  %v3052_v17 = vld [vmem:[%s15362_s5 + $0x50] sm:$0xff] }
 0x156   : > { %16058 = vst [vmem:[#allocation58_spill] sm:$0xff] %v6663_v52  ;;  %v6684_v52 = vld [vmem:[%s15360_s3 + $0x28] sm:$0xff] }
 0x159   : > { %3092 = vperm.xlu0 %5728, %v3044_v0   ;;  %v6671_v0 = vld [vmem:[%s15360_s3 + $0x18] sm:$0xff] }
 0x15a   : > { %1482 = vperm.xlu1 %5734, %v1294_v13  }
 0x15b   : > { %1829 = vperm.xlu2 %5733, %v6653_v42   ;;  %v6656_v26 = vpop.permute.xlu0 %1477 }
 0x15c   : > { %16056 = vst [vmem:[#allocation56_spill] sm:$0xff] %v6656_v26  ;;  %v6676_v26 = vpop.permute.xlu1 %929 }
 0x15d   : > { %16060 = vst [vmem:[#allocation60_spill] sm:$0xff] %v6676_v26  ;;  %v3055_v26 = vld [vmem:[%s15362_s5 + $0x68] sm:$0xff] }
 0x161   : > { %3117 = vperm.xlu0 %5728, %v3049_v3   ;;  %v6689_v3 = vld [vmem:[%s15360_s3 + $0x30] sm:$0xff] }
 0x162   : > { %1839 = vperm.xlu1 %5734, %v1791_v40   ;;  %v6691_v40 = vpop.permute.xlu2 %1322 }
 0x163   : > { %1844 = vperm.xlu2 %5733, %v6671_v0   ;;  %v6674_v13 = vpop.permute.xlu0 %1834  ;;  %16061 = vst [vmem:[#allocation61_spill] sm:$0xff] %v6691_v40 }
 0x164   : > { %16059 = vst [vmem:[#allocation59_spill] sm:$0xff] %v6674_v13  ;;  %v6700_v36 = vpop.permute.xlu1 %941 }
 0x165   : > { %16063 = vst [vmem:[#allocation63_spill] sm:$0xff] %v6700_v36  ;;  %v3058_v36 = vld [vmem:[%s15362_s5 + $0x80] sm:$0xff] }
 0x169   : > { %3132 = vperm.xlu0 %5728, %v3052_v17   ;;  %v6710_v17 = vld [vmem:[%s15360_s3 + $0x48] sm:$0xff] }
 0x16a   : > { %1854 = vperm.xlu1 %5734, %v6684_v52   ;;  %v6716_v40 = vpop.permute.xlu2 %1337 }
 0x16b   : > { %1859 = vperm.xlu2 %5733, %v6689_v3   ;;  %v6695_v13 = vpop.permute.xlu0 %1849  ;;  %16065 = vst [vmem:[#allocation65_spill] sm:$0xff] %v6716_v40 }
 0x16c   : > { %16062 = vst [vmem:[#allocation62_spill] sm:$0xff] %v6695_v13  ;;  %v6731_v38 = vpop.permute.xlu1 %1307 }
 0x16d   : > { %16066 = vst [vmem:[#allocation66_spill] sm:$0xff] %v6731_v38 }
 0x171   : > { %3147 = vperm.xlu0 %5728, %v3055_v26   ;;  %v6729_v26 = vld [vmem:[%s15360_s3 + $0x60] sm:$0xff] }
 0x172   : > { %1869 = vperm.xlu1 %5734, %v6705_v21   ;;  %v6737_v40 = vpop.permute.xlu2 %1352 }
 0x173   : > { %1874 = vperm.xlu2 %5733, %v6710_v17   ;;  %v6714_v13 = vpop.permute.xlu0 %1864  ;;  %16068 = vst [vmem:[#allocation68_spill] sm:$0xff] %v6737_v40  ;;  %v3064_v40 = vld [vmem:[%s15362_s5 + $0xb0] sm:$0xff] }
 0x174   : > { %16064 = vst [vmem:[#allocation64_spill] sm:$0xff] %v6714_v13  ;;  %v6756_v38 = vpop.permute.xlu1 %1317 }
 0x175   : > { %16070 = vst [vmem:[#allocation70_spill] sm:$0xff] %v6756_v38 }
 0x179   : > { %3162 = vperm.xlu0 %5728, %v3058_v36   ;;  %v6750_v36 = vld [vmem:[%s15360_s3 + $0x78] sm:$0xff] }
 0x17a   : > { %1884 = vperm.xlu1 %5734, %v6724_v39   ;;  %v6761_v32 = vpop.permute.xlu2 %1367 }
 0x17b   : > { %1889 = vperm.xlu2 %5733, %v6729_v26   ;;  %v6735_v13 = vpop.permute.xlu0 %1879  ;;  %16071 = vst [vmem:[#allocation71_spill] sm:$0xff] %v6761_v32  ;;  %v3067_v32 = vld [vmem:[%s15362_s5 + $0xc8] sm:$0xff] }
 0x17c   : > { %16067 = vst [vmem:[#allocation67_spill] sm:$0xff] %v6735_v13  ;;  %v6777_v38 = vpop.permute.xlu1 %1332 }
 0x17d   : > { %16073 = vst [vmem:[#allocation73_spill] sm:$0xff] %v6777_v38  ;;  %v3070_v38 = vld [vmem:[%s15362_s5 + $0xe0] sm:$0xff] }
 0x181   : > { %3177 = vperm.xlu0 %5728, %v3061_v60   ;;  %v6771_v60 = vld [vmem:[%s15360_s3 + $0x90] sm:$0xff] }
 0x182   : > { %1899 = vperm.xlu1 %5734, %v6745_v56   ;;  %v6792_v5 = vpop.permute.xlu2 %1382 }
 0x183   : > { %1904 = vperm.xlu2 %5733, %v6750_v36   ;;  %v6754_v13 = vpop.permute.xlu0 %1894  ;;  %16074 = vst [vmem:[#allocation74_spill] sm:$0xff] %v6792_v5 }
 0x184   : > { %16069 = vst [vmem:[#allocation69_spill] sm:$0xff] %v6754_v13  ;;  %v6801_v34 = vpop.permute.xlu1 %1347 }
 0x185   : > { %16076 = vst [vmem:[#allocation76_spill] sm:$0xff] %v6801_v34  ;;  %v3073_v34 = vld [vmem:[%s15362_s5 + $0xf8] sm:$0xff] }
 0x189   : > { %3192 = vperm.xlu0 %5728, %v3064_v40   ;;  %v6790_v40 = vld [vmem:[%s15360_s3 + $0xa8] sm:$0xff] }
 0x18a   : > { %1914 = vperm.xlu1 %5734, %v6766_v31   ;;  %v6817_v5 = vpop.permute.xlu2 %1397 }
 0x18b   : > { %1919 = vperm.xlu2 %5733, %v6771_v60   ;;  %v6775_v13 = vpop.permute.xlu0 %1909  ;;  %16078 = vst [vmem:[#allocation78_spill] sm:$0xff] %v6817_v5 }
 0x18c   : > { %16072 = vst [vmem:[#allocation72_spill] sm:$0xff] %v6775_v13  ;;  %v6832_v35 = vpop.permute.xlu1 %1362 }
 0x18d   : > { %16079 = vst [vmem:[#allocation79_spill] sm:$0xff] %v6832_v35  ;;  %v3079_v35 = vld [vmem:[%s15362_s5 + $0x128] sm:$0xf] }
 0x191   : > { %3207 = vperm.xlu0 %5728, %v3067_v32   ;;  %v6811_v32 = vld [vmem:[%s15360_s3 + $0xc0] sm:$0xff] }
 0x192   : > { %1929 = vperm.xlu1 %5734, %v6785_v9   ;;  %v6838_v5 = vpop.permute.xlu2 %1412 }
 0x193   : > { %1934 = vperm.xlu2 %5733, %v6790_v40   ;;  %v6796_v13 = vpop.permute.xlu0 %1924  ;;  %16081 = vst [vmem:[#allocation81_spill] sm:$0xff] %v6838_v5 }
 0x194   : > { %16075 = vst [vmem:[#allocation75_spill] sm:$0xff] %v6796_v13  ;;  %v6857_v5 = vpop.permute.xlu1 %1377 }
 0x195   : > { %16083 = vst [vmem:[#allocation83_spill] sm:$0xff] %v6857_v5 }
 0x199   : > { %3222 = vperm.xlu0 %5728, %v3070_v38   ;;  %v6830_v38 = vld [vmem:[%s15360_s3 + $0xd8] sm:$0xff] }
 0x19a   : > { %1944 = vperm.xlu1 %5734, %v6806_v48   ;;  %v6862_v27 = vpop.permute.xlu2 %1427 }
 0x19b   : > { %1949 = vperm.xlu2 %5733, %v6811_v32   ;;  %v6815_v13 = vpop.permute.xlu0 %1939  ;;  %16084 = vst [vmem:[#allocation84_spill] sm:$0xff] %v6862_v27  ;;  %v3880_v27 = vld [vmem:[%s15363_s6 + $0x10] sm:$0xff] }
 0x19c   : > { %16077 = vst [vmem:[#allocation77_spill] sm:$0xff] %v6815_v13  ;;  %v6878_v5 = vpop.permute.xlu1 %1392 }
 0x19d   : > { %16086 = vst [vmem:[#allocation86_spill] sm:$0xff] %v6878_v5  ;;  %v3885_v5 = vld [vmem:[%s15363_s6 + $0x38] sm:$0xff] }
 0x1a1   : > { %3237 = vperm.xlu0 %5728, %v3073_v34   ;;  %v6851_v34 = vld [vmem:[%s15360_s3 + $0xf0] sm:$0xff] }
 0x1a2   : > { %1959 = vperm.xlu1 %5734, %v6825_v44   ;;  %v6893_v24 = vpop.permute.xlu2 %1442 }
 0x1a3   : > { %1964 = vperm.xlu2 %5733, %v6830_v38   ;;  %v6836_v13 = vpop.permute.xlu0 %1954  ;;  %16087 = vst [vmem:[#allocation87_spill] sm:$0xff] %v6893_v24 }
 0x1a4   : > { %16080 = vst [vmem:[#allocation80_spill] sm:$0xff] %v6836_v13  ;;  %v6902_v22 = vpop.permute.xlu1 %1407 }
 0x1a5   : > { %16089 = vst [vmem:[#allocation89_spill] sm:$0xff] %v6902_v22 }
 0x1a9   : > { %3252 = vperm.xlu0 %5728, %v3076_v33   ;;  %v6872_v33 = vld [vmem:[%s15360_s3 + $0x108] sm:$0xff] }
 0x1aa   : > { %1974 = vperm.xlu1 %5734, %v6846_v28   ;;  %v6908_v24 = vpop.permute.xlu2 %1457 }
 0x1ab   : > { %1979 = vperm.xlu2 %5733, %v6851_v34   ;;  %v6855_v13 = vpop.permute.xlu0 %1969  ;;  %16092 = vst [vmem:[#allocation91_spill] sm:$0xff] %v6908_v24 }
 0x1ac   : > { %16082 = vst [vmem:[#allocation82_spill] sm:$0xff] %v6855_v13  ;;  %v6915_v18 = vpop.permute.xlu1 %1422 }
 0x1ad   : > { %16093 = vst [vmem:[#allocation92_spill] sm:$0xff] %v6915_v18 }
 0x1b1   : > { %3267 = vperm.xlu0 %5728, %v3079_v35   ;;  %v6891_v35 = vld [vmem:[%s15360_s3 + $0x120] sm:$0xff] }
 0x1b2   : > { %1989 = vperm.xlu1 %5734, %v6867_v29  }
 0x1b3   : > { %1994 = vperm.xlu2 %5733, %v6872_v33   ;;  %v6876_v13 = vpop.permute.xlu0 %1984 }
 0x1b4   : > { %16085 = vst [vmem:[#allocation85_spill] sm:$0xff] %v6876_v13  ;;  %v6928_v24 = vpop.permute.xlu1 %1437 }
 0x1b5   : > { %16097 = vst [vmem:[#allocation96_spill] sm:$0xff] %v6928_v24 }
 0x1b9   : > { %3928 = vperm.xlu0 %5728, %v3880_v27  }
 0x1ba   : > { %2004 = vperm.xlu1 %5734, %v6886_v23  }
 0x1bb   : > { %2009 = vperm.xlu2 %5733, %v6891_v35   ;;  %v6897_v13 = vpop.permute.xlu0 %1999 }
 0x1bc   : > { %16088 = vst [vmem:[#allocation88_spill] sm:$0xff] %v6897_v13  ;;  %v3888_v13 = vld [vmem:[%s15363_s6 + $0x50] sm:$0xff] }
 0x1c1   : > { %3953 = vperm.xlu0 %5728, %v3885_v5  }
 0x1c2   : > { %5735 = vset.pattern.permute.xlu1 %v16090_v19 }
 0x1c3   : > { %5736 = vset.pattern.permute.xlu2 %v16090_v19  ;;  %v6906_v27 = vpop.permute.xlu0 %2014  ;;  %2353 = vperm.xlu1 %5735, %v6653_v42   ;;  %v3891_v42 = vld [vmem:[%s15363_s6 + $0x68] sm:$0xff] }
 0x1c4   : > { %16091 = vst [vmem:[#allocation90_spill] sm:$0xff] %v6906_v27  ;;  %2357 = vperm.xlu2 %5736, %v6450_v25   ;;  %v6921_v27 = vpop.permute.xlu2 %1472 }
 0x1c5   : > { %16095 = vst [vmem:[#allocation94_spill] sm:$0xff] %v6921_v27 }
 0x1c9   : > { %3968 = vperm.xlu0 %5728, %v3888_v13  }
 0x1cb   : > { %v6917_v5 = vpop.permute.xlu0 %3092  ;;  %2365 = vperm.xlu1 %5735, %v6671_v0   ;;  %v3894_v0 = vld [vmem:[%s15363_s6 + $0x80] sm:$0xff] }
 0x1cc   : > { %16094 = vst [vmem:[#allocation93_spill] sm:$0xff] %v6917_v5  ;;  %2369 = vperm.xlu2 %5736, %v6467_v30   ;;  %v6935_v30 = vpop.permute.xlu2 %1829  ;;  %v7085_v5 = vld [vmem:[%s15362_s5 + $0x28] sm:$0xff] }
 0x1cd   : > { %16098 = vst [vmem:[#allocation97_spill] sm:$0xff] %v6935_v30 }
 0x1ce   : > { %16135 = vst [vmem:[#allocation133_spill] sm:$0xff] %v7085_v5 }
 0x1d1   : > { %3983 = vperm.xlu0 %5728, %v3891_v42   ;;  %v6941_v42 = vpop.permute.xlu1 %1452 }
 0x1d2   : > { %16100 = vst [vmem:[#allocation99_spill] sm:$0xff] %v6941_v42 }
 0x1d3   : > { %v6926_v25 = vpop.permute.xlu0 %3117  ;;  %2373 = vperm.xlu1 %5735, %v6684_v52   ;;  %v3897_v52 = vld [vmem:[%s15363_s6 + $0x98] sm:$0xff] }
 0x1d4   : > { %16096 = vst [vmem:[#allocation95_spill] sm:$0xff] %v6926_v25  ;;  %2377 = vperm.xlu2 %5736, %v6689_v3   ;;  %v6946_v3 = vpop.permute.xlu2 %1844 }
 0x1d5   : > { %16101 = vst [vmem:[#allocation100_spill] sm:$0xff] %v6946_v3 }
 0x1d9   : > { %3998 = vperm.xlu0 %5728, %v3894_v0  }
 0x1db   : > { %v6937_v13 = vpop.permute.xlu0 %3132  ;;  %2385 = vperm.xlu1 %5735, %v6705_v21   ;;  %v3900_v21 = vld [vmem:[%s15363_s6 + $0xb0] sm:$0xff] }
 0x1dc   : > { %16099 = vst [vmem:[#allocation98_spill] sm:$0xff] %v6937_v13  ;;  %2389 = vperm.xlu2 %5736, %v6710_v17   ;;  %v6955_v17 = vpop.permute.xlu1 %1467  ;;  %v6959_v13 = vpop.permute.xlu2 %1859 }
 0x1dd   : > { %16103 = vst [vmem:[#allocation102_spill] sm:$0xff] %v6955_v17 }
 0x1de   : > { %16105 = vst [vmem:[#allocation104_spill] sm:$0xff] %v6959_v13 }
 0x1e1   : > { %4013 = vperm.xlu0 %5728, %v3897_v52  }
 0x1e3   : > { %v6948_v25 = vpop.permute.xlu0 %3147  ;;  %2397 = vperm.xlu1 %5735, %v6724_v39   ;;  %v3903_v39 = vld [vmem:[%s15363_s6 + $0xc8] sm:$0xff] }
 0x1e4   : > { %16102 = vst [vmem:[#allocation101_spill] sm:$0xff] %v6948_v25  ;;  %2401 = vperm.xlu2 %5736, %v6729_v26   ;;  %v6966_v26 = vpop.permute.xlu1 %1482 }
 0x1e5   : > { %16106 = vst [vmem:[#allocation105_spill] sm:$0xff] %v6966_v26 }
 0x1e9   : > { %4028 = vperm.xlu0 %5728, %v3900_v21   ;;  %v6972_v21 = vpop.permute.xlu2 %1874 }
 0x1ea   : > { %16108 = vst [vmem:[#allocation107_spill] sm:$0xff] %v6972_v21 }
 0x1eb   : > { %v6957_v0 = vpop.permute.xlu0 %3162  ;;  %2409 = vperm.xlu1 %5735, %v6745_v56   ;;  %v3906_v56 = vld [vmem:[%s15363_s6 + $0xe0] sm:$0xff] }
 0x1ec   : > { %16104 = vst [vmem:[#allocation103_spill] sm:$0xff] %v6957_v0  ;;  %2413 = vperm.xlu2 %5736, %v6750_v36   ;;  %v6979_v0 = vpop.permute.xlu1 %1839 }
 0x1ed   : > { %16110 = vst [vmem:[#allocation109_spill] sm:$0xff] %v6979_v0 }
 0x1f1   : > { %4043 = vperm.xlu0 %5728, %v3903_v39  }
 0x1f3   : > { %v6968_v52 = vpop.permute.xlu0 %3177  ;;  %2421 = vperm.xlu1 %5735, %v6766_v31   ;;  %v3909_v31 = vld [vmem:[%s15363_s6 + $0xf8] sm:$0xff] }
 0x1f4   : > { %16107 = vst [vmem:[#allocation106_spill] sm:$0xff] %v6968_v52  ;;  %2425 = vperm.xlu2 %5736, %v6771_v60   ;;  %v6986_v60 = vpop.permute.xlu2 %1889 }
 0x1f5   : > { %16111 = vst [vmem:[#allocation110_spill] sm:$0xff] %v6986_v60 }
 0x1f9   : > { %4058 = vperm.xlu0 %5728, %v3906_v56   ;;  %v6992_v56 = vpop.permute.xlu1 %1854 }
 0x1fa   : > { %16113 = vst [vmem:[#allocation112_spill] sm:$0xff] %v6992_v56 }
 0x1fb   : > { %v6977_v36 = vpop.permute.xlu0 %3192  ;;  %2433 = vperm.xlu1 %5735, %v6785_v9   ;;  %v3912_v9 = vld [vmem:[%s15363_s6 + $0x110] sm:$0xff] }
 0x1fc   : > { %16109 = vst [vmem:[#allocation108_spill] sm:$0xff] %v6977_v36  ;;  %2437 = vperm.xlu2 %5736, %v6790_v40   ;;  %v6997_v40 = vpop.permute.xlu2 %1904 }
 0x1fd   : > { %16114 = vst [vmem:[#allocation113_spill] sm:$0xff] %v6997_v40 }
 0x201   : > { %4073 = vperm.xlu0 %5728, %v3909_v31  }
 0x203   : > { %v6988_v39 = vpop.permute.xlu0 %3207  ;;  %2445 = vperm.xlu1 %5735, %v6806_v48   ;;  %v3915_v48 = vld [vmem:[%s15363_s6 + $0x128] sm:$0xf] }
 0x204   : > { %16112 = vst [vmem:[#allocation111_spill] sm:$0xff] %v6988_v39  ;;  %2449 = vperm.xlu2 %5736, %v6811_v32   ;;  %v7006_v32 = vpop.permute.xlu1 %1869  ;;  %v7010_v39 = vpop.permute.xlu2 %1919 }
 0x205   : > { %16116 = vst [vmem:[#allocation115_spill] sm:$0xff] %v7006_v32 }
 0x206   : > { %16118 = vst [vmem:[#allocation117_spill] sm:$0xff] %v7010_v39 }
 0x209   : > { %4088 = vperm.xlu0 %5728, %v3912_v9  }
 0x20b   : > { %v6999_v36 = vpop.permute.xlu0 %3222  ;;  %2457 = vperm.xlu1 %5735, %v6825_v44   ;;  %v4412_v44 = vld [vmem:[%s15364_s7 + $0x10] sm:$0xff] }
 0x20c   : > { %16115 = vst [vmem:[#allocation114_spill] sm:$0xff] %v6999_v36  ;;  %2461 = vperm.xlu2 %5736, %v6830_v38   ;;  %v7017_v38 = vpop.permute.xlu1 %1884  ;;  %v7071_v36 = vld [vmem:[%s15362_s5 + $0x20] sm:$0xff] }
 0x20d   : > { %16119 = vst [vmem:[#allocation118_spill] sm:$0xff] %v7017_v38 }
 0x20e   : > { %16132 = vst [vmem:[#allocation130_spill] sm:$0xff] %v7071_v36 }
 0x211   : > { %4103 = vperm.xlu0 %5728, %v3915_v48   ;;  %v7023_v48 = vpop.permute.xlu2 %1934 }
 0x212   : > { %16121 = vst [vmem:[#allocation120_spill] sm:$0xff] %v7023_v48 }
 0x213   : > { %v7008_v31 = vpop.permute.xlu0 %3237  ;;  %2469 = vperm.xlu1 %5735, %v6846_v28   ;;  %v4415_v28 = vld [vmem:[%s15364_s7 + $0x28] sm:$0xff] }
 0x214   : > { %16117 = vst [vmem:[#allocation116_spill] sm:$0xff] %v7008_v31  ;;  %2473 = vperm.xlu2 %5736, %v6851_v34   ;;  %v7030_v31 = vpop.permute.xlu1 %1899 }
 0x215   : > { %16123 = vst [vmem:[#allocation122_spill] sm:$0xff] %v7030_v31 }
 0x219   : > { %4460 = vperm.xlu0 %5728, %v4412_v44   ;;  %v7042_v44 = vld [vmem:[%s15362_s5] sm:$0xff] }
 0x21a   : > { %16125 = vst [vmem:[#allocation124_spill] sm:$0xff] %v7042_v44 }
 0x21b   : > { %v7019_v9 = vpop.permute.xlu0 %3252  ;;  %2481 = vperm.xlu1 %5735, %v6867_v29   ;;  %v4418_v29 = vld [vmem:[%s15364_s7 + $0x40] sm:$0xff] }
 0x21c   : > { %16120 = vst [vmem:[#allocation119_spill] sm:$0xff] %v7019_v9  ;;  %2485 = vperm.xlu2 %5736, %v6872_v33   ;;  %v7037_v33 = vpop.permute.xlu2 %1949 }
 0x21d   : > { %16124 = vst [vmem:[#allocation123_spill] sm:$0xff] %v7037_v33  ;;  %v400_v33 = vld [vmem:[%s7101_s28] ss:$2 sm:$0xf] }
 0x21e   : > { %v7121_v40 = vperm.slane %v400_v33, 0  ;;  %v7123_v60 = vperm.slane %v400_v33, 1  ;;  %v7125_v21 = vperm.slane %v400_v33, 2 }
 0x220   : > { %v7162_v31 = vmul.f32 %v7125_v21, %v6316_v41  ;;  %v7174_v32 = vmul.f32 %v7123_v60, %v6324_v43  ;;  %v7178_v56 = vmul.f32 %v7125_v21, %v6324_v43  ;;  %v7192_v3 = vmul.f32 %v7121_v40, %v6331_v45 }
 0x221   : > { %4475 = vperm.xlu0 %5728, %v4415_v28   ;;  %v7047_v28 = vld [vmem:[%s15362_s5 + $0x8] sm:$0xff]  ;;  %v7196_v17 = vmul.f32 %v7123_v60, %v6331_v45  ;;  %v7210_v30 = vmul.f32 %v7121_v40, %v6333_v46  ;;  %v7214_v18 = vmul.f32 %v7123_v60, %v6333_v46  ;;  %v7218_v27 = vmul.f32 %v7125_v21, %v6333_v46 }
 0x222   : > { %16126 = vst [vmem:[#allocation125_spill] sm:$0xff] %v7047_v28 }
 0x223   : > { %v7028_v34 = vpop.permute.xlu0 %3267  ;;  %2493 = vperm.xlu1 %5735, %v6886_v23  }
 0x224   : > { %16122 = vst [vmem:[#allocation121_spill] sm:$0xff] %v7028_v34  ;;  %2497 = vperm.xlu2 %5736, %v6891_v35   ;;  %v16128_v35 = vmov 0   ;;  %v4421_v34 = vld [vmem:[%s15364_s7 + $0x58] sm:$0xff]  ;;  %v7061_v9 = vpop.permute.xlu2 %1964 }
 0x225   : > { %16130 = vst [vmem:[#allocation128_spill] sm:$0xff] %v7061_v9 }
 0x229   : > { %4490 = vperm.xlu0 %5728, %v4418_v29   ;;  %v7055_v29 = vpop.permute.xlu1 %1914 }
 0x22a   : > { %16129 = vst [vmem:[#allocation127_spill] sm:$0xff] %v7055_v29  ;;  %v7158_v29 = vmul.f32 %v7123_v60, %v6316_v41 }
 0x22b   : > { %v7049_v23 = vpop.permute.xlu0 %3928  ;;  %5737 = vset.pattern.permute.xlu1 %v16128_v35 }
 0x22c   : > { %16127 = vst [vmem:[#allocation126_spill] sm:$0xff] %v7049_v23  ;;  %5738 = vset.pattern.permute.xlu2 %v16128_v35  ;;  %3082 = vperm.xlu1 %5737, %v7042_v44   ;;  %v7066_v23 = vld [vmem:[%s15362_s5 + $0x18] sm:$0xff]  ;;  %v7094_v9 = vpop.permute.xlu2 %1979  ;;  %v4430_v35 = vld [vmem:[%s15364_s7 + $0xa0] sm:$0xff]  ;;  %v7283_v44 = vmul.f32 %v7123_v60, %v6346_v51 }
 0x22d   : > { %3087 = vperm.xlu2 %5738, %v7047_v28   ;;  %16131 = vst [vmem:[#allocation129_spill] sm:$0xff] %v7066_v23 }
 0x22e   : > { %16138 = vst [vmem:[#allocation136_spill] sm:$0xff] %v7094_v9  ;;  %v7117_v9 = vld [vmem:[%s15362_s5 + $0x48] sm:$0xff] }
 0x22f   : > { %16142 = vst [vmem:[#allocation139_spill] sm:$0xff] %v7117_v9 }
 0x230   : > { %16151 = vst [vmem:[#allocation148_spill] sm:$0xff] %v7283_v44  ;;  %v7305_v44 = vmul.f32 %v7125_v21, %v6353_v53 }
 0x231   : > { %4505 = vperm.xlu0 %5728, %v4421_v34   ;;  %v4424_v34 = vld [vmem:[%s15364_s7 + $0x70] sm:$0xff]  ;;  %v7080_v25 = vpop.permute.xlu1 %1929 }
 0x232   : > { %16134 = vst [vmem:[#allocation132_spill] sm:$0xff] %v7080_v25 }
 0x233   : > { %v7073_v52 = vpop.permute.xlu0 %3953  ;;  %16157 = vst [vmem:[#allocation154_spill] sm:$0xff] %v7305_v44  ;;  %v7335_v44 = vmul.f32 %v7121_v40, %v6357_v55 }
 0x234   : > { %16133 = vst [vmem:[#allocation131_spill] sm:$0xff] %v7073_v52  ;;  %3097 = vperm.xlu1 %5737, %v7066_v23   ;;  %v7090_v52 = vld [vmem:[%s15362_s5 + $0x30] sm:$0xff]  ;;  %v7131_v13 = vpop.permute.xlu2 %1994  ;;  %v7271_v23 = vmul.f32 %v7125_v21, %v6344_v50 }
 0x235   : > { %3102 = vperm.xlu2 %5738, %v7071_v36   ;;  %16136 = vst [vmem:[#allocation134_spill] sm:$0xff] %v7090_v52  ;;  %v7267_v36 = vmul.f32 %v7123_v60, %v6344_v50 }
 0x236   : > { %16144 = vst [vmem:[#allocation141_spill] sm:$0xff] %v7131_v13  ;;  %v7154_v13 = vmul.f32 %v7121_v40, %v6316_v41 }
 0x237   : > { %16161 = vst [vmem:[#allocation158_spill] sm:$0xff] %v7335_v44  ;;  %v7357_v44 = vmul.f32 %v7123_v60, %v6364_v57 }
 0x239   : > { %4520 = vperm.xlu0 %5728, %v4424_v34   ;;  %v4427_v34 = vld [vmem:[%s15364_s7 + $0x88] sm:$0xff]  ;;  %v7107_v48 = vpop.permute.xlu1 %1944  ;;  %16166 = vst [vmem:[#allocation163_spill] sm:$0xff] %v7357_v44 }
 0x23a   : > { %16140 = vst [vmem:[#allocation137_spill] sm:$0xff] %v7107_v48  ;;  %v7142_v48 = vmul.f32 %v7123_v60, %v6303_v37 }
 0x23b   : > { %v7092_v26 = vpop.permute.xlu0 %3968 }
 0x23c   : > { %16137 = vst [vmem:[#allocation135_spill] sm:$0xff] %v7092_v26  ;;  %3107 = vperm.xlu1 %5737, %v7085_v5   ;;  %v7112_v26 = vld [vmem:[%s15362_s5 + $0x40] sm:$0xff]  ;;  %v7252_v5 = vmul.f32 %v7125_v21, %v6342_v49 }
 0x23d   : > { %3112 = vperm.xlu2 %5738, %v7090_v52   ;;  %16141 = vst [vmem:[#allocation138_spill] sm:$0xff] %v7112_v26  ;;  %v7248_v52 = vmul.f32 %v7123_v60, %v6342_v49 }
 0x23e   : > { %16148 = vst [vmem:[#allocation145_spill] sm:$0xff] %v7252_v5  ;;  %v7289_v5 = vpop.permute.xlu2 %2009 }
 0x23f   : > { %16147 = vst [vmem:[#allocation144_spill] sm:$0xff] %v7248_v52 }
 0x240   : > { %16153 = vst [vmem:[#allocation150_spill] sm:$0xff] %v7289_v5 }
 0x241   : > { %4535 = vperm.xlu0 %5728, %v4427_v34   ;;  %v7127_v34 = vperm.slane %v400_v33, 3  ;;  %v7146_v33 = vmul.f32 %v7125_v21, %v6303_v37 }
 0x243   : > { %v7119_v39 = vpop.permute.xlu0 %3983  ;;  %v7150_v25 = vmul.f32 %v7127_v34, %v6303_v37  ;;  %v7166_v38 = vmul.f32 %v7127_v34, %v6316_v41  ;;  %v7182_v0 = vmul.f32 %v7127_v34, %v6324_v43  ;;  %v3053_v41 = vld [vmem:[%s15362_s5 + $0x58] sm:$0xff]  ;;  %v7204_v42 = vmul.f32 %v7127_v34, %v6331_v45 }
 0x244   : > { %16143 = vst [vmem:[#allocation140_spill] sm:$0xff] %v7119_v39  ;;  %3122 = vperm.xlu1 %5737, %v7112_v26   ;;  %v7138_v39 = vmul.f32 %v7121_v40, %v6303_v37  ;;  %v7170_v37 = vmul.f32 %v7121_v40, %v6324_v43  ;;  %v7200_v43 = vmul.f32 %v7125_v21, %v6331_v45  ;;  %v7224_v45 = vpop.permute.xlu1 %1959 }
 0x245   : > { %3127 = vperm.xlu2 %5738, %v7117_v9   ;;  %v7222_v22 = vmul.f32 %v7127_v34, %v6333_v46  ;;  %16146 = vst [vmem:[#allocation143_spill] sm:$0xff] %v7224_v45  ;;  %v7232_v9 = vmul.f32 %v7123_v60, %v6335_v47  ;;  %v7236_v26 = vmul.f32 %v7125_v21, %v6335_v47 }
 0x246   : > { %v7240_v46 = vmul.f32 %v7127_v34, %v6335_v47  ;;  %v7244_v45 = vmul.f32 %v7121_v40, %v6342_v49  ;;  %v7275_v28 = vmul.f32 %v7127_v34, %v6344_v50  ;;  %v7293_v52 = vmul.f32 %v7127_v34, %v6346_v51 }
 0x247   : > { %v7309_v5 = vmul.f32 %v7127_v34, %v6353_v53 }
 0x248   : > { %16154 = vst [vmem:[#allocation151_spill] sm:$0xff] %v7293_v52  ;;  %v7317_v52 = vmul.f32 %v7123_v60, %v6355_v54 }
 0x249   : > { %4550 = vperm.xlu0 %5728, %v4430_v35   ;;  %v3054_v35 = vld [vmem:[%s15362_s5 + $0x60] sm:$0xff]  ;;  %16158 = vst [vmem:[#allocation155_spill] sm:$0xff] %v7309_v5  ;;  %v7331_v5 = vmul.f32 %v7127_v34, %v6355_v54 }
 0x24a   : > { %16159 = vst [vmem:[#allocation156_spill] sm:$0xff] %v7317_v52  ;;  %v7349_v52 = vmul.f32 %v7127_v34, %v6357_v55 }
 0x24b   : > { %v7206_v24 = vpop.permute.xlu0 %3998 }
 0x24c   : > { %16145 = vst [vmem:[#allocation142_spill] sm:$0xff] %v7206_v24  ;;  %v7228_v24 = vmul.f32 %v7121_v40, %v6335_v47  ;;  %3137 = vperm.xlu1 %5737, %v3053_v41   ;;  %v4433_v41 = vld [vmem:[%s15364_s7 + $0xb8] sm:$0xff]  ;;  %v7259_v47 = vmul.f32 %v7127_v34, %v6342_v49  ;;  %v7279_v49 = vmul.f32 %v7121_v40, %v6346_v51  ;;  %v7391_v44 = vpop.permute.xlu1 %1974 }
 0x24d   : > { %3142 = vperm.xlu2 %5738, %v3054_v35   ;;  %v7263_v35 = vmul.f32 %v7121_v40, %v6344_v50  ;;  %v7297_v50 = vmul.f32 %v7121_v40, %v6353_v53  ;;  %16165 = vst [vmem:[#allocation162_spill] sm:$0xff] %v7349_v52  ;;  %v7377_v52 = vmul.f32 %v7125_v21, %v6366_v58 }
 0x24e   : > { %16149 = vst [vmem:[#allocation146_spill] sm:$0xff] %v7259_v47  ;;  %v7287_v47 = vmul.f32 %v7125_v21, %v6346_v51  ;;  %v7313_v51 = vmul.f32 %v7121_v40, %v6355_v54 }
 0x24f   : > { %16150 = vst [vmem:[#allocation147_spill] sm:$0xff] %v7279_v49  ;;  %v7301_v49 = vmul.f32 %v7123_v60, %v6353_v53  ;;  %v3057_v53 = vld [vmem:[%s15362_s5 + $0x78] sm:$0xff] }
 0x250   : > { %16152 = vst [vmem:[#allocation149_spill] sm:$0xff] %v7287_v47  ;;  %v7321_v47 = vmul.f32 %v7125_v21, %v6355_v54  ;;  %v7353_v54 = vmul.f32 %v7121_v40, %v6364_v57 }
 0x251   : > { %16155 = vst [vmem:[#allocation152_spill] sm:$0xff] %v7297_v50  ;;  %4565 = vperm.xlu0 %5728, %v4433_v41   ;;  %v3056_v41 = vld [vmem:[%s15362_s5 + $0x70] sm:$0xff] }
 0x252   : > { %16156 = vst [vmem:[#allocation153_spill] sm:$0xff] %v7301_v49  ;;  %v7339_v49 = vmul.f32 %v7123_v60, %v6357_v55 }
 0x253   : > { %16160 = vst [vmem:[#allocation157_spill] sm:$0xff] %v7321_v47  ;;  %v7343_v47 = vmul.f32 %v7125_v21, %v6357_v55  ;;  %v7345_v50 = vpop.permute.xlu0 %4013  ;;  %v7369_v55 = vmul.f32 %v7121_v40, %v6366_v58 }
 0x254   : > { %16162 = vst [vmem:[#allocation159_spill] sm:$0xff] %v7339_v49  ;;  %v7361_v49 = vmul.f32 %v7125_v21, %v6364_v57  ;;  %3152 = vperm.xlu1 %5737, %v3056_v41   ;;  %v4436_v41 = vld [vmem:[%s15364_s7 + $0xd0] sm:$0xff] }
 0x255   : > { %16163 = vst [vmem:[#allocation160_spill] sm:$0xff] %v7343_v47  ;;  %v7365_v47 = vmul.f32 %v7127_v34, %v6364_v57  ;;  %3157 = vperm.xlu2 %5738, %v3057_v53   ;;  %v7385_v57 = vmul.f32 %v7121_v40, %v6368_v59  ;;  %v7398_v53 = vmul.f32 %v7125_v21, %v6368_v59 }
 0x256   : > { %16164 = vst [vmem:[#allocation161_spill] sm:$0xff] %v7345_v50  ;;  %v7373_v50 = vmul.f32 %v7123_v60, %v6366_v58 }
 0x257   : > { %16167 = vst [vmem:[#allocation164_spill] sm:$0xff] %v7361_v49  ;;  %v7381_v49 = vmul.f32 %v7127_v34, %v6366_v58  ;;  %v7402_v58 = vmul.f32 %v7127_v34, %v6368_v59 }
 0x258   : > { %16168 = vst [vmem:[#allocation165_spill] sm:$0xff] %v7365_v47  ;;  %v7389_v47 = vmul.f32 %v7123_v60, %v6368_v59  ;;  %v7422_v59 = vmul.f32 %v7121_v40, %v6377_v62 }
 0x259   : > { %16169 = vst [vmem:[#allocation166_spill] sm:$0xff] %v7385_v57  ;;  %v7406_v57 = vmul.f32 %v7121_v40, %v6375_v61  ;;  %4580 = vperm.xlu0 %5728, %v4436_v41   ;;  %v3059_v41 = vld [vmem:[%s15362_s5 + $0x88] sm:$0xff] }
 0x25a   : > { %16170 = vst [vmem:[#allocation167_spill] sm:$0xff] %v7389_v47  ;;  %v7410_v47 = vmul.f32 %v7123_v60, %v6375_v61 }
 0x25b   : > { %16171 = vst [vmem:[#allocation168_spill] sm:$0xff] %v7391_v44  ;;  %v7414_v44 = vmul.f32 %v7125_v21, %v6375_v61 }
 0x25c   : > { %16172 = vst [vmem:[#allocation169_spill] sm:$0xff] %v7398_v53  ;;  %v7418_v53 = vmul.f32 %v7127_v34, %v6375_v61  ;;  %v7438_v61 = vmul.f32 %v7121_v40, %v6379_v63  ;;  %3167 = vperm.xlu1 %5737, %v3059_v41   ;;  %v7532_v41 = vmul.f32 %v7125_v21, %v6397_v6 }
 0x25d   : > { %16173 = vst [vmem:[#allocation170_spill] sm:$0xff] %v7402_v58  ;;  %v7426_v58 = vmul.f32 %v7123_v60, %v6377_v62 }
 0x25e   : > { %16174 = vst [vmem:[#allocation171_spill] sm:$0xff] %v7406_v57  ;;  %v7430_v57 = vmul.f32 %v7125_v21, %v6377_v62 }
 0x25f   : > { %16175 = vst [vmem:[#allocation172_spill] sm:$0xff] %v7410_v47  ;;  %v7434_v47 = vmul.f32 %v7127_v34, %v6377_v62  ;;  %v7454_v62 = vmul.f32 %v7121_v40, %v6386_v1 }
 0x260   : > { %16176 = vst [vmem:[#allocation173_spill] sm:$0xff] %v7414_v44  ;;  %v7446_v44 = vmul.f32 %v7125_v21, %v6379_v63 }
 0x261   : > { %16177 = vst [vmem:[#allocation174_spill] sm:$0xff] %v7418_v53  ;;  %v7442_v53 = vmul.f32 %v7123_v60, %v6379_v63 }
 0x262   : > { %16178 = vst [vmem:[#allocation175_spill] sm:$0xff] %v7426_v58  ;;  %v7461_v58 = vpop.permute.xlu2 %2357 }
 0x263   : > { %16179 = vst [vmem:[#allocation176_spill] sm:$0xff] %v7430_v57  ;;  %v7450_v57 = vmul.f32 %v7127_v34, %v6379_v63  ;;  %v3060_v63 = vld [vmem:[%s15362_s5 + $0x90] sm:$0xff] }
 0x264   : > { %16180 = vst [vmem:[#allocation177_spill] sm:$0xff] %v7434_v47  ;;  %v5646_v47 = vld [vmem:[%s7101_s28 + $0x1] ss:$2 sm:$0xf]  ;;  %3172 = vperm.xlu2 %5738, %v3060_v63   ;;  %v7536_v63 = vmul.f32 %v7127_v34, %v6397_v6  ;;  %s15285_s28 = scalar_lea.vmem [#allocation7], %s5642_s26 }
 0x265   : > { %16181 = vst [vmem:[#allocation178_spill] sm:$0xff] %v7438_v61  ;;  %v7458_v61 = vmul.f32 %v7123_v60, %v6386_v1  ;;  %s5502_s17 = sshll.u32 %s15285_s28, 4  ;;  %s5503_s17 = int_to_ptr.vmem [resolvable:$true] %s5502_s17 }
 0x266   : > { %16182 = vst [vmem:[#allocation179_spill] sm:$0xff] %v7442_v53  ;;  %v7479_v53 = vmul.f32 %v7121_v40, %v6388_v2 }
 0x267   : > { %16183 = vst [vmem:[#allocation180_spill] sm:$0xff] %v7446_v44  ;;  %v7475_v44 = vmul.f32 %v7127_v34, %v6386_v1 }
 0x268   : > { %16184 = vst [vmem:[#allocation181_spill] sm:$0xff] %v7450_v57  ;;  %v7471_v57 = vmul.f32 %v7125_v21, %v6386_v1  ;;  %v7497_v1 = vmul.f32 %v7121_v40, %v6390_v4 }
 0x269   : > { %16185 = vst [vmem:[#allocation182_spill] sm:$0xff] %v7454_v62  ;;  %v7489_v62 = vmul.f32 %v7125_v21, %v6388_v2 }
 0x26a   : > { %16186 = vst [vmem:[#allocation183_spill] sm:$0xff] %v7458_v61  ;;  %v7485_v61 = vpop.permute.xlu0 %4028 }
 0x26b   : > { %16187 = vst [vmem:[#allocation184_spill] sm:$0xff] %v7461_v58  ;;  %v7483_v58 = vmul.f32 %v7123_v60, %v6388_v2 }
 0x26c   : > { %16188 = vst [vmem:[#allocation185_spill] sm:$0xff] %v7471_v57  ;;  %v7493_v57 = vmul.f32 %v7127_v34, %v6388_v2  ;;  %v7513_v2 = vperm.slane %v5646_v47, 1 }
 0x26d   : > { %16189 = vst [vmem:[#allocation186_spill] sm:$0xff] %v7475_v44  ;;  %v7501_v44 = vmul.f32 %v7123_v60, %v6390_v4 }
 0x26e   : > { %16190 = vst [vmem:[#allocation187_spill] sm:$0xff] %v7483_v58  ;;  %v7505_v58 = vmul.f32 %v7125_v21, %v6390_v4 }
 0x26f   : > { %16191 = vst [vmem:[#allocation188_spill] sm:$0xff] %v7485_v61  ;;  %v7509_v61 = vmul.f32 %v7127_v34, %v6390_v4  ;;  %v4439_v4 = vld [vmem:[%s15364_s7 + $0xe8] sm:$0xff] }
 0x270   : > { %16192 = vst [vmem:[#allocation189_spill] sm:$0xff] %v7489_v62  ;;  %v7511_v62 = vperm.slane %v5646_v47, 0  ;;  %4595 = vperm.xlu0 %5728, %v4439_v4   ;;  %v3062_v4 = vld [vmem:[%s15362_s5 + $0xa0] sm:$0xff] }
 0x271   : > { %16193 = vst [vmem:[#allocation190_spill] sm:$0xff] %v7493_v57  ;;  %v7523_v57 = vperm.slane %v5646_v47, 2  ;;  %3182 = vperm.xlu1 %5737, %v3062_v4   ;;  %v4442_v4 = vld [vmem:[%s15364_s7 + $0x100] sm:$0xff] }
 0x272   : > { %16194 = vst [vmem:[#allocation191_spill] sm:$0xff] %v7497_v1  ;;  %v7517_v1 = vmul.f32 %v7121_v40, %v6397_v6 }
 0x273   : > { %16195 = vst [vmem:[#allocation192_spill] sm:$0xff] %v7501_v44  ;;  %v7521_v44 = vmul.f32 %v7123_v60, %v6397_v6  ;;  %v7556_v6 = vmul.f32 %v7121_v40, %v6401_v8 }
 0x274   : > { %16196 = vst [vmem:[#allocation193_spill] sm:$0xff] %v7505_v58  ;;  %v7525_v58 = vperm.slane %v5646_v47, 3  ;;  %v7544_v47 = vmul.f32 %v7123_v60, %v6399_v7 }
 0x275   : > { %16197 = vst [vmem:[#allocation194_spill] sm:$0xff] %v7509_v61  ;;  %v7540_v61 = vmul.f32 %v7121_v40, %v6399_v7 }
 0x276   : > { %16198 = vst [vmem:[#allocation195_spill] sm:$0xff] %v7511_v62 }
 0x277   : > { %16199 = vst [vmem:[#allocation196_spill] sm:$0xff] %v7513_v2 }
 0x278   : > { %16200 = vst [vmem:[#allocation197_spill] sm:$0xff] %v7517_v1  ;;  %v7552_v1 = vmul.f32 %v7127_v34, %v6399_v7  ;;  %4610 = vperm.xlu0 %5728, %v4442_v4   ;;  %v7729_v4 = vld [vmem:[%s15362_s5 + $0xb8] sm:$0xff] }
 0x279   : > { %16201 = vst [vmem:[#allocation198_spill] sm:$0xff] %v7521_v44  ;;  %v7548_v44 = vmul.f32 %v7125_v21, %v6399_v7  ;;  %v7574_v7 = vmul.f32 %v7121_v40, %v6408_v10  ;;  %3197 = vperm.xlu1 %5737, %v7729_v4  }
 0x27a   : > { %16202 = vst [vmem:[#allocation199_spill] sm:$0xff] %v7523_v57 }
 0x27b   : > { %16203 = vst [vmem:[#allocation200_spill] sm:$0xff] %v7525_v58 }
 0x27c   : > { %16204 = vst [vmem:[#allocation201_spill] sm:$0xff] %v7532_v41  ;;  %v7562_v41 = vpop.permute.xlu1 %1989 }
 0x27d   : > { %16205 = vst [vmem:[#allocation202_spill] sm:$0xff] %v7536_v63  ;;  %v7560_v63 = vmul.f32 %v7123_v60, %v6401_v8 }
 0x27e   : > { %16206 = vst [vmem:[#allocation203_spill] sm:$0xff] %v7544_v47  ;;  %v7566_v47 = vmul.f32 %v7125_v21, %v6401_v8 }
 0x27f   : > { %16207 = vst [vmem:[#allocation204_spill] sm:$0xff] %v7548_v44  ;;  %v7570_v44 = vmul.f32 %v7127_v34, %v6401_v8  ;;  %v7590_v8 = vmul.f32 %v7121_v40, %v6410_v11 }
 0x280   : > { %16208 = vst [vmem:[#allocation205_spill] sm:$0xff] %v7556_v6  ;;  %v7578_v6 = vmul.f32 %v7123_v60, %v6408_v10 }
 0x281   : > { %16209 = vst [vmem:[#allocation206_spill] sm:$0xff] %v7560_v63  ;;  %v7582_v63 = vmul.f32 %v7125_v21, %v6408_v10 }
 0x282   : > { %16210 = vst [vmem:[#allocation207_spill] sm:$0xff] %v7562_v41  ;;  %v3063_v41 = vld [vmem:[%s15362_s5 + $0xa8] sm:$0xff] }
 0x283   : > { %16211 = vst [vmem:[#allocation208_spill] sm:$0xff] %v7566_v47  ;;  %v7586_v47 = vmul.f32 %v7127_v34, %v6408_v10  ;;  %v7604_v10 = vmul.f32 %v7125_v21, %v6410_v11  ;;  %3187 = vperm.xlu2 %5738, %v3063_v41   ;;  %v7669_v41 = vmul.f32 %v7121_v40, %v6423_v16 }
 0x284   : > { %16212 = vst [vmem:[#allocation209_spill] sm:$0xff] %v7570_v44  ;;  %v7594_v44 = vmul.f32 %v7123_v60, %v6410_v11 }
 0x285   : > { %16213 = vst [vmem:[#allocation210_spill] sm:$0xff] %v7578_v6  ;;  %v7622_v6 = vmul.f32 %v7125_v21, %v6412_v12 }
 0x286   : > { %16214 = vst [vmem:[#allocation211_spill] sm:$0xff] %v7582_v63  ;;  %v7618_v63 = vpop.permute.xlu0 %4043 }
 0x287   : > { %16215 = vst [vmem:[#allocation212_spill] sm:$0xff] %v7586_v47  ;;  %v7608_v47 = vmul.f32 %v7127_v34, %v6410_v11  ;;  %v7630_v11 = vmul.f32 %v7121_v40, %v6419_v14 }
 0x288   : > { %16216 = vst [vmem:[#allocation213_spill] sm:$0xff] %v7590_v8  ;;  %v7612_v8 = vmul.f32 %v7121_v40, %v6412_v12 }
 0x289   : > { %16217 = vst [vmem:[#allocation214_spill] sm:$0xff] %v7594_v44  ;;  %v7616_v44 = vmul.f32 %v7123_v60, %v6412_v12 }
 0x28a   : > { %16218 = vst [vmem:[#allocation215_spill] sm:$0xff] %v7604_v10  ;;  %v7626_v10 = vmul.f32 %v7127_v34, %v6412_v12  ;;  %v7648_v12 = vmul.f32 %v7121_v40, %v6421_v15 }
 0x28b   : > { %16219 = vst [vmem:[#allocation216_spill] sm:$0xff] %v7608_v47  ;;  %v7636_v47 = vpop.permute.xlu2 %2369 }
 0x28c   : > { %16220 = vst [vmem:[#allocation217_spill] sm:$0xff] %v7612_v8  ;;  %v7634_v8 = vmul.f32 %v7123_v60, %v6419_v14 }
 0x28d   : > { %16221 = vst [vmem:[#allocation218_spill] sm:$0xff] %v7616_v44  ;;  %v7656_v44 = vmul.f32 %v7125_v21, %v6421_v15 }
 0x28e   : > { %16222 = vst [vmem:[#allocation219_spill] sm:$0xff] %v7618_v63  ;;  %v7640_v63 = vmul.f32 %v7125_v21, %v6419_v14 }
 0x28f   : > { %16223 = vst [vmem:[#allocation220_spill] sm:$0xff] %v7622_v6  ;;  %v7644_v6 = vmul.f32 %v7127_v34, %v6419_v14  ;;  %v953_v14 = vmul.f32 %v7511_v62, %v6434_v20 }
 0x290   : > { %16224 = vst [vmem:[#allocation221_spill] sm:$0xff] %v7626_v10  ;;  %v7652_v10 = vmul.f32 %v7123_v60, %v6421_v15 }
 0x291   : > { %16225 = vst [vmem:[#allocation222_spill] sm:$0xff] %v7634_v8 }
 0x292   : > { %16226 = vst [vmem:[#allocation223_spill] sm:$0xff] %v7636_v47  ;;  %v7660_v47 = vmul.f32 %v7127_v34, %v6421_v15  ;;  %v956_v15 = vmul.f32 %v7525_v58, %v6434_v20 }
 0x293   : > { %16227 = vst [vmem:[#allocation224_spill] sm:$0xff] %v7640_v63 }
 0x294   : > { %16228 = vst [vmem:[#allocation225_spill] sm:$0xff] %v7644_v6  ;;  %v16237_v6 = vld [vmem:[#allocation14_spill] sm:$0xff] }
 0x295   : > { %16229 = vst [vmem:[#allocation226_spill] sm:$0xff] %v7648_v12  ;;  %v7683_v12 = vmul.f32 %v7125_v21, %v6423_v16  ;;  %v7691_v63 = vmul.f32 %v7121_v40, %v16237_v6  ;;  %v7695_v8 = vmul.f32 %v7123_v60, %v16237_v6 }
 0x296   : > { %16230 = vst [vmem:[#allocation227_spill] sm:$0xff] %v7652_v10  ;;  %v954_v10 = vmul.f32 %v7513_v2, %v6434_v20 }
 0x297   : > { %16231 = vst [vmem:[#allocation228_spill] sm:$0xff] %v7656_v44  ;;  %v955_v44 = vmul.f32 %v7523_v57, %v6434_v20  ;;  %v7699_v20 = vmul.f32 %v7125_v21, %v16237_v6 }
 0x298   : > { %16232 = vst [vmem:[#allocation229_spill] sm:$0xff] %v7660_v47  ;;  %v7679_v47 = vmul.f32 %v7123_v60, %v6423_v16 }
 0x299   : > { %16233 = vst [vmem:[#allocation230_spill] sm:$0xff] %v7669_v41  ;;  %v7687_v41 = vmul.f32 %v7127_v34, %v6423_v16 }
 0x29a   : > { %16234 = vst [vmem:[#allocation231_spill] sm:$0xff] %v7679_v47  ;;  %v7703_v47 = vmul.f32 %v7127_v34, %v16237_v6  ;;  %v7722_v6 = vadd.f32 %v953_v14, %v7228_v24  ;;  %v7744_v24 = vadd.f32 %v955_v44, %v7236_v26  ;;  %v7747_v14 = vadd.f32 %v956_v15, %v7240_v46 }
 0x29b   : > { %16235 = vst [vmem:[#allocation232_spill] sm:$0xff] %v7683_v12  ;;  %v16242_v12 = vld [vmem:[#allocation15_spill] sm:$0xff] }
 0x29c   : > { %16236 = vst [vmem:[#allocation233_spill] sm:$0xff] %v7687_v41  ;;  %v7707_v16 = vmul.f32 %v7121_v40, %v16242_v12  ;;  %v7711_v41 = vmul.f32 %v7123_v60, %v16242_v12 }
 0x29d   : > { %16238 = vst [vmem:[#allocation14_spill] sm:$0xff] %v7691_v63 }
 0x29e   : > { %16239 = vst [vmem:[#allocation234_spill] sm:$0xff] %v7695_v8  ;;  %v7715_v8 = vmul.f32 %v7125_v21, %v16242_v12 }
 0x29f   : > { %16240 = vst [vmem:[#allocation235_spill] sm:$0xff] %v7699_v20  ;;  %v7719_v20 = vmul.f32 %v7127_v34, %v16242_v12  ;;  %v7741_v12 = vadd.f32 %v954_v10, %v7232_v9  ;;  %v16261_v10 = vld [vmem:[#allocation17_spill] sm:$0xff] }
 0x2a0   : > { %16241 = vst [vmem:[#allocation236_spill] sm:$0xff] %v7703_v47  ;;  %v7724_v47 = vpop.permute.xlu1 %2004  ;;  %v7775_v15 = vmul.f32 %v7121_v40, %v16261_v10 }
 0x2a1   : > { %16243 = vst [vmem:[#allocation15_spill] sm:$0xff] %v7707_v16 }
 0x2a2   : > { %16244 = vst [vmem:[#allocation237_spill] sm:$0xff] %v7711_v41  ;;  %v7734_v41 = vld [vmem:[%s15362_s5 + $0xc0] sm:$0xff] }
 0x2a3   : > { %16245 = vst [vmem:[#allocation238_spill] sm:$0xff] %v7715_v8  ;;  %v16251_v8 = vld [vmem:[#allocation16_spill] sm:$0xff]  ;;  %3202 = vperm.xlu2 %5738, %v7734_v41  }
 0x2a4   : > { %16246 = vst [vmem:[#allocation239_spill] sm:$0xff] %v7719_v20  ;;  %v7738_v16 = vmul.f32 %v7121_v40, %v16251_v8  ;;  %v7749_v20 = vpop.permute.xlu0 %4058  ;;  %v7761_v26 = vmul.f32 %v7123_v60, %v16251_v8  ;;  %v7765_v44 = vmul.f32 %v7125_v21, %v16251_v8  ;;  %v7769_v46 = vmul.f32 %v7127_v34, %v16251_v8 }
 0x2a5   : > { %16247 = vst [vmem:[#allocation240_spill] sm:$0xff] %v7722_v6  ;;  %v7787_v8 = vmul.f32 %v7127_v34, %v16261_v10 }
 0x2a6   : > { %16248 = vst [vmem:[#allocation241_spill] sm:$0xff] %v7724_v47  ;;  %v16257_v47 = vld [vmem:[#allocation18_spill] sm:$0xff] }
 0x2a7   : > { %16249 = vst [vmem:[#allocation242_spill] sm:$0xff] %v7729_v4  ;;  %v965_v63 = vmul.f32 %v7511_v62, %v16257_v47  ;;  %v966_v6 = vmul.f32 %v7513_v2, %v16257_v47  ;;  %v968_v9 = vmul.f32 %v7525_v58, %v16257_v47  ;;  %v16267_v4 = vld [vmem:[#allocation21_spill] sm:$0xff] }
 0x2a8   : > { %16250 = vst [vmem:[#allocation243_spill] sm:$0xff] %v7734_v41  ;;  %v4445_v41 = vld [vmem:[%s15364_s7 + $0x118] sm:$0xff] }
 0x2a9   : > { %16252 = vst [vmem:[#allocation16_spill] sm:$0xff] %v7738_v16  ;;  %v967_v16 = vmul.f32 %v7523_v57, %v16257_v47  ;;  %v7779_v47 = vmul.f32 %v7123_v60, %v16261_v10  ;;  %4625 = vperm.xlu0 %5728, %v4445_v41   ;;  %v7849_v41 = vld [vmem:[%s15362_s5 + $0xd0] sm:$0xff] }
 0x2aa   : > { %16253 = vst [vmem:[#allocation244_spill] sm:$0xff] %v7741_v12  ;;  %3212 = vperm.xlu1 %5737, %v7849_v41  }
 0x2ab   : > { %16254 = vst [vmem:[#allocation245_spill] sm:$0xff] %v7744_v24 }
 0x2ac   : > { %16255 = vst [vmem:[#allocation246_spill] sm:$0xff] %v7747_v14  ;;  %v16268_v14 = vld [vmem:[#allocation19_spill] sm:$0xff] }
 0x2ad   : > { %16256 = vst [vmem:[#allocation247_spill] sm:$0xff] %v7749_v20  ;;  %v7783_v20 = vmul.f32 %v7125_v21, %v16261_v10  ;;  %v7803_v10 = vadd.f32 %v965_v63, %v7263_v35  ;;  %v7816_v24 = vmul.f32 %v7121_v40, %v16268_v14  ;;  %v7820_v12 = vmul.f32 %v7123_v60, %v16268_v14 }
 0x2ae   : > { %16258 = vst [vmem:[#allocation18_spill] sm:$0xff] %v7761_v26  ;;  %v7812_v26 = vadd.f32 %v968_v9, %v7275_v28  ;;  %v7824_v35 = vmul.f32 %v7125_v21, %v16268_v14 }
 0x2af   : > { %16259 = vst [vmem:[#allocation248_spill] sm:$0xff] %v7765_v44  ;;  %v975_v44 = vmul.f32 %v7523_v57, %v16267_v4 }
 0x2b0   : > { %16260 = vst [vmem:[#allocation249_spill] sm:$0xff] %v7769_v46  ;;  %v7789_v46 = vpop.permute.xlu2 %2377 }
 0x2b1   : > { %16262 = vst [vmem:[#allocation17_spill] sm:$0xff] %v7775_v15  ;;  %v973_v15 = vmul.f32 %v7511_v62, %v16267_v4  ;;  %5743 = vset.pattern.permute.xlu0 %v16090_v19 }
 0x2b2   : > { %16263 = vst [vmem:[#allocation250_spill] sm:$0xff] %v7779_v47  ;;  %v974_v47 = vmul.f32 %v7513_v2, %v16267_v4 }
 0x2b3   : > { %16264 = vst [vmem:[#allocation251_spill] sm:$0xff] %v7783_v20  ;;  %v976_v20 = vmul.f32 %v7525_v58, %v16267_v4  ;;  %v7854_v4 = vld [vmem:[%s15362_s5 + $0xd8] sm:$0xff] }
 0x2b4   : > { %16265 = vst [vmem:[#allocation252_spill] sm:$0xff] %v7787_v8  ;;  %v7806_v8 = vadd.f32 %v966_v6, %v7267_v36  ;;  %v7828_v36 = vmul.f32 %v7127_v34, %v16268_v14  ;;  %v7857_v14 = vadd.f32 %v973_v15, %v7154_v13  ;;  %v7860_v9 = vadd.f32 %v974_v47, %v7158_v29  ;;  %v16287_v29 = vld [vmem:[#allocation24_spill] sm:$0xff] }
 0x2b5   : > { %16266 = vst [vmem:[#allocation253_spill] sm:$0xff] %v7789_v46  ;;  %v7809_v46 = vadd.f32 %v967_v16, %v7271_v23  ;;  %v16273_v23 = vld [vmem:[#allocation20_spill] sm:$0xff]  ;;  %v988_v15 = vmul.f32 %v7525_v58, %v16287_v29  ;;  %3217 = vperm.xlu2 %5738, %v7854_v4  }
 0x2b6   : > { %16269 = vst [vmem:[#allocation21_spill] sm:$0xff] %v7816_v24  ;;  %v7832_v28 = vmul.f32 %v7121_v40, %v16273_v23  ;;  %v7836_v63 = vmul.f32 %v7123_v60, %v16273_v23  ;;  %v7840_v16 = vmul.f32 %v7125_v21, %v16273_v23  ;;  %v7844_v6 = vmul.f32 %v7127_v34, %v16273_v23 }
 0x2b7   : > { %16270 = vst [vmem:[#allocation19_spill] sm:$0xff] %v7820_v12  ;;  %v7866_v23 = vadd.f32 %v976_v20, %v7166_v38  ;;  %v986_v38 = vmul.f32 %v7513_v2, %v16287_v29  ;;  %v987_v20 = vmul.f32 %v7523_v57, %v16287_v29 }
 0x2b8   : > { %16271 = vst [vmem:[#allocation254_spill] sm:$0xff] %v7824_v35 }
 0x2b9   : > { %16272 = vst [vmem:[#allocation255_spill] sm:$0xff] %v7828_v36 }
 0x2ba   : > { %16274 = vst [vmem:[#allocation20_spill] sm:$0xff] %v7832_v28 }
 0x2bb   : > { %16275 = vst [vmem:[#allocation256_spill] sm:$0xff] %v7836_v63  ;;  %v16283_v63 = vld [vmem:[#allocation22_spill] sm:$0xff] }
 0x2bc   : > { %16276 = vst [vmem:[#allocation257_spill] sm:$0xff] %v7840_v16  ;;  %v7863_v16 = vadd.f32 %v975_v44, %v7162_v31  ;;  %v7872_v28 = vmul.f32 %v7121_v40, %v16283_v63  ;;  %v7876_v36 = vmul.f32 %v7123_v60, %v16283_v63  ;;  %v7880_v13 = vmul.f32 %v7125_v21, %v16283_v63  ;;  %v7884_v44 = vpop.permute.xlu1 %2353 }
 0x2bd   : > { %16277 = vst [vmem:[#allocation258_spill] sm:$0xff] %v7844_v6  ;;  %v7868_v6 = vpop.permute.xlu0 %4073  ;;  %v985_v31 = vmul.f32 %v7511_v62, %v16287_v29  ;;  %v7896_v47 = vmul.f32 %v7127_v34, %v16283_v63 }
 0x2be   : > { %16278 = vst [vmem:[#allocation259_spill] sm:$0xff] %v7849_v41 }
 0x2bf   : > { %16279 = vst [vmem:[#allocation260_spill] sm:$0xff] %v7854_v4 }
 0x2c0   : > { %16280 = vst [vmem:[#allocation261_spill] sm:$0xff] %v7863_v16  ;;  %v7931_v16 = vadd.f32 %v985_v31, %v7170_v37 }
 0x2c1   : > { %16281 = vst [vmem:[#allocation262_spill] sm:$0xff] %v7866_v23  ;;  %v7928_v23 = vpop.permute.xlu2 %2389 }
 0x2c2   : > { %16282 = vst [vmem:[#allocation263_spill] sm:$0xff] %v7868_v6  ;;  %v16290_v6 = vld [vmem:[#allocation26_spill] sm:$0xff] }
 0x2c3   : > { %16284 = vst [vmem:[#allocation22_spill] sm:$0xff] %v7872_v28  ;;  %v963_v28 = vmul.f32 %v7523_v57, %v16290_v6  ;;  %v964_v29 = vmul.f32 %v7525_v58, %v16290_v6 }
 0x2c4   : > { %16285 = vst [vmem:[#allocation264_spill] sm:$0xff] %v7876_v36  ;;  %v962_v36 = vmul.f32 %v7513_v2, %v16290_v6 }
 0x2c5   : > { %16286 = vst [vmem:[#allocation265_spill] sm:$0xff] %v7880_v13  ;;  %v961_v13 = vmul.f32 %v7511_v62, %v16290_v6  ;;  %v7961_v31 = vadd.f32 %v963_v28, %v7218_v27 }
 0x2c6   : > { %16288 = vst [vmem:[#allocation24_spill] sm:$0xff] %v7884_v44  ;;  %v16291_v44 = vld [vmem:[#allocation27_spill] sm:$0xff]  ;;  %v7958_v37 = vadd.f32 %v962_v36, %v7214_v18  ;;  %v16302_v36 = vld [vmem:[#allocation30_spill] sm:$0xff] }
 0x2c7   : > { %16289 = vst [vmem:[#allocation266_spill] sm:$0xff] %v7896_v47  ;;  %v997_v41 = vmul.f32 %v7511_v62, %v16291_v44  ;;  %v998_v4 = vmul.f32 %v7513_v2, %v16291_v44  ;;  %v999_v63 = vmul.f32 %v7523_v57, %v16291_v44  ;;  %v16292_v47 = vld [vmem:[#allocation23_spill] sm:$0xff]  ;;  %v1010_v28 = vmul.f32 %v7513_v2, %v16302_v36 }
 0x2c8   : > { %v7914_v35 = vmul.f32 %v7121_v40, %v16292_v47  ;;  %v7918_v12 = vmul.f32 %v7123_v60, %v16292_v47  ;;  %v7922_v6 = vmul.f32 %v7125_v21, %v16292_v47  ;;  %v7926_v24 = vmul.f32 %v7127_v34, %v16292_v47  ;;  %16297 = vst [vmem:[#allocation268_spill] sm:$0xff] %v7928_v23  ;;  %v5778_v34 = vld [vmem:[%s16012_s1 + $0x8] sm:$0xff]  ;;  %v16306_v23 = vld [vmem:[#allocation144_spill] sm:$0xff] }
 0x2c9   : > { %v7934_v40 = vadd.f32 %v986_v38, %v7174_v32  ;;  %v7940_v60 = vadd.f32 %v988_v15, %v7182_v0  ;;  %v1000_v21 = vmul.f32 %v7525_v58, %v16291_v44  ;;  %797 = vperm.xlu0 %5743, %v5778_v34   ;;  %v3071_v32 = vld [vmem:[%s15362_s5 + $0xe8] sm:$0xff]  ;;  %v7955_v0 = vadd.f32 %v961_v13, %v7210_v30  ;;  %v7972_v15 = vpop.permute.xlu0 %4088  ;;  %v16301_v13 = vld [vmem:[#allocation29_spill] sm:$0xff]  ;;  %v8000_v34 = vpop.permute.xlu1 %2365 }
 0x2ca   : > { %16293 = vst [vmem:[#allocation26_spill] sm:$0xff] %v7914_v35  ;;  %v7937_v35 = vadd.f32 %v987_v20, %v7178_v56  ;;  %v3072_v56 = vld [vmem:[%s15362_s5 + $0xf0] sm:$0xff]  ;;  %v7964_v44 = vadd.f32 %v997_v41, %v7192_v3  ;;  %v7967_v38 = vadd.f32 %v998_v4, %v7196_v17  ;;  %v7970_v20 = vadd.f32 %v999_v63, %v7200_v43 }
 0x2cb   : > { %16294 = vst [vmem:[#allocation27_spill] sm:$0xff] %v7918_v12  ;;  %v7975_v30 = vadd.f32 %v964_v29, %v7222_v22  ;;  %v969_v18 = vmul.f32 %v7511_v62, %v16301_v13  ;;  %v970_v27 = vmul.f32 %v7513_v2, %v16301_v13  ;;  %v971_v3 = vmul.f32 %v7523_v57, %v16301_v13  ;;  %v16303_v4 = vld [vmem:[#allocation32_spill] sm:$0xff] }
 0x2cc   : > { %16295 = vst [vmem:[#allocation23_spill] sm:$0xff] %v7922_v6  ;;  %v972_v17 = vmul.f32 %v7525_v58, %v16301_v13  ;;  %v1009_v43 = vmul.f32 %v7511_v62, %v16302_v36  ;;  %v1011_v22 = vmul.f32 %v7523_v57, %v16302_v36  ;;  %3227 = vperm.xlu1 %5737, %v3071_v32  }
 0x2cd   : > { %16296 = vst [vmem:[#allocation267_spill] sm:$0xff] %v7926_v24  ;;  %3232 = vperm.xlu2 %5738, %v3072_v56   ;;  %v1012_v41 = vmul.f32 %v7525_v58, %v16302_v36  ;;  %v981_v47 = vmul.f32 %v7511_v62, %v16303_v4  ;;  %v982_v29 = vmul.f32 %v7513_v2, %v16303_v4  ;;  %v16305_v56 = vld [vmem:[#allocation33_spill] sm:$0xff] }
 0x2ce   : > { %16298 = vst [vmem:[#allocation269_spill] sm:$0xff] %v7961_v31  ;;  %v7998_v63 = vadd.f32 %v1000_v21, %v7204_v42  ;;  %v983_v13 = vmul.f32 %v7523_v57, %v16303_v4  ;;  %v984_v32 = vmul.f32 %v7525_v58, %v16303_v4  ;;  %v1021_v36 = vmul.f32 %v7511_v62, %v16305_v56 }
 0x2cf   : > { %16299 = vst [vmem:[#allocation270_spill] sm:$0xff] %v7972_v15  ;;  %v1022_v15 = vmul.f32 %v7513_v2, %v16305_v56  ;;  %v1023_v24 = vmul.f32 %v7523_v57, %v16305_v56  ;;  %v8013_v42 = vadd.f32 %v969_v18, %v7138_v39  ;;  %v8016_v21 = vadd.f32 %v970_v27, %v7142_v48  ;;  %v16308_v48 = vld [vmem:[#allocation146_spill] sm:$0xff]  ;;  %v16313_v27 = vld [vmem:[#allocation156_spill] sm:$0xff] }
 0x2d0   : > { %16300 = vst [vmem:[#allocation271_spill] sm:$0xff] %v7975_v30  ;;  %v8019_v6 = vadd.f32 %v971_v3, %v7146_v33  ;;  %v8022_v4 = vadd.f32 %v972_v17, %v7150_v25  ;;  %v8025_v12 = vadd.f32 %v1009_v43, %v7244_v45  ;;  %v16307_v30 = vld [vmem:[#allocation145_spill] sm:$0xff]  ;;  %v1024_v39 = vmul.f32 %v7525_v58, %v16305_v56  ;;  %v8038_v33 = vpop.permute.xlu2 %2401  ;;  %v5779_v25 = vld [vmem:[%s16012_s1 + $0x30] sm:$0xff]  ;;  %v8046_v45 = vld [vmem:[%s15362_s5 + $0x100] sm:$0xff] }
 0x2d1   : > { %16304 = vst [vmem:[#allocation29_spill] sm:$0xff] %v8000_v34  ;;  %v8028_v34 = vadd.f32 %v1010_v28, %v16306_v23  ;;  %v8031_v31 = vadd.f32 %v1011_v22, %v16307_v30  ;;  %v8036_v18 = vadd.f32 %v1012_v41, %v16308_v48  ;;  %817 = vperm.xlu0 %5743, %v5779_v25   ;;  %v8051_v23 = vld [vmem:[%s15362_s5 + $0x108] sm:$0xff]  ;;  %v16315_v17 = vld [vmem:[#allocation152_spill] sm:$0xff]  ;;  %v16317_v28 = vld [vmem:[#allocation153_spill] sm:$0xff]  ;;  %v8065_v41 = vpop.permute.xlu0 %4103 }
 0x2d2   : > { %16309 = vst [vmem:[#allocation30_spill] sm:$0xff] %v8038_v33  ;;  %v8054_v30 = vadd.f32 %v981_v47, %v7313_v51  ;;  %v8057_v3 = vadd.f32 %v982_v29, %v16313_v27  ;;  %v8060_v43 = vadd.f32 %v1021_v36, %v16315_v17  ;;  %v8063_v22 = vadd.f32 %v1022_v15, %v16317_v28  ;;  %v16320_v56 = vld [vmem:[#allocation157_spill] sm:$0xff]  ;;  %v16323_v33 = vld [vmem:[#allocation35_spill] sm:$0xff]  ;;  %v16324_v36 = vld [vmem:[#allocation154_spill] sm:$0xff] }
 0x2d3   : > { %16310 = vst [vmem:[#allocation32_spill] sm:$0xff] %v8046_v45  ;;  %v8068_v48 = vadd.f32 %v983_v13, %v16320_v56  ;;  %v8071_v25 = vadd.f32 %v984_v32, %v7331_v5  ;;  %v993_v51 = vmul.f32 %v7511_v62, %v16323_v33  ;;  %v994_v47 = vmul.f32 %v7513_v2, %v16323_v33  ;;  %v16326_v13 = vld [vmem:[#allocation36_spill] sm:$0xff]  ;;  %v16327_v28 = vld [vmem:[#allocation38_spill] sm:$0xff] }
 0x2d4   : > { %16311 = vst [vmem:[#allocation33_spill] sm:$0xff] %v8051_v23  ;;  %v995_v29 = vmul.f32 %v7523_v57, %v16323_v33  ;;  %v8080_v15 = vadd.f32 %v1023_v24, %v16324_v36  ;;  %v996_v27 = vmul.f32 %v7525_v58, %v16323_v33  ;;  %v1033_v17 = vmul.f32 %v7511_v62, %v16326_v13  ;;  %v16328_v33 = vld [vmem:[#allocation155_spill] sm:$0xff] }
 0x2d5   : > { %16312 = vst [vmem:[#allocation144_spill] sm:$0xff] %v8054_v30  ;;  %v1034_v5 = vmul.f32 %v7513_v2, %v16326_v13  ;;  %3242 = vperm.xlu1 %5737, %v8046_v45   ;;  %3247 = vperm.xlu2 %5738, %v8051_v23   ;;  %v1035_v32 = vmul.f32 %v7523_v57, %v16326_v13 }
 0x2d6   : > { %16314 = vst [vmem:[#allocation145_spill] sm:$0xff] %v8057_v3  ;;  %v1036_v24 = vmul.f32 %v7525_v58, %v16326_v13  ;;  %v1005_v56 = vmul.f32 %v7511_v62, %v16327_v28  ;;  %v8097_v36 = vadd.f32 %v1024_v39, %v16328_v33  ;;  %v1007_v45 = vmul.f32 %v7523_v57, %v16327_v28  ;;  %v8111_v39 = vpop.permute.xlu1 %2373 }
 0x2d7   : > { %16316 = vst [vmem:[#allocation146_spill] sm:$0xff] %v8060_v43  ;;  %v1008_v23 = vmul.f32 %v7525_v58, %v16327_v28  ;;  %v8114_v33 = vadd.f32 %v993_v51, %v7369_v55  ;;  %v8120_v43 = vadd.f32 %v1033_v17, %v7353_v54  ;;  %v8126_v3 = vadd.f32 %v995_v29, %v7377_v52  ;;  %v16335_v55 = vld [vmem:[#allocation164_spill] sm:$0xff]  ;;  %v5780_v54 = vld [vmem:[%s16012_s1 + $0x48] sm:$0xff]  ;;  %v8145_v52 = vld [vmem:[%s15362_s5 + $0x118] sm:$0xff] }
 0x2d8   : > { %16318 = vst [vmem:[#allocation156_spill] sm:$0xff] %v8063_v22  ;;  %v8129_v30 = vadd.f32 %v996_v27, %v7381_v49  ;;  %v8134_v51 = vadd.f32 %v1035_v32, %v16335_v55  ;;  %v8150_v49 = vld [vmem:[%s15362_s5 + $0x120] sm:$0xff]  ;;  %v16342_v29 = vld [vmem:[#allocation171_spill] sm:$0xff]  ;;  %v16349_v55 = vld [vmem:[#allocation177_spill] sm:$0xff] }
 0x2d9   : > { %16319 = vst [vmem:[#allocation152_spill] sm:$0xff] %v8065_v41  ;;  %v1006_v41 = vmul.f32 %v7513_v2, %v16327_v28  ;;  %v16333_v28 = vld [vmem:[#allocation163_spill] sm:$0xff]  ;;  %829 = vperm.xlu0 %5743, %v5780_v54   ;;  %v8158_v17 = vpop.permute.xlu0 %4460  ;;  %v16351_v54 = vld [vmem:[#allocation41_spill] sm:$0xff] }
 0x2da   : > { %16321 = vst [vmem:[#allocation153_spill] sm:$0xff] %v8068_v48  ;;  %v8123_v48 = vadd.f32 %v1034_v5, %v16333_v28  ;;  %v16345_v5 = vld [vmem:[#allocation175_spill] sm:$0xff] }
 0x2db   : > { %16322 = vst [vmem:[#allocation157_spill] sm:$0xff] %v8071_v25  ;;  %v16330_v25 = vld [vmem:[#allocation39_spill] sm:$0xff]  ;;  %v8161_v32 = vadd.f32 %v1006_v41, %v16345_v5  ;;  %v8179_v41 = vpop.permute.xlu2 %2413  ;;  %v16357_v5 = vld [vmem:[#allocation42_spill] sm:$0xff] }
 0x2dc   : > { %16325 = vst [vmem:[#allocation35_spill] sm:$0xff] %v8080_v15  ;;  %v1045_v15 = vmul.f32 %v7511_v62, %v16330_v25  ;;  %v1046_v13 = vmul.f32 %v7513_v2, %v16330_v25  ;;  %v1047_v22 = vmul.f32 %v7523_v57, %v16330_v25 }
 0x2dd   : > { %16329 = vst [vmem:[#allocation154_spill] sm:$0xff] %v8097_v36  ;;  %v8117_v36 = vadd.f32 %v994_v47, %v7373_v50  ;;  %v16337_v50 = vld [vmem:[#allocation165_spill] sm:$0xff]  ;;  %3257 = vperm.xlu1 %5737, %v8145_v52   ;;  %3262 = vperm.xlu2 %5738, %v8150_v49  }
 0x2de   : > { %16331 = vst [vmem:[#allocation36_spill] sm:$0xff] %v8111_v39  ;;  %v1048_v39 = vmul.f32 %v7525_v58, %v16330_v25  ;;  %v8137_v47 = vadd.f32 %v1036_v24, %v16337_v50  ;;  %v8153_v25 = vadd.f32 %v1005_v56, %v7422_v59  ;;  %v8156_v27 = vadd.f32 %v1045_v15, %v16342_v29  ;;  %v16347_v24 = vld [vmem:[#allocation176_spill] sm:$0xff]  ;;  %v16354_v29 = vld [vmem:[#allocation173_spill] sm:$0xff] }
 0x2df   : > { %16332 = vst [vmem:[#allocation38_spill] sm:$0xff] %v8120_v43  ;;  %v8164_v28 = vadd.f32 %v1007_v45, %v16347_v24  ;;  %v8167_v50 = vadd.f32 %v1008_v23, %v16349_v55  ;;  %v1018_v59 = vmul.f32 %v7513_v2, %v16351_v54  ;;  %v16352_v56 = vld [vmem:[#allocation172_spill] sm:$0xff]  ;;  %v1019_v45 = vmul.f32 %v7523_v57, %v16351_v54 }
 0x2e0   : > { %16334 = vst [vmem:[#allocation155_spill] sm:$0xff] %v8123_v48  ;;  %v8174_v15 = vadd.f32 %v1046_v13, %v16352_v56  ;;  %v1020_v23 = vmul.f32 %v7525_v58, %v16351_v54  ;;  %v1057_v24 = vmul.f32 %v7511_v62, %v16357_v5  ;;  %v1058_v13 = vmul.f32 %v7513_v2, %v16357_v5  ;;  %v16358_v56 = vld [vmem:[#allocation174_spill] sm:$0xff] }
 0x2e1   : > { %16336 = vst [vmem:[#allocation39_spill] sm:$0xff] %v8134_v51  ;;  %v1060_v55 = vmul.f32 %v7525_v58, %v16357_v5  ;;  %v16367_v51 = vld [vmem:[#allocation190_spill] sm:$0xff] }
 0x2e2   : > { %16338 = vst [vmem:[#allocation163_spill] sm:$0xff] %v8137_v47  ;;  %v1017_v47 = vmul.f32 %v7511_v62, %v16351_v54  ;;  %v16360_v54 = vld [vmem:[#allocation44_spill] sm:$0xff]  ;;  %v8225_v48 = vadd.f32 %v1020_v23, %v16367_v51  ;;  %v8243_v51 = vpop.permute.xlu0 %4475 }
 0x2e3   : > { %16339 = vst [vmem:[#allocation164_spill] sm:$0xff] %v8145_v52  ;;  %v1030_v52 = vmul.f32 %v7513_v2, %v16360_v54 }
 0x2e4   : > { %16340 = vst [vmem:[#allocation165_spill] sm:$0xff] %v8150_v49  ;;  %v1031_v49 = vmul.f32 %v7523_v57, %v16360_v54 }
 0x2e5   : > { %16341 = vst [vmem:[#allocation272_spill] sm:$0xff] %v8153_v25  ;;  %v16366_v25 = vld [vmem:[#allocation189_spill] sm:$0xff]  ;;  %5739 = vset.pattern.permute.xlu1 %v16090_v19  ;;  %5740 = vset.pattern.permute.xlu2 %v16090_v19  ;;  %v16392_v19 = vld [vmem:[#allocation52_spill] sm:$0xff] }
 0x2e6   : > { %16343 = vst [vmem:[#allocation171_spill] sm:$0xff] %v8156_v27 }
 0x2e7   : > { %16344 = vst [vmem:[#allocation273_spill] sm:$0xff] %v8158_v17  ;;  %v8177_v17 = vadd.f32 %v1047_v22, %v16354_v29  ;;  %v1059_v22 = vmul.f32 %v7523_v57, %v16357_v5  ;;  %v8196_v29 = vadd.f32 %v1048_v39, %v16358_v56  ;;  %v8211_v39 = vadd.f32 %v1017_v47, %v7479_v53  ;;  %v16363_v56 = vld [vmem:[#allocation187_spill] sm:$0xff] }
 0x2e8   : > { %16346 = vst [vmem:[#allocation175_spill] sm:$0xff] %v8161_v32  ;;  %v16368_v53 = vld [vmem:[#allocation183_spill] sm:$0xff] }
 0x2e9   : > { %16348 = vst [vmem:[#allocation176_spill] sm:$0xff] %v8164_v28  ;;  %v16365_v28 = vld [vmem:[#allocation182_spill] sm:$0xff]  ;;  %v8230_v47 = vadd.f32 %v1058_v13, %v16368_v53 }
 0x2ea   : > { %16350 = vst [vmem:[#allocation177_spill] sm:$0xff] %v8167_v50  ;;  %v16361_v50 = vld [vmem:[#allocation45_spill] sm:$0xff]  ;;  %v8219_v32 = vadd.f32 %v1057_v24, %v16365_v28  ;;  %v8238_v28 = vpop.permute.xlu1 %2385  ;;  %v16376_v24 = vld [vmem:[#allocation204_spill] sm:$0xff] }
 0x2eb   : > { %16353 = vst [vmem:[#allocation41_spill] sm:$0xff] %v8174_v15  ;;  %v1069_v15 = vmul.f32 %v7511_v62, %v16361_v50  ;;  %v1070_v5 = vmul.f32 %v7513_v2, %v16361_v50  ;;  %v1071_v27 = vmul.f32 %v7523_v57, %v16361_v50  ;;  %v1072_v43 = vmul.f32 %v7525_v58, %v16361_v50 }
 0x2ec   : > { %16355 = vst [vmem:[#allocation172_spill] sm:$0xff] %v8177_v17  ;;  %v1032_v17 = vmul.f32 %v7525_v58, %v16360_v54  ;;  %v8252_v13 = vadd.f32 %v1031_v49, %v16376_v24  ;;  %v16387_v24 = vld [vmem:[#allocation202_spill] sm:$0xff] }
 0x2ed   : > { %16356 = vst [vmem:[#allocation173_spill] sm:$0xff] %v8179_v41  ;;  %v1029_v41 = vmul.f32 %v7511_v62, %v16360_v54  ;;  %v8222_v54 = vadd.f32 %v1019_v45, %v16366_v25  ;;  %v5781_v25 = vld [vmem:[%s16012_s1 + $0x60] sm:$0xff]  ;;  %v16374_v45 = vld [vmem:[#allocation203_spill] sm:$0xff] }
 0x2ee   : > { %16359 = vst [vmem:[#allocation42_spill] sm:$0xff] %v8196_v29  ;;  %v8214_v29 = vadd.f32 %v1018_v59, %v16363_v56  ;;  %v16369_v59 = vld [vmem:[#allocation185_spill] sm:$0xff]  ;;  %841 = vperm.xlu0 %5743, %v5781_v25   ;;  %v8249_v23 = vadd.f32 %v1030_v52, %v16374_v45  ;;  %v16386_v45 = vld [vmem:[#allocation47_spill] sm:$0xff] }
 0x2ef   : > { %16362 = vst [vmem:[#allocation174_spill] sm:$0xff] %v8211_v39  ;;  %v8233_v56 = vadd.f32 %v1059_v22, %v16369_v59  ;;  %v8246_v50 = vadd.f32 %v1029_v41, %v7540_v61  ;;  %v8255_v22 = vadd.f32 %v1032_v17, %v7552_v1  ;;  %v16380_v59 = vld [vmem:[#allocation197_spill] sm:$0xff]  ;;  %v16382_v61 = vld [vmem:[#allocation198_spill] sm:$0xff] }
 0x2f0   : > { %16364 = vst [vmem:[#allocation44_spill] sm:$0xff] %v8214_v29  ;;  %v16370_v29 = vld [vmem:[#allocation186_spill] sm:$0xff]  ;;  %v8262_v25 = vadd.f32 %v1069_v15, %v16380_v59  ;;  %v8265_v41 = vadd.f32 %v1070_v5, %v16382_v61  ;;  %v16384_v1 = vld [vmem:[#allocation201_spill] sm:$0xff]  ;;  %v1041_v15 = vmul.f32 %v7511_v62, %v16386_v45  ;;  %v1042_v5 = vmul.f32 %v7513_v2, %v16386_v45  ;;  %v8283_v61 = vpop.permute.xlu2 %2425 }
 0x2f1   : > { %v8236_v39 = vadd.f32 %v1060_v55, %v16370_v29  ;;  %16371 = vst [vmem:[#allocation45_spill] sm:$0xff] %v8238_v28  ;;  %v16379_v55 = vld [vmem:[#allocation48_spill] sm:$0xff]  ;;  %v8272_v17 = vadd.f32 %v1071_v27, %v16384_v1  ;;  %v8281_v59 = vadd.f32 %v1072_v43, %v16387_v24  ;;  %v1043_v27 = vmul.f32 %v7523_v57, %v16386_v45 }
 0x2f2   : > { %16372 = vst [vmem:[#allocation187_spill] sm:$0xff] %v8243_v51  ;;  %v1081_v29 = vmul.f32 %v7511_v62, %v16379_v55  ;;  %v1082_v53 = vmul.f32 %v7513_v2, %v16379_v55  ;;  %v1083_v52 = vmul.f32 %v7523_v57, %v16379_v55  ;;  %v1084_v49 = vmul.f32 %v7525_v58, %v16379_v55  ;;  %v16390_v51 = vld [vmem:[#allocation124_spill] sm:$0xff]  ;;  %v16391_v55 = vld [vmem:[#allocation125_spill] sm:$0xff] }
 0x2f3   : > { %16373 = vst [vmem:[#allocation182_spill] sm:$0xff] %v8246_v50  ;;  %3423 = vperm.xlu1 %5739, %v16390_v51   ;;  %3427 = vperm.xlu2 %5740, %v16391_v55   ;;  %v1044_v1 = vmul.f32 %v7525_v58, %v16386_v45  ;;  %v1093_v28 = vmul.f32 %v7511_v62, %v16392_v19  ;;  %v16394_v55 = vld [vmem:[#allocation210_spill] sm:$0xff] }
 0x2f4   : > { %16375 = vst [vmem:[#allocation189_spill] sm:$0xff] %v8249_v23  ;;  %v1095_v43 = vmul.f32 %v7523_v57, %v16392_v19  ;;  %v1096_v51 = vmul.f32 %v7525_v58, %v16392_v19  ;;  %v8300_v24 = vadd.f32 %v1081_v29, %v7574_v7  ;;  %v5782_v29 = vld [vmem:[%s16012_s1 + $0x78] sm:$0xff] }
 0x2f5   : > { %16377 = vst [vmem:[#allocation190_spill] sm:$0xff] %v8252_v13  ;;  %v16399_v13 = vld [vmem:[#allocation212_spill] sm:$0xff] }
 0x2f6   : > { %16378 = vst [vmem:[#allocation183_spill] sm:$0xff] %v8255_v22  ;;  %v1094_v22 = vmul.f32 %v7513_v2, %v16392_v19  ;;  %v8313_v23 = vadd.f32 %v1084_v49, %v16399_v13  ;;  %853 = vperm.xlu0 %5743, %v5782_v29   ;;  %v8329_v13 = vadd.f32 %v1093_v28, %v7630_v11  ;;  %v16409_v29 = vld [vmem:[#allocation240_spill] sm:$0xff] }
 0x2f7   : > { %16381 = vst [vmem:[#allocation185_spill] sm:$0xff] %v8262_v25  ;;  %v16414_v11 = vld [vmem:[#allocation224_spill] sm:$0xff] }
 0x2f8   : > { %16383 = vst [vmem:[#allocation186_spill] sm:$0xff] %v8265_v41  ;;  %v16397_v41 = vld [vmem:[#allocation211_spill] sm:$0xff]  ;;  %v8351_v28 = vadd.f32 %v1095_v43, %v16414_v11  ;;  %v16425_v43 = vld [vmem:[#allocation58_spill] sm:$0xff]  ;;  %v16427_v11 = vld [vmem:[#allocation129_spill] sm:$0xff] }
 0x2f9   : > { %16385 = vst [vmem:[#allocation203_spill] sm:$0xff] %v8272_v17  ;;  %v8310_v25 = vadd.f32 %v1083_v52, %v16397_v41  ;;  %v16404_v52 = vld [vmem:[#allocation222_spill] sm:$0xff] }
 0x2fa   : > { %16388 = vst [vmem:[#allocation204_spill] sm:$0xff] %v8281_v59  ;;  %v16396_v59 = vld [vmem:[#allocation50_spill] sm:$0xff]  ;;  %v8332_v49 = vadd.f32 %v1094_v22, %v16404_v52  ;;  %v16416_v22 = vld [vmem:[#allocation225_spill] sm:$0xff] }
 0x2fb   : > { %16389 = vst [vmem:[#allocation48_spill] sm:$0xff] %v8283_v61  ;;  %v8303_v61 = vadd.f32 %v1082_v53, %v16394_v55  ;;  %v1053_v45 = vmul.f32 %v7511_v62, %v16396_v59  ;;  %v1054_v17 = vmul.f32 %v7513_v2, %v16396_v59  ;;  %v1055_v19 = vmul.f32 %v7523_v57, %v16396_v59  ;;  %v16401_v53 = vld [vmem:[#allocation213_spill] sm:$0xff] }
 0x2fc   : > { %16393 = vst [vmem:[#allocation197_spill] sm:$0xff] %v8300_v24  ;;  %v1056_v7 = vmul.f32 %v7525_v58, %v16396_v59  ;;  %v8323_v55 = vadd.f32 %v1041_v15, %v16401_v53  ;;  %v16407_v59 = vld [vmem:[#allocation215_spill] sm:$0xff]  ;;  %v16408_v24 = vld [vmem:[#allocation216_spill] sm:$0xff]  ;;  %v8354_v52 = vadd.f32 %v1096_v51, %v16416_v22  ;;  %v8374_v51 = vadd.f32 %v16425_v43, %v7803_v10  ;;  %v16428_v22 = vld [vmem:[#allocation130_spill] sm:$0xff] }
 0x2fd   : > { %16395 = vst [vmem:[#allocation198_spill] sm:$0xff] %v8303_v61  ;;  %v16402_v61 = vld [vmem:[#allocation214_spill] sm:$0xff]  ;;  %v8340_v50 = vadd.f32 %v1044_v1, %v16408_v24  ;;  %v16410_v15 = vld [vmem:[#allocation55_spill] sm:$0xff]  ;;  %3435 = vperm.xlu1 %5739, %v16427_v11   ;;  %3439 = vperm.xlu2 %5740, %v16428_v22   ;;  %v8390_v10 = vadd.f32 %v16425_v43, %v7806_v8  ;;  %v8402_v11 = vpop.permute.xlu2 %2437  ;;  %v5783_v8 = vld [vmem:[%s16012_s1 + $0x90] sm:$0xff] }
 0x2fe   : > { %16398 = vst [vmem:[#allocation201_spill] sm:$0xff] %v8310_v25  ;;  %v8326_v41 = vadd.f32 %v1042_v5, %v16402_v61  ;;  %v8337_v25 = vadd.f32 %v1043_v27, %v16407_v59  ;;  %v8344_v53 = vadd.f32 %v16410_v15, %v16409_v29  ;;  %v16412_v5 = vld [vmem:[#allocation244_spill] sm:$0xff]  ;;  %v16419_v27 = vld [vmem:[#allocation245_spill] sm:$0xff]  ;;  %v16421_v24 = vld [vmem:[#allocation246_spill] sm:$0xff]  ;;  %865 = vperm.xlu0 %5743, %v5783_v8  }
 0x2ff   : > { %16400 = vst [vmem:[#allocation47_spill] sm:$0xff] %v8313_v23  ;;  %v8334_v23 = vpop.permute.xlu0 %4490  ;;  %v8348_v61 = vadd.f32 %v16410_v15, %v16412_v5  ;;  %v8360_v1 = vadd.f32 %v16410_v15, %v16419_v27  ;;  %v8364_v59 = vadd.f32 %v16410_v15, %v16421_v24  ;;  %v16423_v29 = vld [vmem:[#allocation226_spill] sm:$0xff]  ;;  %v16424_v5 = vld [vmem:[#allocation227_spill] sm:$0xff]  ;;  %v16429_v27 = vld [vmem:[#allocation228_spill] sm:$0xff] }
 0x300   : > { %16403 = vst [vmem:[#allocation202_spill] sm:$0xff] %v8329_v13  ;;  %v8370_v13 = vadd.f32 %v1054_v17, %v16424_v5  ;;  %v16432_v24 = vld [vmem:[#allocation53_spill] sm:$0xff]  ;;  %v8416_v5 = vadd.f32 %v16425_v43, %v7812_v26 }
 0x301   : > { %16405 = vst [vmem:[#allocation124_spill] sm:$0xff] %v8332_v49  ;;  %v8367_v49 = vadd.f32 %v1053_v45, %v16423_v29  ;;  %v1065_v45 = vmul.f32 %v7511_v62, %v16432_v24  ;;  %v1066_v17 = vmul.f32 %v7513_v2, %v16432_v24  ;;  %v8394_v29 = vadd.f32 %v16425_v43, %v7809_v46  ;;  %v16442_v22 = vld [vmem:[#allocation261_spill] sm:$0xff] }
 0x302   : > { %16406 = vst [vmem:[#allocation125_spill] sm:$0xff] %v8334_v23  ;;  %v8356_v23 = vpop.permute.xlu1 %2397 }
 0x303   : > { %16411 = vst [vmem:[#allocation52_spill] sm:$0xff] %v8344_v53  ;;  %v16451_v53 = vld [vmem:[#allocation133_spill] sm:$0xff] }
 0x304   : > { %16413 = vst [vmem:[#allocation210_spill] sm:$0xff] %v8348_v61  ;;  %v16440_v61 = vld [vmem:[#allocation14_spill] sm:$0xff] }
 0x305   : > { %16415 = vst [vmem:[#allocation50_spill] sm:$0xff] %v8351_v28  ;;  %v8431_v26 = vadd.f32 %v1065_v45, %v16440_v61  ;;  %v16447_v45 = vld [vmem:[#allocation235_spill] sm:$0xff]  ;;  %3443 = vperm.xlu1 %5739, %v16451_v53  }
 0x306   : > { %16417 = vst [vmem:[#allocation211_spill] sm:$0xff] %v8354_v52  ;;  %v16430_v52 = vld [vmem:[#allocation229_spill] sm:$0xff] }
 0x307   : > { %16418 = vst [vmem:[#allocation212_spill] sm:$0xff] %v8356_v23  ;;  %v8379_v23 = vadd.f32 %v1055_v19, %v16429_v27  ;;  %v8382_v15 = vadd.f32 %v1056_v7, %v16430_v52  ;;  %v1067_v19 = vmul.f32 %v7523_v57, %v16432_v24  ;;  %v1068_v7 = vmul.f32 %v7525_v58, %v16432_v24  ;;  %v16436_v27 = vld [vmem:[#allocation57_spill] sm:$0xff]  ;;  %v16443_v52 = vld [vmem:[#allocation262_spill] sm:$0xff] }
 0x308   : > { %16420 = vst [vmem:[#allocation213_spill] sm:$0xff] %v8360_v1  ;;  %v1077_v46 = vmul.f32 %v7511_v62, %v16436_v27  ;;  %v1078_v28 = vmul.f32 %v7513_v2, %v16436_v27  ;;  %v1080_v24 = vmul.f32 %v7525_v58, %v16436_v27 }
 0x309   : > { %16422 = vst [vmem:[#allocation214_spill] sm:$0xff] %v8364_v59  ;;  %v16437_v59 = vld [vmem:[#allocation61_spill] sm:$0xff] }
 0x30a   : > { %16426 = vst [vmem:[#allocation222_spill] sm:$0xff] %v8374_v51  ;;  %v8426_v1 = vadd.f32 %v16437_v59, %v7857_v14  ;;  %v8435_v43 = vadd.f32 %v16437_v59, %v7860_v9  ;;  %v8439_v8 = vadd.f32 %v16437_v59, %v16442_v22  ;;  %v8453_v9 = vadd.f32 %v1067_v19, %v16447_v45  ;;  %v16448_v51 = vld [vmem:[#allocation236_spill] sm:$0xff]  ;;  %v16452_v19 = vld [vmem:[#allocation134_spill] sm:$0xff] }
 0x30b   : > { %16431 = vst [vmem:[#allocation215_spill] sm:$0xff] %v8382_v15  ;;  %v1079_v15 = vmul.f32 %v7523_v57, %v16436_v27  ;;  %v8428_v27 = vpop.permute.xlu0 %4505  ;;  %3447 = vperm.xlu2 %5740, %v16452_v19   ;;  %v16453_v22 = vld [vmem:[#allocation16_spill] sm:$0xff] }
 0x30c   : > { %16433 = vst [vmem:[#allocation216_spill] sm:$0xff] %v8390_v10  ;;  %v16446_v10 = vld [vmem:[#allocation60_spill] sm:$0xff] }
 0x30d   : > { %16434 = vst [vmem:[#allocation240_spill] sm:$0xff] %v8394_v29  ;;  %v16444_v29 = vld [vmem:[#allocation234_spill] sm:$0xff]  ;;  %v1090_v61 = vmul.f32 %v7513_v2, %v16446_v10 }
 0x30e   : > { %16435 = vst [vmem:[#allocation55_spill] sm:$0xff] %v8402_v11  ;;  %v8443_v11 = vadd.f32 %v16437_v59, %v16443_v52  ;;  %v8446_v14 = vadd.f32 %v1066_v17, %v16444_v29  ;;  %v1091_v59 = vmul.f32 %v7523_v57, %v16446_v10  ;;  %v1092_v17 = vmul.f32 %v7525_v58, %v16446_v10  ;;  %v16449_v29 = vld [vmem:[#allocation65_spill] sm:$0xff]  ;;  %v16456_v58 = vld [vmem:[#allocation18_spill] sm:$0xff]  ;;  %v16457_v57 = vld [vmem:[#allocation248_spill] sm:$0xff] }
 0x30f   : > { %16438 = vst [vmem:[#allocation244_spill] sm:$0xff] %v8426_v1  ;;  %v8465_v52 = vadd.f32 %v16449_v29, %v7931_v16  ;;  %v8478_v45 = vadd.f32 %v16449_v29, %v7937_v35  ;;  %v8482_v16 = vadd.f32 %v16449_v29, %v7940_v60  ;;  %v8495_v35 = vadd.f32 %v1078_v28, %v16456_v58  ;;  %v16458_v60 = vld [vmem:[#allocation249_spill] sm:$0xff]  ;;  %v8516_v28 = vpop.permute.xlu2 %2449 }
 0x310   : > { %16439 = vst [vmem:[#allocation224_spill] sm:$0xff] %v8428_v27  ;;  %v1089_v27 = vmul.f32 %v7511_v62, %v16446_v10  ;;  %v8498_v1 = vadd.f32 %v1079_v15, %v16457_v57  ;;  %v5784_v57 = vld [vmem:[%s16012_s1 + $0xa8] sm:$0xff] }
 0x311   : > { %16441 = vst [vmem:[#allocation225_spill] sm:$0xff] %v8431_v26  ;;  %v8456_v26 = vadd.f32 %v1068_v7, %v16448_v51  ;;  %v8474_v7 = vadd.f32 %v16449_v29, %v7934_v40  ;;  %v8488_v51 = vadd.f32 %v1077_v46, %v16453_v22  ;;  %v8501_v29 = vadd.f32 %v1080_v24, %v16458_v60  ;;  %v16460_v22 = vld [vmem:[#allocation68_spill] sm:$0xff]  ;;  %v16467_v15 = vld [vmem:[#allocation255_spill] sm:$0xff]  ;;  %v16488_v24 = vld [vmem:[#allocation73_spill] sm:$0xff] }
 0x312   : > { %16445 = vst [vmem:[#allocation245_spill] sm:$0xff] %v8446_v14  ;;  %v8467_v14 = vpop.permute.xlu1 %2409  ;;  %v8510_v19 = vadd.f32 %v16460_v22, %v7964_v44  ;;  %v8514_v58 = vadd.f32 %v16460_v22, %v7967_v38  ;;  %877 = vperm.xlu0 %5743, %v5784_v57   ;;  %v16463_v44 = vld [vmem:[#allocation21_spill] sm:$0xff]  ;;  %v8531_v38 = vadd.f32 %v16460_v22, %v7970_v20 }
 0x313   : > { %16450 = vst [vmem:[#allocation246_spill] sm:$0xff] %v8467_v14  ;;  %v16454_v14 = vld [vmem:[#allocation63_spill] sm:$0xff]  ;;  %v8524_v46 = vpop.permute.xlu0 %4520  ;;  %v8527_v10 = vadd.f32 %v1089_v27, %v16463_v44  ;;  %v8544_v60 = vadd.f32 %v16460_v22, %v7998_v63  ;;  %v16469_v27 = vld [vmem:[#allocation66_spill] sm:$0xff] }
 0x314   : > { %v8492_v40 = vmul.f32 %v7511_v62, %v16454_v14  ;;  %v8505_v53 = vmul.f32 %v7513_v2, %v16454_v14  ;;  %16461 = vst [vmem:[#allocation58_spill] sm:$0xff] %v8516_v28  ;;  %v16465_v28 = vld [vmem:[#allocation19_spill] sm:$0xff]  ;;  %v8540_v14 = vadd.f32 %v1092_v17, %v16467_v15  ;;  %v8548_v44 = vadd.f32 %v16469_v27, %v7955_v0  ;;  %v16476_v22 = vld [vmem:[#allocation138_spill] sm:$0xff] }
 0x315   : > { %16462 = vst [vmem:[#allocation129_spill] sm:$0xff] %v8524_v46  ;;  %v8552_v20 = vadd.f32 %v16469_v27, %v7958_v37  ;;  %3455 = vperm.xlu1 %5739, %v16476_v22   ;;  %v16477_v0 = vld [vmem:[#allocation139_spill] sm:$0xff] }
 0x316   : > { %16455 = vst [vmem:[#allocation226_spill] sm:$0xff] %v8492_v40  ;;  %v16466_v40 = vld [vmem:[#allocation254_spill] sm:$0xff]  ;;  %3459 = vperm.xlu2 %5740, %v16477_v0   ;;  %v16478_v15 = vld [vmem:[#allocation271_spill] sm:$0xff] }
 0x317   : > { %16459 = vst [vmem:[#allocation227_spill] sm:$0xff] %v8505_v53  ;;  %v8534_v53 = vadd.f32 %v1090_v61, %v16465_v28  ;;  %v8537_v57 = vadd.f32 %v1091_v59, %v16466_v40  ;;  %v16472_v61 = vld [vmem:[#allocation269_spill] sm:$0xff]  ;;  %v16474_v40 = vld [vmem:[#allocation70_spill] sm:$0xff]  ;;  %v8568_v37 = vadd.f32 %v16469_v27, %v16478_v15  ;;  %v16483_v22 = vld [vmem:[#allocation71_spill] sm:$0xff]  ;;  %v8627_v62 = vpop.permute.xlu2 %2461 }
 0x318   : > { %16464 = vst [vmem:[#allocation130_spill] sm:$0xff] %v8531_v38  ;;  %v8556_v28 = vadd.f32 %v16469_v27, %v16472_v61  ;;  %v8562_v63 = vadd.f32 %v16474_v40, %v8013_v42  ;;  %v8572_v61 = vadd.f32 %v16474_v40, %v8016_v21  ;;  %v8576_v59 = vadd.f32 %v16474_v40, %v8019_v6  ;;  %v16496_v15 = vld [vmem:[#allocation146_spill] sm:$0xff] }
 0x319   : > { %16468 = vst [vmem:[#allocation228_spill] sm:$0xff] %v8544_v60  ;;  %v8580_v42 = vadd.f32 %v16474_v40, %v8022_v4  ;;  %v8584_v17 = vadd.f32 %v16483_v22, %v8025_v12  ;;  %v8589_v27 = vadd.f32 %v16483_v22, %v8028_v34  ;;  %v8593_v21 = vadd.f32 %v16483_v22, %v8031_v31  ;;  %v5785_v31 = vld [vmem:[%s16012_s1 + $0xc0] sm:$0xff]  ;;  %v16490_v40 = vld [vmem:[#allocation145_spill] sm:$0xff]  ;;  %v16499_v34 = vld [vmem:[#allocation156_spill] sm:$0xff] }
 0x31a   : > { %16470 = vst [vmem:[#allocation229_spill] sm:$0xff] %v8548_v44  ;;  %v8597_v6 = vadd.f32 %v16483_v22, %v8036_v18  ;;  %v8599_v4 = vpop.permute.xlu1 %2421  ;;  %889 = vperm.xlu0 %5743, %v5785_v31   ;;  %v16487_v22 = vld [vmem:[#allocation144_spill] sm:$0xff]  ;;  %v8616_v12 = vadd.f32 %v16488_v24, %v16490_v40  ;;  %v16494_v40 = vld [vmem:[#allocation153_spill] sm:$0xff]  ;;  %v16497_v0 = vld [vmem:[#allocation74_spill] sm:$0xff] }
 0x31b   : > { %16471 = vst [vmem:[#allocation53_spill] sm:$0xff] %v8552_v20  ;;  %v8612_v46 = vadd.f32 %v16488_v24, %v16487_v22  ;;  %v8622_v2 = vpop.permute.xlu0 %4535  ;;  %v8631_v60 = vadd.f32 %v16488_v24, %v16494_v40  ;;  %v8635_v38 = vadd.f32 %v16497_v0, %v16496_v15  ;;  %v16503_v18 = vld [vmem:[#allocation157_spill] sm:$0xff]  ;;  %v16506_v40 = vld [vmem:[#allocation62_spill] sm:$0xff] }
 0x31c   : > { %16473 = vst [vmem:[#allocation57_spill] sm:$0xff] %v8556_v28  ;;  %v8647_v22 = vadd.f32 %v16488_v24, %v16503_v18  ;;  %v16530_v18 = vld [vmem:[#allocation155_spill] sm:$0xff] }
 0x31d   : > { %16475 = vst [vmem:[#allocation61_spill] sm:$0xff] %v8562_v63 }
 0x31e   : > { %16479 = vst [vmem:[#allocation14_spill] sm:$0xff] %v8568_v37 }
 0x31f   : > { %16480 = vst [vmem:[#allocation261_spill] sm:$0xff] %v8572_v61 }
 0x320   : > { %16481 = vst [vmem:[#allocation262_spill] sm:$0xff] %v8576_v59 }
 0x321   : > { %16482 = vst [vmem:[#allocation234_spill] sm:$0xff] %v8580_v42 }
 0x322   : > { %16484 = vst [vmem:[#allocation60_spill] sm:$0xff] %v8593_v21  ;;  %v16508_v21 = vld [vmem:[#allocation154_spill] sm:$0xff] }
 0x323   : > { %16485 = vst [vmem:[#allocation235_spill] sm:$0xff] %v8597_v6  ;;  %v8656_v15 = vadd.f32 %v16497_v0, %v16508_v21 }
 0x324   : > { %16486 = vst [vmem:[#allocation236_spill] sm:$0xff] %v8599_v4  ;;  %v8639_v4 = vadd.f32 %v16497_v0, %v16499_v34  ;;  %v5786_v34 = vld [vmem:[%s15362_s5 + $0x58] sm:$0xff] }
 0x325   : > { %16489 = vst [vmem:[#allocation65_spill] sm:$0xff] %v8612_v46  ;;  %3467 = vperm.xlu1 %5739, %v5786_v34   ;;  %v16514_v34 = vmax.f32 %v8580_v42, 0.0 }
 0x326   : > { %16491 = vst [vmem:[#allocation133_spill] sm:$0xff] %v8616_v12 }
 0x327   : > { %16492 = vst [vmem:[#allocation134_spill] sm:$0xff] %v8622_v2  ;;  %v16501_v2 = vld [vmem:[#allocation35_spill] sm:$0xff] }
 0x328   : > { %16493 = vst [vmem:[#allocation16_spill] sm:$0xff] %v8627_v62  ;;  %v8643_v31 = vadd.f32 %v16497_v0, %v16501_v2  ;;  %v16505_v62 = vmax.f32 %v8562_v63, 0.0  ;;  %v5787_v2 = vld [vmem:[%s15362_s5 + $0x60] sm:$0xff]  ;;  %v16512_v0 = vmax.f32 %v8576_v59, 0.0  ;;  %v8679_v63 = vmul.f32 %v16506_v40, %v16514_v34  ;;  %v16526_v34 = vld [vmem:[#allocation64_spill] sm:$0xff] }
 0x329   : > { %16495 = vst [vmem:[#allocation18_spill] sm:$0xff] %v8631_v60  ;;  %3471 = vperm.xlu2 %5740, %v5787_v2   ;;  %v16516_v2 = vld [vmem:[#allocation76_spill] sm:$0xff] }
 0x32a   : > { %16498 = vst [vmem:[#allocation248_spill] sm:$0xff] %v8635_v38  ;;  %v8652_v6 = vmul.f32 %v16506_v40, %v16505_v62  ;;  %v16510_v62 = vmax.f32 %v8572_v61, 0.0  ;;  %v8674_v21 = vmul.f32 %v16506_v40, %v16512_v0  ;;  %v8683_v24 = vadd.f32 %v16516_v2, %v8114_v33  ;;  %v16534_v61 = vld [vmem:[#allocation163_spill] sm:$0xff] }
 0x32b   : > { %16500 = vst [vmem:[#allocation249_spill] sm:$0xff] %v8639_v4  ;;  %v8696_v0 = vadd.f32 %v16516_v2, %v8129_v30  ;;  %v5788_v30 = vld [vmem:[%s16012_s1 + $0xd8] sm:$0xff]  ;;  %v16528_v33 = vmax.f32 %v8616_v12, 0.0  ;;  %v16537_v12 = vmax.f32 %v8631_v60, 0.0 }
 0x32c   : > { %16502 = vst [vmem:[#allocation68_spill] sm:$0xff] %v8643_v31  ;;  %901 = vperm.xlu0 %5743, %v5788_v30   ;;  %v16557_v31 = vld [vmem:[#allocation67_spill] sm:$0xff] }
 0x32d   : > { %16504 = vst [vmem:[#allocation21_spill] sm:$0xff] %v8647_v22 }
 0x32e   : > { %16507 = vst [vmem:[#allocation19_spill] sm:$0xff] %v8652_v6  ;;  %v8669_v6 = vmul.f32 %v16506_v40, %v16510_v62  ;;  %v8688_v62 = vadd.f32 %v16516_v2, %v8117_v36  ;;  %v16521_v36 = vld [vmem:[#allocation38_spill] sm:$0xff] }
 0x32f   : > { %16509 = vst [vmem:[#allocation254_spill] sm:$0xff] %v8656_v15 }
 0x330   : > { %16511 = vst [vmem:[#allocation255_spill] sm:$0xff] %v8669_v6  ;;  %v8692_v6 = vadd.f32 %v16516_v2, %v8126_v3  ;;  %v8707_v3 = vpop.permute.xlu1 %2433  ;;  %v16525_v2 = vmax.f32 %v8612_v46, 0.0  ;;  %v8734_v46 = vpop.permute.xlu0 %4550 }
 0x331   : > { %16513 = vst [vmem:[#allocation66_spill] sm:$0xff] %v8674_v21  ;;  %v16522_v21 = vld [vmem:[#allocation78_spill] sm:$0xff] }
 0x332   : > { %16515 = vst [vmem:[#allocation269_spill] sm:$0xff] %v8679_v63  ;;  %v8705_v42 = vadd.f32 %v16522_v21, %v16521_v36  ;;  %v8715_v40 = vmul.f32 %v16526_v34, %v16525_v2  ;;  %v8720_v63 = vmul.f32 %v16526_v34, %v16528_v33  ;;  %v8724_v36 = vadd.f32 %v16522_v21, %v16530_v18  ;;  %v16544_v2 = vld [vmem:[#allocation175_spill] sm:$0xff] }
 0x333   : > { %16517 = vst [vmem:[#allocation70_spill] sm:$0xff] %v8683_v24  ;;  %v8732_v30 = vadd.f32 %v16522_v21, %v16534_v61  ;;  %v8740_v33 = vmul.f32 %v16526_v34, %v16537_v12  ;;  %v16546_v12 = vld [vmem:[#allocation176_spill] sm:$0xff] }
 0x334   : > { %16518 = vst [vmem:[#allocation138_spill] sm:$0xff] %v8688_v62 }
 0x335   : > { %16519 = vst [vmem:[#allocation139_spill] sm:$0xff] %v8692_v6 }
 0x336   : > { %16520 = vst [vmem:[#allocation271_spill] sm:$0xff] %v8696_v0 }
 0x337   : > { %16523 = vst [vmem:[#allocation71_spill] sm:$0xff] %v8705_v42  ;;  %v16556_v42 = vmax.f32 %v8683_v24, 0.0 }
 0x338   : > { %16524 = vst [vmem:[#allocation144_spill] sm:$0xff] %v8707_v3  ;;  %v16532_v3 = vld [vmem:[#allocation39_spill] sm:$0xff] }
 0x339   : > { %16527 = vst [vmem:[#allocation73_spill] sm:$0xff] %v8715_v40  ;;  %v8728_v59 = vadd.f32 %v16522_v21, %v16532_v3  ;;  %v16539_v40 = vmax.f32 %v8647_v22, 0.0  ;;  %v16541_v21 = vld [vmem:[#allocation272_spill] sm:$0xff]  ;;  %v16548_v3 = vld [vmem:[#allocation171_spill] sm:$0xff]  ;;  %v8789_v4 = vmul.f32 %v16557_v31, %v16556_v42  ;;  %v16567_v42 = vld [vmem:[#allocation42_spill] sm:$0xff] }
 0x33a   : > { %16529 = vst [vmem:[#allocation145_spill] sm:$0xff] %v8720_v63  ;;  %v16554_v63 = vld [vmem:[#allocation177_spill] sm:$0xff] }
 0x33b   : > { %16531 = vst [vmem:[#allocation153_spill] sm:$0xff] %v8724_v36  ;;  %v8748_v61 = vmul.f32 %v16526_v34, %v16539_v40  ;;  %v16551_v40 = vld [vmem:[#allocation41_spill] sm:$0xff] }
 0x33c   : > { %16533 = vst [vmem:[#allocation146_spill] sm:$0xff] %v8728_v59 }
 0x33d   : > { %16535 = vst [vmem:[#allocation74_spill] sm:$0xff] %v8732_v30 }
 0x33e   : > { %16536 = vst [vmem:[#allocation156_spill] sm:$0xff] %v8734_v46  ;;  %v16542_v46 = vld [vmem:[#allocation79_spill] sm:$0xff] }
 0x33f   : > { %16538 = vst [vmem:[#allocation35_spill] sm:$0xff] %v8740_v33  ;;  %v8752_v15 = vadd.f32 %v16542_v46, %v16541_v21  ;;  %v8756_v60 = vadd.f32 %v16542_v46, %v16544_v2  ;;  %v8760_v18 = vadd.f32 %v16542_v46, %v16546_v12  ;;  %v16549_v33 = vld [vmem:[#allocation81_spill] sm:$0xff]  ;;  %v8771_v21 = vpop.permute.xlu2 %2473  ;;  %v5789_v2 = vld [vmem:[%s15362_s5 + $0x70] sm:$0xff] }
 0x340   : > { %16540 = vst [vmem:[#allocation157_spill] sm:$0xff] %v8748_v61  ;;  %v8765_v22 = vadd.f32 %v16549_v33, %v16548_v3  ;;  %v8769_v34 = vadd.f32 %v16549_v33, %v16551_v40  ;;  %3479 = vperm.xlu1 %5739, %v5789_v2   ;;  %v5790_v12 = vld [vmem:[%s15362_s5 + $0x78] sm:$0xff]  ;;  %v8781_v3 = vadd.f32 %v16542_v46, %v16554_v63  ;;  %v16559_v2 = vld [vmem:[#allocation172_spill] sm:$0xff]  ;;  %v16563_v63 = vmax.f32 %v8692_v6, 0.0 }
 0x341   : > { %16543 = vst [vmem:[#allocation62_spill] sm:$0xff] %v8752_v15  ;;  %3483 = vperm.xlu2 %5740, %v5790_v12   ;;  %v8793_v38 = vadd.f32 %v16549_v33, %v16559_v2  ;;  %v16561_v12 = vmax.f32 %v8688_v62, 0.0  ;;  %v8812_v24 = vadd.f32 %v16549_v33, %v16567_v42  ;;  %v16570_v33 = vld [vmem:[#allocation83_spill] sm:$0xff]  ;;  %v16572_v2 = vld [vmem:[#allocation84_spill] sm:$0xff] }
 0x342   : > { %16545 = vst [vmem:[#allocation154_spill] sm:$0xff] %v8756_v60  ;;  %v8803_v40 = vmul.f32 %v16557_v31, %v16563_v63  ;;  %v8829_v62 = vadd.f32 %v16572_v2, %v8219_v32  ;;  %v16575_v6 = vld [vmem:[#allocation44_spill] sm:$0xff]  ;;  %v8848_v32 = vadd.f32 %v16572_v2, %v8230_v47  ;;  %v16586_v47 = vmax.f32 %v8756_v60, 0.0  ;;  %v16595_v60 = vld [vmem:[#allocation189_spill] sm:$0xff] }
 0x343   : > { %16547 = vst [vmem:[#allocation76_spill] sm:$0xff] %v8760_v18  ;;  %v8798_v46 = vmul.f32 %v16557_v31, %v16561_v12  ;;  %v8831_v12 = vpop.permute.xlu0 %4565  ;;  %v8835_v63 = vadd.f32 %v16570_v33, %v16575_v6  ;;  %v8856_v6 = vadd.f32 %v16572_v2, %v8236_v39  ;;  %v5792_v39 = vld [vmem:[%s15362_s5 + $0x88] sm:$0xff] }
 0x344   : > { %16550 = vst [vmem:[#allocation38_spill] sm:$0xff] %v8765_v22 }
 0x345   : > { %16552 = vst [vmem:[#allocation78_spill] sm:$0xff] %v8769_v34 }
 0x346   : > { %16553 = vst [vmem:[#allocation64_spill] sm:$0xff] %v8771_v21  ;;  %v16565_v21 = vmax.f32 %v8696_v0, 0.0  ;;  %v5791_v0 = vld [vmem:[%s16012_s1 + $0xf0] sm:$0xff] }
 0x347   : > { %16555 = vst [vmem:[#allocation155_spill] sm:$0xff] %v8781_v3  ;;  %913 = vperm.xlu0 %5743, %v5791_v0   ;;  %v8843_v0 = vadd.f32 %v16570_v33, %v8225_v48  ;;  %v16583_v48 = vmax.f32 %v8752_v15, 0.0 }
 0x348   : > { %16558 = vst [vmem:[#allocation39_spill] sm:$0xff] %v8789_v4  ;;  %v8808_v61 = vmul.f32 %v16557_v31, %v16565_v21  ;;  %v16569_v21 = vld [vmem:[#allocation174_spill] sm:$0xff]  ;;  %v8852_v31 = vadd.f32 %v16572_v2, %v8233_v56  ;;  %v16588_v56 = vmax.f32 %v8760_v18, 0.0  ;;  %3491 = vperm.xlu1 %5739, %v5792_v39   ;;  %v5793_v2 = vld [vmem:[%s15362_s5 + $0x90] sm:$0xff]  ;;  %v16601_v39 = vld [vmem:[#allocation87_spill] sm:$0xff] }
 0x349   : > { %16560 = vst [vmem:[#allocation163_spill] sm:$0xff] %v8793_v38  ;;  %v8825_v42 = vadd.f32 %v16570_v33, %v16569_v21  ;;  %3495 = vperm.xlu2 %5740, %v5793_v2   ;;  %v16612_v4 = vld [vmem:[#allocation72_spill] sm:$0xff] }
 0x34a   : > { %16562 = vst [vmem:[#allocation272_spill] sm:$0xff] %v8798_v46 }
 0x34b   : > { %16564 = vst [vmem:[#allocation79_spill] sm:$0xff] %v8803_v40 }
 0x34c   : > { %16566 = vst [vmem:[#allocation175_spill] sm:$0xff] %v8808_v61  ;;  %v8839_v61 = vadd.f32 %v16570_v33, %v8222_v54  ;;  %v8858_v54 = vpop.permute.xlu1 %2445  ;;  %v16584_v33 = vld [vmem:[#allocation69_spill] sm:$0xff] }
 0x34d   : > { %16568 = vst [vmem:[#allocation176_spill] sm:$0xff] %v8812_v24  ;;  %v8864_v21 = vmul.f32 %v16584_v33, %v16583_v48  ;;  %v8869_v40 = vmul.f32 %v16584_v33, %v16586_v47  ;;  %v8874_v46 = vmul.f32 %v16584_v33, %v16588_v56  ;;  %v16590_v48 = vmax.f32 %v8781_v3, 0.0  ;;  %v16593_v56 = vld [vmem:[#allocation86_spill] sm:$0xff]  ;;  %v16605_v3 = vld [vmem:[#allocation203_spill] sm:$0xff] }
 0x34e   : > { %16571 = vst [vmem:[#allocation171_spill] sm:$0xff] %v8825_v42  ;;  %v8894_v15 = vadd.f32 %v16593_v56, %v16595_v60 }
 0x34f   : > { %16573 = vst [vmem:[#allocation81_spill] sm:$0xff] %v8829_v62  ;;  %v8885_v47 = vmul.f32 %v16584_v33, %v16590_v48  ;;  %v8919_v33 = vadd.f32 %v16601_v39, %v16605_v3  ;;  %v16607_v48 = vld [vmem:[#allocation183_spill] sm:$0xff]  ;;  %v16621_v3 = vld [vmem:[#allocation89_spill] sm:$0xff] }
 0x350   : > { %16574 = vst [vmem:[#allocation41_spill] sm:$0xff] %v8831_v12  ;;  %v8923_v12 = vadd.f32 %v16593_v56, %v16607_v48  ;;  %v16615_v48 = vmax.f32 %v8835_v63, 0.0 }
 0x351   : > { %16576 = vst [vmem:[#allocation177_spill] sm:$0xff] %v8835_v63  ;;  %v16627_v63 = vld [vmem:[#allocation91_spill] sm:$0xff] }
 0x352   : > { %16577 = vst [vmem:[#allocation67_spill] sm:$0xff] %v8839_v61 }
 0x353   : > { %16578 = vst [vmem:[#allocation172_spill] sm:$0xff] %v8843_v0 }
 0x354   : > { %16579 = vst [vmem:[#allocation42_spill] sm:$0xff] %v8848_v32 }
 0x355   : > { %16580 = vst [vmem:[#allocation174_spill] sm:$0xff] %v8852_v31  ;;  %v8958_v31 = vadd.f32 %v16621_v3, %v8323_v55 }
 0x356   : > { %16581 = vst [vmem:[#allocation83_spill] sm:$0xff] %v8856_v6 }
 0x357   : > { %16582 = vst [vmem:[#allocation84_spill] sm:$0xff] %v8858_v54  ;;  %v16592_v54 = vld [vmem:[#allocation182_spill] sm:$0xff] }
 0x358   : > { %16585 = vst [vmem:[#allocation44_spill] sm:$0xff] %v8864_v21  ;;  %v8890_v18 = vadd.f32 %v16593_v56, %v16592_v54  ;;  %v8903_v54 = vpop.permute.xlu2 %2485 }
 0x359   : > { %16587 = vst [vmem:[#allocation69_spill] sm:$0xff] %v8869_v40  ;;  %v16600_v40 = vld [vmem:[#allocation185_spill] sm:$0xff] }
 0x35a   : > { %16589 = vst [vmem:[#allocation274_spill] sm:$0xff] %v8874_v46  ;;  %v8911_v21 = vadd.f32 %v16601_v39, %v16600_v40  ;;  %v16603_v46 = vld [vmem:[#allocation186_spill] sm:$0xff]  ;;  %v5794_v40 = vld [vmem:[%s16012_s1 + $0x108] sm:$0xff]  ;;  %v16630_v55 = vmax.f32 %v8890_v18, 0.0 }
 0x35b   : > { %16591 = vst [vmem:[#allocation275_spill] sm:$0xff] %v8885_v47  ;;  %v16598_v47 = vld [vmem:[#allocation190_spill] sm:$0xff]  ;;  %v8915_v2 = vadd.f32 %v16601_v39, %v16603_v46  ;;  %925 = vperm.xlu0 %5743, %v5794_v40   ;;  %v16611_v46 = vmax.f32 %v8825_v42, 0.0  ;;  %v16619_v42 = vmax.f32 %v8843_v0, 0.0 }
 0x35c   : > { %16594 = vst [vmem:[#allocation182_spill] sm:$0xff] %v8890_v18  ;;  %v8907_v60 = vadd.f32 %v16593_v56, %v16598_v47  ;;  %v8939_v56 = vpop.permute.xlu0 %4580 }
 0x35d   : > { %16596 = vst [vmem:[#allocation86_spill] sm:$0xff] %v8894_v15  ;;  %v8935_v6 = vmul.f32 %v16612_v4, %v16611_v46  ;;  %v8954_v46 = vmul.f32 %v16612_v4, %v16619_v42  ;;  %v16631_v42 = vld [vmem:[#allocation75_spill] sm:$0xff] }
 0x35e   : > { %16597 = vst [vmem:[#allocation189_spill] sm:$0xff] %v8903_v54  ;;  %v16609_v54 = vld [vmem:[#allocation204_spill] sm:$0xff]  ;;  %v8993_v0 = vmul.f32 %v16631_v42, %v16630_v55  ;;  %v16641_v18 = vmax.f32 %v8907_v60, 0.0 }
 0x35f   : > { %16599 = vst [vmem:[#allocation190_spill] sm:$0xff] %v8907_v60  ;;  %v8927_v47 = vadd.f32 %v16601_v39, %v16609_v54  ;;  %v8944_v39 = vmul.f32 %v16612_v4, %v16615_v48  ;;  %v16617_v54 = vmax.f32 %v8839_v61, 0.0  ;;  %v8963_v48 = vadd.f32 %v16621_v3, %v8326_v41  ;;  %v16626_v41 = vld [vmem:[#allocation197_spill] sm:$0xff] }
 0x360   : > { %16602 = vst [vmem:[#allocation185_spill] sm:$0xff] %v8911_v21  ;;  %v8967_v61 = vadd.f32 %v16621_v3, %v8337_v25  ;;  %v8982_v25 = vpop.permute.xlu1 %2457 }
 0x361   : > { %16604 = vst [vmem:[#allocation87_spill] sm:$0xff] %v8915_v2  ;;  %v8949_v40 = vmul.f32 %v16612_v4, %v16617_v54  ;;  %v8971_v54 = vadd.f32 %v16621_v3, %v8340_v50  ;;  %v5795_v50 = vld [vmem:[%s15362_s5 + $0xa0] sm:$0xff]  ;;  %v5796_v3 = vld [vmem:[%s15362_s5 + $0xa8] sm:$0xff] }
 0x362   : > { %16606 = vst [vmem:[#allocation186_spill] sm:$0xff] %v8919_v33  ;;  %3503 = vperm.xlu1 %5739, %v5795_v50   ;;  %3507 = vperm.xlu2 %5740, %v5796_v3   ;;  %v16637_v50 = vld [vmem:[#allocation201_spill] sm:$0xff] }
 0x363   : > { %16608 = vst [vmem:[#allocation203_spill] sm:$0xff] %v8923_v12 }
 0x364   : > { %16610 = vst [vmem:[#allocation183_spill] sm:$0xff] %v8927_v47  ;;  %v16646_v47 = vld [vmem:[#allocation124_spill] sm:$0xff]  ;;  %v9059_v60 = vpop.permute.xlu0 %4595 }
 0x365   : > { %16613 = vst [vmem:[#allocation204_spill] sm:$0xff] %v8935_v6 }
 0x366   : > { %16614 = vst [vmem:[#allocation72_spill] sm:$0xff] %v8939_v56  ;;  %v16635_v56 = vld [vmem:[#allocation198_spill] sm:$0xff] }
 0x367   : > { %16616 = vst [vmem:[#allocation276_spill] sm:$0xff] %v8944_v39  ;;  %v16639_v39 = vld [vmem:[#allocation47_spill] sm:$0xff] }
 0x368   : > { %16618 = vst [vmem:[#allocation277_spill] sm:$0xff] %v8949_v40  ;;  %v9006_v40 = vadd.f32 %v16627_v63, %v16637_v50  ;;  %v9010_v3 = vadd.f32 %v16627_v63, %v16639_v39  ;;  %v16644_v50 = vld [vmem:[#allocation94_spill] sm:$0xff]  ;;  %v16648_v39 = vmax.f32 %v8923_v12, 0.0 }
 0x369   : > { %16620 = vst [vmem:[#allocation278_spill] sm:$0xff] %v8954_v46  ;;  %v8980_v46 = vadd.f32 %v16627_v63, %v16626_v41  ;;  %v16633_v41 = vmax.f32 %v8894_v15, 0.0  ;;  %v9016_v15 = vmul.f32 %v16631_v42, %v16641_v18  ;;  %v16650_v18 = vld [vmem:[#allocation92_spill] sm:$0xff] }
 0x36a   : > { %16622 = vst [vmem:[#allocation89_spill] sm:$0xff] %v8958_v31  ;;  %v9032_v55 = vmul.f32 %v16631_v42, %v16648_v39  ;;  %v16655_v39 = vld [vmem:[#allocation215_spill] sm:$0xff] }
 0x36b   : > { %16623 = vst [vmem:[#allocation279_spill] sm:$0xff] %v8963_v48  ;;  %v8998_v4 = vmul.f32 %v16631_v42, %v16633_v41  ;;  %v9036_v41 = vadd.f32 %v16650_v18, %v8367_v49  ;;  %v9050_v42 = vadd.f32 %v16650_v18, %v8379_v23  ;;  %v9054_v49 = vadd.f32 %v16650_v18, %v16655_v39 }
 0x36c   : > { %16624 = vst [vmem:[#allocation280_spill] sm:$0xff] %v8967_v61 }
 0x36d   : > { %16625 = vst [vmem:[#allocation281_spill] sm:$0xff] %v8971_v54 }
 0x36e   : > { %16628 = vst [vmem:[#allocation197_spill] sm:$0xff] %v8980_v46 }
 0x36f   : > { %16629 = vst [vmem:[#allocation91_spill] sm:$0xff] %v8982_v25  ;;  %v9002_v25 = vadd.f32 %v16627_v63, %v16635_v56  ;;  %v9027_v63 = vadd.f32 %v16644_v50, %v16646_v47  ;;  %v9046_v47 = vadd.f32 %v16650_v18, %v8370_v13  ;;  %v16659_v13 = vld [vmem:[#allocation77_spill] sm:$0xff]  ;;  %v16663_v18 = vmax.f32 %v8963_v48, 0.0 }
 0x370   : > { %16632 = vst [vmem:[#allocation75_spill] sm:$0xff] %v8993_v0  ;;  %v16643_v0 = vld [vmem:[#allocation202_spill] sm:$0xff]  ;;  %v16667_v56 = vmax.f32 %v8971_v54, 0.0  ;;  %v16676_v54 = vld [vmem:[#allocation243_spill] sm:$0xff] }
 0x371   : > { %16634 = vst [vmem:[#allocation282_spill] sm:$0xff] %v8998_v4  ;;  %v9023_v6 = vadd.f32 %v16644_v50, %v16643_v0  ;;  %v9039_v4 = vpop.permute.xlu2 %2497  ;;  %v5797_v0 = vld [vmem:[%s16012_s1 + $0x120] sm:$0xff]  ;;  %v9073_v39 = vmul.f32 %v16659_v13, %v16663_v18  ;;  %3519 = vperm.xlu2 %5740, %v16676_v54   ;;  %v16680_v18 = vld [vmem:[#allocation213_spill] sm:$0xff] }
 0x372   : > { %16636 = vst [vmem:[#allocation198_spill] sm:$0xff] %v9002_v25  ;;  %937 = vperm.xlu0 %5743, %v5797_v0   ;;  %v16658_v0 = vmax.f32 %v8958_v31, 0.0 }
 0x373   : > { %16638 = vst [vmem:[#allocation201_spill] sm:$0xff] %v9006_v40 }
 0x374   : > { %16640 = vst [vmem:[#allocation47_spill] sm:$0xff] %v9010_v3 }
 0x375   : > { %16642 = vst [vmem:[#allocation283_spill] sm:$0xff] %v9016_v15  ;;  %v16661_v15 = vld [vmem:[#allocation50_spill] sm:$0xff] }
 0x376   : > { %16645 = vst [vmem:[#allocation202_spill] sm:$0xff] %v9023_v6  ;;  %v9068_v23 = vadd.f32 %v16644_v50, %v16661_v15 }
 0x377   : > { %16647 = vst [vmem:[#allocation94_spill] sm:$0xff] %v9027_v63 }
 0x378   : > { %16649 = vst [vmem:[#allocation124_spill] sm:$0xff] %v9032_v55  ;;  %v9064_v55 = vmul.f32 %v16659_v13, %v16658_v0  ;;  %v16669_v0 = vld [vmem:[#allocation211_spill] sm:$0xff] }
 0x379   : > { %16651 = vst [vmem:[#allocation92_spill] sm:$0xff] %v9036_v41  ;;  %v9087_v31 = vadd.f32 %v16644_v50, %v16669_v0  ;;  %v16677_v0 = vld [vmem:[#allocation210_spill] sm:$0xff] }
 0x37a   : > { %16652 = vst [vmem:[#allocation284_spill] sm:$0xff] %v9039_v4  ;;  %v16665_v4 = vmax.f32 %v8967_v61, 0.0  ;;  %v16678_v15 = vmax.f32 %v16677_v0, 0.0  ;;  %v16689_v0 = vld [vmem:[#allocation245_spill] sm:$0xff] }
 0x37b   : > { %16653 = vst [vmem:[#allocation285_spill] sm:$0xff] %v9046_v47 }
 0x37c   : > { %16654 = vst [vmem:[#allocation286_spill] sm:$0xff] %v9050_v42  ;;  %v9078_v12 = vmul.f32 %v16659_v13, %v16665_v4 }
 0x37d   : > { %16656 = vst [vmem:[#allocation215_spill] sm:$0xff] %v9054_v49 }
 0x37e   : > { %16657 = vst [vmem:[#allocation287_spill] sm:$0xff] %v9059_v60  ;;  %v9083_v60 = vmul.f32 %v16659_v13, %v16667_v56  ;;  %v16685_v56 = vld [vmem:[#allocation225_spill] sm:$0xff]  ;;  %v9121_v13 = vpop.permute.xlu1 %2469 }
 0x37f   : > { %16660 = vst [vmem:[#allocation77_spill] sm:$0xff] %v9064_v55  ;;  %v16673_v55 = vld [vmem:[#allocation97_spill] sm:$0xff] }
 0x380   : > { %16662 = vst [vmem:[#allocation50_spill] sm:$0xff] %v9068_v23  ;;  %v9105_v48 = vmul.f32 %v16673_v55, %v16678_v15 }
 0x381   : > { %16664 = vst [vmem:[#allocation288_spill] sm:$0xff] %v9073_v39  ;;  %v16671_v39 = vld [vmem:[#allocation52_spill] sm:$0xff] }
 0x382   : > { %16666 = vst [vmem:[#allocation289_spill] sm:$0xff] %v9078_v12  ;;  %v16672_v61 = vmax.f32 %v16671_v39, 0.0  ;;  %v16675_v12 = vld [vmem:[#allocation242_spill] sm:$0xff]  ;;  %v16686_v39 = vld [vmem:[#allocation96_spill] sm:$0xff] }
 0x383   : > { %16668 = vst [vmem:[#allocation290_spill] sm:$0xff] %v9083_v60  ;;  %3515 = vperm.xlu1 %5739, %v16675_v12   ;;  %v16681_v60 = vmax.f32 %v16680_v18, 0.0  ;;  %v9119_v50 = vadd.f32 %v16686_v39, %v16685_v56  ;;  %v9125_v15 = vadd.f32 %v16686_v39, %v16689_v0  ;;  %v16695_v56 = vmax.f32 %v9036_v41, 0.0 }
 0x384   : > { %16670 = vst [vmem:[#allocation211_spill] sm:$0xff] %v9087_v31  ;;  %v9095_v4 = vmul.f32 %v16673_v55, %v16672_v61 }
 0x385   : > { %16679 = vst [vmem:[#allocation242_spill] sm:$0xff] %v9105_v48  ;;  %v9110_v61 = vmul.f32 %v16673_v55, %v16681_v60  ;;  %v9129_v48 = vadd.f32 %v16686_v39, %v8453_v9  ;;  %v9133_v60 = vadd.f32 %v16686_v39, %v8456_v26  ;;  %v16701_v39 = vmax.f32 %v9046_v47, 0.0 }
 0x386   : > { %16674 = vst [vmem:[#allocation97_spill] sm:$0xff] %v9095_v4  ;;  %v16682_v4 = vld [vmem:[#allocation214_spill] sm:$0xff] }
 0x387   : > { %v16683_v12 = vmax.f32 %v16682_v4, 0.0  ;;  %16687 = vst [vmem:[#allocation213_spill] sm:$0xff] %v9119_v50 }
 0x388   : > { %16688 = vst [vmem:[#allocation214_spill] sm:$0xff] %v9121_v13 }
 0x389   : > { %v9115_v54 = vmul.f32 %v16673_v55, %v16683_v12  ;;  %16690 = vst [vmem:[#allocation225_spill] sm:$0xff] %v9125_v15  ;;  %v16693_v55 = vld [vmem:[#allocation99_spill] sm:$0xff] }
 0x38a   : > { %16691 = vst [vmem:[#allocation96_spill] sm:$0xff] %v9129_v48  ;;  %v9137_v12 = vadd.f32 %v16693_v55, %v8488_v51  ;;  %v9146_v0 = vadd.f32 %v16693_v55, %v8495_v35  ;;  %v9150_v9 = vadd.f32 %v16693_v55, %v8498_v1  ;;  %v9154_v26 = vadd.f32 %v16693_v55, %v8501_v29  ;;  %v5798_v51 = vld [vmem:[%s15360_s3 + $0x10] sm:$0xff]  ;;  %v16707_v55 = vld [vmem:[#allocation102_spill] sm:$0xff] }
 0x38b   : > { %16684 = vst [vmem:[#allocation243_spill] sm:$0xff] %v9115_v54  ;;  %v16696_v54 = vld [vmem:[#allocation80_spill] sm:$0xff]  ;;  %2361 = vperm.xlu0 %5743, %v5798_v51   ;;  %v16703_v35 = vmax.f32 %v9050_v42, 0.0  ;;  %v16705_v1 = vmax.f32 %v9054_v49, 0.0  ;;  %v9178_v51 = vpop.permute.xlu0 %4610 }
 0x38c   : > { %16692 = vst [vmem:[#allocation245_spill] sm:$0xff] %v9133_v60  ;;  %v9142_v13 = vmul.f32 %v16696_v54, %v16695_v56  ;;  %v9162_v56 = vmul.f32 %v16696_v54, %v16701_v39  ;;  %v9183_v39 = vadd.f32 %v16707_v55, %v8534_v53  ;;  %v16714_v53 = vld [vmem:[#allocation222_spill] sm:$0xff] }
 0x38d   : > { %16694 = vst [vmem:[#allocation99_spill] sm:$0xff] %v9137_v12  ;;  %v9167_v41 = vmul.f32 %v16696_v54, %v16703_v35  ;;  %v9172_v29 = vmul.f32 %v16696_v54, %v16705_v1  ;;  %v9187_v35 = vadd.f32 %v16707_v55, %v8537_v57  ;;  %v9191_v54 = vadd.f32 %v16707_v55, %v8540_v14  ;;  %v9193_v1 = vpop.permute.xlu2 %3087  ;;  %v16725_v57 = vld [vmem:[#allocation259_spill] sm:$0xff]  ;;  %v16726_v14 = vld [vmem:[#allocation260_spill] sm:$0xff] }
 0x38e   : > { %16697 = vst [vmem:[#allocation80_spill] sm:$0xff] %v9142_v13  ;;  %v9176_v13 = vadd.f32 %v16707_v55, %v8527_v10  ;;  %v16715_v42 = vmax.f32 %v16714_v53, 0.0  ;;  %v16724_v53 = vmax.f32 %v8416_v5, 0.0  ;;  %3527 = vperm.xlu1 %5739, %v16725_v57   ;;  %3531 = vperm.xlu2 %5740, %v16726_v14   ;;  %v16732_v57 = vmax.f32 %v9129_v48, 0.0 }
 0x38f   : > { %16698 = vst [vmem:[#allocation291_spill] sm:$0xff] %v9146_v0  ;;  %v16734_v55 = vmax.f32 %v9133_v60, 0.0  ;;  %v16741_v48 = vmax.f32 %v9146_v0, 0.0  ;;  %v16743_v60 = vmax.f32 %v9150_v9, 0.0 }
 0x390   : > { %16699 = vst [vmem:[#allocation292_spill] sm:$0xff] %v9150_v9 }
 0x391   : > { %16700 = vst [vmem:[#allocation293_spill] sm:$0xff] %v9154_v26 }
 0x392   : > { %16702 = vst [vmem:[#allocation294_spill] sm:$0xff] %v9162_v56 }
 0x393   : > { %16704 = vst [vmem:[#allocation295_spill] sm:$0xff] %v9167_v41 }
 0x394   : > { %16706 = vst [vmem:[#allocation296_spill] sm:$0xff] %v9172_v29  ;;  %v16716_v29 = vld [vmem:[#allocation100_spill] sm:$0xff] }
 0x395   : > { %16708 = vst [vmem:[#allocation102_spill] sm:$0xff] %v9176_v13  ;;  %v9202_v41 = vmul.f32 %v16716_v29, %v16715_v42  ;;  %v9220_v42 = vmul.f32 %v16716_v29, %v16724_v53 }
 0x396   : > { %16709 = vst [vmem:[#allocation297_spill] sm:$0xff] %v9178_v51  ;;  %v16721_v51 = vld [vmem:[#allocation240_spill] sm:$0xff] }
 0x397   : > { %16710 = vst [vmem:[#allocation298_spill] sm:$0xff] %v9183_v39  ;;  %v16722_v47 = vmax.f32 %v16721_v51, 0.0  ;;  %v16736_v51 = vmax.f32 %v9137_v12, 0.0  ;;  %v9273_v12 = vpop.permute.xlu1 %2481 }
 0x398   : > { %16711 = vst [vmem:[#allocation299_spill] sm:$0xff] %v9187_v35 }
 0x399   : > { %16712 = vst [vmem:[#allocation300_spill] sm:$0xff] %v9191_v54  ;;  %v9215_v49 = vmul.f32 %v16716_v29, %v16722_v47  ;;  %v16737_v47 = vld [vmem:[#allocation85_spill] sm:$0xff] }
 0x39a   : > { %16713 = vst [vmem:[#allocation301_spill] sm:$0xff] %v9193_v1  ;;  %v16718_v1 = vld [vmem:[#allocation216_spill] sm:$0xff] }
 0x39b   : > { %16717 = vst [vmem:[#allocation100_spill] sm:$0xff] %v9202_v41  ;;  %v16719_v56 = vmax.f32 %v16718_v1, 0.0  ;;  %v16727_v41 = vmax.f32 %v9119_v50, 0.0  ;;  %v9251_v50 = vmul.f32 %v16737_v47, %v16736_v51 }
 0x39c   : > { %16723 = vst [vmem:[#allocation302_spill] sm:$0xff] %v9215_v49  ;;  %v16739_v49 = vmax.f32 %v8548_v44, 0.0 }
 0x39d   : > { %v9210_v10 = vmul.f32 %v16716_v29, %v16719_v56  ;;  %v16728_v56 = vld [vmem:[#allocation82_spill] sm:$0xff]  ;;  %v16730_v29 = vmax.f32 %v9125_v15, 0.0  ;;  %16738 = vst [vmem:[#allocation85_spill] sm:$0xff] %v9251_v50  ;;  %v16740_v15 = vld [vmem:[#allocation109_spill] sm:$0xff]  ;;  %v9303_v50 = vpop.permute.xlu0 %4625 }
 0x39e   : > { %v9241_v14 = vmul.f32 %v16728_v56, %v16732_v57  ;;  %v9261_v57 = vmul.f32 %v16737_v47, %v16741_v48  ;;  %16747 = vst [vmem:[#allocation306_spill] sm:$0xff] %v9273_v12  ;;  %v16748_v48 = vmax.f32 %v8552_v20, 0.0  ;;  %v16752_v12 = vld [vmem:[#allocation88_spill] sm:$0xff]  ;;  %v9376_v20 = vpop.permute.xlu2 %3102 }
 0x39f   : > { %16720 = vst [vmem:[#allocation216_spill] sm:$0xff] %v9210_v10  ;;  %v9228_v10 = vmul.f32 %v16728_v56, %v16727_v41  ;;  %v9236_v53 = vmul.f32 %v16728_v56, %v16730_v29  ;;  %v9246_v41 = vmul.f32 %v16728_v56, %v16734_v55  ;;  %v9256_v29 = vmul.f32 %v16740_v15, %v16739_v49  ;;  %v5799_v49 = vld [vmem:[%s15360_s3 + $0x38] sm:$0xff] }
 0x3a0   : > { %16733 = vst [vmem:[#allocation82_spill] sm:$0xff] %v9241_v14  ;;  %v9266_v55 = vmul.f32 %v16737_v47, %v16743_v60  ;;  %v16745_v56 = vmax.f32 %v9154_v26, 0.0  ;;  %2381 = vperm.xlu0 %5743, %v5799_v49   ;;  %v9281_v0 = vmul.f32 %v16740_v15, %v16748_v48  ;;  %v16749_v60 = vmax.f32 %v8556_v28, 0.0  ;;  %v16754_v49 = vld [vmem:[#allocation244_spill] sm:$0xff]  ;;  %v16789_v14 = vld [vmem:[#allocation122_spill] sm:$0xff] }
 0x3a1   : > { %16729 = vst [vmem:[#allocation259_spill] sm:$0xff] %v9228_v10  ;;  %v16751_v26 = vmax.f32 %v9176_v13, 0.0  ;;  %v16781_v10 = vld [vmem:[#allocation130_spill] sm:$0xff]  ;;  %v16784_v28 = vld [vmem:[#allocation228_spill] sm:$0xff] }
 0x3a2   : > { %16731 = vst [vmem:[#allocation260_spill] sm:$0xff] %v9236_v53  ;;  %v9271_v51 = vmul.f32 %v16737_v47, %v16745_v56  ;;  %v9286_v9 = vmul.f32 %v16740_v15, %v16749_v60  ;;  %v16750_v47 = vmax.f32 %v8568_v37, 0.0  ;;  %v16758_v60 = vmax.f32 %v9183_v39, 0.0  ;;  %v16768_v39 = vld [vmem:[#allocation115_spill] sm:$0xff] }
 0x3a3   : > { %16735 = vst [vmem:[#allocation303_spill] sm:$0xff] %v9246_v41 }
 0x3a4   : > { %16742 = vst [vmem:[#allocation109_spill] sm:$0xff] %v9261_v57  ;;  %v9291_v56 = vmul.f32 %v16740_v15, %v16750_v47  ;;  %v16756_v57 = vld [vmem:[#allocation112_spill] sm:$0xff]  ;;  %v9308_v41 = vmul.f32 %v16752_v12, %v16758_v60  ;;  %v16760_v15 = vmax.f32 %v9187_v35, 0.0  ;;  %v16766_v35 = vmax.f32 %v8443_v11, 0.0 }
 0x3a5   : > { %16744 = vst [vmem:[#allocation304_spill] sm:$0xff] %v9266_v55  ;;  %v16755_v55 = vmax.f32 %v16754_v49, 0.0 }
 0x3a6   : > { %16746 = vst [vmem:[#allocation305_spill] sm:$0xff] %v9271_v51  ;;  %v9296_v51 = vmul.f32 %v16752_v12, %v16751_v26  ;;  %v9313_v47 = vmul.f32 %v16752_v12, %v16760_v15  ;;  %v16762_v26 = vmax.f32 %v9191_v54, 0.0  ;;  %v9333_v15 = vmul.f32 %v16756_v57, %v16766_v35 }
 0x3a7   : > { %v9301_v48 = vmul.f32 %v16756_v57, %v16755_v55  ;;  %16757 = vst [vmem:[#allocation244_spill] sm:$0xff] %v9303_v50  ;;  %v16764_v55 = vmax.f32 %v8435_v43, 0.0  ;;  %v16765_v50 = vmax.f32 %v8439_v8, 0.0  ;;  %v16767_v54 = vmax.f32 %v8465_v52, 0.0 }
 0x3a8   : > { %16753 = vst [vmem:[#allocation88_spill] sm:$0xff] %v9296_v51  ;;  %v9318_v13 = vmul.f32 %v16752_v12, %v16762_v26  ;;  %v16770_v26 = vmax.f32 %v8474_v7, 0.0 }
 0x3a9   : > { %16759 = vst [vmem:[#allocation112_spill] sm:$0xff] %v9308_v41  ;;  %v9323_v51 = vmul.f32 %v16756_v57, %v16764_v55  ;;  %v9328_v60 = vmul.f32 %v16756_v57, %v16765_v50  ;;  %v9338_v12 = vmul.f32 %v16768_v39, %v16767_v54  ;;  %v16776_v57 = vmax.f32 %v8510_v19, 0.0  ;;  %v16777_v41 = vld [vmem:[#allocation118_spill] sm:$0xff] }
 0x3aa   : > { %16761 = vst [vmem:[#allocation307_spill] sm:$0xff] %v9313_v47  ;;  %v9343_v55 = vmul.f32 %v16768_v39, %v16770_v26  ;;  %v16774_v47 = vmax.f32 %v8482_v16, 0.0  ;;  %v16779_v26 = vmax.f32 %v8514_v58, 0.0 }
 0x3ab   : > { %16763 = vst [vmem:[#allocation308_spill] sm:$0xff] %v9318_v13  ;;  %v16772_v13 = vmax.f32 %v8478_v45, 0.0  ;;  %v9358_v54 = vmul.f32 %v16777_v41, %v16776_v57  ;;  %v5800_v57 = vld [vmem:[%s15362_s5 + $0xe8] sm:$0xff] }
 0x3ac   : > { %16769 = vst [vmem:[#allocation115_spill] sm:$0xff] %v9338_v12  ;;  %v9353_v35 = vmul.f32 %v16768_v39, %v16774_v47  ;;  %v9364_v53 = vmul.f32 %v16777_v41, %v16779_v26  ;;  %3539 = vperm.xlu1 %5739, %v5800_v57   ;;  %v5801_v26 = vld [vmem:[%s15362_s5 + $0xf0] sm:$0xff]  ;;  %v16796_v57 = vld [vmem:[#allocation235_spill] sm:$0xff] }
 0x3ad   : > { %16771 = vst [vmem:[#allocation309_spill] sm:$0xff] %v9343_v55  ;;  %v9348_v50 = vmul.f32 %v16768_v39, %v16772_v13  ;;  %v16782_v13 = vmax.f32 %v16781_v10, 0.0  ;;  %v16785_v39 = vmax.f32 %v16784_v28, 0.0  ;;  %3543 = vperm.xlu2 %5740, %v5801_v26   ;;  %v16799_v26 = vld [vmem:[#allocation248_spill] sm:$0xff] }
 0x3ae   : > { %16775 = vst [vmem:[#allocation311_spill] sm:$0xff] %v9353_v35  ;;  %v16800_v35 = vmax.f32 %v16799_v26, 0.0  ;;  %v16814_v26 = vld [vmem:[#allocation132_spill] sm:$0xff] }
 0x3af   : > { %16773 = vst [vmem:[#allocation310_spill] sm:$0xff] %v9348_v50  ;;  %v9369_v37 = vmul.f32 %v16777_v41, %v16782_v13  ;;  %v9374_v47 = vmul.f32 %v16777_v41, %v16785_v39  ;;  %v16788_v13 = vmax.f32 %v8584_v17, 0.0  ;;  %v16791_v41 = vmax.f32 %v8589_v27, 0.0  ;;  %v16801_v50 = vld [vmem:[#allocation127_spill] sm:$0xff] }
 0x3b0   : > { %16778 = vst [vmem:[#allocation118_spill] sm:$0xff] %v9358_v54 }
 0x3b1   : > { %16780 = vst [vmem:[#allocation312_spill] sm:$0xff] %v9364_v53  ;;  %v9387_v44 = vmul.f32 %v16789_v14, %v16788_v13  ;;  %v9392_v39 = vmul.f32 %v16789_v14, %v16791_v41  ;;  %v16797_v53 = vmax.f32 %v16796_v57, 0.0  ;;  %v9407_v13 = vmul.f32 %v16801_v50, %v16800_v35 }
 0x3b2   : > { %16783 = vst [vmem:[#allocation130_spill] sm:$0xff] %v9369_v37 }
 0x3b3   : > { %16786 = vst [vmem:[#allocation228_spill] sm:$0xff] %v9374_v47  ;;  %v9402_v54 = vmul.f32 %v16789_v14, %v16797_v53 }
 0x3b4   : > { %16787 = vst [vmem:[#allocation313_spill] sm:$0xff] %v9376_v20  ;;  %v16793_v20 = vld [vmem:[#allocation60_spill] sm:$0xff] }
 0x3b5   : > { %16790 = vst [vmem:[#allocation122_spill] sm:$0xff] %v9387_v44  ;;  %v16794_v47 = vmax.f32 %v16793_v20, 0.0  ;;  %v16803_v44 = vld [vmem:[#allocation249_spill] sm:$0xff] }
 0x3b6   : > { %16792 = vst [vmem:[#allocation314_spill] sm:$0xff] %v9392_v39  ;;  %v16804_v55 = vmax.f32 %v16803_v44, 0.0  ;;  %v16806_v39 = vld [vmem:[#allocation68_spill] sm:$0xff] }
 0x3b7   : > { %v9397_v37 = vmul.f32 %v16789_v14, %v16794_v47  ;;  %16798 = vst [vmem:[#allocation315_spill] sm:$0xff] %v9402_v54  ;;  %v16807_v12 = vmax.f32 %v16806_v39, 0.0  ;;  %v16812_v14 = vld [vmem:[#allocation71_spill] sm:$0xff] }
 0x3b8   : > { %16802 = vst [vmem:[#allocation127_spill] sm:$0xff] %v9407_v13  ;;  %v9412_v41 = vmul.f32 %v16801_v50, %v16804_v55  ;;  %v16813_v54 = vmax.f32 %v16812_v14, 0.0  ;;  %v16816_v13 = vmax.f32 %v8724_v36, 0.0  ;;  %v16823_v14 = vld [vmem:[#allocation137_spill] sm:$0xff]  ;;  %v16825_v36 = vmax.f32 %v8769_v34, 0.0  ;;  %v16832_v34 = vld [vmem:[#allocation143_spill] sm:$0xff] }
 0x3b9   : > { %16795 = vst [vmem:[#allocation60_spill] sm:$0xff] %v9397_v37  ;;  %v9417_v47 = vmul.f32 %v16801_v50, %v16807_v12  ;;  %v16809_v37 = vld [vmem:[#allocation254_spill] sm:$0xff] }
 0x3ba   : > { %16805 = vst [vmem:[#allocation249_spill] sm:$0xff] %v9412_v41  ;;  %v16810_v57 = vmax.f32 %v16809_v37, 0.0  ;;  %v9427_v35 = vmul.f32 %v16814_v26, %v16813_v54  ;;  %v9432_v55 = vmul.f32 %v16814_v26, %v16816_v13  ;;  %v16818_v41 = vmax.f32 %v8728_v59, 0.0 }
 0x3bb   : > { %16808 = vst [vmem:[#allocation68_spill] sm:$0xff] %v9417_v47  ;;  %v16820_v47 = vmax.f32 %v8732_v30, 0.0  ;;  %v9452_v13 = vmul.f32 %v16823_v14, %v16825_v36  ;;  %v16827_v59 = vmax.f32 %v8793_v38, 0.0  ;;  %v16829_v30 = vmax.f32 %v8812_v24, 0.0 }
 0x3bc   : > { %v9422_v53 = vmul.f32 %v16801_v50, %v16810_v57  ;;  %16815 = vst [vmem:[#allocation132_spill] sm:$0xff] %v9427_v35  ;;  %v9437_v12 = vmul.f32 %v16814_v26, %v16818_v41  ;;  %v16822_v57 = vmax.f32 %v8765_v22, 0.0  ;;  %v16834_v38 = vmax.f32 %v8848_v32, 0.0  ;;  %v16836_v22 = vld [vmem:[#allocation174_spill] sm:$0xff] }
 0x3bd   : > { %16817 = vst [vmem:[#allocation316_spill] sm:$0xff] %v9432_v55  ;;  %v9442_v50 = vmul.f32 %v16814_v26, %v16820_v47  ;;  %v9457_v41 = vmul.f32 %v16823_v14, %v16827_v59  ;;  %v9462_v26 = vmul.f32 %v16823_v14, %v16829_v30  ;;  %v5802_v47 = vld [vmem:[%s15360_s3 + $0x50] sm:$0xff]  ;;  %v16837_v24 = vmax.f32 %v16836_v22, 0.0 }
 0x3be   : > { %16811 = vst [vmem:[#allocation254_spill] sm:$0xff] %v9422_v53  ;;  %v9447_v54 = vmul.f32 %v16823_v14, %v16822_v57  ;;  %2393 = vperm.xlu0 %5743, %v5802_v47   ;;  %v16831_v57 = vmax.f32 %v8829_v62, 0.0  ;;  %v9475_v59 = vmul.f32 %v16832_v34, %v16834_v38  ;;  %v16839_v14 = vld [vmem:[#allocation83_spill] sm:$0xff]  ;;  %v16842_v47 = vmax.f32 %v8911_v21, 0.0  ;;  %v16843_v62 = vld [vmem:[#allocation168_spill] sm:$0xff]  ;;  %v798_v21 = vpop.permute.xlu0 %797 }
 0x3bf   : > { %16819 = vst [vmem:[#allocation317_spill] sm:$0xff] %v9437_v12  ;;  %v9480_v30 = vmul.f32 %v16832_v34, %v16837_v24  ;;  %v16845_v32 = vmax.f32 %v8915_v2, 0.0  ;;  %v16847_v22 = vmax.f32 %v8919_v33, 0.0  ;;  %v16866_v33 = vld [vmem:[#allocation147_spill] sm:$0xff]  ;;  %v16916_v35 = vmax.f32 %v16718_v1, 0.0  ;;  %v16924_v1 = vld [vmem:[#allocation158_spill] sm:$0xff] }
 0x3c0   : > { %16821 = vst [vmem:[#allocation318_spill] sm:$0xff] %v9442_v50  ;;  %v9470_v36 = vmul.f32 %v16832_v34, %v16831_v57  ;;  %v9490_v57 = vmul.f32 %v16843_v62, %v16842_v47  ;;  %v16853_v47 = vld [vmem:[#allocation195_spill] sm:$0xff] }
 0x3c1   : > { %16824 = vst [vmem:[#allocation137_spill] sm:$0xff] %v9447_v54  ;;  %v9495_v38 = vmul.f32 %v16843_v62, %v16845_v32  ;;  %v9500_v24 = vmul.f32 %v16843_v62, %v16847_v22  ;;  %v16857_v22 = vmax.f32 %v8980_v46, 0.0  ;;  %v16867_v46 = vld [vmem:[#allocation148_spill] sm:$0xff]  ;;  %v16869_v12 = vld [vmem:[#allocation151_spill] sm:$0xff] }
 0x3c2   : > { %16826 = vst [vmem:[#allocation319_spill] sm:$0xff] %v9452_v13  ;;  %v16864_v13 = vld [vmem:[#allocation32_spill] sm:$0xff] }
 0x3c3   : > { %16828 = vst [vmem:[#allocation320_spill] sm:$0xff] %v9457_v41  ;;  %3551 = vperm.xlu1 %5739, %v16864_v13   ;;  %v16876_v13 = vld [vmem:[#allocation261_spill] sm:$0xff] }
 0x3c4   : > { %16830 = vst [vmem:[#allocation321_spill] sm:$0xff] %v9462_v26  ;;  %v16840_v26 = vmax.f32 %v16839_v14, 0.0 }
 0x3c5   : > { %16833 = vst [vmem:[#allocation143_spill] sm:$0xff] %v9470_v36 }
 0x3c6   : > { %16835 = vst [vmem:[#allocation322_spill] sm:$0xff] %v9475_v59  ;;  %v9485_v41 = vmul.f32 %v16832_v34, %v16840_v26  ;;  %v9507_v26 = vpop.permute.xlu1 %2493  ;;  %v16855_v59 = vld [vmem:[#allocation199_spill] sm:$0xff] }
 0x3c7   : > { %16838 = vst [vmem:[#allocation323_spill] sm:$0xff] %v9480_v30  ;;  %v16849_v30 = vld [vmem:[#allocation183_spill] sm:$0xff]  ;;  %v959_v32 = vmul.f32 %v16855_v59, %v798_v21 }
 0x3c8   : > { %16841 = vst [vmem:[#allocation324_spill] sm:$0xff] %v9485_v41  ;;  %v16850_v14 = vmax.f32 %v16849_v30, 0.0  ;;  %v16854_v41 = vld [vmem:[#allocation196_spill] sm:$0xff] }
 0x3c9   : > { %16844 = vst [vmem:[#allocation168_spill] sm:$0xff] %v9490_v57  ;;  %v957_v57 = vmul.f32 %v16853_v47, %v798_v21  ;;  %v958_v2 = vmul.f32 %v16854_v41, %v798_v21 }
 0x3ca   : > { %16846 = vst [vmem:[#allocation325_spill] sm:$0xff] %v9495_v38  ;;  %v9505_v34 = vmul.f32 %v16843_v62, %v16850_v14  ;;  %v16856_v38 = vld [vmem:[#allocation200_spill] sm:$0xff]  ;;  %v16860_v62 = vmax.f32 %v9002_v25, 0.0 }
 0x3cb   : > { %16848 = vst [vmem:[#allocation326_spill] sm:$0xff] %v9500_v24  ;;  %v960_v36 = vmul.f32 %v16856_v38, %v798_v21  ;;  %v16858_v24 = vld [vmem:[#allocation207_spill] sm:$0xff]  ;;  %v16865_v21 = vld [vmem:[#allocation33_spill] sm:$0xff]  ;;  %v1109_v54 = vadd.f32 %v957_v57, %v16866_v33  ;;  %v1110_v50 = vadd.f32 %v958_v2, %v16867_v46  ;;  %v16879_v2 = vld [vmem:[#allocation262_spill] sm:$0xff] }
 0x3cc   : > { %16851 = vst [vmem:[#allocation327_spill] sm:$0xff] %v9505_v34  ;;  %v9517_v30 = vmul.f32 %v16858_v24, %v16857_v22  ;;  %v9522_v14 = vmul.f32 %v16858_v24, %v16860_v62  ;;  %3555 = vperm.xlu2 %5740, %v16865_v21   ;;  %v16868_v22 = vld [vmem:[#allocation149_spill] sm:$0xff]  ;;  %v16870_v62 = vmax.f32 %v9010_v3, 0.0  ;;  %v16877_v21 = vmax.f32 %v16876_v13, 0.0  ;;  %v16899_v3 = vld [vmem:[#allocation210_spill] sm:$0xff] }
 0x3cd   : > { %16852 = vst [vmem:[#allocation328_spill] sm:$0xff] %v9507_v26  ;;  %v16862_v26 = vmax.f32 %v9006_v40, 0.0  ;;  %v1112_v25 = vadd.f32 %v960_v36, %v16869_v12  ;;  %v16872_v40 = vld [vmem:[#allocation61_spill] sm:$0xff]  ;;  %v16880_v46 = vmax.f32 %v16879_v2, 0.0  ;;  %v9555_v12 = vpop.permute.xlu2 %3112 }
 0x3ce   : > { %16859 = vst [vmem:[#allocation195_spill] sm:$0xff] %v9517_v30  ;;  %v1111_v30 = vadd.f32 %v959_v32, %v16868_v22  ;;  %v16883_v36 = vld [vmem:[#allocation25_spill] sm:$0xff] }
 0x3cf   : > { %16861 = vst [vmem:[#allocation196_spill] sm:$0xff] %v9522_v14  ;;  %v9527_v34 = vmul.f32 %v16858_v24, %v16862_v26  ;;  %v9538_v14 = vmul.f32 %v16858_v24, %v16870_v62  ;;  %v16873_v26 = vmax.f32 %v16872_v40, 0.0  ;;  %v9558_v24 = vadd.f32 %v16883_v36, %v1109_v54  ;;  %v16884_v62 = vld [vmem:[#allocation234_spill] sm:$0xff]  ;;  %v16888_v2 = vld [vmem:[#allocation241_spill] sm:$0xff] }
 0x3d0   : > { %16882 = vst [vmem:[#allocation147_spill] sm:$0xff] %v9555_v12  ;;  %v9561_v40 = vadd.f32 %v16883_v36, %v1110_v50  ;;  %v9564_v32 = vadd.f32 %v16883_v36, %v1111_v30  ;;  %v9567_v22 = vadd.f32 %v16883_v36, %v1112_v25  ;;  %v16890_v54 = vmax.f32 %v9027_v63, 0.0  ;;  %v16898_v63 = vld [vmem:[#allocation24_spill] sm:$0xff] }
 0x3d1   : > { %16863 = vst [vmem:[#allocation199_spill] sm:$0xff] %v9527_v34  ;;  %v16874_v34 = vld [vmem:[#allocation223_spill] sm:$0xff]  ;;  %v16892_v30 = vmax.f32 %v9068_v23, 0.0 }
 0x3d2   : > { %16871 = vst [vmem:[#allocation200_spill] sm:$0xff] %v9538_v14  ;;  %v9543_v55 = vmul.f32 %v16874_v34, %v16873_v26  ;;  %v9548_v33 = vmul.f32 %v16874_v34, %v16877_v21  ;;  %v9553_v57 = vmul.f32 %v16874_v34, %v16880_v46  ;;  %v16885_v26 = vmax.f32 %v16884_v62, 0.0  ;;  %v16909_v14 = vld [vmem:[#allocation164_spill] sm:$0xff] }
 0x3d3   : > { %v16887_v21 = vmax.f32 %v9023_v6, 0.0  ;;  %v9582_v50 = vmul.f32 %v16888_v2, %v16890_v54  ;;  %v9587_v25 = vmul.f32 %v16888_v2, %v16892_v30  ;;  %v16894_v54 = vmax.f32 %v9087_v31, 0.0  ;;  %v16896_v30 = vld [vmem:[#allocation52_spill] sm:$0xff]  ;;  %3563 = vperm.xlu1 %5739, %v16909_v14  }
 0x3d4   : > { %16875 = vst [vmem:[#allocation207_spill] sm:$0xff] %v9543_v55  ;;  %v9572_v13 = vmul.f32 %v16874_v34, %v16885_v26  ;;  %v5803_v34 = vld [vmem:[%s15360_s3 + $0x68] sm:$0xff]  ;;  %v16897_v23 = vmax.f32 %v16896_v30, 0.0  ;;  %v16901_v62 = vmax.f32 %v16680_v18, 0.0  ;;  %v16902_v31 = vmax.f32 %v9558_v24, 0.0  ;;  %v16918_v14 = vld [vmem:[#allocation240_spill] sm:$0xff] }
 0x3d5   : > { %16878 = vst [vmem:[#allocation32_spill] sm:$0xff] %v9548_v33  ;;  %v9577_v46 = vmul.f32 %v16888_v2, %v16887_v21  ;;  %2405 = vperm.xlu0 %5743, %v5803_v34   ;;  %v9599_v12 = vmul.f32 %v16888_v2, %v16894_v54  ;;  %v16900_v34 = vmax.f32 %v16899_v3, 0.0  ;;  %v818_v21 = vpop.permute.xlu0 %817  ;;  %v16903_v2 = vld [vmem:[#allocation59_spill] sm:$0xff]  ;;  %v16904_v30 = vmax.f32 %v9561_v40, 0.0  ;;  %v16915_v33 = vld [vmem:[#allocation29_spill] sm:$0xff] }
 0x3d6   : > { %16881 = vst [vmem:[#allocation33_spill] sm:$0xff] %v9553_v57  ;;  %v9604_v6 = vmul.f32 %v16898_v63, %v16897_v23  ;;  %v9614_v26 = vmul.f32 %v16898_v63, %v16901_v62  ;;  %v2021_v54 = vmul.f32 %v16903_v2, %v16902_v31  ;;  %v16907_v62 = vmax.f32 %v16682_v4, 0.0  ;;  %v16912_v4 = vld [vmem:[#allocation242_spill] sm:$0xff] }
 0x3d7   : > { %16886 = vst [vmem:[#allocation148_spill] sm:$0xff] %v9572_v13  ;;  %v9609_v36 = vmul.f32 %v16898_v63, %v16900_v34  ;;  %v2022_v23 = vmul.f32 %v16903_v2, %v16904_v30  ;;  %v16906_v34 = vmax.f32 %v9567_v22, 0.0  ;;  %v977_v31 = vmul.f32 %v16853_v47, %v818_v21  ;;  %v16910_v13 = vld [vmem:[#allocation165_spill] sm:$0xff] }
 0x3d8   : > { %16889 = vst [vmem:[#allocation149_spill] sm:$0xff] %v9577_v46  ;;  %v978_v46 = vmul.f32 %v16854_v41, %v818_v21  ;;  %v979_v30 = vmul.f32 %v16855_v59, %v818_v21  ;;  %3567 = vperm.xlu2 %5740, %v16910_v13   ;;  %v9652_v53 = vmul.f32 %v16915_v33, %v16916_v35 }
 0x3d9   : > { %16891 = vst [vmem:[#allocation151_spill] sm:$0xff] %v9582_v50  ;;  %v2024_v18 = vmul.f32 %v16903_v2, %v16906_v34  ;;  %v9633_v50 = vpop.permute.xlu1 %3082  ;;  %v2214_v57 = vadd.f32 %v2022_v23, %v16912_v4  ;;  %v16921_v23 = vmax.f32 %v8416_v5, 0.0  ;;  %v1129_v35 = vadd.f32 %v977_v31, %v16924_v1  ;;  %v16931_v31 = vld [vmem:[#allocation160_spill] sm:$0xff] }
 0x3da   : > { %16893 = vst [vmem:[#allocation61_spill] sm:$0xff] %v9587_v25  ;;  %v9631_v25 = vmul.f32 %v16898_v63, %v16907_v62  ;;  %v16913_v62 = vld [vmem:[#allocation222_spill] sm:$0xff] }
 0x3db   : > { %16895 = vst [vmem:[#allocation223_spill] sm:$0xff] %v9599_v12  ;;  %v16905_v12 = vmax.f32 %v9564_v32, 0.0  ;;  %v2215_v1 = vadd.f32 %v2214_v57, %v9281_v0  ;;  %v16940_v57 = vld [vmem:[#allocation28_spill] sm:$0xff] }
 0x3dc   : > { %16908 = vst [vmem:[#allocation261_spill] sm:$0xff] %v9633_v50  ;;  %v16914_v50 = vmax.f32 %v16913_v62, 0.0  ;;  %v16925_v62 = vld [vmem:[#allocation159_spill] sm:$0xff] }
 0x3dd   : > { %v2023_v3 = vmul.f32 %v16903_v2, %v16905_v12  ;;  %v980_v12 = vmul.f32 %v16856_v38, %v818_v21  ;;  %v16911_v2 = vld [vmem:[#allocation97_spill] sm:$0xff]  ;;  %16917 = vst [vmem:[#allocation262_spill] sm:$0xff] %v9652_v53  ;;  %v16919_v21 = vmax.f32 %v16918_v14, 0.0  ;;  %v1130_v53 = vadd.f32 %v978_v46, %v16925_v62  ;;  %v16932_v46 = vld [vmem:[#allocation162_spill] sm:$0xff] }
 0x3de   : > { %v2169_v34 = vadd.f32 %v2021_v54, %v16911_v2  ;;  %v9647_v55 = vmul.f32 %v16915_v33, %v16914_v50  ;;  %v16920_v54 = vld [vmem:[#allocation243_spill] sm:$0xff]  ;;  %v16922_v50 = vmax.f32 %v16754_v49, 0.0  ;;  %v16926_v14 = vmax.f32 %v8435_v43, 0.0  ;;  %v5804_v43 = vld [vmem:[%s15360_s3 + $0x80] sm:$0xff]  ;;  %v16934_v62 = vld [vmem:[#allocation45_spill] sm:$0xff] }
 0x3df   : > { %v2258_v63 = vadd.f32 %v2023_v3, %v9110_v61  ;;  %v9657_v13 = vmul.f32 %v16915_v33, %v16919_v21  ;;  %v2302_v2 = vadd.f32 %v2024_v18, %v16920_v54  ;;  %v9663_v61 = vmul.f32 %v16915_v33, %v16921_v23  ;;  %v16923_v3 = vld [vmem:[#allocation36_spill] sm:$0xff]  ;;  %v9687_v54 = vpop.permute.xlu2 %3127  ;;  %2417 = vperm.xlu0 %5743, %v5804_v43  }
 0x3e0   : > { %v9668_v4 = vmul.f32 %v16923_v3, %v16922_v50  ;;  %v9675_v21 = vmul.f32 %v16923_v3, %v16926_v14  ;;  %v16927_v18 = vmax.f32 %v8439_v8, 0.0  ;;  %v16928_v33 = vmax.f32 %v8443_v11, 0.0  ;;  %16930 = vst [vmem:[#allocation234_spill] sm:$0xff] %v9687_v54 }
 0x3e1   : > { %v1131_v23 = vadd.f32 %v979_v30, %v16931_v31  ;;  %v1132_v50 = vadd.f32 %v980_v12, %v16932_v46  ;;  %v2170_v8 = vadd.f32 %v2169_v34, %v9256_v29  ;;  %v2259_v11 = vadd.f32 %v2258_v63, %v9286_v9  ;;  %v830_v29 = vpop.permute.xlu0 %829  ;;  %v3879_v63 = vld [vmem:[%s15363_s6 + $0x8] sm:$0xff] }
 0x3e2   : > { %v9680_v5 = vmul.f32 %v16923_v3, %v16927_v18  ;;  %v9685_v49 = vmul.f32 %v16923_v3, %v16928_v33  ;;  %v16933_v3 = vmax.f32 %v8465_v52, 0.0  ;;  %v16936_v30 = vmax.f32 %v8474_v7, 0.0 }
 0x3e3   : > { %v16938_v33 = vmax.f32 %v8478_v45, 0.0  ;;  %v2303_v0 = vadd.f32 %v2302_v2, %v9291_v56  ;;  %v9714_v9 = vadd.f32 %v16940_v57, %v1129_v35  ;;  %v9717_v52 = vadd.f32 %v16940_v57, %v1130_v53  ;;  %v3878_v45 = vld [vmem:[%s15363_s6] sm:$0xff]  ;;  %v16944_v35 = vld [vmem:[#allocation212_spill] sm:$0xff] }
 0x3e4   : > { %16929 = vst [vmem:[#allocation25_spill] sm:$0xff] %v9685_v49  ;;  %v9700_v14 = vmul.f32 %v16934_v62, %v16933_v3  ;;  %v9705_v18 = vmul.f32 %v16934_v62, %v16936_v30  ;;  %v989_v34 = vmul.f32 %v16853_v47, %v830_v29  ;;  %v990_v7 = vmul.f32 %v16854_v41, %v830_v29 }
 0x3e5   : > { %v9710_v12 = vmul.f32 %v16934_v62, %v16938_v33  ;;  %v16941_v56 = vmax.f32 %v8482_v16, 0.0  ;;  %v16943_v53 = vmax.f32 %v8510_v19, 0.0  ;;  %v9738_v43 = vadd.f32 %v16940_v57, %v1131_v23  ;;  %v16947_v16 = vld [vmem:[#allocation100_spill] sm:$0xff]  ;;  %v16949_v19 = vld [vmem:[#allocation302_spill] sm:$0xff] }
 0x3e6   : > { %16935 = vst [vmem:[#allocation241_spill] sm:$0xff] %v9700_v14  ;;  %v991_v46 = vmul.f32 %v16855_v59, %v830_v29  ;;  %v16946_v3 = vmov 0   ;;  %v9743_v30 = vadd.f32 %v16940_v57, %v1132_v50  ;;  %v16948_v33 = vld [vmem:[#allocation216_spill] sm:$0xff]  ;;  %v2260_v54 = vadd.f32 %v2259_v11, %v16949_v19 }
 0x3e7   : > { %16937 = vst [vmem:[#allocation52_spill] sm:$0xff] %v9705_v18  ;;  %v9730_v2 = vmul.f32 %v16934_v62, %v16941_v56  ;;  %v9735_v31 = vmul.f32 %v16944_v35, %v16943_v53  ;;  %5741 = vset.pattern.permute.xlu1 %v16946_v3  ;;  %5742 = vset.pattern.permute.xlu2 %v16946_v3  ;;  %v9749_v53 = vpop.permute.xlu1 %3097  ;;  %v16953_v50 = vmax.f32 %v8514_v58, 0.0  ;;  %v16955_v3 = vmax.f32 %v16781_v10, 0.0  ;;  %v16961_v10 = vld [vmem:[#allocation246_spill] sm:$0xff] }
 0x3e8   : > { %16939 = vst [vmem:[#allocation24_spill] sm:$0xff] %v9710_v12  ;;  %v2171_v62 = vadd.f32 %v2170_v8, %v16947_v16  ;;  %v2216_v56 = vadd.f32 %v2215_v1, %v16948_v33  ;;  %v992_v23 = vmul.f32 %v16856_v38, %v830_v29  ;;  %v16952_v12 = vld [vmem:[#allocation167_spill] sm:$0xff]  ;;  %3918 = vperm.xlu1 %5741, %v3878_v45   ;;  %v15684_v8 = vmax.f32 %v9714_v9, 0.0 }
 0x3e9   : > { %16942 = vst [vmem:[#allocation210_spill] sm:$0xff] %v9730_v2  ;;  %v1142_v18 = vadd.f32 %v990_v7, %v16952_v12  ;;  %3923 = vperm.xlu2 %5742, %v3879_v63   ;;  %v9757_v57 = vmul.f32 %v16944_v35, %v16953_v50  ;;  %v15683_v1 = vmax.f32 %v9717_v52, 0.0  ;;  %v2304_v11 = vadd.f32 %v2303_v0, %v9220_v42  ;;  %v16959_v7 = vld [vmem:[#allocation169_spill] sm:$0xff]  ;;  %v9785_v50 = vpop.permute.xlu2 %3142 }
 0x3ea   : > { %16945 = vst [vmem:[#allocation59_spill] sm:$0xff] %v9735_v31  ;;  %v16951_v31 = vld [vmem:[#allocation166_spill] sm:$0xff]  ;;  %v9765_v29 = vmul.f32 %v16944_v35, %v16955_v3  ;;  %v16957_v12 = vmax.f32 %v16784_v28, 0.0  ;;  %v1143_v45 = vadd.f32 %v991_v46, %v16959_v7  ;;  %v5805_v63 = vld [vmem:[%s15360_s3 + $0x98] sm:$0xff]  ;;  %v16960_v42 = vmax.f32 %v8584_v17, 0.0  ;;  %v16964_v28 = vld [vmem:[#allocation255_spill] sm:$0xff] }
 0x3eb   : > { %16950 = vst [vmem:[#allocation164_spill] sm:$0xff] %v9749_v53  ;;  %v1141_v2 = vadd.f32 %v989_v34, %v16951_v31  ;;  %2429 = vperm.xlu0 %5743, %v5805_v63   ;;  %v16963_v31 = vld [vmem:[#allocation19_spill] sm:$0xff]  ;;  %v2217_v33 = vadd.f32 %v2216_v56, %v16964_v28  ;;  %v16967_v3 = vld [vmem:[#allocation170_spill] sm:$0xff]  ;;  %v842_v63 = vpop.permute.xlu0 %841  ;;  %v16973_v28 = vmax.f32 %v9738_v43, 0.0  ;;  %v17004_v14 = vmax.f32 %v9564_v32, 0.0 }
 0x3ec   : > { %16954 = vst [vmem:[#allocation165_spill] sm:$0xff] %v9757_v57  ;;  %v9770_v34 = vmul.f32 %v16944_v35, %v16957_v12  ;;  %v9780_v0 = vmul.f32 %v16961_v10, %v16960_v42  ;;  %v2172_v16 = vadd.f32 %v2171_v62, %v16963_v31  ;;  %v16965_v35 = vld [vmem:[#allocation66_spill] sm:$0xff]  ;;  %v1144_v12 = vadd.f32 %v992_v23, %v16967_v3  ;;  %v16968_v7 = vld [vmem:[#allocation31_spill] sm:$0xff] }
 0x3ed   : > { %16956 = vst [vmem:[#allocation97_spill] sm:$0xff] %v9765_v29  ;;  %v2261_v19 = vadd.f32 %v2260_v54, %v16965_v35  ;;  %v9790_v58 = vadd.f32 %v16968_v7, %v1141_v2  ;;  %v9793_v17 = vadd.f32 %v16968_v7, %v1142_v18  ;;  %v16969_v42 = vmax.f32 %v8589_v27, 0.0  ;;  %v16971_v54 = vld [vmem:[#allocation104_spill] sm:$0xff]  ;;  %v3881_v2 = vld [vmem:[%s15363_s6 + $0x18] sm:$0xff] }
 0x3ee   : > { %16958 = vst [vmem:[#allocation242_spill] sm:$0xff] %v9770_v34  ;;  %v2041_v56 = vmul.f32 %v16971_v54, %v15684_v8  ;;  %v2042_v23 = vmul.f32 %v16971_v54, %v15683_v1  ;;  %v16972_v18 = vld [vmem:[#allocation269_spill] sm:$0xff]  ;;  %v2043_v27 = vmul.f32 %v16971_v54, %v16973_v28  ;;  %v9814_v35 = vadd.f32 %v16968_v7, %v1143_v45  ;;  %v3882_v1 = vld [vmem:[%s15363_s6 + $0x20] sm:$0xff] }
 0x3ef   : > { %16962 = vst [vmem:[#allocation222_spill] sm:$0xff] %v9780_v0  ;;  %v9798_v62 = vmul.f32 %v16961_v10, %v16969_v42  ;;  %v2305_v31 = vadd.f32 %v2304_v11, %v16972_v18  ;;  %v1001_v3 = vmul.f32 %v16853_v47, %v842_v63  ;;  %v1002_v42 = vmul.f32 %v16854_v41, %v842_v63 }
 0x3f0   : > { %16966 = vst [vmem:[#allocation29_spill] sm:$0xff] %v9785_v50  ;;  %v1003_v8 = vmul.f32 %v16855_v59, %v842_v63  ;;  %v2173_v46 = vadd.f32 %v2172_v16, %v9301_v48  ;;  %v2218_v11 = vadd.f32 %v2217_v33, %v9323_v51  ;;  %v2262_v18 = vadd.f32 %v2261_v19, %v9328_v60  ;;  %v9834_v16 = vpop.permute.xlu1 %3107  ;;  %v16976_v19 = vld [vmem:[#allocation178_spill] sm:$0xff] }
 0x3f1   : > { %16970 = vst [vmem:[#allocation240_spill] sm:$0xff] %v9798_v62  ;;  %v16974_v28 = vmax.f32 %v9743_v30, 0.0  ;;  %v9829_v50 = vadd.f32 %v16968_v7, %v1144_v12  ;;  %v15688_v53 = vmax.f32 %v9790_v58, 0.0  ;;  %v15687_v62 = vmax.f32 %v9793_v17, 0.0  ;;  %3933 = vperm.xlu1 %5741, %v3881_v2   ;;  %3938 = vperm.xlu2 %5742, %v3882_v1   ;;  %v16977_v7 = vld [vmem:[#allocation179_spill] sm:$0xff]  ;;  %v5806_v2 = vld [vmem:[%s15360_s3 + $0xb0] sm:$0xff] }
 0x3f2   : > { %v2174_v0 = vadd.f32 %v2173_v46, %v2041_v56  ;;  %v2219_v34 = vadd.f32 %v2218_v11, %v2042_v23  ;;  %v2263_v48 = vadd.f32 %v2262_v18, %v2043_v27  ;;  %v2306_v51 = vadd.f32 %v2305_v31, %v9333_v15  ;;  %16975 = vst [vmem:[#allocation243_spill] sm:$0xff] %v9834_v16  ;;  %v16980_v15 = vld [vmem:[#allocation235_spill] sm:$0xff]  ;;  %v16986_v11 = vld [vmem:[#allocation236_spill] sm:$0xff] }
 0x3f3   : > { %v2044_v45 = vmul.f32 %v16971_v54, %v16974_v28  ;;  %v1004_v33 = vmul.f32 %v16856_v38, %v842_v63  ;;  %v1153_v12 = vadd.f32 %v1001_v3, %v16976_v19  ;;  %v1154_v54 = vadd.f32 %v1002_v42, %v16977_v7  ;;  %2441 = vperm.xlu0 %5743, %v5806_v2   ;;  %v16983_v63 = vld [vmem:[#allocation180_spill] sm:$0xff]  ;;  %v854_v28 = vpop.permute.xlu0 %853  ;;  %v16988_v19 = vld [vmem:[#allocation73_spill] sm:$0xff] }
 0x3f4   : > { %v16978_v1 = vmax.f32 %v16793_v20, 0.0  ;;  %v16981_v56 = vmax.f32 %v16980_v15, 0.0  ;;  %v1155_v31 = vadd.f32 %v1003_v8, %v16983_v63  ;;  %v16984_v3 = vld [vmem:[#allocation248_spill] sm:$0xff]  ;;  %v2175_v7 = vadd.f32 %v2174_v0, %v16988_v19  ;;  %v16989_v20 = vld [vmem:[#allocation145_spill] sm:$0xff]  ;;  %v9875_v63 = vpop.permute.xlu2 %3157 }
 0x3f5   : > { %v2307_v27 = vadd.f32 %v2306_v51, %v2044_v45  ;;  %v16985_v42 = vmax.f32 %v16984_v3, 0.0  ;;  %v2220_v2 = vadd.f32 %v2219_v34, %v16989_v20  ;;  %v3883_v45 = vld [vmem:[%s15363_s6 + $0x28] sm:$0xff]  ;;  %v16992_v0 = vmax.f32 %v9558_v24, 0.0  ;;  %v16993_v51 = vld [vmem:[#allocation184_spill] sm:$0xff]  ;;  %16994 = vst [vmem:[#allocation160_spill] sm:$0xff] %v9875_v63  ;;  %v16997_v20 = vld [vmem:[#allocation34_spill] sm:$0xff] }
 0x3f6   : > { %v9846_v46 = vmul.f32 %v16961_v10, %v16978_v1  ;;  %v9851_v23 = vmul.f32 %v16961_v10, %v16981_v56  ;;  %v16990_v1 = vld [vmem:[#allocation35_spill] sm:$0xff]  ;;  %v3884_v24 = vld [vmem:[%s15363_s6 + $0x30] sm:$0xff]  ;;  %v1014_v15 = vmul.f32 %v16854_v41, %v854_v28  ;;  %v17003_v29 = vmax.f32 %v9561_v40, 0.0 }
 0x3f7   : > { %v9857_v18 = vmul.f32 %v16986_v11, %v16985_v42  ;;  %v2264_v60 = vadd.f32 %v2263_v48, %v16990_v1  ;;  %v16991_v10 = vld [vmem:[#allocation107_spill] sm:$0xff]  ;;  %v2508_v34 = vmul.f32 %v16993_v51, %v16992_v0  ;;  %v16995_v48 = vmax.f32 %v9814_v35, 0.0  ;;  %v16996_v42 = vld [vmem:[#allocation181_spill] sm:$0xff] }
 0x3f8   : > { %16979 = vst [vmem:[#allocation36_spill] sm:$0xff] %v9846_v46  ;;  %v2053_v56 = vmul.f32 %v16991_v10, %v15688_v53  ;;  %v2054_v8 = vmul.f32 %v16991_v10, %v15687_v62  ;;  %v1156_v19 = vadd.f32 %v1004_v33, %v16996_v42  ;;  %v9882_v1 = vadd.f32 %v16997_v20, %v1153_v12  ;;  %v16998_v33 = vld [vmem:[#allocation115_spill] sm:$0xff]  ;;  %v16999_v42 = vld [vmem:[#allocation309_spill] sm:$0xff] }
 0x3f9   : > { %16982 = vst [vmem:[#allocation158_spill] sm:$0xff] %v9851_v23  ;;  %v2055_v3 = vmul.f32 %v16991_v10, %v16995_v48  ;;  %v9885_v62 = vadd.f32 %v16997_v20, %v1154_v54  ;;  %v9891_v0 = vadd.f32 %v16997_v20, %v1155_v31  ;;  %v1013_v53 = vmul.f32 %v16853_v47, %v854_v28  ;;  %v17000_v54 = vld [vmem:[#allocation310_spill] sm:$0xff]  ;;  %v5807_v40 = vld [vmem:[%s15360_s3 + $0xc8] sm:$0xff] }
 0x3fa   : > { %16987 = vst [vmem:[#allocation159_spill] sm:$0xff] %v9857_v18  ;;  %v1015_v48 = vmul.f32 %v16855_v59, %v854_v28  ;;  %3943 = vperm.xlu1 %5741, %v3883_v45   ;;  %v2176_v12 = vadd.f32 %v2175_v7, %v16998_v33  ;;  %v2221_v63 = vadd.f32 %v2220_v2, %v16999_v42  ;;  %v17001_v18 = vld [vmem:[#allocation157_spill] sm:$0xff]  ;;  %v17002_v46 = vmax.f32 %v9829_v50, 0.0 }
 0x3fb   : > { %v2265_v16 = vadd.f32 %v2264_v60, %v17000_v54  ;;  %v2308_v23 = vadd.f32 %v2307_v27, %v17001_v18  ;;  %3948 = vperm.xlu2 %5742, %v3884_v24   ;;  %v2509_v57 = vmul.f32 %v16993_v51, %v17003_v29  ;;  %v2510_v45 = vmul.f32 %v16993_v51, %v17004_v14  ;;  %v17006_v14 = vld [vmem:[#allocation191_spill] sm:$0xff]  ;;  %v17007_v29 = vld [vmem:[#allocation192_spill] sm:$0xff]  ;;  %v17010_v24 = vld [vmem:[#allocation193_spill] sm:$0xff]  ;;  %v866_v42 = vpop.permute.xlu0 %865 }
 0x3fc   : > { %v2056_v31 = vmul.f32 %v16991_v10, %v17002_v46  ;;  %v17005_v7 = vmax.f32 %v9567_v22, 0.0  ;;  %v9913_v60 = vadd.f32 %v16997_v20, %v1156_v19  ;;  %v15692_v27 = vmax.f32 %v9882_v1, 0.0  ;;  %2453 = vperm.xlu0 %5743, %v5807_v40   ;;  %v9925_v20 = vpop.permute.xlu1 %3122 }
 0x3fd   : > { %v1016_v18 = vmul.f32 %v16856_v38, %v854_v28  ;;  %v1165_v22 = vadd.f32 %v1013_v53, %v17006_v14  ;;  %v1166_v10 = vadd.f32 %v1014_v15, %v17007_v29  ;;  %17009 = vst [vmem:[#allocation162_spill] sm:$0xff] %v9925_v20  ;;  %v1167_v33 = vadd.f32 %v1015_v48, %v17010_v24  ;;  %v17024_v24 = vld [vmem:[#allocation272_spill] sm:$0xff] }
 0x3fe   : > { %v2511_v2 = vmul.f32 %v16993_v51, %v17005_v7  ;;  %v17008_v51 = vld [vmem:[#allocation311_spill] sm:$0xff]  ;;  %v2177_v54 = vadd.f32 %v2176_v12, %v2053_v56  ;;  %v2222_v28 = vadd.f32 %v2221_v63, %v2054_v8  ;;  %v2266_v7 = vadd.f32 %v2265_v16, %v2055_v3  ;;  %v3886_v56 = vld [vmem:[%s15363_s6 + $0x40] sm:$0xff] }
 0x3ff   : > { %v2309_v19 = vadd.f32 %v2308_v23, %v17008_v51  ;;  %v17011_v46 = vmax.f32 %v16803_v44, 0.0  ;;  %v17013_v32 = vmax.f32 %v16806_v39, 0.0  ;;  %v17015_v23 = vmax.f32 %v16809_v37, 0.0  ;;  %v17017_v44 = vld [vmem:[#allocation194_spill] sm:$0xff]  ;;  %v3887_v39 = vld [vmem:[%s15363_s6 + $0x48] sm:$0xff] }
 0x400   : > { %v9947_v16 = vadd.f32 %v2508_v34, %v9604_v6  ;;  %v1168_v8 = vadd.f32 %v1016_v18, %v17017_v44  ;;  %v9954_v63 = vadd.f32 %v2509_v57, %v9609_v36  ;;  %v9957_v37 = vadd.f32 %v2510_v45, %v9614_v26  ;;  %v17018_v6 = vld [vmem:[#allocation110_spill] sm:$0xff]  ;;  %v9969_v18 = vpop.permute.xlu2 %3172  ;;  %v17022_v57 = vld [vmem:[#allocation37_spill] sm:$0xff] }
 0x401   : > { %v9931_v40 = vmul.f32 %v16986_v11, %v17011_v46  ;;  %v9936_v53 = vmul.f32 %v16986_v11, %v17013_v32  ;;  %v9941_v15 = vmul.f32 %v16986_v11, %v17015_v23  ;;  %v9960_v11 = vadd.f32 %v2511_v2, %v9631_v25  ;;  %17020 = vst [vmem:[#allocation100_spill] sm:$0xff] %v9969_v18  ;;  %v17025_v23 = vld [vmem:[#allocation79_spill] sm:$0xff] }
 0x402   : > { %v15691_v3 = vmax.f32 %v9913_v60, 0.0  ;;  %v2065_v34 = vmul.f32 %v17018_v6, %v15692_v27  ;;  %v17019_v48 = vmax.f32 %v9885_v62, 0.0  ;;  %v2310_v46 = vadd.f32 %v2309_v19, %v2056_v31  ;;  %3958 = vperm.xlu1 %5741, %v3886_v56   ;;  %v17037_v27 = vld [vmem:[#allocation209_spill] sm:$0xff] }
 0x403   : > { %17012 = vst [vmem:[#allocation45_spill] sm:$0xff] %v9931_v40  ;;  %v17021_v36 = vmax.f32 %v9891_v0, 0.0  ;;  %v9975_v25 = vadd.f32 %v17022_v57, %v1165_v22  ;;  %v9978_v45 = vadd.f32 %v17022_v57, %v1166_v10  ;;  %v9981_v2 = vadd.f32 %v17022_v57, %v1167_v33  ;;  %3963 = vperm.xlu2 %5742, %v3887_v39   ;;  %v5808_v22 = vld [vmem:[%s15360_s3 + $0xe0] sm:$0xff]  ;;  %v17023_v10 = vld [vmem:[#allocation39_spill] sm:$0xff]  ;;  %v17027_v39 = vld [vmem:[#allocation253_spill] sm:$0xff] }
 0x404   : > { %17014 = vst [vmem:[#allocation28_spill] sm:$0xff] %v9936_v53  ;;  %v2066_v12 = vmul.f32 %v17018_v6, %v17019_v48  ;;  %v1025_v32 = vmul.f32 %v16853_v47, %v866_v42  ;;  %v1026_v31 = vmul.f32 %v16854_v41, %v866_v42  ;;  %v1027_v14 = vmul.f32 %v16855_v59, %v866_v42  ;;  %v17062_v53 = vld [vmem:[#allocation60_spill] sm:$0xff] }
 0x405   : > { %17016 = vst [vmem:[#allocation212_spill] sm:$0xff] %v9941_v15  ;;  %v2067_v26 = vmul.f32 %v17018_v6, %v17021_v36  ;;  %v1028_v29 = vmul.f32 %v16856_v38, %v866_v42  ;;  %v9988_v51 = vadd.f32 %v17022_v57, %v1168_v8  ;;  %2465 = vperm.xlu0 %5743, %v5808_v22   ;;  %v17026_v42 = vmax.f32 %v9714_v9, 0.0  ;;  %v17031_v57 = vld [vmem:[#allocation175_spill] sm:$0xff]  ;;  %v17044_v22 = vld [vmem:[#allocation228_spill] sm:$0xff] }
 0x406   : > { %v2178_v19 = vadd.f32 %v2177_v54, %v17023_v10  ;;  %v2223_v33 = vadd.f32 %v2222_v28, %v17024_v24  ;;  %v2267_v56 = vadd.f32 %v2266_v7, %v17025_v23  ;;  %v2068_v44 = vmul.f32 %v17018_v6, %v15691_v3  ;;  %v878_v10 = vpop.permute.xlu0 %877  ;;  %v17034_v24 = vld [vmem:[#allocation205_spill] sm:$0xff]  ;;  %v10025_v7 = vpop.permute.xlu1 %3137 }
 0x407   : > { %v10002_v8 = vmul.f32 %v17027_v39, %v17026_v42  ;;  %v17029_v48 = vmax.f32 %v9717_v52, 0.0  ;;  %v2311_v54 = vadd.f32 %v2310_v46, %v17031_v57  ;;  %v17032_v6 = vmax.f32 %v9738_v43, 0.0  ;;  %v17035_v52 = vld [vmem:[#allocation206_spill] sm:$0xff]  ;;  %v3889_v57 = vld [vmem:[%s15363_s6 + $0x58] sm:$0xff]  ;;  %17038 = vst [vmem:[#allocation167_spill] sm:$0xff] %v10025_v7 }
 0x408   : > { %v1177_v23 = vadd.f32 %v1025_v32, %v17034_v24  ;;  %v1178_v42 = vadd.f32 %v1026_v31, %v17035_v52  ;;  %v1180_v46 = vadd.f32 %v1028_v29, %v17037_v27  ;;  %v3890_v43 = vld [vmem:[%s15363_s6 + $0x60] sm:$0xff]  ;;  %v17040_v24 = vld [vmem:[#allocation312_spill] sm:$0xff]  ;;  %v1037_v27 = vmul.f32 %v16853_v47, %v878_v10 }
 0x409   : > { %17028 = vst [vmem:[#allocation216_spill] sm:$0xff] %v10002_v8  ;;  %v10007_v36 = vmul.f32 %v17027_v39, %v17029_v48  ;;  %v10016_v9 = vmul.f32 %v17027_v39, %v17032_v6  ;;  %v17036_v48 = vld [vmem:[#allocation208_spill] sm:$0xff]  ;;  %v17039_v6 = vld [vmem:[#allocation118_spill] sm:$0xff]  ;;  %v2224_v31 = vadd.f32 %v2223_v33, %v17040_v24  ;;  %v1038_v29 = vmul.f32 %v16854_v41, %v878_v10 }
 0x40a   : > { %v1179_v3 = vadd.f32 %v1027_v14, %v17036_v48  ;;  %v2179_v32 = vadd.f32 %v2178_v19, %v17039_v6  ;;  %v17041_v52 = vld [vmem:[#allocation130_spill] sm:$0xff]  ;;  %v17042_v48 = vmax.f32 %v9743_v30, 0.0  ;;  %v2312_v18 = vadd.f32 %v2311_v54, %v17044_v22  ;;  %3973 = vperm.xlu1 %5741, %v3889_v57   ;;  %v17045_v33 = vld [vmem:[#allocation40_spill] sm:$0xff]  ;;  %v17048_v22 = vld [vmem:[#allocation69_spill] sm:$0xff] }
 0x40b   : > { %17030 = vst [vmem:[#allocation302_spill] sm:$0xff] %v10007_v36  ;;  %v2268_v14 = vadd.f32 %v2267_v56, %v17041_v52  ;;  %v1039_v7 = vmul.f32 %v16855_v59, %v878_v10  ;;  %v2225_v19 = vadd.f32 %v2224_v31, %v2066_v12  ;;  %v10044_v24 = vadd.f32 %v17045_v33, %v1177_v23  ;;  %v17047_v12 = vld [vmem:[#allocation44_spill] sm:$0xff]  ;;  %v17050_v57 = vld [vmem:[#allocation113_spill] sm:$0xff] }
 0x40c   : > { %17033 = vst [vmem:[#allocation166_spill] sm:$0xff] %v10016_v9  ;;  %v10039_v28 = vmul.f32 %v17027_v39, %v17042_v48  ;;  %v2180_v20 = vadd.f32 %v2179_v32, %v2065_v34  ;;  %v10047_v56 = vadd.f32 %v17045_v33, %v1178_v42  ;;  %v10050_v52 = vadd.f32 %v17045_v33, %v1179_v3  ;;  %v10055_v39 = vpop.permute.xlu2 %3187  ;;  %v5809_v34 = vld [vmem:[%s15360_s3 + $0xf8] sm:$0xff]  ;;  %v17072_v9 = vld [vmem:[#allocation268_spill] sm:$0xff] }
 0x40d   : > { %v2269_v6 = vadd.f32 %v2268_v14, %v2067_v26  ;;  %v10053_v30 = vadd.f32 %v17045_v33, %v1180_v46  ;;  %3978 = vperm.xlu2 %5742, %v3890_v43   ;;  %17046 = vst [vmem:[#allocation246_spill] sm:$0xff] %v10055_v39  ;;  %v1040_v54 = vmul.f32 %v16856_v38, %v878_v10  ;;  %v17049_v3 = vmax.f32 %v9975_v25, 0.0  ;;  %v17053_v14 = vld [vmem:[#allocation274_spill] sm:$0xff] }
 0x40e   : > { %17043 = vst [vmem:[#allocation169_spill] sm:$0xff] %v10039_v28  ;;  %2477 = vperm.xlu0 %5743, %v5809_v34   ;;  %v2181_v26 = vadd.f32 %v2180_v20, %v17047_v12  ;;  %v2226_v23 = vadd.f32 %v2225_v19, %v17048_v22  ;;  %v2313_v42 = vadd.f32 %v2312_v18, %v2068_v44  ;;  %v17051_v43 = vmax.f32 %v9978_v45, 0.0  ;;  %v17055_v19 = vld [vmem:[#allocation217_spill] sm:$0xff]  ;;  %v17056_v44 = vld [vmem:[#allocation218_spill] sm:$0xff]  ;;  %v17057_v12 = vld [vmem:[#allocation220_spill] sm:$0xff] }
 0x40f   : > { %v2077_v46 = vmul.f32 %v17050_v57, %v17049_v3  ;;  %v17052_v10 = vmax.f32 %v9981_v2, 0.0  ;;  %v2270_v48 = vadd.f32 %v2269_v6, %v17053_v14  ;;  %v17054_v33 = vmax.f32 %v9988_v51, 0.0  ;;  %v890_v3 = vpop.permute.xlu0 %889  ;;  %v3892_v6 = vld [vmem:[%s15363_s6 + $0x70] sm:$0xff] }
 0x410   : > { %v2078_v32 = vmul.f32 %v17050_v57, %v17051_v43  ;;  %v1189_v18 = vadd.f32 %v1037_v27, %v17055_v19  ;;  %v1190_v34 = vadd.f32 %v1038_v29, %v17056_v44  ;;  %v1191_v22 = vadd.f32 %v1039_v7, %v17057_v12  ;;  %v17059_v27 = vld [vmem:[#allocation221_spill] sm:$0xff]  ;;  %v17060_v29 = vld [vmem:[#allocation122_spill] sm:$0xff] }
 0x411   : > { %v2079_v31 = vmul.f32 %v17050_v57, %v17052_v10  ;;  %v2080_v20 = vmul.f32 %v17050_v57, %v17054_v33  ;;  %v17058_v10 = vld [vmem:[#allocation275_spill] sm:$0xff]  ;;  %v1192_v33 = vadd.f32 %v1040_v54, %v17059_v27  ;;  %v3893_v7 = vld [vmem:[%s15363_s6 + $0x78] sm:$0xff]  ;;  %v2182_v19 = vadd.f32 %v2181_v26, %v17060_v29  ;;  %v17061_v44 = vld [vmem:[#allocation314_spill] sm:$0xff] }
 0x412   : > { %v2314_v14 = vadd.f32 %v2313_v42, %v17058_v10  ;;  %v2227_v12 = vadd.f32 %v2226_v23, %v17061_v44  ;;  %v1049_v15 = vmul.f32 %v16853_v47, %v890_v3  ;;  %v1050_v43 = vmul.f32 %v16854_v41, %v890_v3  ;;  %v10097_v10 = vpop.permute.xlu1 %3152  ;;  %v17064_v57 = vld [vmem:[#allocation43_spill] sm:$0xff]  ;;  %3988 = vperm.xlu1 %5741, %v3892_v6  }
 0x413   : > { %v1051_v39 = vmul.f32 %v16855_v59, %v890_v3  ;;  %v2271_v42 = vadd.f32 %v2270_v48, %v17062_v53  ;;  %17063 = vst [vmem:[#allocation19_spill] sm:$0xff] %v10097_v10  ;;  %v10100_v54 = vadd.f32 %v17064_v57, %v1189_v18  ;;  %v10103_v27 = vadd.f32 %v17064_v57, %v1190_v34  ;;  %v17068_v29 = vld [vmem:[#allocation315_spill] sm:$0xff]  ;;  %v17070_v10 = vld [vmem:[#allocation117_spill] sm:$0xff]  ;;  %v5810_v34 = vld [vmem:[%s15360_s3 + $0x110] sm:$0xff] }
 0x414   : > { %v10106_v26 = vadd.f32 %v17064_v57, %v1191_v22  ;;  %v1052_v23 = vmul.f32 %v16856_v38, %v890_v3  ;;  %v2315_v44 = vadd.f32 %v2314_v14, %v17068_v29  ;;  %v2183_v40 = vadd.f32 %v2182_v19, %v2077_v46  ;;  %v17078_v14 = vld [vmem:[#allocation230_spill] sm:$0xff]  ;;  %v17079_v19 = vld [vmem:[#allocation231_spill] sm:$0xff] }
 0x415   : > { %17065 = vst [vmem:[#allocation255_spill] sm:$0xff] %v10100_v54  ;;  %3993 = vperm.xlu2 %5742, %v3893_v7   ;;  %v2228_v28 = vadd.f32 %v2227_v12, %v2078_v32  ;;  %v2272_v53 = vadd.f32 %v2271_v42, %v2079_v31  ;;  %v17069_v48 = vmax.f32 %v10044_v24, 0.0  ;;  %v17071_v22 = vmax.f32 %v9790_v58, 0.0  ;;  %v17080_v42 = vld [vmem:[#allocation232_spill] sm:$0xff] }
 0x416   : > { %17066 = vst [vmem:[#allocation66_spill] sm:$0xff] %v10103_v27  ;;  %2489 = vperm.xlu0 %5743, %v5810_v34   ;;  %v17074_v6 = vmax.f32 %v9793_v17, 0.0  ;;  %v17076_v32 = vmax.f32 %v9814_v35, 0.0  ;;  %v1201_v7 = vadd.f32 %v1049_v15, %v17078_v14  ;;  %v1202_v12 = vadd.f32 %v1050_v43, %v17079_v19  ;;  %v17086_v14 = vld [vmem:[#allocation233_spill] sm:$0xff] }
 0x417   : > { %17067 = vst [vmem:[#allocation170_spill] sm:$0xff] %v10106_v26  ;;  %v2089_v18 = vmul.f32 %v17070_v10, %v17069_v48  ;;  %v10119_v3 = vmul.f32 %v17072_v9, %v17071_v22  ;;  %v1203_v29 = vadd.f32 %v1051_v39, %v17080_v42  ;;  %v2316_v58 = vadd.f32 %v2315_v44, %v2080_v20  ;;  %v10134_v48 = vpop.permute.xlu2 %3202  ;;  %v17091_v44 = vld [vmem:[#allocation277_spill] sm:$0xff] }
 0x418   : > { %v10124_v46 = vmul.f32 %v17072_v9, %v17074_v6  ;;  %v10129_v31 = vmul.f32 %v17072_v9, %v17076_v32  ;;  %17081 = vst [vmem:[#allocation178_spill] sm:$0xff] %v10134_v48  ;;  %v17082_v34 = vmax.f32 %v10047_v56, 0.0  ;;  %v10140_v22 = vadd.f32 %v17064_v57, %v1192_v33  ;;  %v902_v32 = vpop.permute.xlu0 %901  ;;  %v3895_v57 = vld [vmem:[%s15363_s6 + $0x88] sm:$0xff]  ;;  %v3896_v33 = vld [vmem:[%s15363_s6 + $0x90] sm:$0xff] }
 0x419   : > { %17073 = vst [vmem:[#allocation31_spill] sm:$0xff] %v10119_v3  ;;  %v17084_v15 = vmax.f32 %v10050_v52, 0.0  ;;  %v17085_v39 = vmax.f32 %v10053_v30, 0.0  ;;  %v1204_v19 = vadd.f32 %v1052_v23, %v17086_v14  ;;  %v17087_v42 = vmax.f32 %v9829_v50, 0.0  ;;  %v17092_v23 = vld [vmem:[#allocation46_spill] sm:$0xff] }
 0x41a   : > { %17075 = vst [vmem:[#allocation104_spill] sm:$0xff] %v10124_v46  ;;  %v2090_v17 = vmul.f32 %v17070_v10, %v17082_v34  ;;  %v2273_v35 = vadd.f32 %v2272_v53, %v17091_v44  ;;  %v10167_v14 = vadd.f32 %v17092_v23, %v1201_v7  ;;  %v10170_v48 = vadd.f32 %v17092_v23, %v1202_v12 }
 0x41b   : > { %17077 = vst [vmem:[#allocation269_spill] sm:$0xff] %v10129_v31  ;;  %v2091_v43 = vmul.f32 %v17070_v10, %v17084_v15  ;;  %v2092_v20 = vmul.f32 %v17070_v10, %v17085_v39  ;;  %v10161_v34 = vmul.f32 %v17072_v9, %v17087_v42  ;;  %v17089_v15 = vld [vmem:[#allocation204_spill] sm:$0xff]  ;;  %v10173_v31 = vadd.f32 %v17092_v23, %v1203_v29 }
 0x41c   : > { %17083 = vst [vmem:[#allocation179_spill] sm:$0xff] %v10140_v22  ;;  %v2184_v6 = vadd.f32 %v2183_v40, %v17089_v15  ;;  %v17090_v10 = vld [vmem:[#allocation276_spill] sm:$0xff]  ;;  %v1061_v50 = vmul.f32 %v16853_v47, %v902_v32  ;;  %v17096_v42 = vmax.f32 %v10100_v54, 0.0  ;;  %v1062_v7 = vmul.f32 %v16854_v41, %v902_v32  ;;  %4003 = vperm.xlu1 %5741, %v3895_v57   ;;  %v5811_v57 = vld [vmem:[%s15360_s3 + $0x128] sm:$0xf]  ;;  %v17104_v54 = vld [vmem:[#allocation249_spill] sm:$0xff] }
 0x41d   : > { %17088 = vst [vmem:[#allocation235_spill] sm:$0xff] %v10161_v34  ;;  %v2229_v39 = vadd.f32 %v2228_v28, %v17090_v10  ;;  %v17097_v40 = vld [vmem:[#allocation120_spill] sm:$0xff]  ;;  %v17098_v28 = vmax.f32 %v10103_v27, 0.0  ;;  %v17099_v12 = vmax.f32 %v10106_v26, 0.0  ;;  %v10194_v44 = vadd.f32 %v17092_v23, %v1204_v19  ;;  %4008 = vperm.xlu2 %5742, %v3896_v33   ;;  %v10198_v27 = vpop.permute.xlu1 %3167  ;;  %v17103_v26 = vld [vmem:[#allocation127_spill] sm:$0xff] }
 0x41e   : > { %17093 = vst [vmem:[#allocation180_spill] sm:$0xff] %v10167_v14  ;;  %v10180_v15 = vmul.f32 %v17097_v40, %v17096_v42  ;;  %v1063_v10 = vmul.f32 %v16855_v59, %v902_v32  ;;  %v17101_v42 = vld [vmem:[#allocation278_spill] sm:$0xff]  ;;  %2501 = vperm.xlu0 %5743, %v5811_v57   ;;  %v17105_v19 = vld [vmem:[#allocation68_spill] sm:$0xff]  ;;  %v15706_v46 = vmax.f32 %v10167_v14, 0.0  ;;  %v15705_v33 = vmax.f32 %v10170_v48, 0.0  ;;  %v17138_v14 = vld [vmem:[#allocation251_spill] sm:$0xff] }
 0x41f   : > { %17094 = vst [vmem:[#allocation248_spill] sm:$0xff] %v10170_v48  ;;  %v10185_v53 = vmul.f32 %v17097_v40, %v17098_v28  ;;  %v10191_v29 = vmul.f32 %v17097_v40, %v17099_v12  ;;  %v2317_v9 = vadd.f32 %v2316_v58, %v17101_v42  ;;  %v1064_v28 = vmul.f32 %v16856_v38, %v902_v32  ;;  %v17106_v42 = vld [vmem:[#allocation15_spill] sm:$0xff]  ;;  %v17107_v32 = vld [vmem:[#allocation237_spill] sm:$0xff] }
 0x420   : > { %17095 = vst [vmem:[#allocation236_spill] sm:$0xff] %v10173_v31  ;;  %v2185_v12 = vadd.f32 %v2184_v6, %v17103_v26  ;;  %v2230_v34 = vadd.f32 %v2229_v39, %v17104_v54  ;;  %v2274_v23 = vadd.f32 %v2273_v35, %v17105_v19  ;;  %v15703_v58 = vmax.f32 %v10173_v31, 0.0  ;;  %v914_v36 = vpop.permute.xlu0 %913  ;;  %v3898_v6 = vld [vmem:[%s15363_s6 + $0xa0] sm:$0xff] }
 0x421   : > { %17100 = vst [vmem:[#allocation73_spill] sm:$0xff] %v10194_v44  ;;  %v1214_v3 = vadd.f32 %v1062_v7, %v17107_v32  ;;  %v17108_v26 = vmax.f32 %v10140_v22, 0.0  ;;  %v15704_v35 = vmax.f32 %v10194_v44, 0.0  ;;  %v17109_v39 = vmax.f32 %v9882_v1, 0.0  ;;  %v17111_v7 = vld [vmem:[#allocation254_spill] sm:$0xff] }
 0x422   : > { %17102 = vst [vmem:[#allocation145_spill] sm:$0xff] %v10198_v27  ;;  %v1213_v27 = vadd.f32 %v1061_v50, %v17106_v42  ;;  %v2186_v8 = vadd.f32 %v2185_v12, %v2089_v18  ;;  %v2231_v49 = vadd.f32 %v2230_v34, %v2090_v17  ;;  %v2275_v57 = vadd.f32 %v2274_v23, %v2091_v43  ;;  %v17110_v50 = vld [vmem:[#allocation30_spill] sm:$0xff]  ;;  %v10227_v17 = vpop.permute.xlu2 %3217  ;;  %v17114_v12 = vld [vmem:[#allocation239_spill] sm:$0xff] }
 0x423   : > { %v10215_v54 = vmul.f32 %v17097_v40, %v17108_v26  ;;  %v10224_v19 = vmul.f32 %v17110_v50, %v17109_v39  ;;  %v2318_v18 = vadd.f32 %v2317_v9, %v17111_v7  ;;  %17112 = vst [vmem:[#allocation35_spill] sm:$0xff] %v10227_v17  ;;  %v17113_v43 = vld [vmem:[#allocation238_spill] sm:$0xff]  ;;  %v1216_v40 = vadd.f32 %v1064_v28, %v17114_v12  ;;  %v3899_v23 = vld [vmem:[%s15363_s6 + $0xa8] sm:$0xff] }
 0x424   : > { %v1215_v34 = vadd.f32 %v1063_v10, %v17113_v43  ;;  %v17115_v42 = vmax.f32 %v9885_v62, 0.0  ;;  %v17116_v1 = vmax.f32 %v9891_v0, 0.0  ;;  %v17117_v9 = vld [vmem:[#allocation123_spill] sm:$0xff]  ;;  %v17118_v62 = vmax.f32 %v9913_v60, 0.0  ;;  %v17119_v43 = vld [vmem:[#allocation49_spill] sm:$0xff]  ;;  %4018 = vperm.xlu1 %5741, %v3898_v6   ;;  %v5812_v6 = vld [vmem:[%s15362_s5 + $0x10] sm:$0xff] }
 0x425   : > { %v10247_v10 = vmul.f32 %v17117_v9, %v15706_v46  ;;  %v10252_v28 = vmul.f32 %v17117_v9, %v15705_v33  ;;  %v2319_v7 = vadd.f32 %v2318_v18, %v2092_v20  ;;  %v10262_v0 = vmul.f32 %v17117_v9, %v15703_v58  ;;  %4023 = vperm.xlu2 %5742, %v3899_v23   ;;  %v17126_v23 = vld [vmem:[#allocation283_spill] sm:$0xff]  ;;  %v17141_v22 = vld [vmem:[#allocation318_spill] sm:$0xff] }
 0x426   : > { %v10237_v32 = vmul.f32 %v17110_v50, %v17115_v42  ;;  %v10242_v26 = vmul.f32 %v17110_v50, %v17116_v1  ;;  %v10257_v39 = vmul.f32 %v17110_v50, %v17118_v62  ;;  %v10265_v12 = vadd.f32 %v17119_v43, %v1213_v27  ;;  %v17120_v50 = vld [vmem:[#allocation75_spill] sm:$0xff]  ;;  %v17121_v62 = vld [vmem:[#allocation282_spill] sm:$0xff]  ;;  %3431 = vperm.xlu0 %5743, %v5812_v6  }
 0x427   : > { %v10268_v42 = vadd.f32 %v17119_v43, %v1214_v3  ;;  %v1073_v1 = vmul.f32 %v16853_v47, %v914_v36  ;;  %v10274_v60 = vmul.f32 %v17117_v9, %v15704_v35  ;;  %v1074_v20 = vmul.f32 %v16854_v41, %v914_v36  ;;  %v17124_v35 = vld [vmem:[#allocation173_spill] sm:$0xff] }
 0x428   : > { %v2187_v18 = vadd.f32 %v2186_v8, %v17120_v50  ;;  %v2232_v58 = vadd.f32 %v2231_v49, %v17121_v62  ;;  %v10280_v27 = vadd.f32 %v17119_v43, %v1215_v34  ;;  %v10283_v3 = vadd.f32 %v17119_v43, %v1216_v40  ;;  %v926_v46 = vpop.permute.xlu0 %925 }
 0x429   : > { %v17123_v9 = vmax.f32 %v9975_v25, 0.0  ;;  %v2276_v8 = vadd.f32 %v2275_v57, %v17126_v23  ;;  %v1075_v49 = vmul.f32 %v16855_v59, %v914_v36  ;;  %v1076_v34 = vmul.f32 %v16856_v38, %v914_v36  ;;  %v10306_v25 = vpop.permute.xlu1 %3182  ;;  %v17133_v36 = vld [vmem:[#allocation124_spill] sm:$0xff] }
 0x42a   : > { %17122 = vst [vmem:[#allocation107_spill] sm:$0xff] %v10283_v3  ;;  %v17127_v50 = vmax.f32 %v9978_v45, 0.0  ;;  %v17129_v43 = vmax.f32 %v9981_v2, 0.0  ;;  %v2320_v17 = vadd.f32 %v2319_v7, %v17133_v36  ;;  %v17134_v45 = vld [vmem:[#allocation250_spill] sm:$0xff]  ;;  %v3901_v2 = vld [vmem:[%s15363_s6 + $0xb8] sm:$0xff]  ;;  %v1086_v6 = vmul.f32 %v16854_v41, %v926_v46 }
 0x42b   : > { %v10291_v33 = vmul.f32 %v17124_v35, %v17123_v9  ;;  %17131 = vst [vmem:[#allocation115_spill] sm:$0xff] %v10306_v25  ;;  %v17132_v9 = vld [vmem:[#allocation17_spill] sm:$0xff]  ;;  %v1226_v44 = vadd.f32 %v1074_v20, %v17134_v45  ;;  %v17136_v25 = vld [vmem:[#allocation316_spill] sm:$0xff]  ;;  %v1087_v57 = vmul.f32 %v16855_v59, %v926_v46  ;;  %v3902_v7 = vld [vmem:[%s15363_s6 + $0xc0] sm:$0xff]  ;;  %v15714_v36 = vmax.f32 %v10280_v27, 0.0 }
 0x42c   : > { %v10299_v40 = vmul.f32 %v17124_v35, %v17127_v50  ;;  %v10304_v62 = vmul.f32 %v17124_v35, %v17129_v43  ;;  %v1225_v23 = vadd.f32 %v1073_v1, %v17132_v9  ;;  %v1085_v50 = vmul.f32 %v16853_v47, %v926_v46  ;;  %v17135_v43 = vld [vmem:[#allocation132_spill] sm:$0xff]  ;;  %v17137_v20 = vld [vmem:[#allocation317_spill] sm:$0xff]  ;;  %4033 = vperm.xlu1 %5741, %v3901_v2  }
 0x42d   : > { %17125 = vst [vmem:[#allocation184_spill] sm:$0xff] %v10291_v33  ;;  %v2188_v31 = vadd.f32 %v2187_v18, %v17135_v43  ;;  %v2233_v48 = vadd.f32 %v2232_v58, %v17136_v25  ;;  %v1088_v1 = vmul.f32 %v16856_v38, %v926_v46  ;;  %v2277_v9 = vadd.f32 %v2276_v8, %v17137_v20  ;;  %v17139_v43 = vld [vmem:[#allocation252_spill] sm:$0xff]  ;;  %v10330_v25 = vpop.permute.xlu2 %3232  ;;  %v17142_v8 = vld [vmem:[#allocation51_spill] sm:$0xff] }
 0x42e   : > { %17128 = vst [vmem:[#allocation181_spill] sm:$0xff] %v10299_v40  ;;  %v1227_v18 = vadd.f32 %v1075_v49, %v17138_v14  ;;  %v1228_v58 = vadd.f32 %v1076_v34, %v17139_v43  ;;  %v10337_v20 = vadd.f32 %v17142_v8, %v1225_v23  ;;  %v10340_v45 = vadd.f32 %v17142_v8, %v1226_v44  ;;  %v17145_v14 = vld [vmem:[#allocation20_spill] sm:$0xff] }
 0x42f   : > { %17130 = vst [vmem:[#allocation34_spill] sm:$0xff] %v10304_v62  ;;  %v2321_v62 = vadd.f32 %v2320_v17, %v17141_v22  ;;  %v2189_v46 = vadd.f32 %v2188_v31, %v10180_v15  ;;  %v2234_v40 = vadd.f32 %v2233_v48, %v10185_v53  ;;  %v2278_v33 = vadd.f32 %v2277_v9, %v10191_v29  ;;  %v17147_v22 = vld [vmem:[#allocation256_spill] sm:$0xff]  ;;  %v17148_v15 = vld [vmem:[#allocation257_spill] sm:$0xff]  ;;  %v17149_v53 = vld [vmem:[#allocation258_spill] sm:$0xff] }
 0x430   : > { %17140 = vst [vmem:[#allocation309_spill] sm:$0xff] %v10330_v25  ;;  %v1237_v49 = vadd.f32 %v1085_v50, %v17145_v14  ;;  %4038 = vperm.xlu2 %5742, %v3902_v7   ;;  %v17146_v34 = vmax.f32 %v9988_v51, 0.0  ;;  %v1238_v31 = vadd.f32 %v1086_v6, %v17147_v22  ;;  %v1239_v48 = vadd.f32 %v1087_v57, %v17148_v15  ;;  %v5813_v17 = vld [vmem:[%s15362_s5 + $0x38] sm:$0xff]  ;;  %v17155_v43 = vld [vmem:[#allocation128_spill] sm:$0xff] }
 0x431   : > { %17143 = vst [vmem:[#allocation310_spill] sm:$0xff] %v10337_v20  ;;  %v1240_v29 = vadd.f32 %v1088_v1, %v17149_v53  ;;  %3451 = vperm.xlu0 %5743, %v5813_v17   ;;  %v2322_v44 = vadd.f32 %v2321_v62, %v10215_v54  ;;  %v10356_v23 = vadd.f32 %v17142_v8, %v1227_v18  ;;  %v17151_v51 = vld [vmem:[#allocation77_spill] sm:$0xff]  ;;  %v17154_v57 = vmax.f32 %v10265_v12, 0.0  ;;  %v3904_v15 = vld [vmem:[%s15363_s6 + $0xd0] sm:$0xff]  ;;  %v17159_v53 = vld [vmem:[#allocation290_spill] sm:$0xff] }
 0x432   : > { %17144 = vst [vmem:[#allocation157_spill] sm:$0xff] %v10340_v45  ;;  %v10346_v2 = vmul.f32 %v17124_v35, %v17146_v34  ;;  %v2190_v50 = vadd.f32 %v2189_v46, %v17151_v51  ;;  %v17152_v35 = vld [vmem:[#allocation288_spill] sm:$0xff]  ;;  %v17153_v9 = vld [vmem:[#allocation289_spill] sm:$0xff]  ;;  %v17156_v14 = vmax.f32 %v10268_v42, 0.0  ;;  %v10374_v54 = vmul.f32 %v17155_v43, %v15714_v36  ;;  %v10390_v51 = vpop.permute.xlu1 %3197 }
 0x433   : > { %17150 = vst [vmem:[#allocation191_spill] sm:$0xff] %v10356_v23  ;;  %v2235_v7 = vadd.f32 %v2234_v40, %v17152_v35  ;;  %v2279_v6 = vadd.f32 %v2278_v33, %v17153_v9  ;;  %v10364_v1 = vmul.f32 %v17155_v43, %v17154_v57  ;;  %v10377_v62 = vadd.f32 %v17142_v8, %v1228_v58  ;;  %v938_v40 = vpop.permute.xlu0 %937  ;;  %v17161_v58 = vld [vmem:[#allocation54_spill] sm:$0xff]  ;;  %v17168_v36 = vld [vmem:[#allocation320_spill] sm:$0xff] }
 0x434   : > { %v10369_v34 = vmul.f32 %v17155_v43, %v17156_v14  ;;  %v17158_v33 = vmax.f32 %v10283_v3, 0.0  ;;  %v2323_v17 = vadd.f32 %v2322_v44, %v17159_v53  ;;  %17160 = vst [vmem:[#allocation311_spill] sm:$0xff] %v10390_v51  ;;  %v10393_v8 = vadd.f32 %v17161_v58, %v1237_v49  ;;  %v17166_v14 = vld [vmem:[#allocation137_spill] sm:$0xff]  ;;  %v17167_v53 = vld [vmem:[#allocation319_spill] sm:$0xff]  ;;  %4048 = vperm.xlu1 %5741, %v3904_v15   ;;  %v17170_v46 = vld [vmem:[#allocation48_spill] sm:$0xff] }
 0x435   : > { %17157 = vst [vmem:[#allocation192_spill] sm:$0xff] %v10377_v62  ;;  %v10396_v35 = vadd.f32 %v17161_v58, %v1238_v31  ;;  %v10399_v9 = vadd.f32 %v17161_v58, %v1239_v48  ;;  %v10402_v57 = vadd.f32 %v17161_v58, %v1240_v29  ;;  %v2236_v49 = vadd.f32 %v2235_v7, %v17167_v53 }
 0x436   : > { %v10382_v18 = vmul.f32 %v17155_v43, %v17158_v33  ;;  %17162 = vst [vmem:[#allocation193_spill] sm:$0xff] %v10393_v8  ;;  %v3905_v43 = vld [vmem:[%s15363_s6 + $0xd8] sm:$0xff]  ;;  %v2191_v33 = vadd.f32 %v2190_v50, %v17166_v14  ;;  %v2280_v22 = vadd.f32 %v2279_v6, %v17168_v36  ;;  %v15718_v31 = vmax.f32 %v10377_v62, 0.0  ;;  %v10431_v14 = vpop.permute.xlu2 %3247 }
 0x437   : > { %17163 = vst [vmem:[#allocation194_spill] sm:$0xff] %v10396_v35  ;;  %v17169_v48 = vmax.f32 %v10044_v24, 0.0  ;;  %v17171_v58 = vmax.f32 %v10047_v56, 0.0  ;;  %v17172_v44 = vmax.f32 %v10050_v52, 0.0  ;;  %v17173_v36 = vld [vmem:[#allocation321_spill] sm:$0xff]  ;;  %v2237_v24 = vadd.f32 %v2236_v49, %v10252_v28  ;;  %v17176_v28 = vld [vmem:[#allocation136_spill] sm:$0xff] }
 0x438   : > { %17164 = vst [vmem:[#allocation110_spill] sm:$0xff] %v10399_v9  ;;  %4053 = vperm.xlu2 %5742, %v3905_v43   ;;  %v2324_v7 = vadd.f32 %v2323_v17, %v17173_v36  ;;  %v2192_v6 = vadd.f32 %v2191_v33, %v10247_v10  ;;  %v2281_v15 = vadd.f32 %v2280_v22, %v10262_v0  ;;  %v5814_v17 = vld [vmem:[%s15362_s5 + $0x50] sm:$0xff]  ;;  %v17175_v10 = vmax.f32 %v10337_v20, 0.0  ;;  %v17180_v52 = vld [vmem:[#allocation229_spill] sm:$0xff]  ;;  %v17196_v20 = vld [vmem:[#allocation26_spill] sm:$0xff] }
 0x439   : > { %17165 = vst [vmem:[#allocation37_spill] sm:$0xff] %v10402_v57  ;;  %v10415_v29 = vmul.f32 %v17170_v46, %v17169_v48  ;;  %v10420_v25 = vmul.f32 %v17170_v46, %v17171_v58  ;;  %v10425_v50 = vmul.f32 %v17170_v46, %v17172_v44  ;;  %3463 = vperm.xlu0 %5743, %v5814_v17   ;;  %v17177_v0 = vmax.f32 %v10340_v45, 0.0  ;;  %v17182_v56 = vld [vmem:[#allocation53_spill] sm:$0xff] }
 0x43a   : > { %17174 = vst [vmem:[#allocation39_spill] sm:$0xff] %v10431_v14  ;;  %v10443_v43 = vmul.f32 %v17176_v28, %v17175_v10  ;;  %v17178_v33 = vmax.f32 %v10356_v23, 0.0  ;;  %v2325_v48 = vadd.f32 %v2324_v7, %v10274_v60  ;;  %v10459_v58 = vmul.f32 %v17176_v28, %v15718_v31  ;;  %v17184_v14 = vld [vmem:[#allocation57_spill] sm:$0xff]  ;;  %v17186_v31 = vld [vmem:[#allocation14_spill] sm:$0xff]  ;;  %v10506_v23 = vpop.permute.xlu1 %3212 }
 0x43b   : > { %v10448_v22 = vmul.f32 %v17176_v28, %v17177_v0  ;;  %v1097_v36 = vmul.f32 %v16853_v47, %v938_v40  ;;  %v1098_v17 = vmul.f32 %v16854_v41, %v938_v40  ;;  %v2362_v10 = vpop.permute.xlu0 %2361  ;;  %v17179_v0 = vmax.f32 %v10053_v30, 0.0  ;;  %v3907_v41 = vld [vmem:[%s15363_s6 + $0xe8] sm:$0xff] }
 0x43c   : > { %v10453_v49 = vmul.f32 %v17176_v28, %v17178_v33  ;;  %v17181_v33 = vmax.f32 %v17180_v52, 0.0  ;;  %v17183_v60 = vmax.f32 %v17182_v56, 0.0  ;;  %v17185_v51 = vmax.f32 %v17184_v14, 0.0  ;;  %4063 = vperm.xlu1 %5741, %v3907_v41  }
 0x43d   : > { %v10466_v44 = vmul.f32 %v17170_v46, %v17179_v0  ;;  %v17187_v62 = vmax.f32 %v17186_v31, 0.0  ;;  %v17188_v30 = vmax.f32 %v10393_v8, 0.0  ;;  %v17189_v46 = vld [vmem:[#allocation141_spill] sm:$0xff]  ;;  %v17190_v52 = vmax.f32 %v10396_v35, 0.0  ;;  %v17195_v8 = vld [vmem:[#allocation295_spill] sm:$0xff] }
 0x43e   : > { %v2512_v53 = vmul.f32 %v2362_v10, %v17181_v33  ;;  %v2513_v7 = vmul.f32 %v2362_v10, %v17183_v60  ;;  %v2514_v28 = vmul.f32 %v2362_v10, %v17185_v51  ;;  %v17191_v14 = vmax.f32 %v10399_v9, 0.0  ;;  %v17193_v60 = vld [vmem:[#allocation80_spill] sm:$0xff] }
 0x43f   : > { %v2515_v47 = vmul.f32 %v2362_v10, %v17187_v62  ;;  %v10482_v0 = vmul.f32 %v17189_v46, %v17188_v30  ;;  %v10487_v56 = vmul.f32 %v17189_v46, %v17190_v52  ;;  %v17192_v62 = vmax.f32 %v10402_v57, 0.0  ;;  %v3908_v10 = vld [vmem:[%s15363_s6 + $0xf0] sm:$0xff]  ;;  %v17194_v52 = vld [vmem:[#allocation294_spill] sm:$0xff] }
 0x440   : > { %v10492_v51 = vmul.f32 %v17189_v46, %v17191_v14  ;;  %v1099_v33 = vmul.f32 %v16855_v59, %v938_v40  ;;  %v2193_v30 = vadd.f32 %v2192_v6, %v17193_v60  ;;  %v2238_v35 = vadd.f32 %v2237_v24, %v17194_v52  ;;  %v17197_v6 = vld [vmem:[#allocation27_spill] sm:$0xff]  ;;  %4068 = vperm.xlu2 %5742, %v3908_v10   ;;  %v17198_v24 = vld [vmem:[#allocation296_spill] sm:$0xff]  ;;  %v17199_v52 = vld [vmem:[#allocation262_spill] sm:$0xff] }
 0x441   : > { %v10497_v31 = vmul.f32 %v17189_v46, %v17192_v62  ;;  %v2282_v9 = vadd.f32 %v2281_v15, %v17195_v8  ;;  %v2657_v14 = vadd.f32 %v9947_v16, %v2512_v53  ;;  %v2701_v57 = vadd.f32 %v9954_v63, %v2513_v7  ;;  %v17201_v53 = vld [vmem:[#allocation143_spill] sm:$0xff] }
 0x442   : > { %v2745_v46 = vadd.f32 %v9957_v37, %v2514_v28  ;;  %v2789_v62 = vadd.f32 %v9960_v11, %v2515_v47  ;;  %v1100_v45 = vmul.f32 %v16856_v38, %v938_v40  ;;  %v1249_v3 = vadd.f32 %v1097_v36, %v17196_v20  ;;  %v5815_v11 = vld [vmem:[%s15362_s5 + $0x68] sm:$0xff] }
 0x443   : > { %v1250_v60 = vadd.f32 %v1098_v17, %v17197_v6  ;;  %v2326_v8 = vadd.f32 %v2325_v48, %v17198_v24  ;;  %v2658_v15 = vadd.f32 %v2657_v14, %v9647_v55  ;;  %v2702_v16 = vadd.f32 %v2701_v57, %v17199_v52  ;;  %3475 = vperm.xlu0 %5743, %v5815_v11   ;;  %v17200_v40 = vld [vmem:[#allocation23_spill] sm:$0xff]  ;;  %v17202_v17 = vld [vmem:[#allocation322_spill] sm:$0xff]  ;;  %v10527_v55 = vpop.permute.xlu2 %3262  ;;  %v17207_v14 = vld [vmem:[#allocation148_spill] sm:$0xff] }
 0x444   : > { %v2746_v63 = vadd.f32 %v2745_v46, %v9657_v13  ;;  %v2790_v37 = vadd.f32 %v2789_v62, %v9663_v61  ;;  %v1251_v20 = vadd.f32 %v1099_v33, %v17200_v40  ;;  %v2194_v36 = vadd.f32 %v2193_v30, %v17201_v53  ;;  %v17203_v48 = vld [vmem:[#allocation323_spill] sm:$0xff]  ;;  %v17205_v13 = vld [vmem:[#allocation32_spill] sm:$0xff]  ;;  %v17206_v61 = vld [vmem:[#allocation33_spill] sm:$0xff]  ;;  %v2382_v62 = vpop.permute.xlu0 %2381 }
 0x445   : > { %v2239_v7 = vadd.f32 %v2238_v35, %v17202_v17  ;;  %v2283_v28 = vadd.f32 %v2282_v9, %v17203_v48  ;;  %v17204_v57 = vld [vmem:[#allocation207_spill] sm:$0xff]  ;;  %v2703_v41 = vadd.f32 %v2702_v16, %v17205_v13  ;;  %v17208_v6 = vld [vmem:[#allocation65_spill] sm:$0xff]  ;;  %v17212_v35 = vld [vmem:[#allocation18_spill] sm:$0xff] }
 0x446   : > { %v2659_v47 = vadd.f32 %v2658_v15, %v17204_v57  ;;  %v2747_v10 = vadd.f32 %v2746_v63, %v17206_v61  ;;  %v2791_v46 = vadd.f32 %v2790_v37, %v17207_v14  ;;  %v17209_v24 = vmax.f32 %v17208_v6, 0.0  ;;  %v17210_v52 = vld [vmem:[#allocation133_spill] sm:$0xff]  ;;  %v3910_v15 = vld [vmem:[%s15363_s6 + $0x100] sm:$0xff]  ;;  %v17214_v53 = vld [vmem:[#allocation324_spill] sm:$0xff] }
 0x447   : > { %v17211_v30 = vmax.f32 %v17210_v52, 0.0  ;;  %v17213_v40 = vmax.f32 %v17212_v35, 0.0  ;;  %v2327_v16 = vadd.f32 %v2326_v8, %v17214_v53  ;;  %v2704_v37 = vadd.f32 %v2703_v41, %v9675_v21  ;;  %v17215_v48 = vld [vmem:[#allocation25_spill] sm:$0xff]  ;;  %v3911_v13 = vld [vmem:[%s15363_s6 + $0x108] sm:$0xff]  ;;  %v17219_v21 = vld [vmem:[#allocation302_spill] sm:$0xff]  ;;  %4078 = vperm.xlu1 %5741, %v3910_v15  }
 0x448   : > { %v2532_v33 = vmul.f32 %v2382_v62, %v17209_v24  ;;  %v2660_v63 = vadd.f32 %v2659_v47, %v9668_v4  ;;  %v2748_v17 = vadd.f32 %v2747_v10, %v9680_v5  ;;  %v2792_v57 = vadd.f32 %v2791_v46, %v17215_v48  ;;  %v17216_v61 = vld [vmem:[#allocation21_spill] sm:$0xff]  ;;  %v17218_v4 = vld [vmem:[#allocation216_spill] sm:$0xff]  ;;  %v17220_v5 = vld [vmem:[#allocation166_spill] sm:$0xff]  ;;  %4083 = vperm.xlu2 %5742, %v3911_v13  }
 0x449   : > { %v2533_v11 = vmul.f32 %v2382_v62, %v17211_v30  ;;  %v2534_v9 = vmul.f32 %v2382_v62, %v17213_v40  ;;  %v17217_v14 = vmax.f32 %v17216_v61, 0.0  ;;  %v2195_v24 = vadd.f32 %v2194_v36, %v10364_v1  ;;  %v17221_v46 = vld [vmem:[#allocation169_spill] sm:$0xff]  ;;  %v17222_v35 = vld [vmem:[#allocation267_spill] sm:$0xff]  ;;  %v17223_v53 = vld [vmem:[#allocation56_spill] sm:$0xff] }
 0x44a   : > { %v2240_v52 = vadd.f32 %v2239_v7, %v10369_v34  ;;  %v2284_v8 = vadd.f32 %v2283_v28, %v10374_v54  ;;  %v2661_v47 = vadd.f32 %v2660_v63, %v17218_v4  ;;  %v2705_v41 = vadd.f32 %v2704_v37, %v17219_v21  ;;  %v10569_v54 = vpop.permute.xlu1 %3227  ;;  %v17224_v15 = vld [vmem:[#allocation259_spill] sm:$0xff]  ;;  %v17225_v37 = vld [vmem:[#allocation260_spill] sm:$0xff] }
 0x44b   : > { %v2535_v6 = vmul.f32 %v2382_v62, %v17217_v14  ;;  %v2749_v10 = vadd.f32 %v2748_v17, %v17220_v5  ;;  %v2793_v30 = vadd.f32 %v2792_v57, %v17221_v46  ;;  %v10560_v40 = vadd.f32 %v1100_v45, %v17222_v35  ;;  %v5816_v45 = vld [vmem:[%s15362_s5 + $0x80] sm:$0xff]  ;;  %v17227_v57 = vld [vmem:[#allocation303_spill] sm:$0xff]  ;;  %v17229_v61 = vld [vmem:[#allocation52_spill] sm:$0xff] }
 0x44c   : > { %v10563_v62 = vadd.f32 %v17223_v53, %v1249_v3  ;;  %v10566_v1 = vadd.f32 %v17223_v53, %v1250_v60  ;;  %v2328_v34 = vadd.f32 %v2327_v16, %v10382_v18  ;;  %v2662_v36 = vadd.f32 %v2661_v47, %v2532_v33  ;;  %3487 = vperm.xlu0 %5743, %v5816_v45   ;;  %v17226_v60 = vld [vmem:[#allocation82_spill] sm:$0xff]  ;;  %v17228_v18 = vld [vmem:[#allocation241_spill] sm:$0xff]  ;;  %v2394_v4 = vpop.permute.xlu0 %2393  ;;  %v17241_v45 = vld [vmem:[#allocation104_spill] sm:$0xff] }
 0x44d   : > { %v2706_v7 = vadd.f32 %v2705_v41, %v2533_v11  ;;  %v2750_v28 = vadd.f32 %v2749_v10, %v2534_v9  ;;  %v2794_v63 = vadd.f32 %v2793_v30, %v2535_v6  ;;  %v2196_v3 = vadd.f32 %v2195_v24, %v17224_v15  ;;  %v17230_v11 = vld [vmem:[#allocation24_spill] sm:$0xff]  ;;  %v17231_v14 = vld [vmem:[#allocation210_spill] sm:$0xff]  ;;  %v17238_v30 = vld [vmem:[#allocation271_spill] sm:$0xff] }
 0x44e   : > { %v2241_v17 = vadd.f32 %v2240_v52, %v17225_v37  ;;  %v2285_v48 = vadd.f32 %v2284_v8, %v17226_v60  ;;  %v2329_v13 = vadd.f32 %v2328_v34, %v17227_v57  ;;  %v2663_v16 = vadd.f32 %v2662_v36, %v17228_v18  ;;  %v17232_v47 = vld [vmem:[#allocation70_spill] sm:$0xff]  ;;  %v17236_v52 = vld [vmem:[#allocation139_spill] sm:$0xff]  ;;  %v3913_v36 = vld [vmem:[%s15363_s6 + $0x118] sm:$0xff] }
 0x44f   : > { %v2707_v33 = vadd.f32 %v2706_v7, %v17229_v61  ;;  %v2751_v9 = vadd.f32 %v2750_v28, %v17230_v11  ;;  %v2795_v6 = vadd.f32 %v2794_v63, %v17231_v14  ;;  %v17233_v21 = vmax.f32 %v17232_v47, 0.0  ;;  %v17234_v5 = vld [vmem:[#allocation138_spill] sm:$0xff]  ;;  %v10593_v7 = vpop.permute.xlu2 %3427  ;;  %v17240_v28 = vld [vmem:[#allocation31_spill] sm:$0xff]  ;;  %v17242_v37 = vld [vmem:[#allocation269_spill] sm:$0xff]  ;;  %4093 = vperm.xlu1 %5741, %v3913_v36  }
 0x450   : > { %v17235_v24 = vmax.f32 %v17234_v5, 0.0  ;;  %v17237_v46 = vmax.f32 %v17236_v52, 0.0  ;;  %v17239_v35 = vmax.f32 %v17238_v30, 0.0  ;;  %v2664_v63 = vadd.f32 %v2663_v16, %v17240_v28  ;;  %v17243_v57 = vld [vmem:[#allocation235_spill] sm:$0xff]  ;;  %v3914_v61 = vld [vmem:[%s15363_s6 + $0x120] sm:$0xff]  ;;  %v17244_v14 = vld [vmem:[#allocation168_spill] sm:$0xff] }
 0x451   : > { %v2544_v41 = vmul.f32 %v2394_v4, %v17233_v21  ;;  %v2708_v15 = vadd.f32 %v2707_v33, %v17241_v45  ;;  %v2752_v60 = vadd.f32 %v2751_v9, %v17242_v37  ;;  %v2796_v18 = vadd.f32 %v2795_v6, %v17243_v57  ;;  %v17245_v47 = vld [vmem:[#allocation325_spill] sm:$0xff]  ;;  %v17246_v5 = vld [vmem:[#allocation326_spill] sm:$0xff]  ;;  %4098 = vperm.xlu2 %5742, %v3914_v61   ;;  %v17247_v9 = vld [vmem:[#allocation327_spill] sm:$0xff] }
 0x452   : > { %v2545_v10 = vmul.f32 %v2394_v4, %v17235_v24  ;;  %v2546_v8 = vmul.f32 %v2394_v4, %v17237_v46  ;;  %v2547_v34 = vmul.f32 %v2394_v4, %v17239_v35  ;;  %v10603_v11 = vadd.f32 %v17223_v53, %v1251_v20  ;;  %v17248_v28 = vld [vmem:[#allocation59_spill] sm:$0xff]  ;;  %v17249_v45 = vld [vmem:[#allocation165_spill] sm:$0xff] }
 0x453   : > { %v2197_v4 = vadd.f32 %v2196_v3, %v17244_v14  ;;  %v2242_v21 = vadd.f32 %v2241_v17, %v17245_v47  ;;  %v2286_v24 = vadd.f32 %v2285_v48, %v17246_v5  ;;  %v2665_v16 = vadd.f32 %v2664_v63, %v2544_v41  ;;  %v17250_v37 = vld [vmem:[#allocation97_spill] sm:$0xff]  ;;  %v17251_v41 = vld [vmem:[#allocation242_spill] sm:$0xff] }
 0x454   : > { %v2709_v52 = vadd.f32 %v2708_v15, %v2545_v10  ;;  %v2753_v33 = vadd.f32 %v2752_v60, %v2546_v8  ;;  %v2797_v46 = vadd.f32 %v2796_v18, %v2547_v34  ;;  %v2330_v6 = vadd.f32 %v2329_v13, %v17247_v9  ;;  %v5817_v8 = vld [vmem:[%s15362_s5 + $0x98] sm:$0xff]  ;;  %v10623_v15 = vpop.permute.xlu1 %3242  ;;  %v2406_v60 = vpop.permute.xlu0 %2405  ;;  %v17257_v5 = vld [vmem:[#allocation154_spill] sm:$0xff] }
 0x455   : > { %v2198_v30 = vadd.f32 %v2197_v4, %v10443_v43  ;;  %v2243_v35 = vadd.f32 %v2242_v21, %v10448_v22  ;;  %v2287_v20 = vadd.f32 %v2286_v24, %v10453_v49  ;;  %v2666_v3 = vadd.f32 %v2665_v16, %v17248_v28  ;;  %3499 = vperm.xlu0 %5743, %v5817_v8   ;;  %v17252_v13 = vld [vmem:[#allocation85_spill] sm:$0xff]  ;;  %v17254_v22 = vld [vmem:[#allocation304_spill] sm:$0xff]  ;;  %v17255_v4 = vld [vmem:[#allocation62_spill] sm:$0xff] }
 0x456   : > { %v2710_v17 = vadd.f32 %v2709_v52, %v17249_v45  ;;  %v2754_v48 = vadd.f32 %v2753_v33, %v17250_v37  ;;  %v2798_v10 = vadd.f32 %v2797_v46, %v17251_v41  ;;  %v17253_v43 = vld [vmem:[#allocation109_spill] sm:$0xff]  ;;  %v2331_v49 = vadd.f32 %v2330_v6, %v10459_v58  ;;  %v17259_v52 = vld [vmem:[#allocation76_spill] sm:$0xff]  ;;  %v17261_v46 = vld [vmem:[#allocation155_spill] sm:$0xff] }
 0x457   : > { %v2199_v34 = vadd.f32 %v2198_v30, %v17252_v13  ;;  %v2244_v36 = vadd.f32 %v2243_v35, %v17253_v43  ;;  %v2288_v63 = vadd.f32 %v2287_v20, %v17254_v22  ;;  %v2667_v57 = vadd.f32 %v2666_v3, %v10224_v19  ;;  %v10640_v19 = vld [vmem:[%s15364_s7] sm:$0xff]  ;;  %v4411_v30 = vld [vmem:[%s15364_s7 + $0x8] sm:$0xff]  ;;  %v17263_v35 = vld [vmem:[#allocation305_spill] sm:$0xff]  ;;  %v10652_v37 = vpop.permute.xlu2 %3439 }
 0x458   : > { %v2711_v18 = vadd.f32 %v2710_v17, %v10237_v32  ;;  %v2755_v61 = vadd.f32 %v2754_v48, %v10242_v26  ;;  %v2799_v14 = vadd.f32 %v2798_v10, %v10257_v39  ;;  %v17256_v47 = vmax.f32 %v17255_v4, 0.0  ;;  %4450 = vperm.xlu1 %5741, %v10640_v19   ;;  %v17265_v41 = vld [vmem:[#allocation196_spill] sm:$0xff]  ;;  %v17266_v8 = vld [vmem:[#allocation199_spill] sm:$0xff]  ;;  %v17267_v43 = vld [vmem:[#allocation222_spill] sm:$0xff] }
 0x459   : > { %v17258_v24 = vmax.f32 %v17257_v5, 0.0  ;;  %v17260_v33 = vmax.f32 %v17259_v52, 0.0  ;;  %v17262_v9 = vmax.f32 %v17261_v46, 0.0  ;;  %v10644_v32 = vadd.f32 %v17223_v53, %v10560_v40  ;;  %v17264_v40 = vld [vmem:[#allocation195_spill] sm:$0xff]  ;;  %4455 = vperm.xlu2 %5742, %v4411_v30   ;;  %v5818_v4 = vld [vmem:[%s15362_s5 + $0xb0] sm:$0xff] }
 0x45a   : > { %v2556_v21 = vmul.f32 %v2406_v60, %v17256_v47  ;;  %v15735_v26 = vmax.f32 %v10563_v62, 0.0  ;;  %v15734_v39 = vmax.f32 %v10566_v1, 0.0  ;;  %v2332_v20 = vadd.f32 %v2331_v49, %v17263_v35  ;;  %v17271_v47 = vld [vmem:[#allocation200_spill] sm:$0xff] }
 0x45b   : > { %v2557_v16 = vmul.f32 %v2406_v60, %v17258_v24  ;;  %v2558_v58 = vmul.f32 %v2406_v60, %v17260_v33  ;;  %v2559_v6 = vmul.f32 %v2406_v60, %v17262_v9  ;;  %v15733_v48 = vmax.f32 %v10603_v11, 0.0  ;;  %v17268_v60 = vld [vmem:[#allocation240_spill] sm:$0xff]  ;;  %v17274_v33 = vld [vmem:[#allocation34_spill] sm:$0xff] }
 0x45c   : > { %v2668_v28 = vadd.f32 %v2667_v57, %v2556_v21  ;;  %v2200_v53 = vadd.f32 %v2199_v34, %v17264_v40  ;;  %v2245_v10 = vadd.f32 %v2244_v36, %v17265_v41  ;;  %v2289_v13 = vadd.f32 %v2288_v63, %v17266_v8  ;;  %v17269_v57 = vld [vmem:[#allocation36_spill] sm:$0xff] }
 0x45d   : > { %v2712_v3 = vadd.f32 %v2711_v18, %v2557_v16  ;;  %v2756_v45 = vadd.f32 %v2755_v61, %v2558_v58  ;;  %v2800_v17 = vadd.f32 %v2799_v14, %v2559_v6  ;;  %v17270_v61 = vld [vmem:[#allocation158_spill] sm:$0xff]  ;;  %3511 = vperm.xlu0 %5743, %v5818_v4   ;;  %v2333_v34 = vadd.f32 %v2332_v20, %v17271_v47  ;;  %v17272_v5 = vld [vmem:[#allocation184_spill] sm:$0xff]  ;;  %v17273_v16 = vld [vmem:[#allocation181_spill] sm:$0xff]  ;;  %v2418_v6 = vpop.permute.xlu0 %2417 }
 0x45e   : > { %v2669_v22 = vadd.f32 %v2668_v28, %v17267_v43  ;;  %v2201_v36 = vadd.f32 %v2200_v53, %v10482_v0  ;;  %v2246_v63 = vadd.f32 %v2245_v10, %v10487_v56  ;;  %v2290_v21 = vadd.f32 %v2289_v13, %v10492_v51  ;;  %v17275_v30 = vld [vmem:[#allocation88_spill] sm:$0xff]  ;;  %v17277_v56 = vld [vmem:[#allocation171_spill] sm:$0xff]  ;;  %v4413_v43 = vld [vmem:[%s15364_s7 + $0x18] sm:$0xff] }
 0x45f   : > { %v2713_v49 = vadd.f32 %v2712_v3, %v17268_v60  ;;  %v2757_v18 = vadd.f32 %v2756_v45, %v17269_v57  ;;  %v2801_v14 = vadd.f32 %v2800_v17, %v17270_v61  ;;  %v15732_v9 = vmax.f32 %v10644_v32, 0.0  ;;  %v17276_v20 = vld [vmem:[#allocation112_spill] sm:$0xff]  ;;  %v17279_v45 = vld [vmem:[#allocation177_spill] sm:$0xff]  ;;  %v17281_v53 = vld [vmem:[#allocation67_spill] sm:$0xff] }
 0x460   : > { %v2670_v24 = vadd.f32 %v2669_v22, %v17272_v5  ;;  %v2202_v35 = vadd.f32 %v2201_v36, %v17275_v30  ;;  %v2247_v28 = vadd.f32 %v2246_v63, %v17276_v20  ;;  %v2334_v0 = vadd.f32 %v2333_v34, %v10497_v31  ;;  %v17283_v8 = vld [vmem:[#allocation172_spill] sm:$0xff]  ;;  %v10689_v22 = vpop.permute.xlu1 %3257  ;;  %v17285_v31 = vld [vmem:[#allocation150_spill] sm:$0xff]  ;;  %4465 = vperm.xlu1 %5741, %v4413_v43   ;;  %v17289_v30 = vld [vmem:[#allocation151_spill] sm:$0xff] }
 0x461   : > { %v2714_v52 = vadd.f32 %v2713_v49, %v17273_v16  ;;  %v2758_v58 = vadd.f32 %v2757_v18, %v17274_v33  ;;  %v2802_v46 = vadd.f32 %v2801_v14, %v10346_v2  ;;  %v17278_v3 = vmax.f32 %v17277_v56, 0.0  ;;  %v4414_v57 = vld [vmem:[%s15364_s7 + $0x20] sm:$0xff]  ;;  %v17286_v18 = vld [vmem:[#allocation307_spill] sm:$0xff]  ;;  %v17287_v14 = vld [vmem:[#allocation308_spill] sm:$0xff] }
 0x462   : > { %v17280_v17 = vmax.f32 %v17279_v45, 0.0  ;;  %v17282_v41 = vmax.f32 %v17281_v53, 0.0  ;;  %v17284_v2 = vmax.f32 %v17283_v8, 0.0  ;;  %v2161_v60 = vmul.f32 %v17285_v31, %v15735_v26  ;;  %v17288_v33 = vld [vmem:[#allocation149_spill] sm:$0xff]  ;;  %4470 = vperm.xlu2 %5742, %v4414_v57   ;;  %v5819_v45 = vld [vmem:[%s15362_s5 + $0xc8] sm:$0xff] }
 0x463   : > { %v2568_v51 = vmul.f32 %v2418_v6, %v17278_v3  ;;  %v2162_v49 = vmul.f32 %v17285_v31, %v15734_v39  ;;  %v2291_v61 = vadd.f32 %v2290_v21, %v17286_v18  ;;  %v2335_v4 = vadd.f32 %v2334_v0, %v17287_v14  ;;  %v17290_v21 = vld [vmem:[#allocation159_spill] sm:$0xff]  ;;  %v17291_v0 = vld [vmem:[#allocation45_spill] sm:$0xff] }
 0x464   : > { %v2569_v40 = vmul.f32 %v2418_v6, %v17280_v17  ;;  %v2570_v10 = vmul.f32 %v2418_v6, %v17282_v41  ;;  %v2571_v13 = vmul.f32 %v2418_v6, %v17284_v2  ;;  %v2163_v5 = vmul.f32 %v17285_v31, %v15733_v48  ;;  %v17294_v17 = vld [vmem:[#allocation61_spill] sm:$0xff]  ;;  %v17296_v43 = vld [vmem:[#allocation63_spill] sm:$0xff] }
 0x465   : > { %v2671_v47 = vadd.f32 %v2670_v24, %v2568_v51  ;;  %v2164_v16 = vmul.f32 %v17285_v31, %v15732_v9  ;;  %v2203_v6 = vadd.f32 %v2202_v35, %v17288_v33  ;;  %v2248_v20 = vadd.f32 %v2247_v28, %v17289_v30  ;;  %v10714_v51 = vpop.permute.xlu2 %3447  ;;  %3523 = vperm.xlu0 %5743, %v5819_v45   ;;  %v2430_v18 = vpop.permute.xlu0 %2429  ;;  %v17308_v30 = vld [vmem:[#allocation153_spill] sm:$0xff] }
 0x466   : > { %v2715_v34 = vadd.f32 %v2714_v52, %v2569_v40  ;;  %v2759_v36 = vadd.f32 %v2758_v58, %v2570_v10  ;;  %v2803_v63 = vadd.f32 %v2802_v46, %v2571_v13  ;;  %v17292_v52 = vld [vmem:[#allocation28_spill] sm:$0xff]  ;;  %v2292_v35 = vadd.f32 %v2291_v61, %v17294_v17  ;;  %v17295_v40 = vld [vmem:[#allocation223_spill] sm:$0xff] }
 0x467   : > { %v2672_v56 = vadd.f32 %v2671_v47, %v17290_v21  ;;  %v17293_v46 = vld [vmem:[#allocation212_spill] sm:$0xff]  ;;  %v2336_v28 = vadd.f32 %v2335_v4, %v17295_v40  ;;  %v10721_v53 = vadd.f32 %v2203_v6, %v2161_v60  ;;  %v10723_v41 = vadd.f32 %v2248_v20, %v2162_v49  ;;  %v17297_v49 = vld [vmem:[#allocation182_spill] sm:$0xff] }
 0x468   : > { %v2716_v24 = vadd.f32 %v2715_v34, %v17291_v0  ;;  %v2760_v58 = vadd.f32 %v2759_v36, %v17292_v52  ;;  %v2804_v3 = vadd.f32 %v2803_v63, %v17293_v46  ;;  %v1103_v31 = vmul.f32 %v16855_v59, %v17296_v43  ;;  %v17299_v4 = vld [vmem:[#allocation86_spill] sm:$0xff]  ;;  %v17303_v36 = vld [vmem:[#allocation203_spill] sm:$0xff] }
 0x469   : > { %v2673_v10 = vadd.f32 %v2672_v56, %v10415_v29  ;;  %v1104_v57 = vmul.f32 %v16856_v38, %v17296_v43  ;;  %v10733_v61 = vadd.f32 %v2292_v35, %v2163_v5  ;;  %v10735_v60 = vadd.f32 %v2336_v28, %v2164_v16  ;;  %v4416_v38 = vld [vmem:[%s15364_s7 + $0x30] sm:$0xff]  ;;  %v17305_v5 = vld [vmem:[#allocation71_spill] sm:$0xff]  ;;  %v17310_v56 = vld [vmem:[#allocation146_spill] sm:$0xff]  ;;  %v10763_v28 = vpop.permute.xlu1 %3423 }
 0x46a   : > { %v2717_v8 = vadd.f32 %v2716_v24, %v10420_v25  ;;  %v2761_v2 = vadd.f32 %v2760_v58, %v10425_v50  ;;  %v2805_v13 = vadd.f32 %v2804_v3, %v10466_v44  ;;  %v17298_v14 = vmax.f32 %v17297_v49, 0.0  ;;  %v17301_v50 = vld [vmem:[#allocation190_spill] sm:$0xff]  ;;  %v17307_v16 = vld [vmem:[#allocation144_spill] sm:$0xff]  ;;  %v4417_v3 = vld [vmem:[%s15364_s7 + $0x38] sm:$0xff]  ;;  %4480 = vperm.xlu1 %5741, %v4416_v38  }
 0x46b   : > { %v17300_v25 = vmax.f32 %v17299_v4, 0.0  ;;  %v17302_v34 = vmax.f32 %v17301_v50, 0.0  ;;  %v17304_v63 = vmax.f32 %v17303_v36, 0.0  ;;  %v17306_v33 = vmax.f32 %v17305_v5, 0.0  ;;  %v17312_v52 = vld [vmem:[#allocation74_spill] sm:$0xff]  ;;  %v17314_v43 = vld [vmem:[#allocation255_spill] sm:$0xff]  ;;  %4485 = vperm.xlu2 %5742, %v4417_v3  }
 0x46c   : > { %v2580_v29 = vmul.f32 %v2430_v18, %v17298_v14  ;;  %v17309_v20 = vmax.f32 %v17308_v30, 0.0  ;;  %v17311_v0 = vmax.f32 %v17310_v56, 0.0  ;;  %v17313_v58 = vmax.f32 %v17312_v52, 0.0  ;;  %v17316_v49 = vld [vmem:[#allocation55_spill] sm:$0xff]  ;;  %v17317_v4 = vld [vmem:[#allocation66_spill] sm:$0xff]  ;;  %v17327_v56 = vld [vmem:[#allocation265_spill] sm:$0xff] }
 0x46d   : > { %v2581_v47 = vmul.f32 %v2430_v18, %v17300_v25  ;;  %v2582_v44 = vmul.f32 %v2430_v18, %v17302_v34  ;;  %v2583_v59 = vmul.f32 %v2430_v18, %v17304_v63  ;;  %v2584_v6 = vmul.f32 %v17307_v16, %v17306_v33  ;;  %v17319_v34 = vld [vmem:[#allocation170_spill] sm:$0xff]  ;;  %v17321_v5 = vld [vmem:[#allocation179_spill] sm:$0xff]  ;;  %v10786_v3 = vpop.permute.xlu2 %3459 }
 0x46e   : > { %v2585_v21 = vmul.f32 %v17307_v16, %v17309_v20  ;;  %v2586_v24 = vmul.f32 %v17307_v16, %v17311_v0  ;;  %v2587_v46 = vmul.f32 %v17307_v16, %v17313_v58  ;;  %v2674_v45 = vadd.f32 %v2673_v10, %v2580_v29  ;;  %v17324_v38 = vld [vmem:[#allocation226_spill] sm:$0xff]  ;;  %v17325_v16 = vld [vmem:[#allocation264_spill] sm:$0xff]  ;;  %v17326_v30 = vld [vmem:[#allocation227_spill] sm:$0xff] }
 0x46f   : > { %v2718_v17 = vadd.f32 %v2717_v8, %v2581_v47  ;;  %v2762_v35 = vadd.f32 %v2761_v2, %v2582_v44  ;;  %v2806_v40 = vadd.f32 %v2805_v13, %v2583_v59  ;;  %v17315_v18 = vmax.f32 %v17314_v43, 0.0  ;;  %v5820_v44 = vld [vmem:[%s15362_s5 + $0xe0] sm:$0xff] }
 0x470   : > { %v17318_v25 = vmax.f32 %v17317_v4, 0.0  ;;  %v17320_v36 = vmax.f32 %v17319_v34, 0.0  ;;  %v17322_v10 = vmax.f32 %v17321_v5, 0.0  ;;  %v2675_v2 = vadd.f32 %v2674_v45, %v2584_v6  ;;  %3535 = vperm.xlu0 %5743, %v5820_v44   ;;  %v17323_v59 = vld [vmem:[#allocation22_spill] sm:$0xff]  ;;  %v2442_v45 = vpop.permute.xlu0 %2441 }
 0x471   : > { %v2588_v14 = vmul.f32 %v17316_v49, %v17315_v18  ;;  %v2719_v13 = vadd.f32 %v2718_v17, %v2585_v21  ;;  %v2763_v29 = vadd.f32 %v2762_v35, %v2586_v24  ;;  %v2807_v47 = vadd.f32 %v2806_v40, %v2587_v46  ;;  %v17328_v52 = vld [vmem:[#allocation266_spill] sm:$0xff]  ;;  %v17329_v17 = vld [vmem:[#allocation105_spill] sm:$0xff] }
 0x472   : > { %v2589_v50 = vmul.f32 %v17316_v49, %v17318_v25  ;;  %v2590_v63 = vmul.f32 %v17316_v49, %v17320_v36  ;;  %v2591_v8 = vmul.f32 %v17316_v49, %v17322_v10  ;;  %v1253_v33 = vadd.f32 %v17324_v38, %v17323_v59  ;;  %v17341_v44 = vld [vmem:[#allocation78_spill] sm:$0xff] }
 0x473   : > { %v1254_v20 = vadd.f32 %v17326_v30, %v17325_v16  ;;  %v1255_v0 = vadd.f32 %v1103_v31, %v17327_v56  ;;  %v1256_v58 = vadd.f32 %v1104_v57, %v17328_v52  ;;  %v2676_v6 = vadd.f32 %v2675_v2, %v2588_v14  ;;  %v17330_v57 = vld [vmem:[#allocation89_spill] sm:$0xff]  ;;  %v17332_v14 = vld [vmem:[#allocation279_spill] sm:$0xff]  ;;  %v17338_v2 = vld [vmem:[#allocation38_spill] sm:$0xff] }
 0x474   : > { %v2720_v21 = vadd.f32 %v2719_v13, %v2589_v50  ;;  %v2764_v24 = vadd.f32 %v2763_v29, %v2590_v63  ;;  %v2808_v46 = vadd.f32 %v2807_v47, %v2591_v8  ;;  %v10789_v35 = vadd.f32 %v17329_v17, %v1253_v33  ;;  %v17334_v50 = vld [vmem:[#allocation280_spill] sm:$0xff]  ;;  %v17336_v63 = vld [vmem:[#allocation281_spill] sm:$0xff]  ;;  %v4419_v8 = vld [vmem:[%s15364_s7 + $0x48] sm:$0xff] }
 0x475   : > { %v10792_v40 = vadd.f32 %v17329_v17, %v1254_v20  ;;  %v10795_v43 = vadd.f32 %v17329_v17, %v1255_v0  ;;  %v10798_v31 = vadd.f32 %v17329_v17, %v1256_v58  ;;  %v17331_v18 = vmax.f32 %v17330_v57, 0.0  ;;  %v17340_v29 = vld [vmem:[#allocation84_spill] sm:$0xff]  ;;  %v17343_v33 = vld [vmem:[#allocation163_spill] sm:$0xff]  ;;  %4495 = vperm.xlu1 %5741, %v4419_v8  }
 0x476   : > { %v17333_v4 = vmax.f32 %v17332_v14, 0.0  ;;  %v17335_v34 = vmax.f32 %v17334_v50, 0.0  ;;  %v17337_v5 = vmax.f32 %v17336_v63, 0.0  ;;  %v17339_v13 = vmax.f32 %v17338_v2, 0.0  ;;  %v17345_v20 = vld [vmem:[#allocation176_spill] sm:$0xff] }
 0x477   : > { %v2592_v49 = vmul.f32 %v2442_v45, %v17331_v18  ;;  %v17342_v59 = vmax.f32 %v17341_v44, 0.0  ;;  %v17344_v16 = vmax.f32 %v17343_v33, 0.0  ;;  %v17346_v56 = vmax.f32 %v17345_v20, 0.0  ;;  %v4420_v52 = vld [vmem:[%s15364_s7 + $0x50] sm:$0xff]  ;;  %v17354_v44 = vld [vmem:[#allocation73_spill] sm:$0xff] }
 0x478   : > { %v2593_v25 = vmul.f32 %v2442_v45, %v17333_v4  ;;  %v2594_v36 = vmul.f32 %v2442_v45, %v17335_v34  ;;  %v2595_v10 = vmul.f32 %v2442_v45, %v17337_v5  ;;  %v2596_v47 = vmul.f32 %v17340_v29, %v17339_v13  ;;  %v17347_v18 = vld [vmem:[#allocation180_spill] sm:$0xff]  ;;  %v17349_v4 = vld [vmem:[#allocation58_spill] sm:$0xff]  ;;  %4500 = vperm.xlu2 %5742, %v4420_v52   ;;  %v2454_v20 = vpop.permute.xlu0 %2453 }
 0x479   : > { %v2597_v38 = vmul.f32 %v17340_v29, %v17342_v59  ;;  %v2598_v30 = vmul.f32 %v17340_v29, %v17344_v16  ;;  %v2599_v0 = vmul.f32 %v17340_v29, %v17346_v56  ;;  %v2677_v58 = vadd.f32 %v2676_v6, %v2592_v49  ;;  %v17350_v34 = vld [vmem:[#allocation248_spill] sm:$0xff] }
 0x47a   : > { %v2721_v45 = vadd.f32 %v2720_v21, %v2593_v25  ;;  %v2765_v17 = vadd.f32 %v2764_v24, %v2594_v36  ;;  %v2809_v57 = vadd.f32 %v2808_v46, %v2595_v10  ;;  %v17348_v14 = vmax.f32 %v17347_v18, 0.0  ;;  %v17352_v2 = vld [vmem:[#allocation236_spill] sm:$0xff]  ;;  %v10838_v25 = vpop.permute.xlu1 %3435  ;;  %v5821_v36 = vld [vmem:[%s15362_s5 + $0xf8] sm:$0xff]  ;;  %v17360_v18 = vld [vmem:[#allocation286_spill] sm:$0xff] }
 0x47b   : > { %v17351_v63 = vmax.f32 %v17350_v34, 0.0  ;;  %v17353_v13 = vmax.f32 %v17352_v2, 0.0  ;;  %v17355_v59 = vmax.f32 %v17354_v44, 0.0  ;;  %v2678_v21 = vadd.f32 %v2677_v58, %v2596_v47  ;;  %3547 = vperm.xlu0 %5743, %v5821_v36   ;;  %v17364_v2 = vld [vmem:[#allocation81_spill] sm:$0xff]  ;;  %v17371_v36 = vld [vmem:[#allocation83_spill] sm:$0xff] }
 0x47c   : > { %v2600_v50 = vmul.f32 %v17349_v4, %v17348_v14  ;;  %v2722_v24 = vadd.f32 %v2721_v45, %v2597_v38  ;;  %v2766_v46 = vadd.f32 %v2765_v17, %v2598_v30  ;;  %v2810_v49 = vadd.f32 %v2809_v57, %v2599_v0  ;;  %v17356_v0 = vld [vmem:[#allocation92_spill] sm:$0xff]  ;;  %v17358_v45 = vld [vmem:[#allocation285_spill] sm:$0xff] }
 0x47d   : > { %v2601_v5 = vmul.f32 %v17349_v4, %v17351_v63  ;;  %v2602_v29 = vmul.f32 %v17349_v4, %v17353_v13  ;;  %v2603_v6 = vmul.f32 %v17349_v4, %v17355_v59  ;;  %v15731_v56 = vmax.f32 %v10789_v35, 0.0  ;;  %v17367_v59 = vld [vmem:[#allocation42_spill] sm:$0xff] }
 0x47e   : > { %v2679_v10 = vadd.f32 %v2678_v21, %v2600_v50  ;;  %v15730_v47 = vmax.f32 %v10792_v40, 0.0  ;;  %v15729_v38 = vmax.f32 %v10795_v43, 0.0  ;;  %v15728_v30 = vmax.f32 %v10798_v31, 0.0  ;;  %v17362_v50 = vld [vmem:[#allocation215_spill] sm:$0xff] }
 0x47f   : > { %v2723_v8 = vadd.f32 %v2722_v24, %v2601_v5  ;;  %v2767_v33 = vadd.f32 %v2766_v46, %v2602_v29  ;;  %v2811_v16 = vadd.f32 %v2810_v49, %v2603_v6  ;;  %v17357_v52 = vmax.f32 %v17356_v0, 0.0  ;;  %v4422_v5 = vld [vmem:[%s15364_s7 + $0x60] sm:$0xff]  ;;  %v17366_v29 = vld [vmem:[#allocation91_spill] sm:$0xff] }
 0x480   : > { %v17359_v17 = vmax.f32 %v17358_v45, 0.0  ;;  %v17361_v14 = vmax.f32 %v17360_v18, 0.0  ;;  %v17363_v34 = vmax.f32 %v17362_v50, 0.0  ;;  %v17365_v13 = vmax.f32 %v17364_v2, 0.0  ;;  %v17369_v24 = vld [vmem:[#allocation174_spill] sm:$0xff]  ;;  %v4423_v45 = vld [vmem:[%s15364_s7 + $0x68] sm:$0xff]  ;;  %4510 = vperm.xlu1 %5741, %v4422_v5  }
 0x481   : > { %v2604_v58 = vmul.f32 %v2454_v20, %v17357_v52  ;;  %v17368_v6 = vmax.f32 %v17367_v59, 0.0  ;;  %v17370_v46 = vmax.f32 %v17369_v24, 0.0  ;;  %v17372_v0 = vmax.f32 %v17371_v36, 0.0  ;;  %v10870_v52 = vpop.permute.xlu2 %3471  ;;  %v17374_v2 = vld [vmem:[#allocation16_spill] sm:$0xff]  ;;  %4515 = vperm.xlu2 %5742, %v4423_v45   ;;  %v17380_v45 = vld [vmem:[#allocation213_spill] sm:$0xff] }
 0x482   : > { %v2605_v57 = vmul.f32 %v2454_v20, %v17359_v17  ;;  %v2606_v4 = vmul.f32 %v2454_v20, %v17361_v14  ;;  %v2607_v63 = vmul.f32 %v2454_v20, %v17363_v34  ;;  %v2608_v44 = vmul.f32 %v17366_v29, %v17365_v13 }
 0x483   : > { %v2609_v21 = vmul.f32 %v17366_v29, %v17368_v6  ;;  %v2610_v49 = vmul.f32 %v17366_v29, %v17370_v46  ;;  %v2611_v20 = vmul.f32 %v17366_v29, %v17372_v0  ;;  %v2680_v17 = vadd.f32 %v2679_v10, %v2604_v58  ;;  %v17377_v46 = vld [vmem:[#allocation107_spill] sm:$0xff]  ;;  %v10893_v0 = vpop.permute.xlu1 %3443 }
 0x484   : > { %v2724_v18 = vadd.f32 %v2723_v8, %v2605_v57  ;;  %v2768_v14 = vadd.f32 %v2767_v33, %v2606_v4  ;;  %v2812_v50 = vadd.f32 %v2811_v16, %v2607_v63  ;;  %v17373_v34 = vmax.f32 %v10265_v12, 0.0  ;;  %v5822_v12 = vld [vmem:[%s15362_s5 + $0x110] sm:$0xff] }
 0x485   : > { %v17375_v59 = vmax.f32 %v10268_v42, 0.0  ;;  %v17376_v29 = vmax.f32 %v10280_v27, 0.0  ;;  %v17378_v36 = vmax.f32 %v17377_v46, 0.0  ;;  %v2681_v8 = vadd.f32 %v2680_v17, %v2608_v44  ;;  %3559 = vperm.xlu0 %5743, %v5822_v12   ;;  %v17379_v42 = vld [vmem:[#allocation90_spill] sm:$0xff]  ;;  %v2466_v44 = vpop.permute.xlu0 %2465  ;;  %v4425_v46 = vld [vmem:[%s15364_s7 + $0x78] sm:$0xff] }
 0x486   : > { %v2612_v13 = vmul.f32 %v17374_v2, %v17373_v34  ;;  %v2725_v33 = vadd.f32 %v2724_v18, %v2609_v21  ;;  %v2769_v16 = vadd.f32 %v2768_v14, %v2610_v49  ;;  %v2813_v58 = vadd.f32 %v2812_v50, %v2611_v20  ;;  %v17382_v14 = vld [vmem:[#allocation225_spill] sm:$0xff] }
 0x487   : > { %v2613_v6 = vmul.f32 %v17374_v2, %v17375_v59  ;;  %v2614_v24 = vmul.f32 %v17374_v2, %v17376_v29  ;;  %v2615_v10 = vmul.f32 %v17374_v2, %v17378_v36  ;;  %v2165_v27 = vmul.f32 %v17379_v42, %v15731_v56  ;;  %v17384_v2 = vld [vmem:[#allocation96_spill] sm:$0xff]  ;;  %v17388_v36 = vld [vmem:[#allocation185_spill] sm:$0xff] }
 0x488   : > { %v2682_v57 = vadd.f32 %v2681_v8, %v2612_v13  ;;  %v2166_v21 = vmul.f32 %v17379_v42, %v15730_v47  ;;  %v2167_v49 = vmul.f32 %v17379_v42, %v15729_v38  ;;  %v2168_v20 = vmul.f32 %v17379_v42, %v15728_v30  ;;  %v17390_v8 = vld [vmem:[#allocation214_spill] sm:$0xff]  ;;  %4525 = vperm.xlu1 %5741, %v4425_v46   ;;  %v17405_v56 = vld [vmem:[#allocation192_spill] sm:$0xff] }
 0x489   : > { %v2726_v4 = vadd.f32 %v2725_v33, %v2613_v6  ;;  %v2770_v63 = vadd.f32 %v2769_v16, %v2614_v24  ;;  %v2814_v5 = vadd.f32 %v2813_v58, %v2615_v10  ;;  %v17381_v17 = vmax.f32 %v17380_v45, 0.0  ;;  %v17386_v6 = vld [vmem:[#allocation245_spill] sm:$0xff]  ;;  %v17391_v16 = vld [vmem:[#allocation87_spill] sm:$0xff]  ;;  %v17393_v42 = vld [vmem:[#allocation186_spill] sm:$0xff] }
 0x48a   : > { %v17383_v50 = vmax.f32 %v17382_v14, 0.0  ;;  %v17385_v13 = vmax.f32 %v17384_v2, 0.0  ;;  %v17387_v29 = vmax.f32 %v17386_v6, 0.0  ;;  %v17389_v10 = vmax.f32 %v17388_v36, 0.0  ;;  %v17395_v14 = vld [vmem:[#allocation183_spill] sm:$0xff]  ;;  %v4426_v2 = vld [vmem:[%s15364_s7 + $0x80] sm:$0xff] }
 0x48b   : > { %v2616_v18 = vmul.f32 %v2466_v44, %v17381_v17  ;;  %v17392_v58 = vmax.f32 %v17391_v16, 0.0  ;;  %v17394_v45 = vmax.f32 %v17393_v42, 0.0  ;;  %v17398_v16 = vld [vmem:[#allocation310_spill] sm:$0xff]  ;;  %v17400_v42 = vld [vmem:[#allocation64_spill] sm:$0xff]  ;;  %4530 = vperm.xlu2 %5742, %v4426_v2   ;;  %v2294_v46 = vsel %vm2205_vm0, %v2167_v49, 0.0 }
 0x48c   : > { %v2617_v34 = vmul.f32 %v2466_v44, %v17383_v50  ;;  %v2618_v59 = vmul.f32 %v2466_v44, %v17385_v13  ;;  %v2619_v24 = vmul.f32 %v2466_v44, %v17387_v29  ;;  %v2620_v33 = vmul.f32 %v17390_v8, %v17389_v10  ;;  %v10930_v10 = vpop.permute.xlu2 %3483  ;;  %v17409_v2 = vld [vmem:[#allocation306_spill] sm:$0xff] }
 0x48d   : > { %v2621_v12 = vmul.f32 %v17390_v8, %v17392_v58  ;;  %v2622_v17 = vmul.f32 %v17390_v8, %v17394_v45  ;;  %v17396_v50 = vmax.f32 %v17395_v14, 0.0  ;;  %v2683_v13 = vadd.f32 %v2682_v57, %v2616_v18  ;;  %17397 = vst [vmem:[#allocation272_spill] sm:$0xff] %v10930_v10  ;;  %v17401_v45 = vld [vmem:[#allocation157_spill] sm:$0xff] }
 0x48e   : > { %v2727_v6 = vadd.f32 %v2726_v4, %v2617_v34  ;;  %v2771_v29 = vadd.f32 %v2770_v63, %v2618_v59  ;;  %v2815_v36 = vadd.f32 %v2814_v5, %v2619_v24  ;;  %v17399_v58 = vmax.f32 %v17398_v16, 0.0  ;;  %v5823_v59 = vld [vmem:[%s15362_s5 + $0x128] sm:$0xf] }
 0x48f   : > { %v2623_v44 = vmul.f32 %v17390_v8, %v17396_v50  ;;  %v17402_v38 = vmax.f32 %v17401_v45, 0.0  ;;  %v17403_v8 = vld [vmem:[#allocation191_spill] sm:$0xff]  ;;  %v17406_v57 = vmax.f32 %v17405_v56, 0.0  ;;  %v2684_v63 = vadd.f32 %v2683_v13, %v2620_v33  ;;  %3571 = vperm.xlu0 %5743, %v5823_v59  }
 0x490   : > { %v2624_v30 = vmul.f32 %v17400_v42, %v17399_v58  ;;  %v17404_v50 = vmax.f32 %v17403_v8, 0.0  ;;  %v2728_v5 = vadd.f32 %v2727_v6, %v2621_v12  ;;  %v2772_v18 = vadd.f32 %v2771_v29, %v2622_v17  ;;  %v17407_v17 = vld [vmem:[#allocation197_spill] sm:$0xff]  ;;  %v17410_v6 = vld [vmem:[#allocation198_spill] sm:$0xff]  ;;  %v17414_v45 = vld [vmem:[#allocation47_spill] sm:$0xff] }
 0x491   : > { %v2625_v14 = vmul.f32 %v17400_v42, %v17402_v38  ;;  %v2627_v4 = vmul.f32 %v17400_v42, %v17406_v57  ;;  %v2816_v34 = vadd.f32 %v2815_v36, %v2623_v44  ;;  %v2206_v38 = vsel %vm2205_vm0, %v2165_v27, 0.0 }
 0x492   : > { %v2626_v47 = vmul.f32 %v17400_v42, %v17404_v50  ;;  %v2250_v24 = vsel %vm2205_vm0, %v2166_v21, 0.0  ;;  %v2338_v56 = vsel %vm2205_vm0, %v2168_v20, 0.0  ;;  %v2685_v16 = vadd.f32 %v2684_v63, %v2624_v30  ;;  %v17412_v42 = vld [vmem:[#allocation201_spill] sm:$0xff]  ;;  %v2478_v30 = vpop.permute.xlu0 %2477  ;;  %v17418_v50 = vld [vmem:[#allocation291_spill] sm:$0xff]  ;;  %v17420_v63 = vld [vmem:[#allocation292_spill] sm:$0xff] }
 0x493   : > { %v2729_v58 = vadd.f32 %v2728_v5, %v2625_v14  ;;  %v2817_v12 = vadd.f32 %v2816_v34, %v2627_v4  ;;  %v17408_v44 = vmax.f32 %v17407_v17, 0.0  ;;  %v17411_v29 = vmax.f32 %v17410_v6, 0.0  ;;  %v17416_v14 = vld [vmem:[#allocation99_spill] sm:$0xff]  ;;  %v17422_v34 = vld [vmem:[#allocation293_spill] sm:$0xff]  ;;  %v10974_v6 = vpop.permute.xlu1 %3455 }
 0x494   : > { %v2773_v33 = vadd.f32 %v2772_v18, %v2626_v47  ;;  %v17413_v27 = vmax.f32 %v17412_v42, 0.0  ;;  %v17415_v49 = vmax.f32 %v17414_v45, 0.0  ;;  %v17417_v47 = vmax.f32 %v17416_v14, 0.0 }
 0x495   : > { %v2632_v13 = vmul.f32 %v17409_v2, %v17408_v44  ;;  %v2633_v36 = vmul.f32 %v17409_v2, %v17411_v29  ;;  %v17419_v57 = vmax.f32 %v17418_v50, 0.0  ;;  %v17421_v5 = vmax.f32 %v17420_v63, 0.0  ;;  %v4428_v44 = vld [vmem:[%s15364_s7 + $0x90] sm:$0xff]  ;;  %v17424_v29 = vld [vmem:[#allocation193_spill] sm:$0xff]  ;;  %v17429_v50 = vld [vmem:[#allocation110_spill] sm:$0xff] }
 0x496   : > { %v2634_v21 = vmul.f32 %v17409_v2, %v17413_v27  ;;  %v2635_v20 = vmul.f32 %v17409_v2, %v17415_v49  ;;  %v2628_v8 = vmul.f32 %v2478_v30, %v17417_v47  ;;  %v17423_v59 = vmax.f32 %v17422_v34, 0.0  ;;  %v4429_v2 = vld [vmem:[%s15364_s7 + $0x98] sm:$0xff]  ;;  %v17427_v49 = vld [vmem:[#allocation194_spill] sm:$0xff]  ;;  %4540 = vperm.xlu1 %5741, %v4428_v44  }
 0x497   : > { %v2629_v4 = vmul.f32 %v2478_v30, %v17419_v57  ;;  %v2630_v18 = vmul.f32 %v2478_v30, %v17421_v5  ;;  %v17425_v42 = vmax.f32 %v17424_v29, 0.0  ;;  %v17426_v27 = vld [vmem:[#allocation189_spill] sm:$0xff]  ;;  %v17428_v14 = vmax.f32 %v17427_v49, 0.0  ;;  %4545 = vperm.xlu2 %5742, %v4429_v2   ;;  %4973 = vperm.xlu0 %5743, %v10640_v19   ;;  %v17444_v2 = vld [vmem:[#allocation298_spill] sm:$0xff] }
 0x498   : > { %v2631_v17 = vmul.f32 %v2478_v30, %v17423_v59  ;;  %v17430_v30 = vmax.f32 %v17429_v50, 0.0  ;;  %v17431_v63 = vld [vmem:[#allocation37_spill] sm:$0xff]  ;;  %v2686_v59 = vadd.f32 %v2685_v16, %v2628_v8  ;;  %v2207_v29 = vadd.f32 %v2206_v38, %v10721_v53  ;;  %v17435_v16 = vld [vmem:[#allocation328_spill] sm:$0xff]  ;;  %v17438_v53 = vld [vmem:[#allocation50_spill] sm:$0xff] }
 0x499   : > { %v2636_v45 = vmul.f32 %v17426_v27, %v17425_v42  ;;  %v2637_v47 = vmul.f32 %v17426_v27, %v17428_v14  ;;  %v17432_v5 = vmax.f32 %v17431_v63, 0.0  ;;  %v2730_v9 = vadd.f32 %v2729_v58, %v2629_v4  ;;  %v17433_v63 = vld [vmem:[#allocation202_spill] sm:$0xff] }
 0x49a   : > { %v2638_v57 = vmul.f32 %v17426_v27, %v17430_v30  ;;  %v2774_v48 = vadd.f32 %v2773_v33, %v2630_v18  ;;  %v2818_v39 = vadd.f32 %v2817_v12, %v2631_v17  ;;  %v2251_v42 = vadd.f32 %v2250_v24, %v10723_v41  ;;  %v17436_v33 = vld [vmem:[#allocation94_spill] sm:$0xff] }
 0x49b   : > { %v2639_v34 = vmul.f32 %v17426_v27, %v17432_v5  ;;  %v2295_v49 = vadd.f32 %v2294_v46, %v10733_v61  ;;  %v2339_v14 = vadd.f32 %v2338_v56, %v10735_v60  ;;  %v2687_v50 = vadd.f32 %v2686_v59, %v2632_v13  ;;  %v17440_v61 = vld [vmem:[#allocation211_spill] sm:$0xff]  ;;  %v2490_v13 = vpop.permute.xlu0 %2489  ;;  %v17442_v18 = vld [vmem:[#allocation102_spill] sm:$0xff] }
 0x49c   : > { %v2731_v26 = vadd.f32 %v2730_v9, %v2633_v36  ;;  %v2775_v30 = vadd.f32 %v2774_v48, %v2634_v21  ;;  %v2819_v10 = vadd.f32 %v2818_v39, %v2635_v20  ;;  %v17434_v27 = vmax.f32 %v17433_v63, 0.0  ;;  %v11007_v9 = vpop.permute.xlu2 %3495  ;;  %v17446_v63 = vld [vmem:[#allocation299_spill] sm:$0xff] }
 0x49d   : > { %v17437_v12 = vmax.f32 %v17436_v33, 0.0  ;;  %v17439_v38 = vmax.f32 %v17438_v53, 0.0  ;;  %v17441_v24 = vmax.f32 %v17440_v61, 0.0  ;;  %v2688_v39 = vadd.f32 %v2687_v50, %v2636_v45  ;;  %v17448_v33 = vld [vmem:[#allocation300_spill] sm:$0xff] }
 0x49e   : > { %v2644_v58 = vmul.f32 %v17435_v16, %v17434_v27  ;;  %v2732_v48 = vadd.f32 %v2731_v26, %v2637_v47  ;;  %v2776_v46 = vadd.f32 %v2775_v30, %v2638_v57  ;;  %v2820_v56 = vadd.f32 %v2819_v10, %v2639_v34  ;;  %v4431_v26 = vld [vmem:[%s15364_s7 + $0xa8] sm:$0xff]  ;;  %v17451_v47 = vld [vmem:[#allocation284_spill] sm:$0xff] }
 0x49f   : > { %v2645_v8 = vmul.f32 %v17435_v16, %v17437_v12  ;;  %v2646_v41 = vmul.f32 %v17435_v16, %v17439_v38  ;;  %v2647_v60 = vmul.f32 %v17435_v16, %v17441_v24  ;;  %v2208_v36 = vrot.slane %v2207_v29, 4  ;;  %v4432_v61 = vld [vmem:[%s15364_s7 + $0xb0] sm:$0xff]  ;;  %4555 = vperm.xlu1 %5741, %v4431_v26  }
 0x4a0   : > { %v2252_v21 = vrot.slane %v2251_v42, 4  ;;  %v2296_v20 = vrot.slane %v2295_v49, 4  ;;  %v2340_v4 = vrot.slane %v2339_v14, 4  ;;  %v17443_v17 = vmax.f32 %v17442_v18, 0.0  ;;  %4560 = vperm.xlu2 %5742, %v4432_v61  }
 0x4a1   : > { %v17445_v5 = vmax.f32 %v17444_v2, 0.0  ;;  %v17447_v27 = vmax.f32 %v17446_v63, 0.0  ;;  %v17449_v19 = vmax.f32 %v17448_v33, 0.0  ;;  %v17450_v10 = vmax.f32 %v10563_v62, 0.0 }
 0x4a2   : > { %v2640_v44 = vmul.f32 %v2490_v13, %v17443_v17  ;;  %v17452_v34 = vmax.f32 %v10566_v1, 0.0  ;;  %v17453_v30 = vmax.f32 %v10603_v11, 0.0  ;;  %v17454_v53 = vmax.f32 %v10644_v32, 0.0  ;;  %v11036_v17 = vpop.permute.xlu1 %3467 }
 0x4a3   : > { %v2641_v59 = vmul.f32 %v2490_v13, %v17445_v5  ;;  %v2642_v16 = vmul.f32 %v2490_v13, %v17447_v27  ;;  %v2643_v45 = vmul.f32 %v2490_v13, %v17449_v19  ;;  %v2648_v57 = vmul.f32 %v17451_v47, %v17450_v10  ;;  %v5824_v19 = vld [vmem:[%s15364_s7 + $0x28] sm:$0xff] }
 0x4a4   : > { %v2649_v50 = vmul.f32 %v17451_v47, %v17452_v34  ;;  %v2650_v12 = vmul.f32 %v17451_v47, %v17453_v30  ;;  %v2651_v38 = vmul.f32 %v17451_v47, %v17454_v53  ;;  %v2689_v24 = vadd.f32 %v2688_v39, %v2640_v44  ;;  %4993 = vperm.xlu0 %5743, %v5824_v19   ;;  %v11041_v44 = vpop.permute.xlu2 %3507 }
 0x4a5   : > { %v2733_v62 = vadd.f32 %v2732_v48, %v2641_v59  ;;  %v2777_v13 = vadd.f32 %v2776_v46, %v2642_v16  ;;  %v2821_v18 = vadd.f32 %v2820_v56, %v2643_v45  ;;  %v2209_v1 = vadd.f32 %v2208_v36, %v2207_v29  ;;  %v2502_v29 = vpop.permute.xlu0 %2501 }
 0x4a6   : > { %v2253_v2 = vadd.f32 %v2252_v21, %v2251_v42  ;;  %v2297_v11 = vadd.f32 %v2296_v20, %v2295_v49  ;;  %v2341_v5 = vadd.f32 %v2340_v4, %v2339_v14  ;;  %v2690_v63 = vadd.f32 %v2689_v24, %v2644_v58  ;;  %v5825_v24 = vld [vmem:[%s15364_s7 + $0x40] sm:$0xff] }
 0x4a7   : > { %v2734_v27 = vadd.f32 %v2733_v62, %v2645_v8  ;;  %v2778_v32 = vadd.f32 %v2777_v13, %v2646_v41  ;;  %v2822_v33 = vadd.f32 %v2821_v18, %v2647_v60  ;;  %v2210_v42 = vrot.slane %v2209_v1, 2 }
 0x4a8   : > { %v2691_v39 = vadd.f32 %v2690_v63, %v2648_v57  ;;  %v2254_v49 = vrot.slane %v2253_v2, 2  ;;  %v2298_v14 = vrot.slane %v2297_v11, 2  ;;  %v2342_v58 = vrot.slane %v2341_v5, 2 }
 0x4a9   : > { %v2735_v48 = vadd.f32 %v2734_v27, %v2649_v50  ;;  %v2779_v46 = vadd.f32 %v2778_v32, %v2650_v12  ;;  %v2823_v56 = vadd.f32 %v2822_v33, %v2651_v38  ;;  %v17455_v8 = vmax.f32 %v10789_v35, 0.0 }
 0x4aa   : > { %v17456_v60 = vmax.f32 %v10792_v40, 0.0  ;;  %v17457_v21 = vmax.f32 %v10795_v43, 0.0  ;;  %v17458_v4 = vmax.f32 %v10798_v31, 0.0  ;;  %v2211_v34 = vadd.f32 %v2210_v42, %v2209_v1  ;;  %v11057_v31 = vpop.permute.xlu1 %3479 }
 0x4ab   : > { %v2652_v41 = vmul.f32 %v2502_v29, %v17455_v8  ;;  %v2255_v43 = vadd.f32 %v2254_v49, %v2253_v2  ;;  %v2299_v50 = vadd.f32 %v2298_v14, %v2297_v11  ;;  %v2343_v30 = vadd.f32 %v2342_v58, %v2341_v5 }
 0x4ac   : > { %v2653_v36 = vmul.f32 %v2502_v29, %v17456_v60  ;;  %v2654_v20 = vmul.f32 %v2502_v29, %v17457_v21  ;;  %v2655_v59 = vmul.f32 %v2502_v29, %v17458_v4  ;;  %5005 = vperm.xlu0 %5743, %v5825_v24   ;;  %v2212_v2 = vrot.slane %v2211_v34, 1  ;;  %v11062_v27 = vpop.permute.xlu2 %3519 }
 0x4ad   : > { %v2692_v16 = vsel %vm2205_vm0, %v2652_v41, 0.0  ;;  %v2256_v11 = vrot.slane %v2255_v43, 1  ;;  %v2300_v5 = vrot.slane %v2299_v50, 1  ;;  %v2344_v63 = vrot.slane %v2343_v30, 1 }
 0x4ae   : > { %v2736_v45 = vsel %vm2205_vm0, %v2653_v36, 0.0  ;;  %v2780_v26 = vsel %vm2205_vm0, %v2654_v20, 0.0  ;;  %v2824_v35 = vsel %vm2205_vm0, %v2655_v59, 0.0  ;;  %v2693_v10 = vadd.f32 %v2692_v16, %v2691_v39  ;;  %v5826_v20 = vld [vmem:[%s15364_s7 + $0x58] sm:$0xff] }
 0x4af   : > { %v2737_v47 = vadd.f32 %v2736_v45, %v2735_v48  ;;  %v2781_v40 = vadd.f32 %v2780_v26, %v2779_v46  ;;  %v2825_v57 = vadd.f32 %v2824_v35, %v2823_v56  ;;  %v2347_v48 = vstv %s11051_s11  ;;  %s5517_s11 = sshll.u32 %s391_s21, 4  ;;  %s5518_s11 = int_to_ptr.vmem [resolvable:$true] %s5517_s11 }
 0x4b0   : > { %v2694_v12 = vrot.slane %v2693_v10, 4  ;;  %v2213_v49 = vadd.f32 %v2212_v2, %v2211_v34  ;;  %v2257_v14 = vadd.f32 %v2256_v11, %v2255_v43  ;;  %v2301_v58 = vadd.f32 %v2300_v5, %v2299_v50  ;;  %v5827_v2 = vld [vmem:[%s15364_s7 + $0x70] sm:$0xff] }
 0x4b1   : > { %v2738_v53 = vrot.slane %v2737_v47, 4  ;;  %v2782_v38 = vrot.slane %v2781_v40, 4  ;;  %v2826_v61 = vrot.slane %v2825_v57, 4  ;;  %v2345_v8 = vadd.f32 %v2344_v63, %v2343_v30 }
 0x4b2   : > { %v2695_v62 = vadd.f32 %v2694_v12, %v2693_v10  ;;  %v2833_v4 = vstv %s5647_s18  ;;  %v11068_v59 = vpop.permute.xlu1 %3491  ;;  %v2348_v10 = vadd.f32 %v2347_v48, %v2213_v49  ;;  %s15254_s18 = sld [smem:[#allocation5 + $0x1]] }
 0x4b3   : > { %v2739_v13 = vadd.f32 %v2738_v53, %v2737_v47  ;;  %v2783_v18 = vadd.f32 %v2782_v38, %v2781_v40  ;;  %v2827_v1 = vadd.f32 %v2826_v61, %v2825_v57  ;;  %v2349_v47 = vadd.f32 %v2347_v48, %v2257_v14 }
 0x4b4   : > { %v2696_v32 = vrot.slane %v2695_v62, 2  ;;  %5017 = vperm.xlu0 %5743, %v5826_v20   ;;  %v2350_v40 = vadd.f32 %v2347_v48, %v2301_v58  ;;  %v2351_v57 = vadd.f32 %v2347_v48, %v2345_v8  ;;  %v11070_v12 = vpop.permute.xlu2 %3531  ;;  %v5828_v58 = vld [vmem:[%s15364_s7 + $0x88] sm:$0xff] }
 0x4b5   : > { %v2740_v33 = vrot.slane %v2739_v13, 2  ;;  %v2784_v19 = vrot.slane %v2783_v18, 2  ;;  %v2828_v39 = vrot.slane %v2827_v1, 2 }
 0x4b6   : > { %v2697_v46 = vadd.f32 %v2696_v32, %v2695_v62 }
 0x4b7   : > { %v2741_v56 = vadd.f32 %v2740_v33, %v2739_v13  ;;  %v2785_v29 = vadd.f32 %v2784_v19, %v2783_v18  ;;  %v2829_v42 = vadd.f32 %v2828_v39, %v2827_v1 }
 0x4b8   : > { %v2698_v41 = vrot.slane %v2697_v46, 1 }
 0x4b9   : > { %v2742_v60 = vrot.slane %v2741_v56, 1  ;;  %v2786_v36 = vrot.slane %v2785_v29, 1  ;;  %v2830_v21 = vrot.slane %v2829_v42, 1 }
 0x4ba   : > { %v2699_v16 = vadd.f32 %v2698_v41, %v2697_v46  ;;  %v11075_v46 = vpop.permute.xlu1 %3503 }
 0x4bb   : > { %v2743_v45 = vadd.f32 %v2742_v60, %v2741_v56  ;;  %v2787_v26 = vadd.f32 %v2786_v36, %v2785_v29  ;;  %v2831_v35 = vadd.f32 %v2830_v21, %v2829_v42 }
 0x4bc   : > { %v2834_v34 = vadd.f32 %v2833_v4, %v2699_v16  ;;  %5029 = vperm.xlu0 %5743, %v5827_v2   ;;  %v11077_v14 = vpop.permute.xlu2 %3543 }
 0x4bd   : > { %v2835_v43 = vadd.f32 %v2833_v4, %v2743_v45  ;;  %v2836_v50 = vadd.f32 %v2833_v4, %v2787_v26  ;;  %v2837_v30 = vadd.f32 %v2833_v4, %v2831_v35  ;;  %v5829_v35 = vld [vmem:[%s15364_s7 + $0xa0] sm:$0xff] }
 0x4be   : > { %v2838_v53 = vmax.f32 %v2348_v10, %v2834_v34 }
 0x4bf   : > { %v2839_v38 = vmax.f32 %v2349_v47, %v2835_v43  ;;  %v2840_v61 = vmax.f32 %v2350_v40, %v2836_v50  ;;  %v2841_v24 = vmax.f32 %v2351_v57, %v2837_v30 }
 0x4c0   : > { %v2842_v62 = vsub.f32 %v2348_v10, %v2838_v53  ;;  %v2854_v11 = vsub.f32 %v2834_v34, %v2838_v53  ;;  %v4434_v34 = vld [vmem:[%s15364_s7 + $0xc0] sm:$0xff] }
 0x4c1   : > { %v2843_v13 = vsub.f32 %v2349_v47, %v2839_v38  ;;  %v2844_v18 = vsub.f32 %v2350_v40, %v2840_v61  ;;  %v2845_v1 = vsub.f32 %v2351_v57, %v2841_v24  ;;  %v2855_v5 = vsub.f32 %v2835_v43, %v2839_v38  ;;  %4570 = vperm.xlu1 %5741, %v4434_v34  }
 0x4c2   : > { %v2856_v63 = vsub.f32 %v2836_v50, %v2840_v61  ;;  %v2857_v32 = vsub.f32 %v2837_v30, %v2841_v24  ;;  %v2846_v33 = vmul.f32 1.442695, %v2842_v62  ;;  %v2858_v56 = vmul.f32 1.442695, %v2854_v11  ;;  %v11092_v20 = vpop.permute.xlu1 %3515 }
 0x4c3   : > { %v2848_v19 = vmul.f32 1.442695, %v2843_v13  ;;  %v2850_v39 = vmul.f32 1.442695, %v2844_v18  ;;  %v2852_v48 = vmul.f32 1.442695, %v2845_v1 }
 0x4c4   : > { %5746 = vpow2.f32 %v2846_v33  ;;  %v2860_v29 = vmul.f32 1.442695, %v2855_v5  ;;  %v2862_v42 = vmul.f32 1.442695, %v2856_v63  ;;  %v2864_v49 = vmul.f32 1.442695, %v2857_v32  ;;  %5041 = vperm.xlu0 %5743, %v5828_v58   ;;  %v11109_v40 = vpop.permute.xlu2 %3555 }
 0x4c5   : > { %5748 = vpow2.f32 %v2848_v19  ;;  %v5830_v13 = vld [vmem:[%s15364_s7 + $0xb8] sm:$0xff] }
 0x4c6   : > { %5750 = vpow2.f32 %v2850_v39 }
 0x4c7   : > { %5752 = vpow2.f32 %v2852_v48 }
 0x4c8   : > { %5754 = vpow2.f32 %v2858_v56 }
 0x4c9   : > { %5756 = vpow2.f32 %v2860_v29 }
 0x4ca   : > { %v11082_v8 = vpop.eup %5746  ;;  %5758 = vpow2.f32 %v2862_v42  ;;  %v11119_v24 = vpop.permute.xlu1 %3527 }
 0x4cb   : > { %v11084_v41 = vpop.eup %5748  ;;  %5760 = vpow2.f32 %v2864_v49 }
 0x4cc   : > { %v11086_v60 = vpop.eup %5750  ;;  %5053 = vperm.xlu0 %5743, %v5829_v35   ;;  %v11132_v29 = vpop.permute.xlu2 %3567 }
 0x4cd   : > { %v11088_v36 = vpop.eup %5752  ;;  %17463 = vst [vmem:[#allocation79_spill] sm:$0xff] %v11132_v29 }
 0x4ce   : > { %v11090_v21 = vpop.eup %5754 }
 0x4cf   : > { %v11094_v4 = vpop.eup %5756  ;;  %v2866_v16 = vadd.f32 %v11090_v21, %v11082_v8 }
 0x4d0   : > { %v11098_v45 = vpop.eup %5758  ;;  %v2867_v26 = vadd.f32 %v11094_v4, %v11084_v41 }
 0x4d1   : > { %v11105_v10 = vpop.eup %5760  ;;  %v2868_v47 = vadd.f32 %v11098_v45, %v11086_v60  ;;  %5762 = vrcp.f32 %v2866_v16  ;;  %v2879_v43 = vand.u32 2147483647, %v2866_v16  ;;  %v2881_v50 = vand.u32 2147483648, %v2866_v16 }
 0x4d2   : > { %v11113_v57 = vadd.f32 %v11105_v10, %v11088_v36  ;;  %5764 = vrcp.f32 %v2867_v26  ;;  %v2894_v53 = vand.u32 2147483647, %v2867_v26  ;;  %v2896_v38 = vand.u32 2147483648, %v2867_v26 }
 0x4d3   : > { %5766 = vrcp.f32 %v2868_v47  ;;  %vm2875_vm1 = vweird.f32 %v2866_v16  ;;  %vm11124_vm2 = vcmp.eq.f32.partialorder %v2879_v43, 8.507059e+37  ;;  %v2882_v2 = vor.u32 1.1754944e-38, %v2881_v50 }
 0x4d4   : > { %5768 = vrcp.f32 %v11113_v57  ;;  %5065 = vperm.xlu0 %5743, %v5830_v13   ;;  %vm2890_vm3 = vweird.f32 %v2867_v26  ;;  %vm2905_vm4 = vweird.f32 %v2868_v47  ;;  %v2909_v32 = vand.u32 2147483647, %v2868_v47 }
 0x4d5   : > { %vm11128_vm5 = vcmp.eq.f32.partialorder %v2894_v53, 8.507059e+37  ;;  %v2897_v48 = vor.u32 1.1754944e-38, %v2896_v38  ;;  %v2911_v56 = vand.u32 2147483648, %v2868_v47  ;;  %v2924_v34 = vand.u32 2147483647, %v11113_v57 }
 0x4d6   : > { %v2926_v43 = vand.u32 2147483648, %v11113_v57  ;;  %vm11138_vm10 = vcmp.eq.f32.partialorder %v2909_v32, 8.507059e+37  ;;  %vm2920_vm11 = vweird.f32 %v11113_v57 }
 0x4d7   : > { %v5763_v30 = vpop.eup %5762  ;;  %vm11151_vm15 = vcmp.eq.f32.partialorder %v2924_v34, 8.507059e+37 }
 0x4d8   : > { %v5765_v61 = vpop.eup %5764  ;;  %v2871_v62 = vmul.f32 %v5763_v30, %v2866_v16  ;;  %vm2876_vm6 = vweird.f32 %v5763_v30 }
 0x4d9   : > { %v5767_v18 = vpop.eup %5766  ;;  %v2886_v11 = vmul.f32 %v5765_v61, %v2867_v26  ;;  %vm2891_vm7 = vweird.f32 %v5765_v61  ;;  %vm2877_vm9 = vmor %vm2875_vm1, %vm2876_vm6  ;;  %v2927_v26 = vor.u32 1.1754944e-38, %v2926_v43 }
 0x4da   : > { %v2872_v5 = vsub.f32 1.0, %v2871_v62  ;;  %v2901_v63 = vmul.f32 %v5767_v18, %v2868_v47  ;;  %v5769_v33 = vpop.eup %5768  ;;  %vm2906_vm8 = vweird.f32 %v5767_v18  ;;  %vm2892_vm12 = vmor %vm2890_vm3, %vm2891_vm7 }
 0x4db   : > { %v2887_v19 = vsub.f32 1.0, %v2886_v11  ;;  %v2916_v58 = vmul.f32 %v5769_v33, %v11113_v57  ;;  %v2912_v11 = vor.u32 1.1754944e-38, %v2911_v56  ;;  %vm2921_vm13 = vweird.f32 %v5769_v33  ;;  %vm2907_vm14 = vmor %vm2905_vm4, %vm2906_vm8 }
 0x4dc   : > { %v2873_v42 = vmul.f32 %v5763_v30, %v2872_v5  ;;  %v2902_v49 = vsub.f32 1.0, %v2901_v63  ;;  %vm2922_vm1 = vmor %vm2920_vm11, %vm2921_vm13 }
 0x4dd   : > { %v2888_v35 = vmul.f32 %v5765_v61, %v2887_v19  ;;  %v2917_v62 = vsub.f32 1.0, %v2916_v58 }
 0x4de   : > { %v2874_v50 = vadd.f32 %v5763_v30, %v2873_v42  ;;  %v2903_v53 = vmul.f32 %v5767_v18, %v2902_v49  ;;  %v5831_v42 = vld [vmem:[%s15364_s7 + $0xd0] sm:$0xff]  ;;  %v11158_v49 = vpop.permute.xlu1 %3539 }
 0x4df   : > { %v2889_v38 = vadd.f32 %v5765_v61, %v2888_v35  ;;  %v2918_v19 = vmul.f32 %v5769_v33, %v2917_v62  ;;  %5077 = vperm.xlu0 %5743, %v5831_v42   ;;  %v11183_v62 = vpop.permute.xlu2 %3923 }
 0x4e0   : > { %v2878_v5 = vsel %vm2877_vm9, %v5763_v30, %v2874_v50  ;;  %v2904_v63 = vadd.f32 %v5767_v18, %v2903_v53  ;;  %v4435_v30 = vld [vmem:[%s15364_s7 + $0xc8] sm:$0xff]  ;;  %17468 = vst [vmem:[#allocation253_spill] sm:$0xff] %v11183_v62 }
 0x4e1   : > { %v2883_v16 = vsel %vm11124_vm2, %v2882_v2, %v2878_v5  ;;  %v2893_v32 = vsel %vm2892_vm12, %v5765_v61, %v2889_v38  ;;  %v2919_v2 = vadd.f32 %v5769_v33, %v2918_v19  ;;  %4575 = vperm.xlu2 %5742, %v4435_v30  }
 0x4e2   : > { %v2884_v58 = vmul.f32 %v11082_v8, %v2883_v16  ;;  %v2898_v1 = vsel %vm11128_vm5, %v2897_v48, %v2893_v32  ;;  %v2908_v61 = vsel %vm2907_vm14, %v5767_v18, %v2904_v63  ;;  %v2930_v34 = vmul.f32 %v11090_v21, %v2883_v16 }
 0x4e3   : > { %v2899_v47 = vmul.f32 %v11084_v41, %v2898_v1  ;;  %v2913_v35 = vsel %vm11138_vm10, %v2912_v11, %v2908_v61  ;;  %v2931_v43 = vmul.f32 %v11094_v4, %v2898_v1  ;;  %v2923_v39 = vsel %vm2922_vm1, %v5769_v33, %v2919_v2 }
 0x4e4   : > { %v2914_v8 = vmul.f32 %v11086_v60, %v2913_v35  ;;  %v2932_v18 = vmul.f32 %v11098_v45, %v2913_v35  ;;  %v11173_v48 = vmul.f32 %v2884_v58, %v2884_v58  ;;  %v2928_v41 = vsel %vm11151_vm15, %v2927_v26, %v2923_v39  ;;  %v5833_v58 = vld [vmem:[%s15364_s7 + $0x100] sm:$0xff] }
 0x4e5   : > { %v11177_v50 = vmul.f32 %v2899_v47, %v2899_v47  ;;  %v11179_v53 = vmul.f32 %v2930_v34, %v2930_v34  ;;  %v11181_v57 = vmul.f32 %v2931_v43, %v2931_v43  ;;  %v2929_v21 = vmul.f32 %v11088_v36, %v2928_v41  ;;  %v5832_v36 = vld [vmem:[%s15364_s7 + $0xe8] sm:$0xff] }
 0x4e6   : > { %v2933_v60 = vmul.f32 %v11105_v10, %v2928_v41  ;;  %v11187_v4 = vmul.f32 %v2914_v8, %v2914_v8  ;;  %v11189_v45 = vmul.f32 %v2932_v18, %v2932_v18  ;;  %v11208_v63 = vpop.permute.xlu1 %3551 }
 0x4e7   : > { %v2942_v33 = vadd.f32 %v11179_v53, %v11173_v48  ;;  %v2943_v38 = vadd.f32 %v11181_v57, %v11177_v50  ;;  %v11195_v13 = vmul.f32 %v2929_v21, %v2929_v21  ;;  %5089 = vperm.xlu0 %5743, %v5832_v36   ;;  %v11211_v26 = vpop.permute.xlu2 %3938 }
 0x4e8   : > { %v11197_v11 = vmul.f32 %v2933_v60, %v2933_v60  ;;  %v2944_v5 = vadd.f32 %v11189_v45, %v11187_v4  ;;  %17469 = vst [vmem:[#allocation175_spill] sm:$0xff] %v11211_v26 }
 0x4e9   : > { %5770 = vrcp.f32 %v2942_v33  ;;  %v2955_v19 = vand.u32 2147483647, %v2942_v33  ;;  %v2957_v42 = vand.u32 2147483648, %v2942_v33  ;;  %v2970_v16 = vand.u32 2147483647, %v2943_v38 }
 0x4ea   : > { %v11206_v10 = vadd.f32 %v11197_v11, %v11195_v13  ;;  %5772 = vrcp.f32 %v2943_v38  ;;  %vm2951_vm2 = vweird.f32 %v2942_v33  ;;  %vm2966_vm4 = vweird.f32 %v2943_v38 }
 0x4eb   : > { %5774 = vrcp.f32 %v2944_v5  ;;  %vm11216_vm3 = vcmp.eq.f32.partialorder %v2955_v19, 8.507059e+37  ;;  %v2972_v47 = vand.u32 2147483648, %v2943_v38  ;;  %v2958_v34 = vor.u32 1.1754944e-38, %v2957_v42 }
 0x4ec   : > { %5776 = vrcp.f32 %v11206_v10  ;;  %vm11220_vm5 = vcmp.eq.f32.partialorder %v2970_v16, 8.507059e+37  ;;  %vm2981_vm6 = vweird.f32 %v2944_v5  ;;  %v2985_v41 = vand.u32 2147483647, %v2944_v5 }
 0x4ed   : > { %v2987_v21 = vand.u32 2147483648, %v2944_v5  ;;  %v2973_v26 = vor.u32 1.1754944e-38, %v2972_v47  ;;  %v3002_v42 = vand.u32 2147483648, %v11206_v10  ;;  %vm2996_vm12 = vweird.f32 %v11206_v10 }
 0x4ee   : > { %v11226_v16 = vpop.permute.xlu1 %3563  ;;  %vm11229_vm11 = vcmp.eq.f32.partialorder %v2985_v41, 8.507059e+37 }
 0x4ef   : > { %v5771_v32 = vpop.eup %5770  ;;  %5101 = vperm.xlu0 %5743, %v5833_v58   ;;  %17474 = vst [vmem:[#allocation205_spill] sm:$0xff] %v11226_v16 }
 0x4f0   : > { %v5773_v56 = vpop.eup %5772  ;;  %v2947_v30 = vmul.f32 %v5771_v32, %v2942_v33  ;;  %vm2952_vm7 = vweird.f32 %v5771_v32  ;;  %v5834_v33 = vld [vmem:[%s15364_s7 + $0x118] sm:$0xff] }
 0x4f1   : > { %v5775_v1 = vpop.eup %5774  ;;  %v2962_v2 = vmul.f32 %v5773_v56, %v2943_v38  ;;  %vm2967_vm8 = vweird.f32 %v5773_v56  ;;  %vm2953_vm10 = vmor %vm2951_vm2, %vm2952_vm7 }
 0x4f2   : > { %v2948_v35 = vsub.f32 1.0, %v2947_v30  ;;  %v2977_v8 = vmul.f32 %v5775_v1, %v2944_v5  ;;  %v5777_v39 = vpop.eup %5776  ;;  %vm2982_vm9 = vweird.f32 %v5775_v1  ;;  %vm2968_vm13 = vmor %vm2966_vm4, %vm2967_vm8  ;;  %vm3019_vm4 = vcmask 1042434  }
 0x4f3   : > { %v2963_v18 = vsub.f32 1.0, %v2962_v2  ;;  %v2992_v19 = vmul.f32 %v5777_v39, %v11206_v10  ;;  %vm2997_vm14 = vweird.f32 %v5777_v39  ;;  %vm2983_vm15 = vmor %vm2981_vm6, %vm2982_vm9 }
 0x4f4   : > { %v2949_v60 = vmul.f32 %v5771_v32, %v2948_v35  ;;  %v2978_v36 = vsub.f32 1.0, %v2977_v8  ;;  %v3000_v8 = vand.u32 2147483647, %v11206_v10  ;;  %vm2998_vm1 = vmor %vm2996_vm12, %vm2997_vm14  ;;  %v17487_v10 = vld [vmem:[#allocation301_spill] sm:$0xff] }
 0x4f5   : > { %v2964_v58 = vmul.f32 %v5773_v56, %v2963_v18  ;;  %v2993_v29 = vsub.f32 1.0, %v2992_v19  ;;  %v3003_v19 = vor.u32 1.1754944e-38, %v3002_v42 }
 0x4f6   : > { %v2950_v30 = vadd.f32 %v5771_v32, %v2949_v60  ;;  %v2979_v62 = vmul.f32 %v5775_v1, %v2978_v36  ;;  %v2988_v36 = vor.u32 1.1754944e-38, %v2987_v21  ;;  %vm3001_vm2 = vcmp.eq.f32.partialorder %v3000_v8, 8.507059e+37 }
 0x4f7   : > { %v2965_v2 = vadd.f32 %v5773_v56, %v2964_v58  ;;  %v2994_v16 = vmul.f32 %v5777_v39, %v2993_v29  ;;  %5113 = vperm.xlu0 %5743, %v5834_v33  }
 0x4f8   : > { %v2954_v47 = vsel %vm2953_vm10, %v5771_v32, %v2950_v30  ;;  %v2980_v18 = vadd.f32 %v5775_v1, %v2979_v62  ;;  %v11243_v32 = vpop.permute.xlu2 %3948 }
 0x4f9   : > { %v2959_v41 = vsel %vm11216_vm3, %v2958_v34, %v2954_v47  ;;  %v2969_v60 = vsel %vm2968_vm13, %v5773_v56, %v2965_v2  ;;  %17477 = vst [vmem:[#allocation206_spill] sm:$0xff] %v11243_v32  ;;  %v2995_v58 = vadd.f32 %v5777_v39, %v2994_v16  ;;  %v17484_v34 = vld [vmem:[#allocation261_spill] sm:$0xff]  ;;  %v11308_v2 = vpop.permute.xlu1 %3918  ;;  %vm3017_vm3 = vcmask 1040384  }
 0x4fa   : > { %v11246_v62 = vmul.f32 %v2959_v41, %v11173_v48  ;;  %v2974_v29 = vsel %vm11220_vm5, %v2973_v26, %v2969_v60  ;;  %v2984_v38 = vsel %vm2983_vm15, %v5775_v1, %v2980_v18  ;;  %v11259_v5 = vmul.f32 %v2959_v41, %v11179_v53  ;;  %17491 = vst [vmem:[#allocation274_spill] sm:$0xff] %v11308_v2  ;;  %v17493_v18 = vld [vmem:[#allocation164_spill] sm:$0xff] }
 0x4fb   : > { %v11251_v30 = vmul.f32 %v2974_v29, %v11177_v50  ;;  %v2989_v56 = vsel %vm11229_vm11, %v2988_v36, %v2984_v38  ;;  %v11262_v48 = vmul.f32 %v2974_v29, %v11181_v57  ;;  %v2999_v1 = vsel %vm2998_vm1, %v5777_v39, %v2995_v58  ;;  %v17495_v29 = vld [vmem:[#allocation313_spill] sm:$0xff] }
 0x4fc   : > { %17478 = vst [vmem:[#allocation208_spill] sm:$0xff] %v11246_v62  ;;  %v11265_v26 = vmul.f32 %v2989_v56, %v11187_v4  ;;  %v11268_v50 = vmul.f32 %v2989_v56, %v11189_v45  ;;  %v3004_v61 = vsel %vm3001_vm2, %v3003_v19, %v2999_v1  ;;  %v11272_v43 = vmul.f32 %v17484_v34, %v11246_v62 }
 0x4fd   : > { %17479 = vst [vmem:[#allocation209_spill] sm:$0xff] %v11251_v30  ;;  %v11276_v53 = vmul.f32 %v17484_v34, %v11251_v30  ;;  %v11279_v57 = vmul.f32 %v3004_v61, %v11195_v13  ;;  %v11282_v4 = vmul.f32 %v3004_v61, %v11197_v11  ;;  %v11286_v39 = vmul.f32 %v17487_v10, %v11246_v62  ;;  %v17488_v13 = vld [vmem:[#allocation93_spill] sm:$0xff]  ;;  %v17496_v61 = vld [vmem:[#allocation243_spill] sm:$0xff] }
 0x4fe   : > { %17480 = vst [vmem:[#allocation118_spill] sm:$0xff] %v11259_v5  ;;  %v11290_v45 = vmul.f32 %v17487_v10, %v11251_v30  ;;  %v11294_v21 = vmul.f32 %v17484_v34, %v11265_v26  ;;  %v11298_v42 = vmul.f32 %v17487_v10, %v11265_v26  ;;  %v11302_v11 = vmul.f32 %v17488_v13, %v11246_v62 }
 0x4ff   : > { %17481 = vst [vmem:[#allocation312_spill] sm:$0xff] %v11262_v48  ;;  %v11306_v16 = vmul.f32 %v17488_v13, %v11251_v30  ;;  %v11312_v35 = vmul.f32 %v17484_v34, %v11279_v57  ;;  %v11316_v8 = vmul.f32 %v17487_v10, %v11279_v57  ;;  %v11320_v47 = vmul.f32 %v17488_v13, %v11265_v26 }
 0x500   : > { %17482 = vst [vmem:[#allocation130_spill] sm:$0xff] %v11265_v26  ;;  %v11324_v33 = vmul.f32 %v17493_v18, %v11246_v62  ;;  %v11328_v41 = vmul.f32 %v17488_v13, %v11279_v57  ;;  %v11332_v60 = vmul.f32 %v17493_v18, %v11251_v30  ;;  %v11336_v36 = vmul.f32 %v17493_v18, %v11265_v26 }
 0x501   : > { %17483 = vst [vmem:[#allocation228_spill] sm:$0xff] %v11268_v50  ;;  %v11340_v19 = vmul.f32 %v17493_v18, %v11279_v57  ;;  %v11344_v38 = vmul.f32 %v17495_v29, %v11246_v62  ;;  %v11348_v58 = vmul.f32 %v17495_v29, %v11251_v30  ;;  %v11352_v56 = vmul.f32 %v17495_v29, %v11265_v26 }
 0x502   : > { %17485 = vst [vmem:[#allocation40_spill] sm:$0xff] %v11279_v57  ;;  %v11356_v1 = vmul.f32 %v17495_v29, %v11279_v57  ;;  %v11360_v34 = vmul.f32 %v17496_v61, %v11246_v62  ;;  %v11364_v10 = vmul.f32 %v17496_v61, %v11251_v30  ;;  %v11368_v13 = vmul.f32 %v17496_v61, %v11265_v26  ;;  %v17500_v29 = vld [vmem:[#allocation147_spill] sm:$0xff] }
 0x503   : > { %17486 = vst [vmem:[#allocation44_spill] sm:$0xff] %v11282_v4  ;;  %v11372_v18 = vmul.f32 %v17496_v61, %v11279_v57  ;;  %v11390_v32 = vmul.f32 %v17500_v29, %v11279_v57  ;;  %v17505_v61 = vld [vmem:[#allocation95_spill] sm:$0xff] }
 0x504   : > { %17489 = vst [vmem:[#allocation69_spill] sm:$0xff] %v11302_v11  ;;  %v11386_v11 = vmul.f32 %v17500_v29, %v11265_v26  ;;  %v11394_v2 = vmul.f32 %v17505_v61, %v11246_v62 }
 0x505   : > { %17490 = vst [vmem:[#allocation113_spill] sm:$0xff] %v11306_v16  ;;  %v11382_v16 = vmul.f32 %v17500_v29, %v11251_v30 }
 0x506   : > { %17492 = vst [vmem:[#allocation217_spill] sm:$0xff] %v11320_v47  ;;  %v11378_v47 = vmul.f32 %v17500_v29, %v11246_v62 }
 0x507   : > { %17494 = vst [vmem:[#allocation218_spill] sm:$0xff] %v11328_v41  ;;  %v11374_v41 = vpop.permute.xlu2 %3963 }
 0x508   : > { %17497 = vst [vmem:[#allocation220_spill] sm:$0xff] %v11368_v13  ;;  %v11998_v13 = vmul.f32 %v10714_v51, %v11268_v50 }
 0x509   : > { %17498 = vst [vmem:[#allocation275_spill] sm:$0xff] %v11372_v18  ;;  %v11986_v18 = vmul.f32 %v10893_v0, %v11282_v4 }
 0x50a   : > { %17499 = vst [vmem:[#allocation221_spill] sm:$0xff] %v11374_v41  ;;  %v11398_v41 = vmul.f32 %v17505_v61, %v11251_v30 }
 0x50b   : > { %17501 = vst [vmem:[#allocation122_spill] sm:$0xff] %v11378_v47  ;;  %v11402_v47 = vmul.f32 %v17505_v61, %v11265_v26 }
 0x50c   : > { %17502 = vst [vmem:[#allocation314_spill] sm:$0xff] %v11382_v16  ;;  %v11406_v16 = vmul.f32 %v17505_v61, %v11279_v57 }
 0x50d   : > { %17503 = vst [vmem:[#allocation60_spill] sm:$0xff] %v11386_v11  ;;  %v17510_v11 = vld [vmem:[#allocation162_spill] sm:$0xff] }
 0x50e   : > { %17504 = vst [vmem:[#allocation43_spill] sm:$0xff] %v11390_v32  ;;  %v11410_v29 = vmul.f32 %v17510_v11, %v11246_v62  ;;  %v11414_v32 = vmul.f32 %v17510_v11, %v11251_v30 }
 0x50f   : > { %17506 = vst [vmem:[#allocation315_spill] sm:$0xff] %v11394_v2  ;;  %v11418_v2 = vmul.f32 %v17510_v11, %v11265_v26 }
 0x510   : > { %17507 = vst [vmem:[#allocation117_spill] sm:$0xff] %v11398_v41  ;;  %v11422_v41 = vmul.f32 %v17510_v11, %v11279_v57 }
 0x511   : > { %17508 = vst [vmem:[#allocation268_spill] sm:$0xff] %v11402_v47  ;;  %v17515_v47 = vld [vmem:[#allocation234_spill] sm:$0xff] }
 0x512   : > { %17509 = vst [vmem:[#allocation230_spill] sm:$0xff] %v11406_v16  ;;  %v11426_v61 = vmul.f32 %v17515_v47, %v11246_v62  ;;  %v11430_v16 = vmul.f32 %v17515_v47, %v11251_v30 }
 0x513   : > { %17511 = vst [vmem:[#allocation231_spill] sm:$0xff] %v11410_v29  ;;  %v11434_v29 = vmul.f32 %v17515_v47, %v11265_v26 }
 0x514   : > { %17512 = vst [vmem:[#allocation232_spill] sm:$0xff] %v11414_v32  ;;  %v11438_v32 = vmul.f32 %v17515_v47, %v11279_v57 }
 0x515   : > { %17513 = vst [vmem:[#allocation233_spill] sm:$0xff] %v11418_v2  ;;  %v17520_v2 = vld [vmem:[#allocation98_spill] sm:$0xff] }
 0x516   : > { %17514 = vst [vmem:[#allocation204_spill] sm:$0xff] %v11422_v41  ;;  %v11442_v11 = vmul.f32 %v17520_v2, %v11246_v62  ;;  %v11446_v41 = vmul.f32 %v17520_v2, %v11251_v30 }
 0x517   : > { %17516 = vst [vmem:[#allocation276_spill] sm:$0xff] %v11426_v61  ;;  %v11450_v61 = vmul.f32 %v17520_v2, %v11265_v26 }
 0x518   : > { %17517 = vst [vmem:[#allocation277_spill] sm:$0xff] %v11430_v16  ;;  %v11454_v16 = vmul.f32 %v17520_v2, %v11279_v57  ;;  %v17531_v2 = vld [vmem:[#allocation29_spill] sm:$0xff] }
 0x519   : > { %17518 = vst [vmem:[#allocation46_spill] sm:$0xff] %v11434_v29  ;;  %v17525_v29 = vld [vmem:[#allocation167_spill] sm:$0xff] }
 0x51a   : > { %17519 = vst [vmem:[#allocation120_spill] sm:$0xff] %v11438_v32  ;;  %v11458_v47 = vmul.f32 %v17525_v29, %v11246_v62  ;;  %v11462_v32 = vmul.f32 %v17525_v29, %v11251_v30 }
 0x51b   : > { %17521 = vst [vmem:[#allocation278_spill] sm:$0xff] %v11442_v11  ;;  %v11466_v11 = vmul.f32 %v17525_v29, %v11265_v26 }
 0x51c   : > { %17522 = vst [vmem:[#allocation127_spill] sm:$0xff] %v11446_v41  ;;  %v11470_v41 = vmul.f32 %v17525_v29, %v11279_v57  ;;  %v17536_v29 = vld [vmem:[#allocation101_spill] sm:$0xff] }
 0x51d   : > { %17523 = vst [vmem:[#allocation249_spill] sm:$0xff] %v11450_v61  ;;  %v11472_v61 = vpop.permute.xlu1 %3933 }
 0x51e   : > { %17524 = vst [vmem:[#allocation68_spill] sm:$0xff] %v11454_v16  ;;  %v11476_v16 = vmul.f32 %v17531_v2, %v11246_v62 }
 0x51f   : > { %17526 = vst [vmem:[#allocation15_spill] sm:$0xff] %v11458_v47  ;;  %v11480_v47 = vmul.f32 %v17531_v2, %v11251_v30 }
 0x520   : > { %17527 = vst [vmem:[#allocation237_spill] sm:$0xff] %v11462_v32  ;;  %v11484_v32 = vmul.f32 %v17531_v2, %v11265_v26 }
 0x521   : > { %17528 = vst [vmem:[#allocation30_spill] sm:$0xff] %v11466_v11  ;;  %v11488_v11 = vmul.f32 %v17531_v2, %v11279_v57 }
 0x522   : > { %17529 = vst [vmem:[#allocation254_spill] sm:$0xff] %v11470_v41  ;;  %v11492_v41 = vmul.f32 %v17536_v29, %v11246_v62 }
 0x523   : > { %17530 = vst [vmem:[#allocation238_spill] sm:$0xff] %v11472_v61  ;;  %v11496_v61 = vmul.f32 %v17536_v29, %v11251_v30 }
 0x524   : > { %17532 = vst [vmem:[#allocation239_spill] sm:$0xff] %v11476_v16  ;;  %v11500_v16 = vmul.f32 %v17536_v29, %v11265_v26 }
 0x525   : > { %17533 = vst [vmem:[#allocation123_spill] sm:$0xff] %v11480_v47  ;;  %v11504_v47 = vmul.f32 %v17536_v29, %v11279_v57 }
 0x526   : > { %17534 = vst [vmem:[#allocation49_spill] sm:$0xff] %v11484_v32  ;;  %v17541_v32 = vld [vmem:[#allocation19_spill] sm:$0xff] }
 0x527   : > { %17535 = vst [vmem:[#allocation75_spill] sm:$0xff] %v11488_v11  ;;  %v11508_v2 = vmul.f32 %v17541_v32, %v11246_v62  ;;  %v11512_v11 = vmul.f32 %v17541_v32, %v11251_v30 }
 0x528   : > { %17537 = vst [vmem:[#allocation282_spill] sm:$0xff] %v11492_v41  ;;  %v11516_v41 = vmul.f32 %v17541_v32, %v11265_v26 }
 0x529   : > { %17538 = vst [vmem:[#allocation173_spill] sm:$0xff] %v11496_v61  ;;  %v11520_v61 = vmul.f32 %v17541_v32, %v11279_v57  ;;  %v17552_v32 = vld [vmem:[#allocation103_spill] sm:$0xff] }
 0x52a   : > { %17539 = vst [vmem:[#allocation283_spill] sm:$0xff] %v11500_v16  ;;  %v17546_v16 = vld [vmem:[#allocation160_spill] sm:$0xff] }
 0x52b   : > { %17540 = vst [vmem:[#allocation17_spill] sm:$0xff] %v11504_v47  ;;  %v11524_v29 = vmul.f32 %v17546_v16, %v11246_v62  ;;  %v11528_v47 = vmul.f32 %v17546_v16, %v11251_v30 }
 0x52c   : > { %17542 = vst [vmem:[#allocation124_spill] sm:$0xff] %v11508_v2  ;;  %v11532_v2 = vmul.f32 %v17546_v16, %v11265_v26 }
 0x52d   : > { %17543 = vst [vmem:[#allocation250_spill] sm:$0xff] %v11512_v11  ;;  %v11536_v11 = vmul.f32 %v17546_v16, %v11279_v57  ;;  %v17557_v16 = vld [vmem:[#allocation145_spill] sm:$0xff] }
 0x52e   : > { %17544 = vst [vmem:[#allocation132_spill] sm:$0xff] %v11516_v41  ;;  %v11538_v41 = vpop.permute.xlu2 %3978 }
 0x52f   : > { %17545 = vst [vmem:[#allocation316_spill] sm:$0xff] %v11520_v61  ;;  %v11542_v61 = vmul.f32 %v17552_v32, %v11246_v62 }
 0x530   : > { %17547 = vst [vmem:[#allocation317_spill] sm:$0xff] %v11524_v29  ;;  %v11546_v29 = vmul.f32 %v17552_v32, %v11251_v30 }
 0x531   : > { %17548 = vst [vmem:[#allocation251_spill] sm:$0xff] %v11528_v47  ;;  %v11550_v47 = vmul.f32 %v17552_v32, %v11265_v26 }
 0x532   : > { %17549 = vst [vmem:[#allocation252_spill] sm:$0xff] %v11532_v2  ;;  %v11554_v2 = vmul.f32 %v17552_v32, %v11279_v57 }
 0x533   : > { %17550 = vst [vmem:[#allocation318_spill] sm:$0xff] %v11536_v11  ;;  %v11558_v11 = vmul.f32 %v17557_v16, %v11246_v62 }
 0x534   : > { %17551 = vst [vmem:[#allocation51_spill] sm:$0xff] %v11538_v41  ;;  %v11562_v41 = vmul.f32 %v17557_v16, %v11251_v30 }
 0x535   : > { %17553 = vst [vmem:[#allocation20_spill] sm:$0xff] %v11542_v61  ;;  %v11566_v61 = vmul.f32 %v17557_v16, %v11265_v26 }
 0x536   : > { %17554 = vst [vmem:[#allocation256_spill] sm:$0xff] %v11546_v29  ;;  %v11570_v29 = vmul.f32 %v17557_v16, %v11279_v57 }
 0x537   : > { %17555 = vst [vmem:[#allocation257_spill] sm:$0xff] %v11550_v47  ;;  %v17562_v47 = vld [vmem:[#allocation100_spill] sm:$0xff] }
 0x538   : > { %17556 = vst [vmem:[#allocation258_spill] sm:$0xff] %v11554_v2  ;;  %v11574_v32 = vmul.f32 %v17562_v47, %v11246_v62  ;;  %v11578_v2 = vmul.f32 %v17562_v47, %v11251_v30 }
 0x539   : > { %17558 = vst [vmem:[#allocation77_spill] sm:$0xff] %v11558_v11  ;;  %v11582_v11 = vmul.f32 %v17562_v47, %v11265_v26 }
 0x53a   : > { %17559 = vst [vmem:[#allocation288_spill] sm:$0xff] %v11562_v41  ;;  %v11586_v41 = vmul.f32 %v17562_v47, %v11279_v57 }
 0x53b   : > { %17560 = vst [vmem:[#allocation289_spill] sm:$0xff] %v11566_v61  ;;  %v17567_v61 = vld [vmem:[#allocation106_spill] sm:$0xff] }
 0x53c   : > { %17561 = vst [vmem:[#allocation128_spill] sm:$0xff] %v11570_v29  ;;  %v11590_v16 = vmul.f32 %v17567_v61, %v11246_v62  ;;  %v11594_v29 = vmul.f32 %v17567_v61, %v11251_v30 }
 0x53d   : > { %17563 = vst [vmem:[#allocation290_spill] sm:$0xff] %v11574_v32  ;;  %v11598_v32 = vmul.f32 %v17567_v61, %v11265_v26 }
 0x53e   : > { %17564 = vst [vmem:[#allocation54_spill] sm:$0xff] %v11578_v2  ;;  %v11602_v2 = vmul.f32 %v17567_v61, %v11279_v57 }
 0x53f   : > { %17565 = vst [vmem:[#allocation137_spill] sm:$0xff] %v11582_v11  ;;  %v17572_v11 = vld [vmem:[#allocation115_spill] sm:$0xff] }
 0x540   : > { %17566 = vst [vmem:[#allocation319_spill] sm:$0xff] %v11586_v41  ;;  %v11606_v47 = vmul.f32 %v17572_v11, %v11246_v62  ;;  %v11610_v41 = vmul.f32 %v17572_v11, %v11251_v30 }
 0x541   : > { %17568 = vst [vmem:[#allocation320_spill] sm:$0xff] %v11590_v16  ;;  %v11614_v16 = vmul.f32 %v17572_v11, %v11265_v26 }
 0x542   : > { %17569 = vst [vmem:[#allocation48_spill] sm:$0xff] %v11594_v29  ;;  %v11618_v29 = vmul.f32 %v17572_v11, %v11279_v57  ;;  %v17583_v11 = vld [vmem:[#allocation108_spill] sm:$0xff] }
 0x543   : > { %17570 = vst [vmem:[#allocation321_spill] sm:$0xff] %v11598_v32  ;;  %v17577_v32 = vld [vmem:[#allocation246_spill] sm:$0xff] }
 0x544   : > { %17571 = vst [vmem:[#allocation136_spill] sm:$0xff] %v11602_v2  ;;  %v11622_v61 = vmul.f32 %v17577_v32, %v11246_v62  ;;  %v11626_v2 = vmul.f32 %v17577_v32, %v11251_v30 }
 0x545   : > { %17573 = vst [vmem:[#allocation229_spill] sm:$0xff] %v11606_v47  ;;  %v11630_v47 = vmul.f32 %v17577_v32, %v11265_v26 }
 0x546   : > { %17574 = vst [vmem:[#allocation53_spill] sm:$0xff] %v11610_v41  ;;  %v11634_v41 = vmul.f32 %v17577_v32, %v11279_v57  ;;  %v17588_v32 = vld [vmem:[#allocation311_spill] sm:$0xff] }
 0x547   : > { %17575 = vst [vmem:[#allocation57_spill] sm:$0xff] %v11614_v16  ;;  %v11636_v16 = vpop.permute.xlu1 %3943 }
 0x548   : > { %17576 = vst [vmem:[#allocation14_spill] sm:$0xff] %v11618_v29  ;;  %v11640_v29 = vmul.f32 %v17583_v11, %v11246_v62 }
 0x549   : > { %17578 = vst [vmem:[#allocation141_spill] sm:$0xff] %v11622_v61  ;;  %v11644_v61 = vmul.f32 %v17583_v11, %v11251_v30 }
 0x54a   : > { %17579 = vst [vmem:[#allocation80_spill] sm:$0xff] %v11626_v2  ;;  %v11648_v2 = vmul.f32 %v17583_v11, %v11265_v26 }
 0x54b   : > { %17580 = vst [vmem:[#allocation294_spill] sm:$0xff] %v11630_v47  ;;  %v11652_v47 = vmul.f32 %v17583_v11, %v11279_v57 }
 0x54c   : > { %17581 = vst [vmem:[#allocation295_spill] sm:$0xff] %v11634_v41  ;;  %v11656_v41 = vmul.f32 %v17588_v32, %v11246_v62 }
 0x54d   : > { %17582 = vst [vmem:[#allocation26_spill] sm:$0xff] %v11636_v16  ;;  %v11660_v16 = vmul.f32 %v17588_v32, %v11251_v30 }
 0x54e   : > { %17584 = vst [vmem:[#allocation27_spill] sm:$0xff] %v11640_v29  ;;  %v11664_v29 = vmul.f32 %v17588_v32, %v11265_v26 }
 0x54f   : > { %17585 = vst [vmem:[#allocation296_spill] sm:$0xff] %v11644_v61  ;;  %v11668_v61 = vmul.f32 %v17588_v32, %v11279_v57 }
 0x550   : > { %17586 = vst [vmem:[#allocation262_spill] sm:$0xff] %v11648_v2  ;;  %v17593_v2 = vld [vmem:[#allocation178_spill] sm:$0xff] }
 0x551   : > { %17587 = vst [vmem:[#allocation23_spill] sm:$0xff] %v11652_v47  ;;  %v11672_v11 = vmul.f32 %v17593_v2, %v11246_v62  ;;  %v11676_v47 = vmul.f32 %v17593_v2, %v11251_v30 }
 0x552   : > { %17589 = vst [vmem:[#allocation143_spill] sm:$0xff] %v11656_v41  ;;  %v11680_v41 = vmul.f32 %v17593_v2, %v11265_v26 }
 0x553   : > { %17590 = vst [vmem:[#allocation322_spill] sm:$0xff] %v11660_v16  ;;  %v11684_v16 = vmul.f32 %v17593_v2, %v11279_v57  ;;  %v11706_v2 = vmul.f32 %v10506_v23, %v11246_v62 }
 0x554   : > { %17591 = vst [vmem:[#allocation323_spill] sm:$0xff] %v11664_v29  ;;  %v17598_v29 = vld [vmem:[#allocation111_spill] sm:$0xff] }
 0x555   : > { %17592 = vst [vmem:[#allocation207_spill] sm:$0xff] %v11668_v61  ;;  %v11688_v32 = vmul.f32 %v17598_v29, %v11246_v62  ;;  %v11692_v61 = vmul.f32 %v17598_v29, %v11251_v30 }
 0x556   : > { %17594 = vst [vmem:[#allocation32_spill] sm:$0xff] %v11672_v11  ;;  %v11696_v11 = vmul.f32 %v17598_v29, %v11265_v26 }
 0x557   : > { %17595 = vst [vmem:[#allocation33_spill] sm:$0xff] %v11676_v47  ;;  %v11700_v47 = vmul.f32 %v17598_v29, %v11279_v57  ;;  %v17608_v29 = vld [vmem:[#allocation35_spill] sm:$0xff] }
 0x558   : > { %17596 = vst [vmem:[#allocation148_spill] sm:$0xff] %v11680_v41  ;;  %v11702_v41 = vpop.permute.xlu2 %3993 }
 0x559   : > { %17597 = vst [vmem:[#allocation65_spill] sm:$0xff] %v11684_v16  ;;  %v11982_v16 = vmul.f32 %v10893_v0, %v11268_v50 }
 0x55a   : > { %17599 = vst [vmem:[#allocation133_spill] sm:$0xff] %v11688_v32  ;;  %v11710_v32 = vmul.f32 %v10506_v23, %v11251_v30 }
 0x55b   : > { %17600 = vst [vmem:[#allocation18_spill] sm:$0xff] %v11692_v61  ;;  %v11714_v61 = vmul.f32 %v10506_v23, %v11265_v26 }
 0x55c   : > { %17601 = vst [vmem:[#allocation324_spill] sm:$0xff] %v11696_v11  ;;  %v11718_v11 = vmul.f32 %v10506_v23, %v11279_v57 }
 0x55d   : > { %17602 = vst [vmem:[#allocation25_spill] sm:$0xff] %v11700_v47  ;;  %v11722_v47 = vmul.f32 %v17608_v29, %v11246_v62 }
 0x55e   : > { %17603 = vst [vmem:[#allocation21_spill] sm:$0xff] %v11702_v41  ;;  %v11726_v41 = vmul.f32 %v17608_v29, %v11251_v30 }
 0x55f   : > { %17604 = vst [vmem:[#allocation216_spill] sm:$0xff] %v11706_v2  ;;  %v11730_v2 = vmul.f32 %v17608_v29, %v11265_v26 }
 0x560   : > { %17605 = vst [vmem:[#allocation302_spill] sm:$0xff] %v11710_v32  ;;  %v11734_v32 = vmul.f32 %v17608_v29, %v11279_v57  ;;  %v4437_v29 = vld [vmem:[%s15364_s7 + $0xd8] sm:$0xff] }
 0x561   : > { %17606 = vst [vmem:[#allocation166_spill] sm:$0xff] %v11714_v61  ;;  %v17613_v61 = vld [vmem:[#allocation114_spill] sm:$0xff]  ;;  %4585 = vperm.xlu1 %5741, %v4437_v29  }
 0x562   : > { %17607 = vst [vmem:[#allocation169_spill] sm:$0xff] %v11718_v11  ;;  %v11738_v23 = vmul.f32 %v17613_v61, %v11246_v62  ;;  %v11742_v11 = vmul.f32 %v17613_v61, %v11251_v30 }
 0x563   : > { %17609 = vst [vmem:[#allocation267_spill] sm:$0xff] %v11722_v47  ;;  %v11746_v47 = vmul.f32 %v17613_v61, %v11265_v26 }
 0x564   : > { %17610 = vst [vmem:[#allocation56_spill] sm:$0xff] %v11726_v41  ;;  %v11750_v41 = vmul.f32 %v17613_v61, %v11279_v57  ;;  %v11768_v61 = vmul.f32 %v10569_v54, %v11265_v26 }
 0x565   : > { %17611 = vst [vmem:[#allocation259_spill] sm:$0xff] %v11730_v2 }
 0x566   : > { %17612 = vst [vmem:[#allocation260_spill] sm:$0xff] %v11734_v32  ;;  %v11760_v32 = vmul.f32 %v10569_v54, %v11246_v62 }
 0x567   : > { %17614 = vst [vmem:[#allocation82_spill] sm:$0xff] %v11738_v23  ;;  %v4438_v23 = vld [vmem:[%s15364_s7 + $0xe0] sm:$0xff] }
 0x568   : > { %17615 = vst [vmem:[#allocation303_spill] sm:$0xff] %v11742_v11  ;;  %v11764_v11 = vmul.f32 %v10569_v54, %v11251_v30  ;;  %4590 = vperm.xlu2 %5742, %v4438_v23   ;;  %v11814_v23 = vmul.f32 %v10623_v15, %v11251_v30 }
 0x569   : > { %17616 = vst [vmem:[#allocation241_spill] sm:$0xff] %v11746_v47  ;;  %v17622_v47 = vld [vmem:[#allocation309_spill] sm:$0xff] }
 0x56a   : > { %17617 = vst [vmem:[#allocation52_spill] sm:$0xff] %v11750_v41  ;;  %v11772_v41 = vmul.f32 %v10569_v54, %v11279_v57  ;;  %v11776_v2 = vmul.f32 %v17622_v47, %v11246_v62  ;;  %v17627_v54 = vld [vmem:[#allocation116_spill] sm:$0xff] }
 0x56b   : > { %17618 = vst [vmem:[#allocation24_spill] sm:$0xff] %v11760_v32  ;;  %v11780_v32 = vmul.f32 %v17622_v47, %v11251_v30  ;;  %v11792_v29 = vmul.f32 %v17627_v54, %v11246_v62 }
 0x56c   : > { %17619 = vst [vmem:[#allocation210_spill] sm:$0xff] %v11764_v11  ;;  %v11784_v11 = vmul.f32 %v17622_v47, %v11265_v26 }
 0x56d   : > { %17620 = vst [vmem:[#allocation70_spill] sm:$0xff] %v11768_v61  ;;  %v11788_v61 = vmul.f32 %v17622_v47, %v11279_v57  ;;  %v11810_v47 = vmul.f32 %v10623_v15, %v11246_v62 }
 0x56e   : > { %17621 = vst [vmem:[#allocation138_spill] sm:$0xff] %v11772_v41  ;;  %v11796_v41 = vmul.f32 %v17627_v54, %v11251_v30 }
 0x56f   : > { %17623 = vst [vmem:[#allocation139_spill] sm:$0xff] %v11776_v2  ;;  %v11806_v2 = vpop.permute.xlu1 %3958 }
 0x570   : > { %17624 = vst [vmem:[#allocation271_spill] sm:$0xff] %v11780_v32  ;;  %v11800_v32 = vmul.f32 %v17627_v54, %v11265_v26 }
 0x571   : > { %17625 = vst [vmem:[#allocation31_spill] sm:$0xff] %v11784_v11  ;;  %v11804_v11 = vmul.f32 %v17627_v54, %v11279_v57  ;;  %v17637_v54 = vld [vmem:[#allocation39_spill] sm:$0xff] }
 0x572   : > { %17626 = vst [vmem:[#allocation104_spill] sm:$0xff] %v11788_v61  ;;  %v11968_v61 = vmul.f32 %v10652_v37, %v11282_v4 }
 0x573   : > { %17628 = vst [vmem:[#allocation269_spill] sm:$0xff] %v11792_v29  ;;  %v11830_v29 = vmul.f32 %v17637_v54, %v11251_v30 }
 0x574   : > { %17629 = vst [vmem:[#allocation235_spill] sm:$0xff] %v11796_v41  ;;  %v11818_v41 = vmul.f32 %v10623_v15, %v11265_v26 }
 0x575   : > { %17630 = vst [vmem:[#allocation168_spill] sm:$0xff] %v11800_v32  ;;  %v11822_v32 = vmul.f32 %v10623_v15, %v11279_v57 }
 0x576   : > { %17631 = vst [vmem:[#allocation325_spill] sm:$0xff] %v11804_v11  ;;  %v11826_v11 = vmul.f32 %v17637_v54, %v11246_v62 }
 0x577   : > { %17632 = vst [vmem:[#allocation326_spill] sm:$0xff] %v11806_v2  ;;  %v11978_v2 = vmul.f32 %v10893_v0, %v11262_v48 }
 0x578   : > { %17633 = vst [vmem:[#allocation327_spill] sm:$0xff] %v11810_v47  ;;  %v11834_v47 = vmul.f32 %v17637_v54, %v11265_v26 }
 0x579   : > { %17634 = vst [vmem:[#allocation59_spill] sm:$0xff] %v11814_v23  ;;  %v11838_v23 = vmul.f32 %v17637_v54, %v11279_v57  ;;  %v11858_v54 = vmul.f32 %v10689_v22, %v11246_v62 }
 0x57a   : > { %17635 = vst [vmem:[#allocation165_spill] sm:$0xff] %v11818_v41  ;;  %v17642_v41 = vld [vmem:[#allocation119_spill] sm:$0xff] }
 0x57b   : > { %17636 = vst [vmem:[#allocation97_spill] sm:$0xff] %v11822_v32  ;;  %v11842_v15 = vmul.f32 %v17642_v41, %v11246_v62  ;;  %v11846_v32 = vmul.f32 %v17642_v41, %v11251_v30 }
 0x57c   : > { %17638 = vst [vmem:[#allocation242_spill] sm:$0xff] %v11826_v11  ;;  %v11850_v11 = vmul.f32 %v17642_v41, %v11265_v26 }
 0x57d   : > { %17639 = vst [vmem:[#allocation85_spill] sm:$0xff] %v11830_v29  ;;  %v11854_v29 = vmul.f32 %v17642_v41, %v11279_v57  ;;  %v11876_v41 = vmul.f32 %v10527_v55, %v11246_v62 }
 0x57e   : > { %17640 = vst [vmem:[#allocation109_spill] sm:$0xff] %v11834_v47  ;;  %v11964_v47 = vmul.f32 %v10652_v37, %v11268_v50 }
 0x57f   : > { %17641 = vst [vmem:[#allocation304_spill] sm:$0xff] %v11838_v23  ;;  %v11862_v23 = vmul.f32 %v10689_v22, %v11251_v30 }
 0x580   : > { %17643 = vst [vmem:[#allocation62_spill] sm:$0xff] %v11842_v15  ;;  %v11866_v15 = vmul.f32 %v10689_v22, %v11265_v26 }
 0x581   : > { %17644 = vst [vmem:[#allocation154_spill] sm:$0xff] %v11846_v32  ;;  %v11870_v32 = vmul.f32 %v10689_v22, %v11279_v57  ;;  %v17656_v22 = vld [vmem:[#allocation121_spill] sm:$0xff] }
 0x582   : > { %17645 = vst [vmem:[#allocation76_spill] sm:$0xff] %v11850_v11  ;;  %v11872_v11 = vpop.permute.xlu2 %4008 }
 0x583   : > { %17646 = vst [vmem:[#allocation155_spill] sm:$0xff] %v11854_v29  ;;  %v11880_v29 = vmul.f32 %v10527_v55, %v11251_v30 }
 0x584   : > { %17647 = vst [vmem:[#allocation305_spill] sm:$0xff] %v11858_v54  ;;  %v11896_v54 = vmul.f32 %v17656_v22, %v11251_v30  ;;  %v11916_v30 = vmul.f32 %v10763_v28, %v11268_v50 }
 0x585   : > { %17648 = vst [vmem:[#allocation195_spill] sm:$0xff] %v11862_v23  ;;  %v11884_v23 = vmul.f32 %v10527_v55, %v11265_v26 }
 0x586   : > { %17649 = vst [vmem:[#allocation196_spill] sm:$0xff] %v11866_v15  ;;  %v11888_v15 = vmul.f32 %v10527_v55, %v11279_v57  ;;  %v11908_v55 = vmul.f32 %v10763_v28, %v11259_v5 }
 0x587   : > { %17650 = vst [vmem:[#allocation199_spill] sm:$0xff] %v11870_v32  ;;  %v11892_v32 = vmul.f32 %v17656_v22, %v11246_v62  ;;  %v11912_v62 = vmul.f32 %v10763_v28, %v11262_v48 }
 0x588   : > { %17651 = vst [vmem:[#allocation222_spill] sm:$0xff] %v11872_v11  ;;  %v11970_v11 = vpop.permute.xlu1 %3973 }
 0x589   : > { %17652 = vst [vmem:[#allocation240_spill] sm:$0xff] %v11876_v41  ;;  %v11900_v41 = vmul.f32 %v17656_v22, %v11265_v26  ;;  %v11920_v26 = vmul.f32 %v10763_v28, %v11282_v4  ;;  %v11940_v28 = vmul.f32 %v10838_v25, %v11259_v5 }
 0x58a   : > { %17653 = vst [vmem:[#allocation36_spill] sm:$0xff] %v11880_v29  ;;  %v11904_v29 = vmul.f32 %v17656_v22, %v11279_v57  ;;  %v11924_v22 = vmul.f32 %v10593_v7, %v11259_v5  ;;  %v11928_v57 = vmul.f32 %v10593_v7, %v11262_v48 }
 0x58b   : > { %17654 = vst [vmem:[#allocation158_spill] sm:$0xff] %v11884_v23  ;;  %v11960_v23 = vmul.f32 %v10652_v37, %v11262_v48 }
 0x58c   : > { %17655 = vst [vmem:[#allocation200_spill] sm:$0xff] %v11888_v15  ;;  %v11952_v15 = vmul.f32 %v10838_v25, %v11282_v4 }
 0x58d   : > { %17657 = vst [vmem:[#allocation184_spill] sm:$0xff] %v11892_v32  ;;  %v11948_v32 = vmul.f32 %v10838_v25, %v11268_v50 }
 0x58e   : > { %17658 = vst [vmem:[#allocation181_spill] sm:$0xff] %v11896_v54  ;;  %v11944_v54 = vmul.f32 %v10838_v25, %v11262_v48  ;;  %v11974_v25 = vmul.f32 %v10893_v0, %v11259_v5  ;;  %v12006_v0 = vmul.f32 %v10974_v6, %v11259_v5 }
 0x58f   : > { %17659 = vst [vmem:[#allocation34_spill] sm:$0xff] %v11900_v41  ;;  %v11936_v41 = vmul.f32 %v10593_v7, %v11282_v4 }
 0x590   : > { %17660 = vst [vmem:[#allocation88_spill] sm:$0xff] %v11904_v29  ;;  %v11932_v29 = vmul.f32 %v10593_v7, %v11268_v50  ;;  %v11956_v7 = vmul.f32 %v10652_v37, %v11259_v5  ;;  %v11990_v37 = vmul.f32 %v10714_v51, %v11259_v5 }
 0x591   : > { %17661 = vst [vmem:[#allocation112_spill] sm:$0xff] %v11970_v11  ;;  %v11994_v11 = vmul.f32 %v10714_v51, %v11262_v48 }
 0x592   : > { %17662 = vst [vmem:[#allocation171_spill] sm:$0xff] %v11978_v2  ;;  %v12002_v2 = vmul.f32 %v10714_v51, %v11282_v4  ;;  %v12022_v51 = vmul.f32 %v10786_v3, %v11259_v5 }
 0x593   : > { %17663 = vst [vmem:[#allocation177_spill] sm:$0xff] %v11986_v18  ;;  %v12010_v18 = vmul.f32 %v10974_v6, %v11262_v48 }
 0x594   : > { %17664 = vst [vmem:[#allocation67_spill] sm:$0xff] %v11990_v37  ;;  %v12014_v37 = vmul.f32 %v10974_v6, %v11268_v50 }
 0x595   : > { %17665 = vst [vmem:[#allocation172_spill] sm:$0xff] %v11994_v11  ;;  %v12018_v11 = vmul.f32 %v10974_v6, %v11282_v4  ;;  %v4440_v6 = vld [vmem:[%s15364_s7 + $0xf0] sm:$0xff] }
 0x596   : > { %17666 = vst [vmem:[#allocation150_spill] sm:$0xff] %v12002_v2  ;;  %v12026_v2 = vmul.f32 %v10786_v3, %v11262_v48  ;;  %4600 = vperm.xlu1 %5741, %v4440_v6   ;;  %v12082_v6 = vmul.f32 %v11057_v31, %v11262_v48 }
 0x597   : > { %17667 = vst [vmem:[#allocation307_spill] sm:$0xff] %v12006_v0  ;;  %v12030_v0 = vmul.f32 %v10786_v3, %v11268_v50 }
 0x598   : > { %17668 = vst [vmem:[#allocation308_spill] sm:$0xff] %v12010_v18  ;;  %v12034_v18 = vmul.f32 %v10786_v3, %v11282_v4  ;;  %v12054_v3 = vmul.f32 %v11036_v17, %v11268_v50 }
 0x599   : > { %17669 = vst [vmem:[#allocation149_spill] sm:$0xff] %v12018_v11  ;;  %v12042_v11 = vpop.permute.xlu2 %4023 }
 0x59a   : > { %17670 = vst [vmem:[#allocation151_spill] sm:$0xff] %v12022_v51  ;;  %v4441_v51 = vld [vmem:[%s15364_s7 + $0xf8] sm:$0xff] }
 0x59b   : > { %17671 = vst [vmem:[#allocation159_spill] sm:$0xff] %v12026_v2  ;;  %v12046_v2 = vmul.f32 %v11036_v17, %v11259_v5  ;;  %4605 = vperm.xlu2 %5742, %v4441_v51  }
 0x59c   : > { %17672 = vst [vmem:[#allocation45_spill] sm:$0xff] %v12030_v0  ;;  %v12050_v0 = vmul.f32 %v11036_v17, %v11262_v48 }
 0x59d   : > { %17673 = vst [vmem:[#allocation28_spill] sm:$0xff] %v12034_v18  ;;  %v12058_v18 = vmul.f32 %v11036_v17, %v11282_v4  ;;  %v12078_v17 = vmul.f32 %v11057_v31, %v11259_v5 }
 0x59e   : > { %17674 = vst [vmem:[#allocation212_spill] sm:$0xff] %v12042_v11  ;;  %v12062_v11 = vmul.f32 %v10870_v52, %v11259_v5 }
 0x59f   : > { %17675 = vst [vmem:[#allocation61_spill] sm:$0xff] %v12046_v2  ;;  %v12066_v2 = vmul.f32 %v10870_v52, %v11262_v48 }
 0x5a0   : > { %17676 = vst [vmem:[#allocation223_spill] sm:$0xff] %v12050_v0  ;;  %v12070_v0 = vmul.f32 %v10870_v52, %v11268_v50 }
 0x5a1   : > { %17677 = vst [vmem:[#allocation63_spill] sm:$0xff] %v12054_v3  ;;  %v12074_v3 = vmul.f32 %v10870_v52, %v11282_v4  ;;  %v17684_v52 = vld [vmem:[#allocation272_spill] sm:$0xff] }
 0x5a2   : > { %17678 = vst [vmem:[#allocation182_spill] sm:$0xff] %v12066_v2  ;;  %v12086_v2 = vmul.f32 %v11057_v31, %v11268_v50  ;;  %v12098_v51 = vmul.f32 %v17684_v52, %v11262_v48 }
 0x5a3   : > { %17679 = vst [vmem:[#allocation86_spill] sm:$0xff] %v12070_v0  ;;  %v12090_v0 = vmul.f32 %v11057_v31, %v11282_v4  ;;  %v12110_v31 = vmul.f32 %v11068_v59, %v11259_v5 }
 0x5a4   : > { %17680 = vst [vmem:[#allocation190_spill] sm:$0xff] %v12074_v3  ;;  %v12094_v3 = vmul.f32 %v17684_v52, %v11259_v5 }
 0x5a5   : > { %17681 = vst [vmem:[#allocation203_spill] sm:$0xff] %v12078_v17  ;;  %v12102_v17 = vmul.f32 %v17684_v52, %v11268_v50 }
 0x5a6   : > { %17682 = vst [vmem:[#allocation71_spill] sm:$0xff] %v12082_v6  ;;  %v12106_v6 = vmul.f32 %v17684_v52, %v11282_v4  ;;  %v12126_v52 = vmul.f32 %v11007_v9, %v11259_v5 }
 0x5a7   : > { %17683 = vst [vmem:[#allocation144_spill] sm:$0xff] %v12090_v0  ;;  %v12114_v0 = vmul.f32 %v11068_v59, %v11262_v48 }
 0x5a8   : > { %17685 = vst [vmem:[#allocation153_spill] sm:$0xff] %v12094_v3  ;;  %v12118_v3 = vmul.f32 %v11068_v59, %v11268_v50 }
 0x5a9   : > { %17686 = vst [vmem:[#allocation146_spill] sm:$0xff] %v12098_v51  ;;  %v12122_v51 = vmul.f32 %v11068_v59, %v11282_v4  ;;  %v12144_v59 = vmul.f32 %v11075_v46, %v11259_v5 }
 0x5aa   : > { %17687 = vst [vmem:[#allocation74_spill] sm:$0xff] %v12106_v6  ;;  %v12130_v6 = vmul.f32 %v11007_v9, %v11262_v48 }
 0x5ab   : > { %17688 = vst [vmem:[#allocation255_spill] sm:$0xff] %v12110_v31  ;;  %v12134_v31 = vmul.f32 %v11007_v9, %v11268_v50 }
 0x5ac   : > { %17689 = vst [vmem:[#allocation55_spill] sm:$0xff] %v12114_v0  ;;  %v12138_v0 = vmul.f32 %v11007_v9, %v11282_v4  ;;  %v12160_v9 = vmul.f32 %v11041_v44, %v11259_v5 }
 0x5ad   : > { %17690 = vst [vmem:[#allocation66_spill] sm:$0xff] %v12118_v3  ;;  %v12140_v3 = vpop.permute.xlu1 %3988 }
 0x5ae   : > { %17691 = vst [vmem:[#allocation170_spill] sm:$0xff] %v12126_v52  ;;  %v12148_v52 = vmul.f32 %v11075_v46, %v11262_v48 }
 0x5af   : > { %17692 = vst [vmem:[#allocation179_spill] sm:$0xff] %v12130_v6  ;;  %v12152_v6 = vmul.f32 %v11075_v46, %v11268_v50 }
 0x5b0   : > { %17693 = vst [vmem:[#allocation22_spill] sm:$0xff] %v12134_v31  ;;  %v12156_v31 = vmul.f32 %v11075_v46, %v11282_v4  ;;  %v12176_v46 = vmul.f32 %v11092_v20, %v11259_v5 }
 0x5b1   : > { %17694 = vst [vmem:[#allocation226_spill] sm:$0xff] %v12140_v3  ;;  %v12164_v3 = vmul.f32 %v11041_v44, %v11262_v48 }
 0x5b2   : > { %17695 = vst [vmem:[#allocation264_spill] sm:$0xff] %v12144_v59  ;;  %v12168_v59 = vmul.f32 %v11041_v44, %v11268_v50 }
 0x5b3   : > { %17696 = vst [vmem:[#allocation227_spill] sm:$0xff] %v12148_v52  ;;  %v12172_v52 = vmul.f32 %v11041_v44, %v11282_v4  ;;  %v12192_v44 = vmul.f32 %v11062_v27, %v11259_v5 }
 0x5b4   : > { %17697 = vst [vmem:[#allocation265_spill] sm:$0xff] %v12152_v6  ;;  %v12184_v6 = vmul.f32 %v11092_v20, %v11268_v50 }
 0x5b5   : > { %17698 = vst [vmem:[#allocation266_spill] sm:$0xff] %v12156_v31  ;;  %v12180_v31 = vmul.f32 %v11092_v20, %v11262_v48 }
 0x5b6   : > { %17699 = vst [vmem:[#allocation105_spill] sm:$0xff] %v12164_v3  ;;  %v12188_v3 = vmul.f32 %v11092_v20, %v11282_v4  ;;  %v12210_v20 = vmul.f32 %v11119_v24, %v11259_v5 }
 0x5b7   : > { %17700 = vst [vmem:[#allocation89_spill] sm:$0xff] %v12172_v52  ;;  %v12196_v52 = vmul.f32 %v11062_v27, %v11262_v48 }
 0x5b8   : > { %17701 = vst [vmem:[#allocation279_spill] sm:$0xff] %v12176_v46  ;;  %v12200_v46 = vmul.f32 %v11062_v27, %v11268_v50 }
 0x5b9   : > { %17702 = vst [vmem:[#allocation280_spill] sm:$0xff] %v12180_v31  ;;  %v12204_v31 = vmul.f32 %v11062_v27, %v11282_v4  ;;  %v12226_v27 = vmul.f32 %v11070_v12, %v11259_v5 }
 0x5ba   : > { %17703 = vst [vmem:[#allocation281_spill] sm:$0xff] %v12184_v6  ;;  %v12206_v6 = vpop.permute.xlu2 %4038 }
 0x5bb   : > { %17704 = vst [vmem:[#allocation38_spill] sm:$0xff] %v12188_v3  ;;  %v12214_v3 = vmul.f32 %v11119_v24, %v11262_v48 }
 0x5bc   : > { %17705 = vst [vmem:[#allocation84_spill] sm:$0xff] %v12196_v52  ;;  %v12218_v52 = vmul.f32 %v11119_v24, %v11268_v50 }
 0x5bd   : > { %17706 = vst [vmem:[#allocation78_spill] sm:$0xff] %v12200_v46  ;;  %v12222_v46 = vmul.f32 %v11119_v24, %v11282_v4  ;;  %v12242_v24 = vmul.f32 %v11158_v49, %v11259_v5 }
 0x5be   : > { %17707 = vst [vmem:[#allocation163_spill] sm:$0xff] %v12206_v6  ;;  %v12230_v6 = vmul.f32 %v11070_v12, %v11262_v48 }
 0x5bf   : > { %17708 = vst [vmem:[#allocation176_spill] sm:$0xff] %v12210_v20  ;;  %v12234_v20 = vmul.f32 %v11070_v12, %v11268_v50 }
 0x5c0   : > { %17709 = vst [vmem:[#allocation180_spill] sm:$0xff] %v12214_v3  ;;  %v12238_v3 = vmul.f32 %v11070_v12, %v11282_v4  ;;  %v12258_v12 = vmul.f32 %v11077_v14, %v11259_v5 }
 0x5c1   : > { %17710 = vst [vmem:[#allocation58_spill] sm:$0xff] %v12218_v52  ;;  %v12250_v52 = vmul.f32 %v11158_v49, %v11268_v50 }
 0x5c2   : > { %17711 = vst [vmem:[#allocation248_spill] sm:$0xff] %v12222_v46  ;;  %v12246_v46 = vmul.f32 %v11158_v49, %v11262_v48 }
 0x5c3   : > { %17712 = vst [vmem:[#allocation236_spill] sm:$0xff] %v12230_v6  ;;  %v12254_v6 = vmul.f32 %v11158_v49, %v11282_v4  ;;  %v12274_v49 = vmul.f32 %v11208_v63, %v11259_v5 }
 0x5c4   : > { %17713 = vst [vmem:[#allocation73_spill] sm:$0xff] %v12238_v3  ;;  %v12262_v3 = vmul.f32 %v11077_v14, %v11262_v48 }
 0x5c5   : > { %17714 = vst [vmem:[#allocation92_spill] sm:$0xff] %v12242_v24  ;;  %v12266_v24 = vmul.f32 %v11077_v14, %v11268_v50 }
 0x5c6   : > { %17715 = vst [vmem:[#allocation285_spill] sm:$0xff] %v12246_v46  ;;  %v12270_v46 = vmul.f32 %v11077_v14, %v11282_v4  ;;  %v12290_v14 = vmul.f32 %v11109_v40, %v11259_v5 }
 0x5c7   : > { %17716 = vst [vmem:[#allocation286_spill] sm:$0xff] %v12250_v52  ;;  %v12282_v52 = vmul.f32 %v11208_v63, %v11268_v50 }
 0x5c8   : > { %17717 = vst [vmem:[#allocation215_spill] sm:$0xff] %v12254_v6  ;;  %v12278_v6 = vmul.f32 %v11208_v63, %v11262_v48 }
 0x5c9   : > { %17718 = vst [vmem:[#allocation81_spill] sm:$0xff] %v12258_v12 }
 0x5ca   : > { %17719 = vst [vmem:[#allocation91_spill] sm:$0xff] %v12262_v3  ;;  %v12286_v3 = vmul.f32 %v11208_v63, %v11282_v4  ;;  %v17731_v63 = vld [vmem:[#allocation205_spill] sm:$0xff] }
 0x5cb   : > { %17720 = vst [vmem:[#allocation42_spill] sm:$0xff] %v12266_v24 }
 0x5cc   : > { %17721 = vst [vmem:[#allocation174_spill] sm:$0xff] %v12270_v46  ;;  %v12294_v46 = vmul.f32 %v11109_v40, %v11262_v48 }
 0x5cd   : > { %17722 = vst [vmem:[#allocation83_spill] sm:$0xff] %v12274_v49  ;;  %v12298_v49 = vmul.f32 %v11109_v40, %v11268_v50 }
 0x5ce   : > { %17723 = vst [vmem:[#allocation16_spill] sm:$0xff] %v12278_v6  ;;  %v12302_v6 = vmul.f32 %v11109_v40, %v11282_v4  ;;  %v4443_v40 = vld [vmem:[%s15364_s7 + $0x108] sm:$0xff] }
 0x5cf   : > { %17724 = vst [vmem:[#allocation107_spill] sm:$0xff] %v12282_v52  ;;  %v12304_v52 = vpop.permute.xlu1 %4003  ;;  %4615 = vperm.xlu1 %5741, %v4443_v40   ;;  %v17757_v40 = vld [vmem:[#allocation233_spill] sm:$0xff] }
 0x5d0   : > { %17725 = vst [vmem:[#allocation90_spill] sm:$0xff] %v12286_v3  ;;  %v12308_v3 = vmul.f32 %v17731_v63, %v11259_v5 }
 0x5d1   : > { %17726 = vst [vmem:[#allocation213_spill] sm:$0xff] %v12290_v14  ;;  %v12312_v14 = vmul.f32 %v17731_v63, %v11262_v48 }
 0x5d2   : > { %17727 = vst [vmem:[#allocation225_spill] sm:$0xff] %v12294_v46  ;;  %v12316_v46 = vmul.f32 %v17731_v63, %v11268_v50 }
 0x5d3   : > { %17728 = vst [vmem:[#allocation96_spill] sm:$0xff] %v12298_v49  ;;  %v12320_v49 = vmul.f32 %v17731_v63, %v11282_v4 }
 0x5d4   : > { %17729 = vst [vmem:[#allocation245_spill] sm:$0xff] %v12302_v6  ;;  %v17736_v6 = vld [vmem:[#allocation79_spill] sm:$0xff] }
 0x5d5   : > { %17730 = vst [vmem:[#allocation185_spill] sm:$0xff] %v12304_v52  ;;  %v12330_v24 = vmul.f32 %v17736_v6, %v11259_v5  ;;  %v12338_v63 = vmul.f32 %v17736_v6, %v11268_v50  ;;  %v17793_v52 = vld [vmem:[#allocation144_spill] sm:$0xff] }
 0x5d6   : > { %17732 = vst [vmem:[#allocation214_spill] sm:$0xff] %v12308_v3  ;;  %v4444_v3 = vld [vmem:[%s15364_s7 + $0x110] sm:$0xff] }
 0x5d7   : > { %17733 = vst [vmem:[#allocation87_spill] sm:$0xff] %v12312_v14  ;;  %v12334_v14 = vmul.f32 %v17736_v6, %v11262_v48  ;;  %4620 = vperm.xlu2 %5742, %v4444_v3  }
 0x5d8   : > { %17734 = vst [vmem:[#allocation186_spill] sm:$0xff] %v12316_v46  ;;  %v12346_v46 = vadd.f32 %v11908_v55, %v11272_v43  ;;  %v12366_v43 = vadd.f32 %v11928_v57, %v11290_v45  ;;  %v12388_v57 = vadd.f32 %v11948_v32, %v11336_v36  ;;  %v12392_v45 = vadd.f32 %v11952_v15, %v11340_v19  ;;  %v17743_v19 = vld [vmem:[#allocation220_spill] sm:$0xff]  ;;  %v17745_v32 = vld [vmem:[#allocation177_spill] sm:$0xff]  ;;  %v17753_v55 = vld [vmem:[#allocation231_spill] sm:$0xff] }
 0x5d9   : > { %17735 = vst [vmem:[#allocation183_spill] sm:$0xff] %v12320_v49  ;;  %v12342_v49 = vmul.f32 %v17736_v6, %v11282_v4  ;;  %v12362_v6 = vadd.f32 %v11924_v22, %v11286_v39  ;;  %v12384_v39 = vadd.f32 %v11944_v54, %v11332_v60  ;;  %v17742_v60 = vld [vmem:[#allocation171_spill] sm:$0xff]  ;;  %v17750_v15 = vld [vmem:[#allocation60_spill] sm:$0xff] }
 0x5da   : > { %17737 = vst [vmem:[#allocation310_spill] sm:$0xff] %v12330_v24  ;;  %v12350_v24 = vadd.f32 %v11912_v62, %v11276_v53  ;;  %v12370_v62 = vadd.f32 %v11932_v29, %v11298_v42  ;;  %v12376_v53 = vpop.permute.xlu2 %4053  ;;  %v12400_v42 = vadd.f32 %v11960_v23, %v11348_v58  ;;  %v12416_v36 = vadd.f32 %v17742_v60, %v11364_v10  ;;  %v17744_v58 = vld [vmem:[#allocation275_spill] sm:$0xff]  ;;  %v17746_v29 = vld [vmem:[#allocation122_spill] sm:$0xff]  ;;  %v17749_v23 = vld [vmem:[#allocation172_spill] sm:$0xff] }
 0x5db   : > { %17738 = vst [vmem:[#allocation64_spill] sm:$0xff] %v12334_v14  ;;  %v12354_v14 = vadd.f32 %v11916_v30, %v11294_v21  ;;  %v12374_v30 = vadd.f32 %v11936_v41, %v11316_v8  ;;  %v12396_v21 = vadd.f32 %v11956_v7, %v11344_v38  ;;  %v12408_v8 = vadd.f32 %v11968_v61, %v11356_v1  ;;  %v17748_v61 = vld [vmem:[#allocation314_spill] sm:$0xff]  ;;  %v17751_v54 = vld [vmem:[#allocation43_spill] sm:$0xff]  ;;  %v17755_v7 = vld [vmem:[#allocation232_spill] sm:$0xff] }
 0x5dc   : > { %17739 = vst [vmem:[#allocation157_spill] sm:$0xff] %v12338_v63  ;;  %v12358_v63 = vadd.f32 %v11920_v26, %v11312_v35  ;;  %v12380_v26 = vadd.f32 %v11940_v28, %v11324_v33  ;;  %v12404_v35 = vadd.f32 %v11964_v47, %v11352_v56  ;;  %v12412_v33 = vadd.f32 %v11974_v25, %v11360_v34  ;;  %v17747_v47 = vld [vmem:[#allocation67_spill] sm:$0xff]  ;;  %v17752_v41 = vld [vmem:[#allocation150_spill] sm:$0xff]  ;;  %v17756_v25 = vld [vmem:[#allocation308_spill] sm:$0xff] }
 0x5dd   : > { %17740 = vst [vmem:[#allocation191_spill] sm:$0xff] %v12342_v49  ;;  %v12420_v38 = vadd.f32 %v11982_v16, %v17743_v19  ;;  %v12424_v56 = vadd.f32 %v17745_v32, %v17744_v58  ;;  %v12428_v1 = vadd.f32 %v17747_v47, %v17746_v29  ;;  %v12432_v34 = vadd.f32 %v17749_v23, %v17748_v61  ;;  %v17754_v22 = vld [vmem:[#allocation307_spill] sm:$0xff]  ;;  %v17758_v19 = vld [vmem:[#allocation204_spill] sm:$0xff]  ;;  %v17759_v58 = vld [vmem:[#allocation149_spill] sm:$0xff] }
 0x5de   : > { %17741 = vst [vmem:[#allocation192_spill] sm:$0xff] %v12376_v53  ;;  %v12436_v10 = vadd.f32 %v11998_v13, %v17750_v15  ;;  %v12440_v16 = vadd.f32 %v17752_v41, %v17751_v54  ;;  %v12444_v28 = vadd.f32 %v17754_v22, %v17753_v55  ;;  %v12448_v3 = vadd.f32 %v17756_v25, %v17755_v7  ;;  %v17760_v32 = vld [vmem:[#allocation276_spill] sm:$0xff]  ;;  %v17761_v29 = vld [vmem:[#allocation151_spill] sm:$0xff]  ;;  %v17762_v61 = vld [vmem:[#allocation277_spill] sm:$0xff] }
 0x5df   : > { %v12452_v60 = vadd.f32 %v12014_v37, %v17757_v40  ;;  %v12456_v13 = vadd.f32 %v17759_v58, %v17758_v19  ;;  %v12460_v47 = vadd.f32 %v17761_v29, %v17760_v32  ;;  %v17763_v23 = vld [vmem:[#allocation159_spill] sm:$0xff]  ;;  %v17764_v54 = vld [vmem:[#allocation46_spill] sm:$0xff]  ;;  %v17765_v41 = vld [vmem:[#allocation45_spill] sm:$0xff] }
 0x5e0   : > { %v12464_v15 = vadd.f32 %v17763_v23, %v17762_v61  ;;  %v12468_v55 = vadd.f32 %v17765_v41, %v17764_v54  ;;  %v17766_v22 = vld [vmem:[#allocation120_spill] sm:$0xff]  ;;  %v17768_v25 = vld [vmem:[#allocation15_spill] sm:$0xff]  ;;  %v17769_v40 = vld [vmem:[#allocation61_spill] sm:$0xff]  ;;  %v12490_v41 = vpop.permute.xlu1 %4018 }
 0x5e1   : > { %v17767_v7 = vld [vmem:[#allocation28_spill] sm:$0xff]  ;;  %v12476_v19 = vadd.f32 %v17769_v40, %v17768_v25  ;;  %v17770_v58 = vld [vmem:[#allocation237_spill] sm:$0xff]  ;;  %v17771_v49 = vld [vmem:[#allocation223_spill] sm:$0xff]  ;;  %17775 = vst [vmem:[#allocation197_spill] sm:$0xff] %v12490_v41 }
 0x5e2   : > { %v12472_v37 = vadd.f32 %v17767_v7, %v17766_v22  ;;  %v12480_v32 = vadd.f32 %v17771_v49, %v17770_v58  ;;  %v17772_v29 = vld [vmem:[#allocation30_spill] sm:$0xff]  ;;  %v17773_v4 = vld [vmem:[#allocation63_spill] sm:$0xff]  ;;  %v17779_v49 = vld [vmem:[#allocation49_spill] sm:$0xff] }
 0x5e3   : > { %v12484_v61 = vadd.f32 %v17773_v4, %v17772_v29  ;;  %v17774_v23 = vld [vmem:[#allocation254_spill] sm:$0xff]  ;;  %v17776_v22 = vld [vmem:[#allocation239_spill] sm:$0xff] }
 0x5e4   : > { %v12488_v54 = vadd.f32 %v12058_v18, %v17774_v23  ;;  %v12494_v7 = vadd.f32 %v12062_v11, %v17776_v22  ;;  %v17777_v25 = vld [vmem:[#allocation123_spill] sm:$0xff]  ;;  %v17778_v40 = vld [vmem:[#allocation182_spill] sm:$0xff]  ;;  %v17785_v18 = vld [vmem:[#allocation124_spill] sm:$0xff] }
 0x5e5   : > { %v12498_v50 = vadd.f32 %v17778_v40, %v17777_v25  ;;  %v17780_v58 = vld [vmem:[#allocation86_spill] sm:$0xff]  ;;  %v17782_v4 = vld [vmem:[#allocation75_spill] sm:$0xff]  ;;  %v17790_v22 = vld [vmem:[#allocation132_spill] sm:$0xff] }
 0x5e6   : > { %v12502_v48 = vadd.f32 %v17780_v58, %v17779_v49  ;;  %v17783_v29 = vld [vmem:[#allocation190_spill] sm:$0xff]  ;;  %v17786_v23 = vld [vmem:[#allocation203_spill] sm:$0xff]  ;;  %v12518_v25 = vadd.f32 %v12086_v2, %v17790_v22  ;;  %v17792_v40 = vld [vmem:[#allocation316_spill] sm:$0xff] }
 0x5e7   : > { %v12506_v5 = vadd.f32 %v17783_v29, %v17782_v4  ;;  %v12510_v12 = vadd.f32 %v17786_v23, %v17785_v18  ;;  %v17787_v41 = vld [vmem:[#allocation250_spill] sm:$0xff]  ;;  %v17788_v53 = vld [vmem:[#allocation71_spill] sm:$0xff]  ;;  %v12522_v49 = vadd.f32 %v17793_v52, %v17792_v40  ;;  %v17795_v58 = vld [vmem:[#allocation317_spill] sm:$0xff] }
 0x5e8   : > { %17781 = vst [vmem:[#allocation306_spill] sm:$0xff] %v12502_v48  ;;  %v12514_v11 = vadd.f32 %v17788_v53, %v17787_v41  ;;  %v17796_v48 = vld [vmem:[#allocation153_spill] sm:$0xff]  ;;  %v17798_v29 = vld [vmem:[#allocation251_spill] sm:$0xff]  ;;  %v17800_v23 = vld [vmem:[#allocation252_spill] sm:$0xff] }
 0x5e9   : > { %17784 = vst [vmem:[#allocation198_spill] sm:$0xff] %v12506_v5  ;;  %v12526_v4 = vadd.f32 %v17796_v48, %v17795_v58  ;;  %v17799_v5 = vld [vmem:[#allocation146_spill] sm:$0xff]  ;;  %v12534_v53 = vadd.f32 %v12102_v17, %v17800_v23  ;;  %v17803_v22 = vld [vmem:[#allocation77_spill] sm:$0xff]  ;;  %v17806_v40 = vld [vmem:[#allocation288_spill] sm:$0xff]  ;;  %v12556_v23 = vpop.permute.xlu2 %4068 }
 0x5ea   : > { %17789 = vst [vmem:[#allocation201_spill] sm:$0xff] %v12514_v11  ;;  %v12530_v18 = vadd.f32 %v17799_v5, %v17798_v29  ;;  %v17801_v41 = vld [vmem:[#allocation318_spill] sm:$0xff]  ;;  %v17809_v58 = vld [vmem:[#allocation289_spill] sm:$0xff]  ;;  %v17812_v29 = vld [vmem:[#allocation128_spill] sm:$0xff] }
 0x5eb   : > { %17791 = vst [vmem:[#allocation47_spill] sm:$0xff] %v12518_v25  ;;  %v17802_v11 = vld [vmem:[#allocation74_spill] sm:$0xff]  ;;  %v17804_v25 = vld [vmem:[#allocation255_spill] sm:$0xff]  ;;  %v12554_v17 = vadd.f32 %v12122_v51, %v17812_v29 }
 0x5ec   : > { %17794 = vst [vmem:[#allocation99_spill] sm:$0xff] %v12522_v49  ;;  %v12538_v2 = vadd.f32 %v17802_v11, %v17801_v41  ;;  %v12542_v52 = vadd.f32 %v17804_v25, %v17803_v22  ;;  %v17807_v49 = vld [vmem:[#allocation55_spill] sm:$0xff]  ;;  %v12561_v11 = vld [vmem:[%s15364_s7 + $0x120] sm:$0xff] }
 0x5ed   : > { %17797 = vst [vmem:[#allocation291_spill] sm:$0xff] %v12526_v4  ;;  %v12546_v48 = vadd.f32 %v17807_v49, %v17806_v40  ;;  %v17810_v4 = vld [vmem:[#allocation66_spill] sm:$0xff]  ;;  %v12566_v25 = vld [vmem:[%s15364_s7 + $0x128] sm:$0xf]  ;;  %4630 = vperm.xlu1 %5741, %v12561_v11  }
 0x5ee   : > { %17805 = vst [vmem:[#allocation292_spill] sm:$0xff] %v12542_v52  ;;  %v12550_v5 = vadd.f32 %v17810_v4, %v17809_v58  ;;  %v17817_v49 = vld [vmem:[#allocation290_spill] sm:$0xff]  ;;  %v17821_v40 = vld [vmem:[#allocation179_spill] sm:$0xff]  ;;  %v17822_v58 = vld [vmem:[#allocation137_spill] sm:$0xff]  ;;  %4635 = vperm.xlu2 %5742, %v12566_v25  }
 0x5ef   : > { %17808 = vst [vmem:[#allocation293_spill] sm:$0xff] %v12546_v48  ;;  %v17818_v41 = vld [vmem:[#allocation170_spill] sm:$0xff]  ;;  %v17826_v48 = vld [vmem:[#allocation141_spill] sm:$0xff] }
 0x5f0   : > { %17811 = vst [vmem:[#allocation193_spill] sm:$0xff] %v12550_v5  ;;  %v12570_v4 = vadd.f32 %v17818_v41, %v17817_v49  ;;  %v17820_v22 = vld [vmem:[#allocation54_spill] sm:$0xff]  ;;  %v12587_v52 = vadd.f32 %v12160_v9, %v17826_v48  ;;  %v17827_v49 = vld [vmem:[#allocation80_spill] sm:$0xff]  ;;  %v17828_v41 = vld [vmem:[#allocation105_spill] sm:$0xff] }
 0x5f1   : > { %17813 = vst [vmem:[#allocation189_spill] sm:$0xff] %v12554_v17  ;;  %v12574_v51 = vadd.f32 %v17821_v40, %v17820_v22  ;;  %v17823_v29 = vld [vmem:[#allocation22_spill] sm:$0xff]  ;;  %v17825_v17 = vld [vmem:[#allocation319_spill] sm:$0xff]  ;;  %v17836_v48 = vld [vmem:[#allocation33_spill] sm:$0xff] }
 0x5f2   : > { %17814 = vst [vmem:[#allocation194_spill] sm:$0xff] %v12556_v23  ;;  %v12578_v23 = vadd.f32 %v17823_v29, %v17822_v58  ;;  %v12582_v5 = vadd.f32 %v12138_v0, %v17825_v17  ;;  %v17830_v22 = vld [vmem:[#allocation294_spill] sm:$0xff]  ;;  %v17831_v58 = vld [vmem:[#allocation295_spill] sm:$0xff]  ;;  %v17832_v29 = vld [vmem:[#allocation89_spill] sm:$0xff]  ;;  %v12601_v0 = vpop.permute.xlu0 %3431 }
 0x5f3   : > { %17815 = vst [vmem:[#allocation110_spill] sm:$0xff] %v12561_v11  ;;  %v12595_v40 = vadd.f32 %v12168_v59, %v17830_v22  ;;  %v17835_v17 = vld [vmem:[#allocation32_spill] sm:$0xff]  ;;  %v17841_v22 = vld [vmem:[#allocation65_spill] sm:$0xff] }
 0x5f4   : > { %17816 = vst [vmem:[#allocation37_spill] sm:$0xff] %v12566_v25  ;;  %v12606_v9 = vadd.f32 %v12192_v44, %v17835_v17  ;;  %v17837_v11 = vld [vmem:[#allocation84_spill] sm:$0xff]  ;;  %v17845_v17 = vld [vmem:[#allocation259_spill] sm:$0xff] }
 0x5f5   : > { %17819 = vst [vmem:[#allocation202_spill] sm:$0xff] %v12570_v4  ;;  %v12591_v4 = vadd.f32 %v17828_v41, %v17827_v49  ;;  %v12610_v49 = vadd.f32 %v17837_v11, %v17836_v48  ;;  %v17839_v41 = vld [vmem:[#allocation148_spill] sm:$0xff]  ;;  %v12630_v11 = vadd.f32 %v12234_v20, %v17845_v17 }
 0x5f6   : > { %17824 = vst [vmem:[#allocation328_spill] sm:$0xff] %v12578_v23  ;;  %v12599_v23 = vadd.f32 %v17832_v29, %v17831_v58  ;;  %v12618_v58 = vadd.f32 %v12204_v31, %v17841_v22  ;;  %v17842_v29 = vld [vmem:[#allocation267_spill] sm:$0xff]  ;;  %v17843_v25 = vld [vmem:[#allocation56_spill] sm:$0xff]  ;;  %v12668_v22 = vpop.permute.xlu1 %4033 }
 0x5f7   : > { %17829 = vst [vmem:[#allocation94_spill] sm:$0xff] %v12591_v4  ;;  %v17840_v4 = vld [vmem:[#allocation78_spill] sm:$0xff]  ;;  %v17846_v48 = vld [vmem:[#allocation260_spill] sm:$0xff] }
 0x5f8   : > { %17833 = vst [vmem:[#allocation50_spill] sm:$0xff] %v12599_v23  ;;  %v12614_v59 = vadd.f32 %v17840_v4, %v17839_v41  ;;  %v17844_v23 = vld [vmem:[#allocation236_spill] sm:$0xff]  ;;  %v17848_v41 = vld [vmem:[#allocation274_spill] sm:$0xff] }
 0x5f9   : > { %17834 = vst [vmem:[#allocation211_spill] sm:$0xff] %v12601_v0  ;;  %v12622_v0 = vadd.f32 %v12226_v27, %v17842_v29  ;;  %v12626_v44 = vadd.f32 %v17844_v23, %v17843_v25  ;;  %v12638_v31 = vadd.f32 %v17848_v41, %v12346_v46  ;;  %v12642_v27 = vadd.f32 %v17848_v41, %v12350_v24  ;;  %v17853_v25 = vld [vmem:[#allocation253_spill] sm:$0xff] }
 0x5fa   : > { %17838 = vst [vmem:[#allocation102_spill] sm:$0xff] %v12610_v49  ;;  %v17847_v49 = vld [vmem:[#allocation73_spill] sm:$0xff]  ;;  %v12646_v23 = vadd.f32 %v17848_v41, %v12354_v14  ;;  %v12650_v20 = vadd.f32 %v17848_v41, %v12358_v63  ;;  %v12658_v46 = vadd.f32 %v17853_v25, %v12366_v43  ;;  %v12662_v24 = vadd.f32 %v17853_v25, %v12370_v62  ;;  %v17859_v63 = vld [vmem:[#allocation238_spill] sm:$0xff] }
 0x5fb   : > { %v12634_v4 = vadd.f32 %v17847_v49, %v17846_v48  ;;  %17849 = vst [vmem:[#allocation298_spill] sm:$0xff] %v12638_v31  ;;  %v12654_v49 = vadd.f32 %v17853_v25, %v12362_v6  ;;  %v12666_v14 = vadd.f32 %v17853_v25, %v12374_v30  ;;  %v12672_v29 = vadd.f32 %v17859_v63, %v12380_v26  ;;  %v17864_v30 = vld [vmem:[#allocation175_spill] sm:$0xff]  ;;  %v17869_v48 = vld [vmem:[#allocation26_spill] sm:$0xff] }
 0x5fc   : > { %17850 = vst [vmem:[#allocation299_spill] sm:$0xff] %v12642_v27  ;;  %v12676_v6 = vadd.f32 %v17859_v63, %v12384_v39  ;;  %v12680_v43 = vadd.f32 %v17859_v63, %v12388_v57  ;;  %v12684_v62 = vadd.f32 %v17859_v63, %v12392_v45  ;;  %v12688_v17 = vadd.f32 %v17864_v30, %v12396_v21  ;;  %v17881_v63 = vld [vmem:[#allocation326_spill] sm:$0xff] }
 0x5fd   : > { %17851 = vst [vmem:[#allocation300_spill] sm:$0xff] %v12646_v23  ;;  %v12692_v26 = vadd.f32 %v17864_v30, %v12400_v42  ;;  %v12696_v39 = vadd.f32 %v17864_v30, %v12404_v35  ;;  %v12700_v57 = vadd.f32 %v17864_v30, %v12408_v8  ;;  %v12704_v45 = vadd.f32 %v17869_v48, %v12412_v33  ;;  %v17875_v8 = vld [vmem:[#allocation206_spill] sm:$0xff]  ;;  %v5835_v30 = vld [vmem:[%s15364_s7 + $0x8] sm:$0xff] }
 0x5fe   : > { %17852 = vst [vmem:[#allocation284_spill] sm:$0xff] %v12650_v20  ;;  %v12708_v21 = vadd.f32 %v17869_v48, %v12416_v36  ;;  %v12712_v42 = vadd.f32 %v17869_v48, %v12420_v38  ;;  %v12716_v35 = vadd.f32 %v17869_v48, %v12424_v56  ;;  %v17874_v41 = vmov 1   ;;  %v12735_v56 = vpop.permute.xlu2 %4083 }
 0x5ff   : > { %17854 = vst [vmem:[#allocation261_spill] sm:$0xff] %v12654_v49  ;;  %5744 = vset.pattern.permute.xlu1 %v17874_v41  ;;  %v12721_v25 = vadd.f32 %v17875_v8, %v12428_v1  ;;  %v12725_v33 = vadd.f32 %v17875_v8, %v12432_v34  ;;  %v12729_v36 = vadd.f32 %v17875_v8, %v12436_v10 }
 0x600   : > { %17855 = vst [vmem:[#allocation301_spill] sm:$0xff] %v12658_v46  ;;  %v12733_v38 = vadd.f32 %v17875_v8, %v12440_v16  ;;  %5745 = vset.pattern.permute.xlu2 %v17874_v41  ;;  %v12740_v1 = vadd.f32 %v17881_v63, %v12444_v28  ;;  %v12744_v34 = vadd.f32 %v17881_v63, %v12448_v3  ;;  %v17886_v28 = vld [vmem:[#allocation221_spill] sm:$0xff]  ;;  %v12773_v41 = vpop.permute.xlu0 %3451  ;;  %v5836_v8 = vld [vmem:[%s15364_s7 + $0x10] sm:$0xff] }
 0x601   : > { %17856 = vst [vmem:[#allocation93_spill] sm:$0xff] %v12662_v24  ;;  %v12748_v10 = vadd.f32 %v17881_v63, %v12452_v60  ;;  %v12752_v16 = vadd.f32 %v17881_v63, %v12456_v13  ;;  %4977 = vperm.xlu1 %5744, %v5835_v30   ;;  %v12759_v48 = vadd.f32 %v17886_v28, %v12460_v47  ;;  %v17892_v47 = vld [vmem:[#allocation112_spill] sm:$0xff]  ;;  %v17897_v30 = vld [vmem:[#allocation51_spill] sm:$0xff] }
 0x602   : > { %17857 = vst [vmem:[#allocation164_spill] sm:$0xff] %v12666_v14  ;;  %v12763_v3 = vadd.f32 %v17886_v28, %v12464_v15  ;;  %v12767_v60 = vadd.f32 %v17886_v28, %v12468_v55  ;;  %v12771_v13 = vadd.f32 %v17886_v28, %v12472_v37  ;;  %4981 = vperm.xlu2 %5745, %v5836_v8   ;;  %v17900_v8 = vld [vmem:[#allocation306_spill] sm:$0xff] }
 0x603   : > { %17858 = vst [vmem:[#allocation313_spill] sm:$0xff] %v12668_v22  ;;  %v12780_v63 = vadd.f32 %v17892_v47, %v12476_v19  ;;  %v12784_v15 = vadd.f32 %v17892_v47, %v12480_v32  ;;  %v12788_v55 = vadd.f32 %v17892_v47, %v12484_v61  ;;  %v12792_v37 = vadd.f32 %v17892_v47, %v12488_v54  ;;  %v17906_v47 = vld [vmem:[#allocation201_spill] sm:$0xff]  ;;  %v17908_v22 = vld [vmem:[#allocation47_spill] sm:$0xff] }
 0x604   : > { %17860 = vst [vmem:[#allocation243_spill] sm:$0xff] %v12672_v29  ;;  %v12796_v28 = vadd.f32 %v17897_v30, %v12494_v7  ;;  %v12800_v19 = vadd.f32 %v17897_v30, %v12498_v50  ;;  %v12804_v32 = vadd.f32 %v17897_v30, %v17900_v8 }
 0x605   : > { %17861 = vst [vmem:[#allocation147_spill] sm:$0xff] %v12676_v6 }
 0x606   : > { %17862 = vst [vmem:[#allocation95_spill] sm:$0xff] %v12680_v43 }
 0x607   : > { %17863 = vst [vmem:[#allocation162_spill] sm:$0xff] %v12684_v62 }
 0x608   : > { %17865 = vst [vmem:[#allocation234_spill] sm:$0xff] %v12688_v17 }
 0x609   : > { %17866 = vst [vmem:[#allocation98_spill] sm:$0xff] %v12692_v26 }
 0x60a   : > { %17867 = vst [vmem:[#allocation167_spill] sm:$0xff] %v12696_v39 }
 0x60b   : > { %17868 = vst [vmem:[#allocation29_spill] sm:$0xff] %v12700_v57 }
 0x60c   : > { %17870 = vst [vmem:[#allocation101_spill] sm:$0xff] %v12704_v45 }
 0x60d   : > { %17871 = vst [vmem:[#allocation19_spill] sm:$0xff] %v12708_v21 }
 0x60e   : > { %17872 = vst [vmem:[#allocation160_spill] sm:$0xff] %v12712_v42 }
 0x60f   : > { %17873 = vst [vmem:[#allocation103_spill] sm:$0xff] %v12716_v35 }
 0x610   : > { %17876 = vst [vmem:[#allocation145_spill] sm:$0xff] %v12721_v25  ;;  %v18121_v25 = vld [vmem:[#allocation200_spill] sm:$0xff] }
 0x611   : > { %17877 = vst [vmem:[#allocation100_spill] sm:$0xff] %v12725_v33  ;;  %v17997_v33 = vld [vmem:[#allocation31_spill] sm:$0xff] }
 0x612   : > { %17878 = vst [vmem:[#allocation106_spill] sm:$0xff] %v12729_v36 }
 0x613   : > { %17879 = vst [vmem:[#allocation115_spill] sm:$0xff] %v12733_v38 }
 0x614   : > { %17880 = vst [vmem:[#allocation246_spill] sm:$0xff] %v12735_v56  ;;  %v17902_v56 = vld [vmem:[#allocation198_spill] sm:$0xff] }
 0x615   : > { %17882 = vst [vmem:[#allocation108_spill] sm:$0xff] %v12740_v1  ;;  %v12808_v61 = vadd.f32 %v17897_v30, %v17902_v56 }
 0x616   : > { %17883 = vst [vmem:[#allocation311_spill] sm:$0xff] %v12744_v34 }
 0x617   : > { %17884 = vst [vmem:[#allocation178_spill] sm:$0xff] %v12748_v10 }
 0x618   : > { %17885 = vst [vmem:[#allocation111_spill] sm:$0xff] %v12752_v16 }
 0x619   : > { %17887 = vst [vmem:[#allocation35_spill] sm:$0xff] %v12759_v48  ;;  %v18000_v48 = vld [vmem:[#allocation174_spill] sm:$0xff] }
 0x61a   : > { %17888 = vst [vmem:[#allocation114_spill] sm:$0xff] %v12763_v3  ;;  %v18005_v3 = vld [vmem:[#allocation187_spill] sm:$0xff] }
 0x61b   : > { %17889 = vst [vmem:[#allocation309_spill] sm:$0xff] %v12767_v60 }
 0x61c   : > { %17890 = vst [vmem:[#allocation116_spill] sm:$0xff] %v12771_v13 }
 0x61d   : > { %17891 = vst [vmem:[#allocation39_spill] sm:$0xff] %v12773_v41  ;;  %v17904_v41 = vld [vmem:[#allocation226_spill] sm:$0xff] }
 0x61e   : > { %17893 = vst [vmem:[#allocation119_spill] sm:$0xff] %v12780_v63  ;;  %v12812_v54 = vadd.f32 %v17904_v41, %v12510_v12  ;;  %v12816_v7 = vadd.f32 %v17904_v41, %v17906_v47  ;;  %v12820_v50 = vadd.f32 %v17904_v41, %v17908_v22  ;;  %v12842_v47 = vpop.permute.xlu1 %4048 }
 0x61f   : > { %17894 = vst [vmem:[#allocation121_spill] sm:$0xff] %v12784_v15 }
 0x620   : > { %17895 = vst [vmem:[#allocation272_spill] sm:$0xff] %v12788_v55 }
 0x621   : > { %17896 = vst [vmem:[#allocation205_spill] sm:$0xff] %v12792_v37 }
 0x622   : > { %17898 = vst [vmem:[#allocation79_spill] sm:$0xff] %v12796_v28  ;;  %v17913_v28 = vld [vmem:[#allocation21_spill] sm:$0xff] }
 0x623   : > { %17899 = vst [vmem:[#allocation171_spill] sm:$0xff] %v12800_v19  ;;  %v17910_v19 = vld [vmem:[#allocation99_spill] sm:$0xff]  ;;  %v12832_v12 = vadd.f32 %v17913_v28, %v12530_v18  ;;  %v12836_v30 = vadd.f32 %v17913_v28, %v12534_v53  ;;  %v12840_v22 = vadd.f32 %v17913_v28, %v12538_v2  ;;  %v17924_v18 = vld [vmem:[#allocation193_spill] sm:$0xff]  ;;  %v17928_v2 = vld [vmem:[#allocation202_spill] sm:$0xff] }
 0x624   : > { %17901 = vst [vmem:[#allocation220_spill] sm:$0xff] %v12804_v32  ;;  %v12824_v8 = vadd.f32 %v17904_v41, %v17910_v19  ;;  %v17912_v32 = vld [vmem:[#allocation291_spill] sm:$0xff]  ;;  %v17919_v41 = vld [vmem:[#allocation292_spill] sm:$0xff]  ;;  %v17920_v19 = vld [vmem:[#allocation185_spill] sm:$0xff] }
 0x625   : > { %17903 = vst [vmem:[#allocation275_spill] sm:$0xff] %v12808_v61  ;;  %v12828_v56 = vadd.f32 %v17913_v28, %v17912_v32  ;;  %v17922_v32 = vld [vmem:[#allocation293_spill] sm:$0xff]  ;;  %v17929_v28 = vld [vmem:[#allocation222_spill] sm:$0xff]  ;;  %v17993_v61 = vld [vmem:[#allocation139_spill] sm:$0xff] }
 0x626   : > { %17905 = vst [vmem:[#allocation177_spill] sm:$0xff] %v12812_v54  ;;  %v17926_v53 = vld [vmem:[#allocation189_spill] sm:$0xff] }
 0x627   : > { %17907 = vst [vmem:[#allocation122_spill] sm:$0xff] %v12816_v7 }
 0x628   : > { %17909 = vst [vmem:[#allocation67_spill] sm:$0xff] %v12820_v50 }
 0x629   : > { %17911 = vst [vmem:[#allocation314_spill] sm:$0xff] %v12824_v8  ;;  %v12846_v8 = vadd.f32 %v17920_v19, %v17919_v41  ;;  %v12866_v41 = vadd.f32 %v17929_v28, %v12574_v51 }
 0x62a   : > { %17914 = vst [vmem:[#allocation172_spill] sm:$0xff] %v12828_v56  ;;  %v12850_v56 = vadd.f32 %v17920_v19, %v17922_v32 }
 0x62b   : > { %17915 = vst [vmem:[#allocation60_spill] sm:$0xff] %v12832_v12  ;;  %v12854_v12 = vadd.f32 %v17920_v19, %v17924_v18  ;;  %v12874_v18 = vadd.f32 %v17929_v28, %v12582_v5  ;;  %v5837_v5 = vld [vmem:[%s15364_s7 + $0x18] sm:$0xff] }
 0x62c   : > { %17916 = vst [vmem:[#allocation43_spill] sm:$0xff] %v12836_v30  ;;  %v12858_v30 = vadd.f32 %v17920_v19, %v17926_v53  ;;  %v17937_v53 = vld [vmem:[#allocation94_spill] sm:$0xff]  ;;  %4985 = vperm.xlu1 %5744, %v5837_v5  }
 0x62d   : > { %17917 = vst [vmem:[#allocation150_spill] sm:$0xff] %v12840_v22  ;;  %v12862_v22 = vadd.f32 %v17929_v28, %v17928_v2  ;;  %v5838_v5 = vld [vmem:[%s15364_s7 + $0x20] sm:$0xff] }
 0x62e   : > { %17918 = vst [vmem:[#allocation231_spill] sm:$0xff] %v12842_v47  ;;  %v17932_v47 = vld [vmem:[#allocation328_spill] sm:$0xff]  ;;  %4989 = vperm.xlu2 %5745, %v5838_v5  }
 0x62f   : > { %17921 = vst [vmem:[#allocation307_spill] sm:$0xff] %v12846_v8  ;;  %v12870_v32 = vadd.f32 %v17929_v28, %v17932_v47 }
 0x630   : > { %17923 = vst [vmem:[#allocation232_spill] sm:$0xff] %v12850_v56 }
 0x631   : > { %17925 = vst [vmem:[#allocation308_spill] sm:$0xff] %v12854_v12  ;;  %v17935_v12 = vld [vmem:[#allocation212_spill] sm:$0xff] }
 0x632   : > { %17927 = vst [vmem:[#allocation233_spill] sm:$0xff] %v12858_v30  ;;  %v12878_v19 = vadd.f32 %v17935_v12, %v12587_v52  ;;  %v12882_v2 = vadd.f32 %v17935_v12, %v17937_v53  ;;  %v12886_v51 = vadd.f32 %v17935_v12, %v12595_v40  ;;  %v17942_v52 = vld [vmem:[#allocation163_spill] sm:$0xff] }
 0x633   : > { %17930 = vst [vmem:[#allocation204_spill] sm:$0xff] %v12862_v22  ;;  %v12897_v28 = vadd.f32 %v17942_v52, %v12606_v9  ;;  %v12905_v40 = vadd.f32 %v17942_v52, %v12614_v59  ;;  %v17949_v9 = vld [vmem:[#allocation192_spill] sm:$0xff]  ;;  %v17952_v59 = vld [vmem:[#allocation229_spill] sm:$0xff] }
 0x634   : > { %17931 = vst [vmem:[#allocation149_spill] sm:$0xff] %v12866_v41  ;;  %v17940_v41 = vld [vmem:[#allocation50_spill] sm:$0xff]  ;;  %v12934_v5 = vadd.f32 %v17949_v9, %v12634_v4 }
 0x635   : > { %17933 = vst [vmem:[#allocation276_spill] sm:$0xff] %v12870_v32  ;;  %v12890_v47 = vadd.f32 %v17935_v12, %v17940_v41  ;;  %v12909_v12 = vadd.f32 %v17942_v52, %v12618_v58  ;;  %v12911_v41 = vpop.permute.xlu2 %4098  ;;  %v17954_v58 = vld [vmem:[#allocation53_spill] sm:$0xff] }
 0x636   : > { %17934 = vst [vmem:[#allocation151_spill] sm:$0xff] %v12874_v18 }
 0x637   : > { %17936 = vst [vmem:[#allocation277_spill] sm:$0xff] %v12878_v19  ;;  %v17944_v19 = vld [vmem:[#allocation102_spill] sm:$0xff] }
 0x638   : > { %17938 = vst [vmem:[#allocation159_spill] sm:$0xff] %v12882_v2  ;;  %v12901_v53 = vadd.f32 %v17942_v52, %v17944_v19  ;;  %v12922_v19 = vadd.f32 %v17949_v9, %v12626_v44  ;;  %v17955_v52 = vld [vmem:[#allocation227_spill] sm:$0xff]  ;;  %v17961_v44 = vld [vmem:[#allocation266_spill] sm:$0xff]  ;;  %v12940_v2 = vpop.permute.xlu0 %3463 }
 0x639   : > { %17939 = vst [vmem:[#allocation46_spill] sm:$0xff] %v12886_v51  ;;  %v17960_v51 = vld [vmem:[#allocation14_spill] sm:$0xff] }
 0x63a   : > { %17941 = vst [vmem:[#allocation45_spill] sm:$0xff] %v12890_v47 }
 0x63b   : > { %17943 = vst [vmem:[#allocation120_spill] sm:$0xff] %v12897_v28  ;;  %v12918_v28 = vadd.f32 %v17949_v9, %v12622_v0  ;;  %v17958_v0 = vld [vmem:[#allocation57_spill] sm:$0xff] }
 0x63c   : > { %17945 = vst [vmem:[#allocation28_spill] sm:$0xff] %v12901_v53 }
 0x63d   : > { %17946 = vst [vmem:[#allocation15_spill] sm:$0xff] %v12905_v40  ;;  %v17953_v40 = vld [vmem:[#allocation264_spill] sm:$0xff] }
 0x63e   : > { %17947 = vst [vmem:[#allocation61_spill] sm:$0xff] %v12909_v12  ;;  %v3806_v53 = vadd.f32 %v17953_v40, %v17952_v59  ;;  %v3807_v12 = vadd.f32 %v17955_v52, %v17954_v58  ;;  %v17962_v40 = vld [vmem:[#allocation197_spill] sm:$0xff] }
 0x63f   : > { %17948 = vst [vmem:[#allocation237_spill] sm:$0xff] %v12911_v41  ;;  %v12930_v41 = vadd.f32 %v17949_v9, %v12630_v11  ;;  %v17967_v9 = vld [vmem:[#allocation156_spill] sm:$0xff] }
 0x640   : > { %17950 = vst [vmem:[#allocation223_spill] sm:$0xff] %v12918_v28  ;;  %v17959_v28 = vld [vmem:[#allocation265_spill] sm:$0xff]  ;;  %v12943_v59 = vadd.f32 %v17962_v40, %v3806_v53  ;;  %v12946_v58 = vadd.f32 %v17962_v40, %v3807_v12 }
 0x641   : > { %17951 = vst [vmem:[#allocation30_spill] sm:$0xff] %v12922_v19  ;;  %v3808_v47 = vadd.f32 %v17959_v28, %v17958_v0  ;;  %v3809_v19 = vadd.f32 %v17961_v44, %v17960_v51  ;;  %v5842_v44 = vld [vmem:[%s15364_s7 + $0x50] sm:$0xff] }
 0x642   : > { %17956 = vst [vmem:[#allocation63_spill] sm:$0xff] %v12930_v41  ;;  %v15798_v53 = vmax.f32 %v12943_v59, 0.0  ;;  %v15800_v0 = vmax.f32 %v12946_v58, 0.0  ;;  %v18016_v41 = vld [vmem:[#allocation125_spill] sm:$0xff] }
 0x643   : > { %17957 = vst [vmem:[#allocation254_spill] sm:$0xff] %v12934_v5  ;;  %v12951_v4 = vadd.f32 %v17962_v40, %v3808_v47  ;;  %v12954_v28 = vadd.f32 %v17962_v40, %v3809_v19  ;;  %v12966_v40 = vpop.permute.xlu1 %4063  ;;  %v5839_v19 = vld [vmem:[%s15364_s7 + $0x30] sm:$0xff]  ;;  %v5840_v47 = vld [vmem:[%s15364_s7 + $0x38] sm:$0xff]  ;;  %v18022_v5 = vmax.f32 %v12752_v16, 0.0 }
 0x644   : > { %17963 = vst [vmem:[#allocation239_spill] sm:$0xff] %v12943_v59  ;;  %v12971_v51 = vmul.f32 %v17967_v9, %v15798_v53  ;;  %v12976_v12 = vmul.f32 %v17967_v9, %v15800_v0  ;;  %4997 = vperm.xlu1 %5744, %v5839_v19   ;;  %5001 = vperm.xlu2 %5745, %v5840_v47   ;;  %v13006_v59 = vpop.permute.xlu2 %4455  ;;  %v17996_v19 = vld [vmem:[#allocation91_spill] sm:$0xff] }
 0x645   : > { %17964 = vst [vmem:[#allocation123_spill] sm:$0xff] %v12946_v58  ;;  %v15802_v52 = vmax.f32 %v12951_v4, 0.0  ;;  %v17971_v53 = vmax.f32 %v12954_v28, 0.0 }
 0x646   : > { %17965 = vst [vmem:[#allocation182_spill] sm:$0xff] %v12951_v4  ;;  %v5841_v4 = vld [vmem:[%s15364_s7 + $0x48] sm:$0xff] }
 0x647   : > { %17966 = vst [vmem:[#allocation49_spill] sm:$0xff] %v12954_v28  ;;  %v12986_v11 = vmul.f32 %v17967_v9, %v15802_v52  ;;  %v12991_v58 = vmul.f32 %v17967_v9, %v17971_v53  ;;  %v17976_v53 = vld [vmem:[#allocation314_spill] sm:$0xff]  ;;  %v17981_v52 = vld [vmem:[#allocation308_spill] sm:$0xff]  ;;  %v17995_v28 = vld [vmem:[#allocation271_spill] sm:$0xff] }
 0x648   : > { %17968 = vst [vmem:[#allocation86_spill] sm:$0xff] %v12971_v51  ;;  %v3847_v9 = vadd.f32 %v17996_v19, %v17995_v28  ;;  %v17999_v51 = vld [vmem:[#allocation104_spill] sm:$0xff]  ;;  %v18004_v19 = vmax.f32 %v12704_v45, 0.0  ;;  %v18056_v45 = vld [vmem:[#allocation69_spill] sm:$0xff] }
 0x649   : > { %17969 = vst [vmem:[#allocation75_spill] sm:$0xff] %v12976_v12  ;;  %v3849_v38 = vadd.f32 %v18000_v48, %v17999_v51  ;;  %v5843_v12 = vld [vmem:[%s15364_s7 + $0x60] sm:$0xff]  ;;  %v5844_v51 = vld [vmem:[%s15364_s7 + $0x68] sm:$0xff] }
 0x64a   : > { %17970 = vst [vmem:[#allocation190_spill] sm:$0xff] %v12986_v11  ;;  %v17994_v11 = vld [vmem:[#allocation81_spill] sm:$0xff]  ;;  %v13090_v60 = vmul.f32 %v18005_v3, %v18004_v19  ;;  %v18013_v19 = vmax.f32 %v12716_v35, 0.0  ;;  %v18053_v35 = vld [vmem:[#allocation279_spill] sm:$0xff] }
 0x64b   : > { %17972 = vst [vmem:[#allocation124_spill] sm:$0xff] %v12991_v58  ;;  %v13016_v58 = vpop.permute.xlu0 %3475  ;;  %v13037_v0 = vpop.permute.xlu1 %4078 }
 0x64c   : > { %5009 = vperm.xlu1 %5744, %v5841_v4   ;;  %5013 = vperm.xlu2 %5745, %v5842_v44   ;;  %v13058_v36 = vpop.permute.xlu2 %4470  ;;  %v3846_v4 = vadd.f32 %v17994_v11, %v17993_v61  ;;  %v17998_v44 = vld [vmem:[#allocation42_spill] sm:$0xff]  ;;  %18006 = vst [vmem:[#allocation71_spill] sm:$0xff] %v13090_v60 }
 0x64d   : > { %v3848_v22 = vadd.f32 %v17998_v44, %v17997_v33  ;;  %v18001_v61 = vld [vmem:[#allocation194_spill] sm:$0xff]  ;;  %v18007_v33 = vmax.f32 %v12708_v21, 0.0  ;;  %v5845_v21 = vld [vmem:[%s15364_s7 + $0x78] sm:$0xff] }
 0x64e   : > { %v13082_v11 = vadd.f32 %v18001_v61, %v3846_v4  ;;  %v13085_v28 = vadd.f32 %v18001_v61, %v3847_v9  ;;  %v13104_v9 = vadd.f32 %v18001_v61, %v3849_v38  ;;  %v18011_v4 = vmax.f32 %v12712_v42, 0.0  ;;  %v18054_v42 = vld [vmem:[#allocation322_spill] sm:$0xff] }
 0x64f   : > { %v13095_v48 = vmul.f32 %v18005_v3, %v18007_v33  ;;  %v13114_v33 = vmul.f32 %v18005_v3, %v18013_v19  ;;  %v18018_v38 = vmax.f32 %v12744_v34, 0.0  ;;  %v18020_v19 = vmax.f32 %v12748_v10, 0.0 }
 0x650   : > { %18002 = vst [vmem:[#allocation203_spill] sm:$0xff] %v13082_v11  ;;  %v13109_v44 = vmul.f32 %v18005_v3, %v18011_v4  ;;  %v18027_v34 = vmax.f32 %v12784_v15, 0.0  ;;  %v18029_v3 = vmax.f32 %v12788_v55, 0.0  ;;  %v18036_v15 = vmax.f32 %v12816_v7, 0.0 }
 0x651   : > { %18003 = vst [vmem:[#allocation250_spill] sm:$0xff] %v13085_v28  ;;  %v18024_v28 = vmax.f32 %v12780_v63, 0.0  ;;  %v18038_v55 = vmax.f32 %v12820_v50, 0.0  ;;  %v18045_v7 = vmax.f32 %v12850_v56, 0.0  ;;  %v18047_v63 = vld [vmem:[#allocation118_spill] sm:$0xff]  ;;  %v18048_v50 = vld [vmem:[#allocation211_spill] sm:$0xff] }
 0x652   : > { %18008 = vst [vmem:[#allocation132_spill] sm:$0xff] %v13095_v48  ;;  %v3582_v16 = vmul.f32 %v18048_v50, %v18047_v63 }
 0x653   : > { %v13070_v47 = vpop.permute.xlu0 %3487  ;;  %18010 = vst [vmem:[#allocation144_spill] sm:$0xff] %v13104_v9  ;;  %v13128_v4 = vpop.permute.xlu1 %4093  ;;  %v18031_v9 = vmax.f32 %v12792_v37, 0.0  ;;  %v18040_v37 = vmax.f32 %v17976_v53, 0.0 }
 0x654   : > { %5021 = vperm.xlu1 %5744, %v5843_v12   ;;  %5025 = vperm.xlu2 %5745, %v5844_v51   ;;  %v13101_v12 = vadd.f32 %v18001_v61, %v3848_v22  ;;  %18012 = vst [vmem:[#allocation317_spill] sm:$0xff] %v13109_v44  ;;  %v18015_v22 = vmax.f32 %v12740_v1, 0.0  ;;  %v13126_v61 = vmul.f32 %v18016_v41, %v18018_v38  ;;  %v18025_v38 = vld [vmem:[#allocation224_spill] sm:$0xff]  ;;  %v13196_v53 = vpop.permute.xlu2 %4485  ;;  %v18052_v1 = vld [vmem:[#allocation143_spill] sm:$0xff]  ;;  %v18113_v44 = vld [vmem:[#allocation310_spill] sm:$0xff] }
 0x655   : > { %18014 = vst [vmem:[#allocation153_spill] sm:$0xff] %v13114_v33  ;;  %v13135_v51 = vmul.f32 %v18016_v41, %v18020_v19  ;;  %v13145_v11 = vmul.f32 %v18025_v38, %v18024_v28  ;;  %v13150_v32 = vmul.f32 %v18025_v38, %v18027_v34  ;;  %v13155_v19 = vmul.f32 %v18025_v38, %v18029_v3  ;;  %v18112_v33 = vld [vmem:[#allocation240_spill] sm:$0xff] }
 0x656   : > { %18009 = vst [vmem:[#allocation316_spill] sm:$0xff] %v13101_v12  ;;  %v13121_v18 = vmul.f32 %v18016_v41, %v18015_v22  ;;  %v13140_v22 = vmul.f32 %v18016_v41, %v18022_v5  ;;  %v13160_v41 = vmul.f32 %v18025_v38, %v18031_v9  ;;  %v18033_v5 = vmax.f32 %v12812_v54, 0.0  ;;  %v18034_v12 = vld [vmem:[#allocation129_spill] sm:$0xff]  ;;  %v18043_v54 = vld [vmem:[#allocation134_spill] sm:$0xff] }
 0x657   : > { %18019 = vst [vmem:[#allocation146_spill] sm:$0xff] %v13126_v61  ;;  %v13170_v34 = vmul.f32 %v18034_v12, %v18036_v15  ;;  %v13175_v3 = vmul.f32 %v18034_v12, %v18038_v55  ;;  %v13180_v9 = vmul.f32 %v18034_v12, %v18040_v37  ;;  %v18042_v38 = vmax.f32 %v12846_v8, 0.0  ;;  %v18049_v55 = vld [vmem:[#allocation312_spill] sm:$0xff] }
 0x658   : > { %18017 = vst [vmem:[#allocation251_spill] sm:$0xff] %v13121_v18  ;;  %v13165_v28 = vmul.f32 %v18034_v12, %v18033_v5  ;;  %v13190_v15 = vmul.f32 %v18043_v54, %v18045_v7  ;;  %v3583_v10 = vmul.f32 %v18048_v50, %v18049_v55  ;;  %v18050_v37 = vld [vmem:[#allocation228_spill] sm:$0xff]  ;;  %v3818_v56 = vadd.f32 %v18053_v35, %v18052_v1  ;;  %v18062_v35 = vld [vmem:[#allocation217_spill] sm:$0xff] }
 0x659   : > { %18021 = vst [vmem:[#allocation252_spill] sm:$0xff] %v13135_v51  ;;  %v13185_v5 = vmul.f32 %v18043_v54, %v18042_v38  ;;  %v3584_v12 = vmul.f32 %v18048_v50, %v18050_v37  ;;  %v18051_v8 = vld [vmem:[#allocation44_spill] sm:$0xff]  ;;  %v18100_v51 = vld [vmem:[#allocation315_spill] sm:$0xff]  ;;  %v18110_v18 = vld [vmem:[#allocation169_spill] sm:$0xff]  ;;  %v3870_v48 = vadd.f32 %v18113_v44, %v18112_v33 }
 0x65a   : > { %18023 = vst [vmem:[#allocation318_spill] sm:$0xff] %v13140_v22  ;;  %v3585_v38 = vmul.f32 %v18048_v50, %v18051_v8  ;;  %v18055_v7 = vld [vmem:[#allocation280_spill] sm:$0xff]  ;;  %v18061_v50 = vld [vmem:[#allocation38_spill] sm:$0xff] }
 0x65b   : > { %18026 = vst [vmem:[#allocation74_spill] sm:$0xff] %v13145_v11  ;;  %v3819_v13 = vadd.f32 %v18055_v7, %v18054_v42  ;;  %v5846_v42 = vld [vmem:[%s15364_s7 + $0x80] sm:$0xff]  ;;  %v3736_v1 = vadd.f32 %v3584_v12, %v18062_v35  ;;  %v18089_v11 = vld [vmem:[#allocation245_spill] sm:$0xff] }
 0x65c   : > { %18028 = vst [vmem:[#allocation77_spill] sm:$0xff] %v13150_v32  ;;  %5033 = vperm.xlu1 %5744, %v5845_v21   ;;  %v13215_v32 = vpop.permute.xlu0 %3499  ;;  %5037 = vperm.xlu2 %5745, %v5846_v42   ;;  %v18063_v21 = vld [vmem:[#allocation218_spill] sm:$0xff]  ;;  %v18083_v42 = vld [vmem:[#allocation213_spill] sm:$0xff] }
 0x65d   : > { %18030 = vst [vmem:[#allocation255_spill] sm:$0xff] %v13155_v19  ;;  %v3737_v7 = vadd.f32 %v3585_v38, %v18063_v21  ;;  %v18074_v38 = vmax.f32 %v17981_v52, 0.0  ;;  %v18082_v35 = vld [vmem:[#allocation242_spill] sm:$0xff]  ;;  %v18084_v21 = vld [vmem:[#allocation85_spill] sm:$0xff] }
 0x65e   : > { %18032 = vst [vmem:[#allocation288_spill] sm:$0xff] %v13160_v41  ;;  %v18060_v41 = vld [vmem:[#allocation207_spill] sm:$0xff]  ;;  %v18085_v52 = vld [vmem:[#allocation225_spill] sm:$0xff]  ;;  %v18106_v22 = vld [vmem:[#allocation302_spill] sm:$0xff] }
 0x65f   : > { %18035 = vst [vmem:[#allocation55_spill] sm:$0xff] %v13165_v28  ;;  %v3821_v19 = vadd.f32 %v18061_v50, %v18060_v41 }
 0x660   : > { %18037 = vst [vmem:[#allocation289_spill] sm:$0xff] %v13170_v34  ;;  %v18059_v34 = vld [vmem:[#allocation281_spill] sm:$0xff] }
 0x661   : > { %18039 = vst [vmem:[#allocation66_spill] sm:$0xff] %v13175_v3  ;;  %v18058_v3 = vld [vmem:[#allocation323_spill] sm:$0xff] }
 0x662   : > { %18041 = vst [vmem:[#allocation128_spill] sm:$0xff] %v13180_v9  ;;  %v3820_v28 = vadd.f32 %v18059_v34, %v18058_v3  ;;  %v18067_v34 = vld [vmem:[#allocation126_spill] sm:$0xff] }
 0x663   : > { %18044 = vst [vmem:[#allocation290_spill] sm:$0xff] %v13185_v5  ;;  %v18057_v5 = vld [vmem:[#allocation113_spill] sm:$0xff]  ;;  %v13241_v12 = vadd.f32 %v18067_v34, %v3736_v1  ;;  %v13260_v1 = vpop.permute.xlu1 %4450 }
 0x664   : > { %18046 = vst [vmem:[#allocation170_spill] sm:$0xff] %v13190_v15  ;;  %v3734_v15 = vadd.f32 %v3582_v16, %v18056_v45  ;;  %v3735_v9 = vadd.f32 %v3583_v10, %v18057_v5  ;;  %v18064_v45 = vld [vmem:[#allocation313_spill] sm:$0xff] }
 0x665   : > { %v13223_v16 = vadd.f32 %v18064_v45, %v3818_v56  ;;  %v13226_v10 = vadd.f32 %v18064_v45, %v3819_v13  ;;  %v13235_v5 = vadd.f32 %v18064_v45, %v3820_v28  ;;  %v13238_v50 = vadd.f32 %v18064_v45, %v3821_v19  ;;  %18072 = vst [vmem:[#allocation80_spill] sm:$0xff] %v13241_v12  ;;  %v18087_v45 = vld [vmem:[#allocation96_spill] sm:$0xff] }
 0x666   : > { %v13229_v3 = vadd.f32 %v18067_v34, %v3734_v15  ;;  %v13232_v41 = vadd.f32 %v18067_v34, %v3735_v9  ;;  %v13244_v56 = vadd.f32 %v18067_v34, %v3737_v7  ;;  %v13251_v9 = vmul.f32 %v18043_v54, %v18074_v38  ;;  %v18078_v38 = vld [vmem:[#allocation41_spill] sm:$0xff]  ;;  %v18088_v34 = vld [vmem:[#allocation304_spill] sm:$0xff] }
 0x667   : > { %18065 = vst [vmem:[#allocation54_spill] sm:$0xff] %v13223_v16  ;;  %v15860_v13 = vmax.f32 %v13223_v16, 0.0  ;;  %v18076_v28 = vmax.f32 %v12858_v30, 0.0  ;;  %v3858_v30 = vadd.f32 %v18083_v42, %v18082_v35  ;;  %v3859_v7 = vadd.f32 %v18085_v52, %v18084_v21  ;;  %v18091_v42 = vld [vmem:[#allocation246_spill] sm:$0xff]  ;;  %v13301_v21 = vpop.permute.xlu2 %4500 }
 0x668   : > { %18066 = vst [vmem:[#allocation179_spill] sm:$0xff] %v13226_v10  ;;  %v3861_v16 = vadd.f32 %v18089_v11, %v18088_v34  ;;  %v18094_v34 = vmax.f32 %v13235_v5, 0.0 }
 0x669   : > { %18068 = vst [vmem:[#allocation137_spill] sm:$0xff] %v13229_v3  ;;  %v13256_v19 = vmul.f32 %v18043_v54, %v18076_v28  ;;  %v13269_v15 = vmul.f32 %v18078_v38, %v15860_v13  ;;  %v18080_v54 = vmax.f32 %v13226_v10, 0.0  ;;  %v18090_v13 = vld [vmem:[#allocation39_spill] sm:$0xff]  ;;  %v13292_v35 = vadd.f32 %v18091_v42, %v3858_v30 }
 0x66a   : > { %18069 = vst [vmem:[#allocation22_spill] sm:$0xff] %v13232_v41  ;;  %v3603_v10 = vmul.f32 %v18090_v13, %v18049_v55  ;;  %v13295_v52 = vadd.f32 %v18091_v42, %v3859_v7  ;;  %v3604_v11 = vmul.f32 %v18090_v13, %v18050_v37  ;;  %v13309_v30 = vmul.f32 %v18078_v38, %v18094_v34  ;;  %v18101_v34 = vld [vmem:[#allocation117_spill] sm:$0xff] }
 0x66b   : > { %18070 = vst [vmem:[#allocation319_spill] sm:$0xff] %v13235_v5  ;;  %v13274_v28 = vmul.f32 %v18078_v38, %v18080_v54  ;;  %v5847_v54 = vld [vmem:[%s15364_s7 + $0x90] sm:$0xff]  ;;  %v18096_v7 = vmax.f32 %v13238_v50, 0.0 }
 0x66c   : > { %18071 = vst [vmem:[#allocation141_spill] sm:$0xff] %v13238_v50  ;;  %5045 = vperm.xlu1 %5744, %v5847_v54   ;;  %v13330_v50 = vpop.permute.xlu0 %3511 }
 0x66d   : > { %18073 = vst [vmem:[#allocation105_spill] sm:$0xff] %v13244_v56  ;;  %v13314_v54 = vmul.f32 %v18078_v38, %v18096_v7  ;;  %v18102_v38 = vld [vmem:[#allocation268_spill] sm:$0xff] }
 0x66e   : > { %18075 = vst [vmem:[#allocation294_spill] sm:$0xff] %v13251_v9  ;;  %v13333_v7 = vadd.f32 %v3604_v11, %v18102_v38  ;;  %v18114_v11 = vld [vmem:[#allocation36_spill] sm:$0xff] }
 0x66f   : > { %18077 = vst [vmem:[#allocation295_spill] sm:$0xff] %v13256_v19  ;;  %v18086_v19 = vld [vmem:[#allocation109_spill] sm:$0xff]  ;;  %v18115_v38 = vld [vmem:[#allocation64_spill] sm:$0xff] }
 0x670   : > { %18079 = vst [vmem:[#allocation89_spill] sm:$0xff] %v13269_v15  ;;  %v3860_v9 = vadd.f32 %v18087_v45, %v18086_v19  ;;  %v3602_v15 = vmul.f32 %v18090_v13, %v18047_v63  ;;  %v3605_v19 = vmul.f32 %v18090_v13, %v18051_v8  ;;  %v5848_v45 = vld [vmem:[%s15364_s7 + $0x98] sm:$0xff]  ;;  %v13320_v13 = vadd.f32 %v18091_v42, %v3861_v16  ;;  %v18104_v16 = vld [vmem:[#allocation216_spill] sm:$0xff] }
 0x671   : > { %18081 = vst [vmem:[#allocation32_spill] sm:$0xff] %v13274_v28  ;;  %5049 = vperm.xlu2 %5745, %v5848_v45   ;;  %v3871_v60 = vadd.f32 %v18115_v38, %v18114_v11  ;;  %v18125_v38 = vld [vmem:[#allocation237_spill] sm:$0xff] }
 0x672   : > { %18092 = vst [vmem:[#allocation33_spill] sm:$0xff] %v13292_v35  ;;  %v13317_v28 = vadd.f32 %v18091_v42, %v3860_v9  ;;  %v13325_v5 = vadd.f32 %v3602_v15, %v18100_v51  ;;  %v18103_v9 = vld [vmem:[#allocation230_spill] sm:$0xff]  ;;  %v18105_v42 = vld [vmem:[#allocation176_spill] sm:$0xff] }
 0x673   : > { %18093 = vst [vmem:[#allocation84_spill] sm:$0xff] %v13295_v52  ;;  %v3830_v61 = vadd.f32 %v18105_v42, %v18104_v16  ;;  %v18107_v35 = vld [vmem:[#allocation180_spill] sm:$0xff]  ;;  %v18108_v52 = vld [vmem:[#allocation166_spill] sm:$0xff] }
 0x674   : > { %18095 = vst [vmem:[#allocation148_spill] sm:$0xff] %v13309_v30  ;;  %v13328_v30 = vadd.f32 %v3603_v10, %v18101_v34  ;;  %v3831_v45 = vadd.f32 %v18107_v35, %v18106_v22  ;;  %v18109_v51 = vld [vmem:[#allocation58_spill] sm:$0xff]  ;;  %v18111_v10 = vld [vmem:[#allocation248_spill] sm:$0xff]  ;;  %v18120_v22 = vld [vmem:[#allocation157_spill] sm:$0xff] }
 0x675   : > { %18097 = vst [vmem:[#allocation78_spill] sm:$0xff] %v13314_v54  ;;  %v13336_v54 = vadd.f32 %v3605_v19, %v18103_v9  ;;  %v3832_v15 = vadd.f32 %v18109_v51, %v18108_v52  ;;  %v3833_v34 = vadd.f32 %v18111_v10, %v18110_v18  ;;  %v18116_v19 = vld [vmem:[#allocation231_spill] sm:$0xff]  ;;  %v18119_v42 = vld [vmem:[#allocation158_spill] sm:$0xff]  ;;  %v3616_v10 = vmul.f32 %v12940_v2, %v18050_v37 }
 0x676   : > { %18098 = vst [vmem:[#allocation65_spill] sm:$0xff] %v13317_v28  ;;  %v13351_v9 = vadd.f32 %v18116_v19, %v3830_v61  ;;  %v13354_v16 = vadd.f32 %v18116_v19, %v3831_v45  ;;  %v3872_v35 = vadd.f32 %v18120_v22, %v18119_v42  ;;  %v18122_v52 = vld [vmem:[#allocation191_spill] sm:$0xff]  ;;  %v13368_v61 = vpop.permute.xlu1 %4465  ;;  %v13373_v42 = vadd.f32 %v18125_v38, %v3870_v48  ;;  %v18144_v28 = vld [vmem:[#allocation249_spill] sm:$0xff] }
 0x677   : > { %18099 = vst [vmem:[#allocation267_spill] sm:$0xff] %v13320_v13  ;;  %v3873_v51 = vadd.f32 %v18122_v52, %v18121_v25  ;;  %v13363_v44 = vadd.f32 %v18116_v19, %v3832_v15  ;;  %v13366_v33 = vadd.f32 %v18116_v19, %v3833_v34  ;;  %v13376_v25 = vadd.f32 %v18125_v38, %v3871_v60  ;;  %v5849_v15 = vld [vmem:[%s15364_s7 + $0xa8] sm:$0xff]  ;;  %v5850_v60 = vld [vmem:[%s15364_s7 + $0xb0] sm:$0xff]  ;;  %v18143_v13 = vld [vmem:[#allocation285_spill] sm:$0xff] }
 0x678   : > { %18117 = vst [vmem:[#allocation56_spill] sm:$0xff] %v13351_v9  ;;  %v15872_v45 = vmax.f32 %v13351_v9, 0.0  ;;  %v15875_v11 = vmax.f32 %v13354_v16, 0.0  ;;  %5057 = vperm.xlu1 %5744, %v5849_v15   ;;  %v3614_v22 = vmul.f32 %v12940_v2, %v18047_v63  ;;  %v3615_v52 = vmul.f32 %v12940_v2, %v18049_v55  ;;  %v18130_v19 = vld [vmem:[#allocation72_spill] sm:$0xff] }
 0x679   : > { %18118 = vst [vmem:[#allocation236_spill] sm:$0xff] %v13354_v16  ;;  %5061 = vperm.xlu2 %5745, %v5850_v60   ;;  %v13391_v48 = vadd.f32 %v18125_v38, %v3872_v35  ;;  %v13394_v15 = vadd.f32 %v18125_v38, %v3873_v51  ;;  %v3617_v18 = vmul.f32 %v12940_v2, %v18051_v8  ;;  %v18133_v35 = vmax.f32 %v13363_v44, 0.0  ;;  %v13420_v2 = vpop.permute.xlu2 %4515  ;;  %v18141_v16 = vld [vmem:[#allocation92_spill] sm:$0xff] }
 0x67a   : > { %18123 = vst [vmem:[#allocation259_spill] sm:$0xff] %v13363_v44  ;;  %v13403_v34 = vmul.f32 %v18130_v19, %v15872_v45  ;;  %v13408_v60 = vmul.f32 %v18130_v19, %v15875_v11  ;;  %v18135_v38 = vmax.f32 %v13366_v33, 0.0  ;;  %v18140_v11 = vld [vmem:[#allocation24_spill] sm:$0xff]  ;;  %v18142_v44 = vld [vmem:[#allocation210_spill] sm:$0xff] }
 0x67b   : > { %18124 = vst [vmem:[#allocation260_spill] sm:$0xff] %v13366_v33  ;;  %v13413_v51 = vmul.f32 %v18130_v19, %v18133_v35  ;;  %v3842_v9 = vadd.f32 %v18141_v16, %v18140_v11  ;;  %v3843_v35 = vadd.f32 %v18143_v13, %v18142_v44  ;;  %v18145_v33 = vld [vmem:[#allocation68_spill] sm:$0xff]  ;;  %v3627_v11 = vmul.f32 %v13016_v58, %v18049_v55 }
 0x67c   : > { %18126 = vst [vmem:[#allocation73_spill] sm:$0xff] %v13373_v42 }
 0x67d   : > { %18127 = vst [vmem:[#allocation274_spill] sm:$0xff] %v13376_v25  ;;  %v18139_v25 = vld [vmem:[#allocation127_spill] sm:$0xff]  ;;  %v13448_v16 = vadd.f32 %v12966_v40, %v3843_v35 }
 0x67e   : > { %18128 = vst [vmem:[#allocation253_spill] sm:$0xff] %v13391_v48  ;;  %v18138_v48 = vld [vmem:[#allocation278_spill] sm:$0xff]  ;;  %v13426_v42 = vadd.f32 %v3615_v52, %v18139_v25  ;;  %v13442_v25 = vpop.permute.xlu0 %3523  ;;  %v13445_v52 = vadd.f32 %v12966_v40, %v3842_v9  ;;  %v3626_v9 = vmul.f32 %v13016_v58, %v18047_v63 }
 0x67f   : > { %18129 = vst [vmem:[#allocation238_spill] sm:$0xff] %v13394_v15  ;;  %v13418_v15 = vmul.f32 %v18130_v19, %v18135_v38  ;;  %v13423_v45 = vadd.f32 %v3614_v22, %v18138_v48  ;;  %v13436_v19 = vadd.f32 %v3617_v18, %v18145_v33  ;;  %v18146_v38 = vld [vmem:[#allocation70_spill] sm:$0xff]  ;;  %v18149_v48 = vld [vmem:[#allocation215_spill] sm:$0xff]  ;;  %v18154_v18 = vmax.f32 %v12658_v46, 0.0 }
 0x680   : > { %18131 = vst [vmem:[#allocation175_spill] sm:$0xff] %v13403_v34  ;;  %v18148_v22 = vld [vmem:[#allocation138_spill] sm:$0xff] }
 0x681   : > { %18132 = vst [vmem:[#allocation26_spill] sm:$0xff] %v13408_v60  ;;  %v3845_v34 = vadd.f32 %v18149_v48, %v18148_v22  ;;  %v18157_v48 = vmax.f32 %v12662_v24, 0.0  ;;  %v18160_v22 = vld [vmem:[#allocation287_spill] sm:$0xff] }
 0x682   : > { %18134 = vst [vmem:[#allocation206_spill] sm:$0xff] %v13413_v51  ;;  %v13433_v51 = vadd.f32 %v3616_v10, %v18144_v28  ;;  %v18153_v28 = vmax.f32 %v12654_v49, 0.0  ;;  %v13458_v10 = vmul.f32 %v13006_v59, %v18154_v18  ;;  %v18158_v18 = vmax.f32 %v12666_v14, 0.0  ;;  %v18164_v14 = vld [vmem:[#allocation282_spill] sm:$0xff]  ;;  %v18166_v49 = vld [vmem:[#allocation283_spill] sm:$0xff] }
 0x683   : > { %18136 = vst [vmem:[#allocation326_spill] sm:$0xff] %v13418_v15  ;;  %v18147_v15 = vld [vmem:[#allocation286_spill] sm:$0xff]  ;;  %v13464_v33 = vadd.f32 %v12966_v40, %v3845_v34 }
 0x684   : > { %18137 = vst [vmem:[#allocation221_spill] sm:$0xff] %v13420_v2  ;;  %v3844_v60 = vadd.f32 %v18147_v15, %v18146_v38  ;;  %v13453_v13 = vmul.f32 %v13006_v59, %v18153_v28  ;;  %v15891_v15 = vmax.f32 %v13445_v52, 0.0  ;;  %v3628_v38 = vmul.f32 %v13016_v58, %v18050_v37  ;;  %v18170_v2 = vld [vmem:[#allocation59_spill] sm:$0xff] }
 0x685   : > { %18150 = vst [vmem:[#allocation112_spill] sm:$0xff] %v13442_v25  ;;  %v13484_v28 = vmul.f32 %v13006_v59, %v18157_v48  ;;  %v13489_v35 = vmul.f32 %v13006_v59, %v18158_v18  ;;  %v18162_v48 = vmax.f32 %v13448_v16, 0.0  ;;  %v13507_v59 = vadd.f32 %v3626_v9, %v18164_v14  ;;  %v18165_v18 = vld [vmem:[#allocation173_spill] sm:$0xff] }
 0x686   : > { %18151 = vst [vmem:[#allocation51_spill] sm:$0xff] %v13445_v52  ;;  %v13461_v44 = vadd.f32 %v12966_v40, %v3844_v60  ;;  %v3629_v60 = vmul.f32 %v13016_v58, %v18051_v8  ;;  %v5851_v40 = vld [vmem:[%s15364_s7 + $0xc0] sm:$0xff]  ;;  %v13491_v58 = vpop.permute.xlu1 %4480  ;;  %v13499_v34 = vmul.f32 %v18160_v22, %v15891_v15  ;;  %v13510_v46 = vadd.f32 %v3627_v11, %v18165_v18  ;;  %v18168_v52 = vld [vmem:[#allocation327_spill] sm:$0xff]  ;;  %v18178_v18 = vld [vmem:[#allocation97_spill] sm:$0xff] }
 0x687   : > { %18152 = vst [vmem:[#allocation306_spill] sm:$0xff] %v13448_v16  ;;  %5069 = vperm.xlu1 %5744, %v5851_v40   ;;  %v5852_v40 = vld [vmem:[%s15364_s7 + $0xc8] sm:$0xff]  ;;  %v13504_v24 = vmul.f32 %v18160_v22, %v18162_v48  ;;  %v18171_v16 = vld [vmem:[#allocation16_spill] sm:$0xff]  ;;  %v18174_v9 = vmax.f32 %v13464_v33, 0.0 }
 0x688   : > { %18155 = vst [vmem:[#allocation198_spill] sm:$0xff] %v13461_v44  ;;  %5073 = vperm.xlu2 %5745, %v5852_v40   ;;  %v18167_v40 = vld [vmem:[#allocation17_spill] sm:$0xff]  ;;  %v18169_v15 = vld [vmem:[#allocation83_spill] sm:$0xff]  ;;  %v3855_v62 = vadd.f32 %v18171_v16, %v18170_v2  ;;  %v18172_v48 = vmax.f32 %v13461_v44, 0.0  ;;  %v18182_v16 = vmax.f32 %v12688_v17, 0.0 }
 0x689   : > { %18156 = vst [vmem:[#allocation226_spill] sm:$0xff] %v13464_v33  ;;  %v13516_v25 = vadd.f32 %v3629_v60, %v18167_v40  ;;  %v13530_v11 = vmul.f32 %v18160_v22, %v18174_v9  ;;  %v18179_v40 = vld [vmem:[#allocation90_spill] sm:$0xff]  ;;  %v13552_v9 = vpop.permute.xlu2 %4530  ;;  %v18188_v33 = vmax.f32 %v12696_v39, 0.0  ;;  %v18196_v39 = vld [vmem:[#allocation20_spill] sm:$0xff] }
 0x68a   : > { %18159 = vst [vmem:[#allocation201_spill] sm:$0xff] %v13491_v58  ;;  %v13513_v58 = vadd.f32 %v3628_v38, %v18166_v49  ;;  %v13525_v14 = vmul.f32 %v18160_v22, %v18172_v48  ;;  %v18176_v49 = vld [vmem:[#allocation165_spill] sm:$0xff]  ;;  %v18177_v38 = vld [vmem:[#allocation107_spill] sm:$0xff]  ;;  %v13540_v2 = vadd.f32 %v13037_v0, %v3855_v62  ;;  %v18183_v22 = vmax.f32 %v12692_v26, 0.0 }
 0x68b   : > { %18161 = vst [vmem:[#allocation47_spill] sm:$0xff] %v13499_v34  ;;  %v3854_v34 = vadd.f32 %v18169_v15, %v18168_v52  ;;  %v3856_v60 = vadd.f32 %v18177_v38, %v18176_v49  ;;  %v13545_v15 = vmul.f32 %v13058_v36, %v18182_v16  ;;  %v3638_v62 = vmul.f32 %v13070_v47, %v18047_v63 }
 0x68c   : > { %18163 = vst [vmem:[#allocation99_spill] sm:$0xff] %v13504_v24  ;;  %v3857_v24 = vadd.f32 %v18179_v40, %v18178_v18  ;;  %v13550_v48 = vmul.f32 %v13058_v36, %v18183_v22  ;;  %v3639_v38 = vmul.f32 %v13070_v47, %v18049_v55  ;;  %v3640_v16 = vmul.f32 %v13070_v47, %v18050_v37  ;;  %v13570_v22 = vpop.permute.xlu0 %3535 }
 0x68d   : > { %18173 = vst [vmem:[#allocation291_spill] sm:$0xff] %v13525_v14  ;;  %v13537_v52 = vadd.f32 %v13037_v0, %v3854_v34  ;;  %v13555_v49 = vadd.f32 %v13037_v0, %v3856_v60  ;;  %v3641_v60 = vmul.f32 %v13070_v47, %v18051_v8  ;;  %v13577_v44 = vmul.f32 %v13058_v36, %v18188_v33  ;;  %v5853_v47 = vld [vmem:[%s15364_s7 + $0xd8] sm:$0xff]  ;;  %v18204_v14 = vld [vmem:[#allocation195_spill] sm:$0xff] }
 0x68e   : > { %18175 = vst [vmem:[#allocation21_spill] sm:$0xff] %v13530_v11  ;;  %v13558_v34 = vadd.f32 %v13037_v0, %v3857_v24  ;;  %v18189_v18 = vmax.f32 %v12700_v57, 0.0  ;;  %v18192_v24 = vld [vmem:[#allocation297_spill] sm:$0xff]  ;;  %v18194_v0 = vmax.f32 %v13540_v2, 0.0  ;;  %v13598_v57 = vadd.f32 %v3638_v62, %v18196_v39  ;;  %v18205_v39 = vld [vmem:[#allocation87_spill] sm:$0xff] }
 0x68f   : > { %18180 = vst [vmem:[#allocation292_spill] sm:$0xff] %v13537_v52  ;;  %5081 = vperm.xlu1 %5744, %v5853_v47   ;;  %v18191_v26 = vmax.f32 %v13537_v52, 0.0  ;;  %v5854_v47 = vld [vmem:[%s15364_s7 + $0xe0] sm:$0xff]  ;;  %v18200_v52 = vld [vmem:[#allocation257_spill] sm:$0xff]  ;;  %v3867_v62 = vadd.f32 %v18205_v39, %v18204_v14 }
 0x690   : > { %18181 = vst [vmem:[#allocation185_spill] sm:$0xff] %v13540_v2  ;;  %v13582_v40 = vmul.f32 %v13058_v36, %v18189_v18  ;;  %v13595_v33 = vmul.f32 %v18192_v24, %v18194_v0  ;;  %v18198_v36 = vld [vmem:[#allocation256_spill] sm:$0xff]  ;;  %5085 = vperm.xlu2 %5745, %v5854_v47   ;;  %v13607_v11 = vadd.f32 %v3640_v16, %v18200_v52  ;;  %v18202_v2 = vld [vmem:[#allocation305_spill] sm:$0xff]  ;;  %v18203_v0 = vld [vmem:[#allocation214_spill] sm:$0xff]  ;;  %v13628_v16 = vpop.permute.xlu1 %4495 }
 0x691   : > { %18184 = vst [vmem:[#allocation293_spill] sm:$0xff] %v13552_v9  ;;  %v13590_v17 = vmul.f32 %v18192_v24, %v18191_v26  ;;  %v13601_v18 = vadd.f32 %v3639_v38, %v18198_v36  ;;  %v18201_v26 = vld [vmem:[#allocation258_spill] sm:$0xff]  ;;  %v18208_v9 = vld [vmem:[#allocation199_spill] sm:$0xff] }
 0x692   : > { %18185 = vst [vmem:[#allocation193_spill] sm:$0xff] %v13555_v49  ;;  %v18207_v38 = vld [vmem:[#allocation186_spill] sm:$0xff]  ;;  %v18210_v47 = vld [vmem:[#allocation131_spill] sm:$0xff] }
 0x693   : > { %18186 = vst [vmem:[#allocation189_spill] sm:$0xff] %v13558_v34  ;;  %v13626_v52 = vadd.f32 %v18210_v47, %v13328_v30  ;;  %v13646_v30 = vadd.f32 %v18210_v47, %v13336_v54  ;;  %v3651_v54 = vmul.f32 %v13215_v32, %v18049_v55 }
 0x694   : > { %18187 = vst [vmem:[#allocation202_spill] sm:$0xff] %v13570_v22  ;;  %v18206_v22 = vld [vmem:[#allocation196_spill] sm:$0xff] }
 0x695   : > { %18190 = vst [vmem:[#allocation222_spill] sm:$0xff] %v13582_v40  ;;  %v3868_v36 = vadd.f32 %v18207_v38, %v18206_v22  ;;  %v13622_v40 = vadd.f32 %v18210_v47, %v13325_v5  ;;  %v13642_v5 = vadd.f32 %v18210_v47, %v13333_v7  ;;  %v15909_v39 = vmax.f32 %v13646_v30, 0.0 }
 0x696   : > { %18193 = vst [vmem:[#allocation328_spill] sm:$0xff] %v13590_v17  ;;  %v13610_v17 = vadd.f32 %v3641_v60, %v18201_v26  ;;  %v18215_v60 = vmax.f32 %v13558_v34, 0.0  ;;  %v3650_v7 = vmul.f32 %v13215_v32, %v18047_v63  ;;  %v3652_v38 = vmul.f32 %v13215_v32, %v18050_v37 }
 0x697   : > { %18195 = vst [vmem:[#allocation212_spill] sm:$0xff] %v13595_v33  ;;  %v3866_v33 = vadd.f32 %v18203_v0, %v18202_v2  ;;  %v18213_v2 = vmax.f32 %v13555_v49, 0.0  ;;  %v15906_v26 = vmax.f32 %v13622_v40, 0.0  ;;  %v15907_v0 = vmax.f32 %v13626_v52, 0.0  ;;  %v18232_v49 = vld [vmem:[#allocation321_spill] sm:$0xff] }
 0x698   : > { %18197 = vst [vmem:[#allocation94_spill] sm:$0xff] %v13598_v57  ;;  %v13638_v22 = vmul.f32 %v18192_v24, %v18215_v60  ;;  %v3653_v47 = vmul.f32 %v13215_v32, %v18051_v8  ;;  %v13692_v32 = vmul.f32 %v13196_v53, %v15909_v39  ;;  %v13709_v39 = vpop.permute.xlu0 %3547 }
 0x699   : > { %18199 = vst [vmem:[#allocation50_spill] sm:$0xff] %v13601_v18  ;;  %v18209_v18 = vld [vmem:[#allocation183_spill] sm:$0xff]  ;;  %v13633_v14 = vmul.f32 %v18192_v24, %v18213_v2  ;;  %v15908_v24 = vmax.f32 %v13642_v5, 0.0  ;;  %v13672_v2 = vpop.permute.xlu2 %4545  ;;  %v13677_v60 = vmul.f32 %v13196_v53, %v15906_v26  ;;  %v18223_v26 = vld [vmem:[#allocation320_spill] sm:$0xff] }
 0x69a   : > { %v3869_v57 = vadd.f32 %v18209_v18, %v18208_v9  ;;  %18211 = vst [vmem:[#allocation163_spill] sm:$0xff] %v13622_v40  ;;  %v13649_v9 = vadd.f32 %v13128_v4, %v3866_v33  ;;  %v13652_v18 = vadd.f32 %v13128_v4, %v3867_v62  ;;  %v13663_v33 = vadd.f32 %v13128_v4, %v3868_v36 }
 0x69b   : > { %18212 = vst [vmem:[#allocation102_spill] sm:$0xff] %v13626_v52  ;;  %v13682_v36 = vmul.f32 %v13196_v53, %v15907_v0  ;;  %v18224_v0 = vld [vmem:[#allocation48_spill] sm:$0xff]  ;;  %v18244_v52 = vmax.f32 %v12676_v6, 0.0 }
 0x69c   : > { %18214 = vst [vmem:[#allocation192_spill] sm:$0xff] %v13633_v14  ;;  %v13666_v62 = vadd.f32 %v13128_v4, %v3869_v57  ;;  %v13687_v57 = vmul.f32 %v13196_v53, %v15908_v24  ;;  %v5855_v4 = vld [vmem:[%s15364_s7 + $0xf0] sm:$0xff] }
 0x69d   : > { %18216 = vst [vmem:[#allocation229_spill] sm:$0xff] %v13638_v22  ;;  %5093 = vperm.xlu1 %5744, %v5855_v4   ;;  %v5856_v4 = vld [vmem:[%s15364_s7 + $0xf8] sm:$0xff] }
 0x69e   : > { %18217 = vst [vmem:[#allocation264_spill] sm:$0xff] %v13642_v5  ;;  %5097 = vperm.xlu2 %5745, %v5856_v4   ;;  %v18233_v4 = vld [vmem:[#allocation136_spill] sm:$0xff] }
 0x69f   : > { %18218 = vst [vmem:[#allocation53_spill] sm:$0xff] %v13646_v30  ;;  %v13729_v30 = vadd.f32 %v3652_v38, %v18232_v49  ;;  %v13732_v5 = vadd.f32 %v3653_v47, %v18233_v4  ;;  %v3663_v4 = vmul.f32 %v13330_v50, %v18049_v55 }
 0x6a0   : > { %18219 = vst [vmem:[#allocation227_spill] sm:$0xff] %v13649_v9  ;;  %v18226_v9 = vmax.f32 %v12642_v27, 0.0 }
 0x6a1   : > { %18220 = vst [vmem:[#allocation57_spill] sm:$0xff] %v13652_v18  ;;  %v18225_v18 = vmax.f32 %v12638_v31, 0.0  ;;  %v13807_v40 = vpop.permute.xlu2 %4560  ;;  %v18300_v31 = vld [vmem:[#allocation318_spill] sm:$0xff] }
 0x6a2   : > { %18221 = vst [vmem:[#allocation265_spill] sm:$0xff] %v13663_v33  ;;  %v13701_v33 = vadd.f32 %v3651_v54, %v18224_v0  ;;  %v4639_v53 = vmul.f32 %v13260_v1, %v18226_v9 }
 0x6a3   : > { %18222 = vst [vmem:[#allocation14_spill] sm:$0xff] %v13666_v62  ;;  %v13698_v62 = vadd.f32 %v3650_v7, %v18223_v26  ;;  %v4638_v24 = vmul.f32 %v13260_v1, %v18225_v18  ;;  %v18227_v26 = vmax.f32 %v12646_v23, 0.0  ;;  %v18228_v7 = vmax.f32 %v12650_v20, 0.0  ;;  %v18229_v18 = vld [vmem:[#allocation135_spill] sm:$0xff]  ;;  %v18275_v20 = vld [vmem:[#allocation94_spill] sm:$0xff] }
 0x6a4   : > { %v13722_v34 = vadd.f32 %v18229_v18, %v13423_v45  ;;  %v13726_v9 = vadd.f32 %v18229_v18, %v13426_v42 }
 0x6a5   : > { %v4640_v0 = vmul.f32 %v13260_v1, %v18227_v26  ;;  %v4641_v54 = vmul.f32 %v13260_v1, %v18228_v7  ;;  %v13736_v26 = vadd.f32 %v18229_v18, %v13433_v51  ;;  %v13740_v1 = vadd.f32 %v18229_v18, %v13436_v19  ;;  %v13752_v19 = vpop.permute.xlu1 %4510 }
 0x6a6   : > { %18230 = vst [vmem:[#allocation266_spill] sm:$0xff] %v13722_v34  ;;  %v4790_v45 = vadd.f32 %v13453_v13, %v4638_v24  ;;  %v4834_v7 = vadd.f32 %v13458_v10, %v4639_v53  ;;  %v15914_v42 = vmax.f32 %v13722_v34, 0.0  ;;  %v15915_v49 = vmax.f32 %v13726_v9, 0.0 }
 0x6a7   : > { %18231 = vst [vmem:[#allocation197_spill] sm:$0xff] %v13726_v9  ;;  %v15917_v38 = vmax.f32 %v13736_v26, 0.0  ;;  %v15921_v47 = vmax.f32 %v13740_v1, 0.0  ;;  %v3662_v51 = vmul.f32 %v13330_v50, %v18047_v63  ;;  %v4878_v13 = vadd.f32 %v13484_v28, %v4640_v0 }
 0x6a8   : > { %18234 = vst [vmem:[#allocation156_spill] sm:$0xff] %v13736_v26  ;;  %v4922_v10 = vadd.f32 %v13489_v35, %v4641_v54  ;;  %v13759_v24 = vmul.f32 %v13301_v21, %v15914_v42  ;;  %v13764_v53 = vmul.f32 %v13301_v21, %v15915_v49  ;;  %v3664_v35 = vmul.f32 %v13330_v50, %v18050_v37  ;;  %v18236_v54 = vld [vmem:[#allocation27_spill] sm:$0xff]  ;;  %v18237_v49 = vld [vmem:[#allocation296_spill] sm:$0xff]  ;;  %v18239_v26 = vld [vmem:[#allocation273_spill] sm:$0xff] }
 0x6a9   : > { %18235 = vst [vmem:[#allocation139_spill] sm:$0xff] %v13740_v1  ;;  %v13769_v18 = vmul.f32 %v13301_v21, %v15917_v38  ;;  %v13774_v28 = vmul.f32 %v13301_v21, %v15921_v47  ;;  %v3665_v0 = vmul.f32 %v13330_v50, %v18051_v8  ;;  %v13781_v42 = vadd.f32 %v3662_v51, %v18236_v54  ;;  %v5857_v47 = vld [vmem:[%s15364_s7 + $0x108] sm:$0xff] }
 0x6aa   : > { %v13784_v9 = vadd.f32 %v3663_v4, %v18237_v49  ;;  %v18238_v38 = vmax.f32 %v13229_v3, 0.0  ;;  %v18240_v1 = vmax.f32 %v13232_v41, 0.0  ;;  %5105 = vperm.xlu1 %5744, %v5857_v47   ;;  %v18241_v50 = vmax.f32 %v13241_v12, 0.0  ;;  %v5858_v47 = vld [vmem:[%s15364_s7 + $0x110] sm:$0xff]  ;;  %v18274_v3 = vld [vmem:[#allocation153_spill] sm:$0xff] }
 0x6ab   : > { %v18242_v49 = vmax.f32 %v13244_v56, 0.0  ;;  %v18243_v54 = vmax.f32 %v12672_v29, 0.0  ;;  %5109 = vperm.xlu2 %5745, %v5858_v47   ;;  %v13826_v47 = vpop.permute.xlu0 %3559 }
 0x6ac   : > { %v4646_v34 = vmul.f32 %v18239_v26, %v18238_v38  ;;  %v4647_v21 = vmul.f32 %v18239_v26, %v18240_v1  ;;  %v4648_v51 = vmul.f32 %v18239_v26, %v18241_v50  ;;  %v4651_v1 = vmul.f32 %v13368_v61, %v18244_v52  ;;  %v18248_v52 = vld [vmem:[#allocation140_spill] sm:$0xff] }
 0x6ad   : > { %v4649_v4 = vmul.f32 %v18239_v26, %v18242_v49  ;;  %v4650_v38 = vmul.f32 %v13368_v61, %v18243_v54  ;;  %v18245_v50 = vmax.f32 %v12680_v43, 0.0  ;;  %v18246_v26 = vld [vmem:[#allocation162_spill] sm:$0xff]  ;;  %v13820_v12 = vadd.f32 %v18248_v52, %v13507_v59 }
 0x6ae   : > { %v18247_v49 = vmax.f32 %v18246_v26, 0.0  ;;  %v4791_v54 = vadd.f32 %v4790_v45, %v4646_v34  ;;  %v4835_v14 = vadd.f32 %v4834_v7, %v4647_v21  ;;  %v4879_v6 = vadd.f32 %v4878_v13, %v4648_v51  ;;  %v18253_v21 = vld [vmem:[#allocation262_spill] sm:$0xff] }
 0x6af   : > { %v4652_v22 = vmul.f32 %v13368_v61, %v18245_v50  ;;  %v4923_v56 = vadd.f32 %v4922_v10, %v4649_v4  ;;  %18249 = vst [vmem:[#allocation81_spill] sm:$0xff] %v13820_v12  ;;  %v13824_v41 = vadd.f32 %v18248_v52, %v13510_v46  ;;  %v13830_v26 = vadd.f32 %v18248_v52, %v13513_v58  ;;  %v13842_v58 = vpop.permute.xlu1 %4525 }
 0x6b0   : > { %v4653_v29 = vmul.f32 %v13368_v61, %v18247_v49  ;;  %v4792_v43 = vadd.f32 %v4791_v54, %v4650_v38  ;;  %v4836_v50 = vadd.f32 %v4835_v14, %v4651_v1  ;;  %v13834_v61 = vadd.f32 %v18248_v52, %v13516_v25  ;;  %v18254_v25 = vld [vmem:[#allocation23_spill] sm:$0xff]  ;;  %v18258_v38 = vld [vmem:[#allocation110_spill] sm:$0xff]  ;;  %v18259_v52 = vld [vmem:[#allocation37_spill] sm:$0xff] }
 0x6b1   : > { %18250 = vst [vmem:[#allocation271_spill] sm:$0xff] %v13824_v41  ;;  %v4880_v34 = vadd.f32 %v4879_v6, %v4652_v22  ;;  %v15933_v59 = vmax.f32 %v13820_v12, 0.0  ;;  %v15932_v7 = vmax.f32 %v13824_v41, 0.0  ;;  %v15930_v14 = vmax.f32 %v13830_v26, 0.0  ;;  %v13902_v12 = vpop.permute.xlu2 %4575 }
 0x6b2   : > { %18251 = vst [vmem:[#allocation91_spill] sm:$0xff] %v13830_v26  ;;  %v4924_v45 = vadd.f32 %v4923_v56, %v4653_v29  ;;  %v4793_v46 = vadd.f32 %v4792_v43, %v13545_v15  ;;  %v4837_v13 = vadd.f32 %v4836_v50, %v13550_v48  ;;  %v15931_v10 = vmax.f32 %v13834_v61, 0.0  ;;  %v18255_v56 = vld [vmem:[#allocation222_spill] sm:$0xff]  ;;  %v18256_v43 = vld [vmem:[#allocation221_spill] sm:$0xff]  ;;  %5117 = vperm.xlu1 %5744, %v18258_v38   ;;  %v18269_v26 = vld [vmem:[#allocation115_spill] sm:$0xff] }
 0x6b3   : > { %18252 = vst [vmem:[#allocation31_spill] sm:$0xff] %v13834_v61  ;;  %v13845_v51 = vadd.f32 %v3664_v35, %v18253_v21  ;;  %v13848_v6 = vadd.f32 %v3665_v0, %v18254_v25  ;;  %v4881_v29 = vadd.f32 %v4880_v34, %v13577_v44  ;;  %v13855_v15 = vmul.f32 %v18256_v43, %v15933_v59  ;;  %v18257_v35 = vld [vmem:[#allocation112_spill] sm:$0xff]  ;;  %v18260_v50 = vld [vmem:[#allocation133_spill] sm:$0xff]  ;;  %v18267_v59 = vld [vmem:[#allocation106_spill] sm:$0xff] }
 0x6b4   : > { %v4925_v22 = vadd.f32 %v4924_v45, %v18255_v56  ;;  %v13860_v48 = vmul.f32 %v18256_v43, %v15932_v7  ;;  %v3674_v4 = vmul.f32 %v18257_v35, %v18047_v63  ;;  %v3675_v0 = vmul.f32 %v18257_v35, %v18049_v55  ;;  %5121 = vperm.xlu2 %5745, %v18259_v52   ;;  %v18261_v45 = vld [vmem:[#allocation18_spill] sm:$0xff]  ;;  %v18262_v25 = vld [vmem:[#allocation145_spill] sm:$0xff] }
 0x6b5   : > { %v13870_v44 = vmul.f32 %v18256_v43, %v15930_v14  ;;  %v13875_v1 = vmul.f32 %v18256_v43, %v15931_v10  ;;  %v3676_v49 = vmul.f32 %v18257_v35, %v18050_v37  ;;  %v3677_v54 = vmul.f32 %v18257_v35, %v18051_v8  ;;  %v18264_v38 = vld [vmem:[#allocation201_spill] sm:$0xff]  ;;  %v18265_v43 = vld [vmem:[#allocation100_spill] sm:$0xff] }
 0x6b6   : > { %v13883_v34 = vadd.f32 %v3674_v4, %v18260_v50  ;;  %v13886_v21 = vadd.f32 %v3675_v0, %v18261_v45  ;;  %v18263_v56 = vmax.f32 %v18262_v25, 0.0  ;;  %v18266_v10 = vmax.f32 %v18265_v43, 0.0  ;;  %v18271_v50 = vld [vmem:[#allocation71_spill] sm:$0xff]  ;;  %v18272_v0 = vld [vmem:[#allocation132_spill] sm:$0xff]  ;;  %v18273_v25 = vld [vmem:[#allocation317_spill] sm:$0xff] }
 0x6b7   : > { %v18268_v61 = vmax.f32 %v18267_v59, 0.0  ;;  %v18270_v52 = vmax.f32 %v18269_v26, 0.0  ;;  %v4794_v41 = vadd.f32 %v4793_v46, %v18271_v50  ;;  %v4838_v45 = vadd.f32 %v4837_v13, %v18272_v0  ;;  %v18278_v59 = vld [vmem:[#allocation50_spill] sm:$0xff]  ;;  %v13914_v26 = vpop.permute.xlu0 %3571  ;;  %v18284_v0 = vld [vmem:[#allocation324_spill] sm:$0xff] }
 0x6b8   : > { %v4662_v14 = vmul.f32 %v18264_v38, %v18263_v56  ;;  %v4663_v7 = vmul.f32 %v18264_v38, %v18266_v10  ;;  %v4882_v56 = vadd.f32 %v4881_v29, %v18273_v25  ;;  %v4926_v43 = vadd.f32 %v4925_v22, %v18274_v3  ;;  %v18276_v10 = vld [vmem:[#allocation142_spill] sm:$0xff] }
 0x6b9   : > { %v4664_v35 = vmul.f32 %v18264_v38, %v18268_v61  ;;  %v4665_v4 = vmul.f32 %v18264_v38, %v18270_v52  ;;  %v13908_v23 = vadd.f32 %v18276_v10, %v18275_v20  ;;  %v13912_v61 = vadd.f32 %v18276_v10, %v18278_v59  ;;  %v13988_v27 = vpop.permute.xlu2 %4590 }
 0x6ba   : > { %v4795_v38 = vadd.f32 %v4794_v41, %v4662_v14  ;;  %v4839_v46 = vadd.f32 %v4838_v45, %v4663_v7  ;;  %v13918_v13 = vadd.f32 %v18276_v10, %v13607_v11  ;;  %v13922_v29 = vadd.f32 %v18276_v10, %v13610_v17  ;;  %v13930_v11 = vpop.permute.xlu1 %4540 }
 0x6bb   : > { %18277 = vst [vmem:[#allocation42_spill] sm:$0xff] %v13908_v23  ;;  %v4883_v3 = vadd.f32 %v4882_v56, %v4664_v35  ;;  %v4927_v22 = vadd.f32 %v4926_v43, %v4665_v4  ;;  %v15944_v20 = vmax.f32 %v13908_v23, 0.0  ;;  %v15943_v25 = vmax.f32 %v13912_v61, 0.0  ;;  %v18282_v43 = vld [vmem:[#allocation293_spill] sm:$0xff] }
 0x6bc   : > { %18279 = vst [vmem:[#allocation104_spill] sm:$0xff] %v13912_v61  ;;  %v4796_v59 = vadd.f32 %v4795_v38, %v13677_v60  ;;  %v4840_v52 = vadd.f32 %v4839_v46, %v13682_v36  ;;  %v15942_v41 = vmax.f32 %v13918_v13, 0.0  ;;  %v15941_v7 = vmax.f32 %v13922_v29, 0.0  ;;  %v18285_v56 = vld [vmem:[#allocation25_spill] sm:$0xff]  ;;  %v18295_v61 = vld [vmem:[#allocation116_spill] sm:$0xff] }
 0x6bd   : > { %18280 = vst [vmem:[#allocation174_spill] sm:$0xff] %v13918_v13  ;;  %v4884_v14 = vadd.f32 %v4883_v3, %v13687_v57  ;;  %v4928_v17 = vadd.f32 %v4927_v22, %v13692_v32  ;;  %v13937_v35 = vmul.f32 %v18282_v43, %v15944_v20  ;;  %v13942_v60 = vmul.f32 %v18282_v43, %v15943_v25  ;;  %v18283_v32 = vld [vmem:[#allocation202_spill] sm:$0xff] }
 0x6be   : > { %18281 = vst [vmem:[#allocation194_spill] sm:$0xff] %v13922_v29  ;;  %v13947_v36 = vmul.f32 %v18282_v43, %v15942_v41  ;;  %v13952_v57 = vmul.f32 %v18282_v43, %v15941_v7  ;;  %v3686_v4 = vmul.f32 %v18283_v32, %v18047_v63  ;;  %v3687_v50 = vmul.f32 %v18283_v32, %v18049_v55  ;;  %v18286_v3 = vld [vmem:[#allocation82_spill] sm:$0xff]  ;;  %v18287_v43 = vld [vmem:[#allocation303_spill] sm:$0xff] }
 0x6bf   : > { %v13959_v45 = vadd.f32 %v3676_v49, %v18284_v0  ;;  %v13962_v10 = vadd.f32 %v3677_v54, %v18285_v56  ;;  %v3688_v38 = vmul.f32 %v18283_v32, %v18050_v37  ;;  %v3689_v46 = vmul.f32 %v18283_v32, %v18051_v8  ;;  %v18289_v41 = vld [vmem:[#allocation35_spill] sm:$0xff]  ;;  %v18291_v0 = vld [vmem:[#allocation114_spill] sm:$0xff]  ;;  %v18293_v56 = vld [vmem:[#allocation309_spill] sm:$0xff] }
 0x6c0   : > { %v13969_v22 = vadd.f32 %v3686_v4, %v18286_v3  ;;  %v13972_v7 = vadd.f32 %v3687_v50, %v18287_v43  ;;  %v18290_v25 = vmax.f32 %v18289_v41, 0.0  ;;  %v18292_v20 = vmax.f32 %v18291_v0, 0.0  ;;  %v18297_v3 = vld [vmem:[#allocation251_spill] sm:$0xff]  ;;  %v18298_v50 = vld [vmem:[#allocation146_spill] sm:$0xff]  ;;  %v18299_v41 = vld [vmem:[#allocation252_spill] sm:$0xff] }
 0x6c1   : > { %v18294_v29 = vmax.f32 %v18293_v56, 0.0  ;;  %v18296_v32 = vmax.f32 %v18295_v61, 0.0  ;;  %v4797_v23 = vadd.f32 %v4796_v59, %v18297_v3  ;;  %v4841_v43 = vadd.f32 %v4840_v52, %v18298_v50  ;;  %v14000_v61 = vpop.permute.xlu0 %4973  ;;  %v18307_v50 = vld [vmem:[#allocation52_spill] sm:$0xff] }
 0x6c2   : > { %18288 = vst [vmem:[#allocation187_spill] sm:$0xff] %v13972_v7  ;;  %v4674_v49 = vmul.f32 %v13628_v16, %v18290_v25  ;;  %v4675_v54 = vmul.f32 %v13628_v16, %v18292_v20  ;;  %v4885_v25 = vadd.f32 %v4884_v14, %v18299_v41  ;;  %v4929_v0 = vadd.f32 %v4928_v17, %v18300_v31  ;;  %v18301_v20 = vld [vmem:[#allocation161_spill] sm:$0xff]  ;;  %v18323_v56 = vld [vmem:[#allocation188_spill] sm:$0xff] }
 0x6c3   : > { %v4676_v13 = vmul.f32 %v13628_v16, %v18294_v29  ;;  %v4677_v4 = vmul.f32 %v13628_v16, %v18296_v32  ;;  %v13994_v7 = vadd.f32 %v18301_v20, %v13698_v62  ;;  %v13998_v29 = vadd.f32 %v18301_v20, %v13701_v33  ;;  %v14012_v33 = vpop.permute.xlu1 %4555 }
 0x6c4   : > { %v4798_v16 = vadd.f32 %v4797_v23, %v4674_v49  ;;  %v4842_v59 = vadd.f32 %v4841_v43, %v4675_v54  ;;  %v14004_v52 = vadd.f32 %v18301_v20, %v13729_v30  ;;  %v14008_v41 = vadd.f32 %v18301_v20, %v13732_v5 }
 0x6c5   : > { %18302 = vst [vmem:[#allocation125_spill] sm:$0xff] %v13994_v7  ;;  %v4886_v31 = vadd.f32 %v4885_v25, %v4676_v13  ;;  %v4930_v14 = vadd.f32 %v4929_v0, %v4677_v4  ;;  %v15954_v62 = vmax.f32 %v13994_v7, 0.0  ;;  %v15953_v17 = vmax.f32 %v13998_v29, 0.0  ;;  %v18306_v4 = vld [vmem:[#allocation241_spill] sm:$0xff]  ;;  %v18322_v7 = vld [vmem:[#allocation288_spill] sm:$0xff] }
 0x6c6   : > { %18303 = vst [vmem:[#allocation224_spill] sm:$0xff] %v13998_v29  ;;  %v4799_v32 = vadd.f32 %v4798_v16, %v13759_v24  ;;  %v4843_v23 = vadd.f32 %v4842_v59, %v13764_v53  ;;  %v15952_v49 = vmax.f32 %v14004_v52, 0.0  ;;  %v15951_v30 = vmax.f32 %v14008_v41, 0.0  ;;  %v18309_v59 = vld [vmem:[#allocation235_spill] sm:$0xff] }
 0x6c7   : > { %18304 = vst [vmem:[#allocation129_spill] sm:$0xff] %v14004_v52  ;;  %v4887_v54 = vadd.f32 %v4886_v31, %v13769_v18  ;;  %v4931_v5 = vadd.f32 %v4930_v14, %v13774_v28  ;;  %v14023_v13 = vmul.f32 %v13672_v2, %v15954_v62  ;;  %v14028_v0 = vmul.f32 %v13672_v2, %v15953_v17  ;;  %v18310_v14 = vld [vmem:[#allocation79_spill] sm:$0xff]  ;;  %v18315_v17 = vld [vmem:[#allocation220_spill] sm:$0xff]  ;;  %v18320_v52 = vld [vmem:[#allocation77_spill] sm:$0xff] }
 0x6c8   : > { %18305 = vst [vmem:[#allocation134_spill] sm:$0xff] %v14008_v41  ;;  %v14033_v24 = vmul.f32 %v13672_v2, %v15952_v49  ;;  %v14038_v53 = vmul.f32 %v13672_v2, %v15951_v30  ;;  %v3698_v18 = vmul.f32 %v13709_v39, %v18047_v63  ;;  %v3699_v28 = vmul.f32 %v13709_v39, %v18049_v55  ;;  %v18308_v2 = vld [vmem:[#allocation269_spill] sm:$0xff]  ;;  %v18317_v41 = vld [vmem:[#allocation275_spill] sm:$0xff] }
 0x6c9   : > { %v14045_v3 = vadd.f32 %v3688_v38, %v18306_v4  ;;  %v14048_v43 = vadd.f32 %v3689_v46, %v18307_v50  ;;  %v3700_v25 = vmul.f32 %v13709_v39, %v18050_v37  ;;  %v3701_v20 = vmul.f32 %v13709_v39, %v18051_v8  ;;  %v18312_v4 = vld [vmem:[#allocation171_spill] sm:$0xff]  ;;  %v14066_v50 = vpop.permute.xlu2 %4605  ;;  %v14076_v29 = vpop.permute.xlu0 %4993 }
 0x6ca   : > { %v14055_v16 = vadd.f32 %v3698_v18, %v18308_v2  ;;  %v14058_v31 = vadd.f32 %v3699_v28, %v18309_v59  ;;  %v18311_v30 = vmax.f32 %v18310_v14, 0.0  ;;  %v18313_v49 = vmax.f32 %v18312_v4, 0.0  ;;  %18314 = vst [vmem:[#allocation211_spill] sm:$0xff] %v14066_v50  ;;  %v18319_v28 = vld [vmem:[#allocation74_spill] sm:$0xff] }
 0x6cb   : > { %v18316_v62 = vmax.f32 %v18315_v17, 0.0  ;;  %v18318_v18 = vmax.f32 %v18317_v41, 0.0  ;;  %v4800_v59 = vadd.f32 %v4799_v32, %v18319_v28  ;;  %v4844_v14 = vadd.f32 %v4843_v23, %v18320_v52  ;;  %v14096_v23 = vpop.permute.xlu1 %4570 }
 0x6cc   : > { %v4686_v38 = vmul.f32 %v13752_v19, %v18311_v30  ;;  %v4687_v46 = vmul.f32 %v13752_v19, %v18313_v49  ;;  %v18321_v30 = vld [vmem:[#allocation255_spill] sm:$0xff]  ;;  %v4932_v49 = vadd.f32 %v4931_v5, %v18322_v7  ;;  %v14082_v50 = vadd.f32 %v18323_v56, %v13781_v42 }
 0x6cd   : > { %v4688_v39 = vmul.f32 %v13752_v19, %v18316_v62  ;;  %v4689_v2 = vmul.f32 %v13752_v19, %v18318_v18  ;;  %v4888_v4 = vadd.f32 %v4887_v54, %v18321_v30  ;;  %v14086_v62 = vadd.f32 %v18323_v56, %v13784_v9  ;;  %v18329_v18 = vld [vmem:[#allocation325_spill] sm:$0xff]  ;;  %v18330_v30 = vld [vmem:[#allocation62_spill] sm:$0xff] }
 0x6ce   : > { %18324 = vst [vmem:[#allocation143_spill] sm:$0xff] %v14082_v50  ;;  %v4801_v41 = vadd.f32 %v4800_v59, %v4686_v38  ;;  %v4845_v19 = vadd.f32 %v4844_v14, %v4687_v46  ;;  %v14090_v32 = vadd.f32 %v18323_v56, %v13845_v51  ;;  %v14094_v52 = vadd.f32 %v18323_v56, %v13848_v6 }
 0x6cf   : > { %18325 = vst [vmem:[#allocation279_spill] sm:$0xff] %v14086_v62  ;;  %v4889_v7 = vadd.f32 %v4888_v4, %v4688_v39  ;;  %v4933_v54 = vadd.f32 %v4932_v49, %v4689_v2  ;;  %v15963_v42 = vmax.f32 %v14082_v50, 0.0  ;;  %v15962_v5 = vmax.f32 %v14086_v62, 0.0  ;;  %v18342_v62 = vld [vmem:[#allocation66_spill] sm:$0xff]  ;;  %v18343_v50 = vld [vmem:[#allocation128_spill] sm:$0xff] }
 0x6d0   : > { %18326 = vst [vmem:[#allocation322_spill] sm:$0xff] %v14090_v32  ;;  %v4802_v9 = vadd.f32 %v4801_v41, %v13855_v15  ;;  %v4846_v14 = vadd.f32 %v4845_v19, %v13860_v48  ;;  %v15961_v38 = vmax.f32 %v14090_v32, 0.0  ;;  %v15960_v51 = vmax.f32 %v14094_v52, 0.0  ;;  %v18328_v41 = vld [vmem:[#allocation168_spill] sm:$0xff]  ;;  %v18331_v19 = vld [vmem:[#allocation154_spill] sm:$0xff]  ;;  %v18341_v32 = vld [vmem:[#allocation289_spill] sm:$0xff] }
 0x6d1   : > { %18327 = vst [vmem:[#allocation280_spill] sm:$0xff] %v14094_v52  ;;  %v4890_v46 = vadd.f32 %v4889_v7, %v13870_v44  ;;  %v4934_v6 = vadd.f32 %v4933_v54, %v13875_v1  ;;  %v14109_v56 = vmul.f32 %v13807_v40, %v15963_v42  ;;  %v14114_v4 = vmul.f32 %v13807_v40, %v15962_v5  ;;  %v18332_v54 = vld [vmem:[#allocation172_spill] sm:$0xff]  ;;  %v18336_v5 = vld [vmem:[#allocation43_spill] sm:$0xff]  ;;  %v18338_v52 = vld [vmem:[#allocation150_spill] sm:$0xff] }
 0x6d2   : > { %v14119_v15 = vmul.f32 %v13807_v40, %v15961_v38  ;;  %v14124_v48 = vmul.f32 %v13807_v40, %v15960_v51  ;;  %v3710_v44 = vmul.f32 %v13826_v47, %v18047_v63  ;;  %v3711_v1 = vmul.f32 %v13826_v47, %v18049_v55  ;;  %v14140_v40 = vpop.permute.xlu2 %4620  ;;  %v14154_v38 = vpop.permute.xlu0 %5005 }
 0x6d3   : > { %v14131_v39 = vadd.f32 %v3700_v25, %v18328_v41  ;;  %v14134_v2 = vadd.f32 %v3701_v20, %v18329_v18  ;;  %v3712_v28 = vmul.f32 %v13826_v47, %v18050_v37  ;;  %v3713_v59 = vmul.f32 %v13826_v47, %v18051_v8  ;;  %v18334_v20 = vld [vmem:[#allocation60_spill] sm:$0xff] }
 0x6d4   : > { %v14143_v49 = vadd.f32 %v3710_v44, %v18330_v30  ;;  %v14146_v7 = vadd.f32 %v3711_v1, %v18331_v19  ;;  %v18333_v25 = vmax.f32 %v18332_v54, 0.0  ;;  %v18335_v18 = vmax.f32 %v18334_v20, 0.0  ;;  %v18340_v1 = vld [vmem:[#allocation55_spill] sm:$0xff] }
 0x6d5   : > { %v18337_v47 = vmax.f32 %v18336_v5, 0.0  ;;  %v18339_v44 = vmax.f32 %v18338_v52, 0.0  ;;  %v4803_v19 = vadd.f32 %v4802_v9, %v18340_v1  ;;  %v4847_v54 = vadd.f32 %v4846_v14, %v18341_v32 }
 0x6d6   : > { %v4698_v41 = vmul.f32 %v13842_v58, %v18333_v25  ;;  %v4699_v51 = vmul.f32 %v13842_v58, %v18335_v18  ;;  %v4891_v25 = vadd.f32 %v4890_v46, %v18342_v62  ;;  %v4935_v20 = vadd.f32 %v4934_v6, %v18343_v50  ;;  %v18344_v18 = vld [vmem:[#allocation219_spill] sm:$0xff] }
 0x6d7   : > { %v4700_v42 = vmul.f32 %v13842_v58, %v18337_v47  ;;  %v4701_v30 = vmul.f32 %v13842_v58, %v18339_v44  ;;  %v14168_v17 = vadd.f32 %v18344_v18, %v13883_v34  ;;  %v14172_v5 = vadd.f32 %v18344_v18, %v13886_v21  ;;  %v14174_v47 = vpop.permute.xlu1 %4585  ;;  %v18351_v44 = vld [vmem:[#allocation155_spill] sm:$0xff] }
 0x6d8   : > { %v4804_v52 = vadd.f32 %v4803_v19, %v4698_v41  ;;  %v4848_v58 = vadd.f32 %v4847_v54, %v4699_v51  ;;  %v14178_v9 = vadd.f32 %v18344_v18, %v13959_v45  ;;  %v14182_v62 = vadd.f32 %v18344_v18, %v13962_v10  ;;  %v18350_v41 = vld [vmem:[#allocation76_spill] sm:$0xff] }
 0x6d9   : > { %18345 = vst [vmem:[#allocation69_spill] sm:$0xff] %v14168_v17  ;;  %v4892_v50 = vadd.f32 %v4891_v25, %v4700_v42  ;;  %v4936_v32 = vadd.f32 %v4935_v20, %v4701_v30  ;;  %v15971_v34 = vmax.f32 %v14168_v17, 0.0  ;;  %v15970_v14 = vmax.f32 %v14172_v5, 0.0  ;;  %v18352_v25 = vld [vmem:[#allocation184_spill] sm:$0xff] }
 0x6da   : > { %18346 = vst [vmem:[#allocation113_spill] sm:$0xff] %v14172_v5  ;;  %v4805_v21 = vadd.f32 %v4804_v52, %v13937_v35  ;;  %v4849_v46 = vadd.f32 %v4848_v58, %v13942_v60  ;;  %v15969_v51 = vmax.f32 %v14178_v9, 0.0  ;;  %v15968_v6 = vmax.f32 %v14182_v62, 0.0  ;;  %v14216_v52 = vpop.permute.xlu2 %4635  ;;  %v14228_v19 = vpop.permute.xlu0 %5017  ;;  %v18354_v58 = vld [vmem:[#allocation181_spill] sm:$0xff] }
 0x6db   : > { %18347 = vst [vmem:[#allocation323_spill] sm:$0xff] %v14178_v9  ;;  %v4893_v45 = vadd.f32 %v4892_v50, %v13947_v36  ;;  %v4937_v54 = vadd.f32 %v4936_v32, %v13952_v57  ;;  %v14195_v10 = vmul.f32 %v13902_v12, %v15971_v34  ;;  %v14200_v42 = vmul.f32 %v13902_v12, %v15970_v14  ;;  %v18356_v32 = vld [vmem:[#allocation204_spill] sm:$0xff]  ;;  %v18362_v34 = vld [vmem:[#allocation151_spill] sm:$0xff] }
 0x6dc   : > { %18348 = vst [vmem:[#allocation281_spill] sm:$0xff] %v14182_v62  ;;  %v14205_v35 = vmul.f32 %v13902_v12, %v15969_v51  ;;  %v14210_v60 = vmul.f32 %v13902_v12, %v15968_v6  ;;  %v3722_v36 = vmul.f32 %v13914_v26, %v18047_v63  ;;  %v3723_v57 = vmul.f32 %v13914_v26, %v18049_v55  ;;  %v18360_v51 = vld [vmem:[#allocation276_spill] sm:$0xff]  ;;  %v18366_v55 = vld [vmem:[#allocation294_spill] sm:$0xff]  ;;  %v18502_v62 = vld [vmem:[#allocation167_spill] sm:$0xff] }
 0x6dd   : > { %18349 = vst [vmem:[#allocation207_spill] sm:$0xff] %v14216_v52  ;;  %v14219_v20 = vadd.f32 %v3712_v28, %v18350_v41  ;;  %v14222_v30 = vadd.f32 %v3713_v59, %v18351_v44  ;;  %v3724_v1 = vmul.f32 %v13914_v26, %v18050_v37  ;;  %v3725_v12 = vmul.f32 %v13914_v26, %v18051_v8  ;;  %v18358_v59 = vld [vmem:[#allocation149_spill] sm:$0xff]  ;;  %v18367_v52 = vld [vmem:[#allocation295_spill] sm:$0xff] }
 0x6de   : > { %v14231_v18 = vadd.f32 %v3722_v36, %v18352_v25  ;;  %v14234_v50 = vadd.f32 %v3723_v57, %v18354_v58  ;;  %v18357_v28 = vmax.f32 %v18356_v32, 0.0  ;;  %v18359_v44 = vmax.f32 %v18358_v59, 0.0  ;;  %v18364_v25 = vld [vmem:[#allocation290_spill] sm:$0xff]  ;;  %v18454_v59 = vld [vmem:[#allocation272_spill] sm:$0xff]  ;;  %v18482_v32 = vld [vmem:[#allocation67_spill] sm:$0xff] }
 0x6df   : > { %v18361_v14 = vmax.f32 %v18360_v51, 0.0  ;;  %v18363_v63 = vmax.f32 %v18362_v34, 0.0  ;;  %v4806_v8 = vadd.f32 %v4805_v21, %v18364_v25  ;;  %v18365_v57 = vld [vmem:[#allocation170_spill] sm:$0xff]  ;;  %v14250_v37 = vpop.permute.xlu1 %4600  ;;  %v18370_v51 = vld [vmem:[#allocation187_spill] sm:$0xff] }
 0x6e0   : > { %18353 = vst [vmem:[#allocation38_spill] sm:$0xff] %v14231_v18  ;;  %v4710_v41 = vmul.f32 %v13930_v11, %v18357_v28  ;;  %v4711_v6 = vmul.f32 %v13930_v11, %v18359_v44  ;;  %v4850_v58 = vadd.f32 %v4849_v46, %v18365_v57  ;;  %v4894_v28 = vadd.f32 %v4893_v45, %v18366_v55  ;;  %v18368_v44 = vld [vmem:[#allocation247_spill] sm:$0xff]  ;;  %v18378_v25 = vld [vmem:[#allocation298_spill] sm:$0xff] }
 0x6e1   : > { %18355 = vst [vmem:[#allocation217_spill] sm:$0xff] %v14234_v50  ;;  %v4712_v26 = vmul.f32 %v13930_v11, %v18361_v14  ;;  %v4713_v36 = vmul.f32 %v13930_v11, %v18363_v63  ;;  %v4938_v50 = vadd.f32 %v4937_v54, %v18367_v52  ;;  %v14256_v18 = vadd.f32 %v18368_v44, %v13969_v22 }
 0x6e2   : > { %v14260_v14 = vadd.f32 %v18368_v44, %v18370_v51  ;;  %v4807_v34 = vadd.f32 %v4806_v8, %v4710_v41  ;;  %v4851_v63 = vadd.f32 %v4850_v58, %v4711_v6  ;;  %v14264_v11 = vadd.f32 %v18368_v44, %v14045_v3  ;;  %v18376_v41 = vld [vmem:[#allocation88_spill] sm:$0xff]  ;;  %v18380_v58 = vld [vmem:[#allocation299_spill] sm:$0xff] }
 0x6e3   : > { %18369 = vst [vmem:[#allocation218_spill] sm:$0xff] %v14256_v18  ;;  %v14268_v21 = vadd.f32 %v18368_v44, %v14048_v43  ;;  %v4895_v55 = vadd.f32 %v4894_v28, %v4712_v26  ;;  %v4939_v46 = vadd.f32 %v4938_v50, %v4713_v36  ;;  %v15980_v45 = vmax.f32 %v14256_v18, 0.0  ;;  %v14306_v36 = vpop.permute.xlu0 %5029  ;;  %v18382_v44 = vld [vmem:[#allocation277_spill] sm:$0xff]  ;;  %v18450_v18 = vld [vmem:[#allocation119_spill] sm:$0xff] }
 0x6e4   : > { %18371 = vst [vmem:[#allocation313_spill] sm:$0xff] %v14260_v14  ;;  %v15979_v22 = vmax.f32 %v14260_v14, 0.0  ;;  %v4808_v54 = vadd.f32 %v4807_v34, %v14023_v13  ;;  %v4852_v51 = vadd.f32 %v4851_v63, %v14028_v0  ;;  %v15978_v8 = vmax.f32 %v14264_v11, 0.0  ;;  %v14288_v13 = vpop.permute.xlu2 %4981  ;;  %v18374_v0 = vld [vmem:[#allocation34_spill] sm:$0xff] }
 0x6e5   : > { %18372 = vst [vmem:[#allocation126_spill] sm:$0xff] %v14264_v11  ;;  %v15977_v6 = vmax.f32 %v14268_v21, 0.0  ;;  %v4896_v3 = vadd.f32 %v4895_v55, %v14033_v24  ;;  %v4940_v52 = vadd.f32 %v4939_v46, %v14038_v53  ;;  %v14281_v43 = vmul.f32 %v13988_v27, %v15980_v45  ;;  %v18384_v46 = vld [vmem:[#allocation159_spill] sm:$0xff] }
 0x6e6   : > { %18373 = vst [vmem:[#allocation41_spill] sm:$0xff] %v14268_v21  ;;  %v14286_v50 = vmul.f32 %v13988_v27, %v15979_v22  ;;  %v14291_v34 = vadd.f32 %v3724_v1, %v18374_v0  ;;  %v14294_v26 = vadd.f32 %v3725_v12, %v18376_v41  ;;  %v14299_v24 = vmul.f32 %v13988_v27, %v15978_v8  ;;  %v18386_v41 = vld [vmem:[#allocation46_spill] sm:$0xff]  ;;  %v18388_v8 = vld [vmem:[#allocation45_spill] sm:$0xff]  ;;  %v18393_v21 = vld [vmem:[#allocation124_spill] sm:$0xff] }
 0x6e7   : > { %v14304_v53 = vmul.f32 %v13988_v27, %v15977_v6  ;;  %v18379_v57 = vmax.f32 %v18378_v25, 0.0  ;;  %v18381_v12 = vmax.f32 %v18380_v58, 0.0  ;;  %v18383_v63 = vmax.f32 %v18382_v44, 0.0  ;;  %v18390_v58 = vld [vmem:[#allocation86_spill] sm:$0xff] }
 0x6e8   : > { %18375 = vst [vmem:[#allocation242_spill] sm:$0xff] %v14291_v34  ;;  %v18385_v0 = vmax.f32 %v18384_v46, 0.0  ;;  %v18387_v6 = vmax.f32 %v18386_v41, 0.0  ;;  %v4809_v45 = vadd.f32 %v4808_v54, %v18390_v58  ;;  %v14332_v34 = vpop.permute.xlu1 %4615  ;;  %v18392_v44 = vld [vmem:[#allocation190_spill] sm:$0xff]  ;;  %v4941_v46 = vadd.f32 %v4940_v52, %v18393_v21 }
 0x6e9   : > { %18377 = vst [vmem:[#allocation213_spill] sm:$0xff] %v14294_v26  ;;  %v14311_v1 = vmul.f32 %v14000_v61, %v18379_v57  ;;  %v14316_v28 = vmul.f32 %v14000_v61, %v18381_v12  ;;  %v4722_v55 = vmul.f32 %v14012_v33, %v18383_v63  ;;  %v18389_v57 = vmax.f32 %v18388_v8, 0.0  ;;  %v18391_v12 = vld [vmem:[#allocation75_spill] sm:$0xff]  ;;  %v18420_v41 = vld [vmem:[#allocation78_spill] sm:$0xff] }
 0x6ea   : > { %v4723_v27 = vmul.f32 %v14012_v33, %v18385_v0  ;;  %v4724_v25 = vmul.f32 %v14012_v33, %v18387_v6  ;;  %v4853_v26 = vadd.f32 %v4852_v51, %v18391_v12  ;;  %v4897_v63 = vadd.f32 %v4896_v3, %v18392_v44  ;;  %v18394_v0 = vld [vmem:[#allocation263_spill] sm:$0xff] }
 0x6eb   : > { %v4725_v22 = vmul.f32 %v14012_v33, %v18389_v57  ;;  %v14338_v11 = vadd.f32 %v18394_v0, %v14055_v16  ;;  %v14342_v6 = vadd.f32 %v18394_v0, %v14058_v31  ;;  %v4810_v8 = vadd.f32 %v4809_v45, %v4722_v55  ;;  %v14392_v12 = vpop.permute.xlu0 %5041 }
 0x6ec   : > { %v4854_v33 = vadd.f32 %v4853_v26, %v4723_v27  ;;  %v14346_v54 = vadd.f32 %v18394_v0, %v14131_v39  ;;  %v14350_v51 = vadd.f32 %v18394_v0, %v14134_v2  ;;  %v4898_v3 = vadd.f32 %v4897_v63, %v4724_v25  ;;  %v18399_v2 = vld [vmem:[#allocation211_spill] sm:$0xff]  ;;  %v18404_v63 = vld [vmem:[#allocation101_spill] sm:$0xff] }
 0x6ed   : > { %18395 = vst [vmem:[#allocation85_spill] sm:$0xff] %v14338_v11  ;;  %v4942_v21 = vadd.f32 %v4941_v46, %v4725_v22  ;;  %v15986_v52 = vmax.f32 %v14338_v11, 0.0  ;;  %v15985_v16 = vmax.f32 %v14342_v6, 0.0  ;;  %v4811_v44 = vadd.f32 %v4810_v8, %v14109_v56  ;;  %v14370_v56 = vpop.permute.xlu2 %4989 }
 0x6ee   : > { %18396 = vst [vmem:[#allocation225_spill] sm:$0xff] %v14342_v6  ;;  %v4855_v31 = vadd.f32 %v4854_v33, %v14114_v4  ;;  %v15983_v45 = vmax.f32 %v14346_v54, 0.0  ;;  %v15984_v26 = vmax.f32 %v14350_v51, 0.0  ;;  %v4899_v39 = vadd.f32 %v4898_v3, %v14119_v15  ;;  %v18400_v4 = vld [vmem:[#allocation300_spill] sm:$0xff]  ;;  %v18406_v3 = vld [vmem:[#allocation19_spill] sm:$0xff] }
 0x6ef   : > { %18397 = vst [vmem:[#allocation109_spill] sm:$0xff] %v14346_v54  ;;  %v4943_v55 = vadd.f32 %v4942_v21, %v14124_v48  ;;  %v14363_v22 = vmul.f32 %v18399_v2, %v15986_v52  ;;  %v14368_v46 = vmul.f32 %v18399_v2, %v15985_v16  ;;  %v18401_v8 = vmax.f32 %v18400_v4, 0.0  ;;  %v18402_v15 = vld [vmem:[#allocation284_spill] sm:$0xff]  ;;  %v18414_v52 = vld [vmem:[#allocation61_spill] sm:$0xff] }
 0x6f0   : > { %18398 = vst [vmem:[#allocation96_spill] sm:$0xff] %v14350_v51  ;;  %v18403_v25 = vmax.f32 %v18402_v15, 0.0  ;;  %v14385_v57 = vmul.f32 %v18399_v2, %v15983_v45  ;;  %v14390_v58 = vmul.f32 %v18399_v2, %v15984_v26  ;;  %v18405_v0 = vmax.f32 %v18404_v63, 0.0  ;;  %v18408_v4 = vld [vmem:[#allocation120_spill] sm:$0xff]  ;;  %v18412_v26 = vld [vmem:[#allocation15_spill] sm:$0xff]  ;;  %v14418_v11 = vpop.permute.xlu1 %4630 }
 0x6f1   : > { %v14375_v27 = vmul.f32 %v14000_v61, %v18401_v8  ;;  %v18409_v8 = vmax.f32 %v18408_v4, 0.0  ;;  %v18413_v16 = vmax.f32 %v18412_v26, 0.0  ;;  %18418 = vst [vmem:[#allocation304_spill] sm:$0xff] %v14418_v11  ;;  %v18419_v4 = vld [vmem:[#allocation148_spill] sm:$0xff]  ;;  %v18443_v11 = vld [vmem:[#allocation26_spill] sm:$0xff] }
 0x6f2   : > { %v14380_v48 = vmul.f32 %v14000_v61, %v18403_v25  ;;  %v14397_v33 = vmul.f32 %v14076_v29, %v18405_v0  ;;  %v18407_v61 = vmax.f32 %v18406_v3, 0.0  ;;  %v18410_v25 = vld [vmem:[#allocation28_spill] sm:$0xff]  ;;  %v18415_v0 = vmax.f32 %v18414_v52, 0.0  ;;  %v18416_v3 = vld [vmem:[#allocation89_spill] sm:$0xff] }
 0x6f3   : > { %v4734_v15 = vmul.f32 %v14096_v23, %v18409_v8  ;;  %v18411_v45 = vmax.f32 %v18410_v25, 0.0  ;;  %v4736_v63 = vmul.f32 %v14096_v23, %v18413_v16  ;;  %v4812_v54 = vadd.f32 %v4811_v44, %v18416_v3  ;;  %v14478_v3 = vpop.permute.xlu0 %5053 }
 0x6f4   : > { %v14402_v21 = vmul.f32 %v14076_v29, %v18407_v61  ;;  %v4737_v51 = vmul.f32 %v14096_v23, %v18415_v0  ;;  %v18417_v61 = vld [vmem:[#allocation32_spill] sm:$0xff]  ;;  %v4900_v8 = vadd.f32 %v4899_v39, %v18419_v4  ;;  %v4944_v25 = vadd.f32 %v4943_v55, %v18420_v41 }
 0x6f5   : > { %v4735_v2 = vmul.f32 %v14096_v23, %v18411_v45  ;;  %v4856_v6 = vadd.f32 %v4855_v31, %v18417_v61  ;;  %v18421_v45 = vld [vmem:[#allocation270_spill] sm:$0xff]  ;;  %v4813_v52 = vadd.f32 %v4812_v54, %v4734_v15  ;;  %v18430_v61 = vld [vmem:[#allocation108_spill] sm:$0xff] }
 0x6f6   : > { %v14424_v14 = vadd.f32 %v18421_v45, %v14143_v49  ;;  %v14428_v16 = vadd.f32 %v18421_v45, %v14146_v7  ;;  %v14432_v44 = vadd.f32 %v18421_v45, %v14219_v20  ;;  %v14436_v31 = vadd.f32 %v18421_v45, %v14222_v30 }
 0x6f7   : > { %v4857_v23 = vadd.f32 %v4856_v6, %v4735_v2  ;;  %v4901_v39 = vadd.f32 %v4900_v8, %v4736_v63  ;;  %v4945_v41 = vadd.f32 %v4944_v25, %v4737_v51  ;;  %v4814_v4 = vadd.f32 %v4813_v52, %v14195_v10  ;;  %v14456_v10 = vpop.permute.xlu2 %5001 }
 0x6f8   : > { %18422 = vst [vmem:[#allocation245_spill] sm:$0xff] %v14424_v14  ;;  %v15995_v55 = vmax.f32 %v14424_v14, 0.0  ;;  %v15994_v49 = vmax.f32 %v14428_v16, 0.0  ;;  %v15993_v6 = vmax.f32 %v14432_v44, 0.0  ;;  %v15992_v54 = vmax.f32 %v14436_v31, 0.0  ;;  %v18449_v14 = vld [vmem:[#allocation326_spill] sm:$0xff] }
 0x6f9   : > { %18423 = vst [vmem:[#allocation39_spill] sm:$0xff] %v14428_v16  ;;  %v4858_v7 = vadd.f32 %v4857_v23, %v14200_v42  ;;  %v4902_v20 = vadd.f32 %v4901_v39, %v14205_v35  ;;  %v4946_v15 = vadd.f32 %v4945_v41, %v14210_v60  ;;  %v18426_v42 = vld [vmem:[#allocation160_spill] sm:$0xff]  ;;  %v18428_v35 = vld [vmem:[#allocation103_spill] sm:$0xff]  ;;  %v18431_v8 = vmax.f32 %v18430_v61, 0.0  ;;  %v18434_v41 = vld [vmem:[#allocation178_spill] sm:$0xff] }
 0x6fa   : > { %18424 = vst [vmem:[#allocation246_spill] sm:$0xff] %v14432_v44  ;;  %v14449_v30 = vmul.f32 %v14140_v40, %v15995_v55  ;;  %v14454_v51 = vmul.f32 %v14140_v40, %v15994_v49  ;;  %v18427_v52 = vmax.f32 %v18426_v42, 0.0  ;;  %v18429_v2 = vmax.f32 %v18428_v35, 0.0  ;;  %v18432_v23 = vld [vmem:[#allocation311_spill] sm:$0xff]  ;;  %v18448_v16 = vld [vmem:[#allocation206_spill] sm:$0xff] }
 0x6fb   : > { %18425 = vst [vmem:[#allocation315_spill] sm:$0xff] %v14436_v31  ;;  %v14471_v63 = vmul.f32 %v14140_v40, %v15993_v6  ;;  %v14476_v0 = vmul.f32 %v14140_v40, %v15992_v54  ;;  %v14483_v45 = vmul.f32 %v14154_v38, %v18431_v8  ;;  %v18435_v42 = vmax.f32 %v18434_v41, 0.0  ;;  %v18436_v35 = vld [vmem:[#allocation111_spill] sm:$0xff]  ;;  %v18440_v6 = vld [vmem:[#allocation30_spill] sm:$0xff]  ;;  %v14508_v31 = vpop.permute.xlu1 %4977 }
 0x6fc   : > { %v14461_v25 = vmul.f32 %v14076_v29, %v18427_v52  ;;  %v14466_v60 = vmul.f32 %v14076_v29, %v18429_v2  ;;  %v18433_v29 = vmax.f32 %v18432_v23, 0.0  ;;  %v18437_v40 = vmax.f32 %v18436_v35, 0.0  ;;  %v18438_v54 = vld [vmem:[#allocation223_spill] sm:$0xff] }
 0x6fd   : > { %v14493_v52 = vmul.f32 %v14154_v38, %v18435_v42  ;;  %v18439_v61 = vmax.f32 %v18438_v54, 0.0  ;;  %v18441_v49 = vmax.f32 %v18440_v6, 0.0  ;;  %v4859_v41 = vadd.f32 %v4858_v7, %v18443_v11  ;;  %v18444_v42 = vld [vmem:[#allocation63_spill] sm:$0xff]  ;;  %v18452_v7 = vld [vmem:[#allocation121_spill] sm:$0xff] }
 0x6fe   : > { %v14488_v39 = vmul.f32 %v14154_v38, %v18433_v29  ;;  %v14498_v2 = vmul.f32 %v14154_v38, %v18437_v40  ;;  %v18442_v29 = vld [vmem:[#allocation175_spill] sm:$0xff]  ;;  %v18445_v44 = vmax.f32 %v18444_v42, 0.0  ;;  %v18446_v38 = vld [vmem:[#allocation254_spill] sm:$0xff]  ;;  %v4947_v6 = vadd.f32 %v4946_v15, %v18449_v14  ;;  %v18456_v14 = vld [vmem:[#allocation205_spill] sm:$0xff] }
 0x6ff   : > { %v4746_v8 = vmul.f32 %v14174_v47, %v18439_v61  ;;  %v4747_v23 = vmul.f32 %v14174_v47, %v18441_v49  ;;  %v4815_v55 = vadd.f32 %v4814_v4, %v18442_v29  ;;  %v18447_v40 = vmax.f32 %v18446_v38, 0.0 }
 0x700   : > { %v4748_v35 = vmul.f32 %v14174_v47, %v18445_v44  ;;  %v4903_v61 = vadd.f32 %v4902_v20, %v18448_v16  ;;  %v18451_v4 = vmax.f32 %v18450_v18, 0.0  ;;  %v18453_v29 = vmax.f32 %v18452_v7, 0.0  ;;  %v18464_v7 = vld [vmem:[#allocation144_spill] sm:$0xff] }
 0x701   : > { %v4749_v54 = vmul.f32 %v14174_v47, %v18447_v40  ;;  %v4816_v26 = vadd.f32 %v4815_v55, %v4746_v8  ;;  %v4860_v49 = vadd.f32 %v4859_v41, %v4747_v23  ;;  %v18455_v47 = vmax.f32 %v18454_v59, 0.0  ;;  %v18458_v8 = vld [vmem:[#allocation203_spill] sm:$0xff] }
 0x702   : > { %v14521_v11 = vmul.f32 %v14228_v19, %v18451_v4  ;;  %v14526_v42 = vmul.f32 %v14228_v19, %v18453_v29  ;;  %v4904_v44 = vadd.f32 %v4903_v61, %v4748_v35  ;;  %v18457_v55 = vmax.f32 %v18456_v14, 0.0  ;;  %v18460_v35 = vld [vmem:[#allocation250_spill] sm:$0xff]  ;;  %v18462_v61 = vld [vmem:[#allocation316_spill] sm:$0xff] }
 0x703   : > { %v4948_v38 = vadd.f32 %v4947_v6, %v4749_v54  ;;  %v14531_v16 = vmul.f32 %v14228_v19, %v18455_v47  ;;  %v4817_v18 = vadd.f32 %v4816_v26, %v14281_v43  ;;  %v4861_v15 = vadd.f32 %v4860_v49, %v14286_v50  ;;  %v14554_v26 = vpop.permute.xlu2 %5013  ;;  %v18466_v49 = vld [vmem:[#allocation47_spill] sm:$0xff] }
 0x704   : > { %v14536_v20 = vmul.f32 %v14228_v19, %v18457_v55  ;;  %v18459_v23 = vmax.f32 %v18458_v8, 0.0  ;;  %v18461_v6 = vmax.f32 %v18460_v35, 0.0  ;;  %v4905_v54 = vadd.f32 %v4904_v44, %v14299_v24  ;;  %v18467_v47 = vld [vmem:[#allocation99_spill] sm:$0xff]  ;;  %v18468_v55 = vld [vmem:[#allocation137_spill] sm:$0xff] }
 0x705   : > { %v4949_v40 = vadd.f32 %v4948_v38, %v14304_v53  ;;  %v18463_v4 = vmax.f32 %v18462_v61, 0.0  ;;  %v18465_v43 = vmax.f32 %v18464_v7, 0.0  ;;  %v4818_v29 = vadd.f32 %v4817_v18, %v18466_v49  ;;  %v18470_v53 = vld [vmem:[#allocation22_spill] sm:$0xff]  ;;  %v18474_v61 = vld [vmem:[#allocation80_spill] sm:$0xff]  ;;  %v18476_v49 = vld [vmem:[#allocation105_spill] sm:$0xff] }
 0x706   : > { %v4758_v41 = vmul.f32 %v14250_v37, %v18459_v23  ;;  %v4759_v59 = vmul.f32 %v14250_v37, %v18461_v6  ;;  %v4862_v14 = vadd.f32 %v4861_v15, %v18467_v47  ;;  %v18469_v23 = vmax.f32 %v18468_v55, 0.0  ;;  %v14568_v6 = vpop.permute.xlu0 %5065 }
 0x707   : > { %v4760_v19 = vmul.f32 %v14250_v37, %v18463_v4  ;;  %v4761_v50 = vmul.f32 %v14250_v37, %v18465_v43  ;;  %v18471_v38 = vmax.f32 %v18470_v53, 0.0  ;;  %v18472_v4 = vld [vmem:[#allocation291_spill] sm:$0xff]  ;;  %v18473_v43 = vld [vmem:[#allocation21_spill] sm:$0xff]  ;;  %v18475_v18 = vmax.f32 %v18474_v61, 0.0  ;;  %v4986_v61 = vpop.permute.xlu1 %4985 }
 0x708   : > { %v14561_v24 = vmul.f32 %v14288_v13, %v18469_v23  ;;  %v4906_v37 = vadd.f32 %v4905_v54, %v18472_v4  ;;  %v4950_v7 = vadd.f32 %v4949_v40, %v18473_v43  ;;  %v18477_v47 = vmax.f32 %v18476_v49, 0.0  ;;  %v18480_v54 = vld [vmem:[#allocation122_spill] sm:$0xff] }
 0x709   : > { %v14566_v44 = vmul.f32 %v14288_v13, %v18471_v38  ;;  %v14575_v15 = vmul.f32 %v14288_v13, %v18475_v18  ;;  %v4819_v23 = vadd.f32 %v4818_v29, %v4758_v41  ;;  %v4863_v53 = vadd.f32 %v4862_v14, %v4759_v59  ;;  %v18478_v38 = vld [vmem:[#allocation177_spill] sm:$0xff]  ;;  %v18484_v41 = vld [vmem:[#allocation314_spill] sm:$0xff] }
 0x70a   : > { %v14580_v55 = vmul.f32 %v14288_v13, %v18477_v47  ;;  %v18479_v35 = vmax.f32 %v18478_v38, 0.0  ;;  %v18481_v4 = vmax.f32 %v18480_v54, 0.0  ;;  %v4907_v43 = vadd.f32 %v4906_v37, %v4760_v19  ;;  %v18486_v47 = vld [vmem:[#allocation33_spill] sm:$0xff]  ;;  %v18488_v19 = vld [vmem:[#allocation84_spill] sm:$0xff] }
 0x70b   : > { %v4951_v18 = vadd.f32 %v4950_v7, %v4761_v50  ;;  %v18483_v49 = vmax.f32 %v18482_v32, 0.0  ;;  %v18485_v59 = vmax.f32 %v18484_v41, 0.0  ;;  %v4864_v14 = vadd.f32 %v4863_v53, %v14368_v46  ;;  %v18492_v41 = vld [vmem:[#allocation267_spill] sm:$0xff] }
 0x70c   : > { %v14585_v8 = vmul.f32 %v14306_v36, %v18479_v35  ;;  %v14590_v40 = vmul.f32 %v14306_v36, %v18481_v4  ;;  %v4820_v35 = vadd.f32 %v4819_v23, %v14363_v22  ;;  %v18487_v38 = vmax.f32 %v18486_v47, 0.0  ;;  %v18490_v4 = vld [vmem:[#allocation65_spill] sm:$0xff]  ;;  %v18494_v23 = vld [vmem:[#allocation328_spill] sm:$0xff]  ;;  %v18496_v47 = vld [vmem:[#allocation234_spill] sm:$0xff] }
 0x70d   : > { %v14595_v13 = vmul.f32 %v14306_v36, %v18483_v49  ;;  %v14600_v29 = vmul.f32 %v14306_v36, %v18485_v59  ;;  %v18489_v7 = vmax.f32 %v18488_v19, 0.0  ;;  %v4908_v50 = vadd.f32 %v4907_v43, %v14385_v57  ;;  %v18495_v59 = vld [vmem:[#allocation212_spill] sm:$0xff]  ;;  %v18498_v57 = vld [vmem:[#allocation98_spill] sm:$0xff] }
 0x70e   : > { %v4770_v54 = vmul.f32 %v14332_v34, %v18487_v38  ;;  %v4952_v37 = vadd.f32 %v4951_v18, %v14390_v58  ;;  %v18491_v49 = vmax.f32 %v18490_v4, 0.0  ;;  %v18493_v22 = vmax.f32 %v18492_v41, 0.0  ;;  %v18500_v18 = vld [vmem:[#allocation192_spill] sm:$0xff]  ;;  %v18501_v4 = vld [vmem:[#allocation229_spill] sm:$0xff] }
 0x70f   : > { %v4771_v32 = vmul.f32 %v14332_v34, %v18489_v7  ;;  %v4821_v53 = vadd.f32 %v4820_v35, %v18494_v23  ;;  %v4865_v38 = vadd.f32 %v4864_v14, %v18495_v59  ;;  %v18497_v19 = vmax.f32 %v18496_v47, 0.0  ;;  %v18504_v14 = vld [vmem:[#allocation29_spill] sm:$0xff] }
 0x710   : > { %v4772_v36 = vmul.f32 %v14332_v34, %v18491_v49  ;;  %v4773_v46 = vmul.f32 %v14332_v34, %v18493_v22  ;;  %v18499_v43 = vmax.f32 %v18498_v57, 0.0  ;;  %v4909_v49 = vadd.f32 %v4908_v50, %v18500_v18  ;;  %v18506_v57 = vld [vmem:[#allocation307_spill] sm:$0xff]  ;;  %v18509_v50 = vld [vmem:[#allocation232_spill] sm:$0xff] }
 0x711   : > { %v14623_v7 = vmul.f32 %v14370_v56, %v18497_v19  ;;  %v4953_v41 = vadd.f32 %v4952_v37, %v18501_v4  ;;  %v18503_v34 = vmax.f32 %v18502_v62, 0.0  ;;  %v18505_v22 = vmax.f32 %v18504_v14, 0.0  ;;  %v5026_v19 = vpop.permute.xlu2 %5025 }
 0x712   : > { %v14628_v58 = vmul.f32 %v14370_v56, %v18499_v43  ;;  %v4822_v23 = vadd.f32 %v4821_v53, %v4770_v54  ;;  %v4866_v59 = vadd.f32 %v4865_v38, %v4771_v32  ;;  %v18507_v43 = vmax.f32 %v18506_v57, 0.0  ;;  %v14662_v53 = vpop.permute.xlu0 %5077 }
 0x713   : > { %v14635_v35 = vmul.f32 %v14370_v56, %v18503_v34  ;;  %v14640_v47 = vmul.f32 %v14370_v56, %v18505_v22  ;;  %v18510_v37 = vmax.f32 %v18509_v50, 0.0  ;;  %v4910_v4 = vadd.f32 %v4909_v49, %v4772_v36  ;;  %v18512_v34 = vld [vmem:[#allocation308_spill] sm:$0xff]  ;;  %v18515_v22 = vld [vmem:[#allocation233_spill] sm:$0xff]  ;;  %v18518_v36 = vld [vmem:[#allocation163_spill] sm:$0xff] }
 0x714   : > { %v14645_v9 = vmul.f32 %v14392_v12, %v18507_v43  ;;  %v4954_v18 = vadd.f32 %v4953_v41, %v4773_v46  ;;  %v18513_v14 = vmax.f32 %v18512_v34, 0.0  ;;  %v18516_v54 = vmax.f32 %v18515_v22, 0.0  ;;  %v18520_v49 = vld [vmem:[#allocation102_spill] sm:$0xff]  ;;  %v18524_v34 = vld [vmem:[#allocation53_spill] sm:$0xff] }
 0x715   : > { %v14650_v62 = vmul.f32 %v14392_v12, %v18510_v37  ;;  %v14665_v38 = vadd.f32 %v4822_v23, %v14449_v30  ;;  %v14668_v57 = vadd.f32 %v4866_v59, %v14454_v51  ;;  %v18519_v41 = vmax.f32 %v18518_v36, 0.0  ;;  %v18522_v23 = vld [vmem:[#allocation264_spill] sm:$0xff] }
 0x716   : > { %18508 = vst [vmem:[#allocation117_spill] sm:$0xff] %v14645_v9  ;;  %v14655_v56 = vmul.f32 %v14392_v12, %v18513_v14  ;;  %v14660_v32 = vmul.f32 %v14392_v12, %v18516_v54  ;;  %v18521_v43 = vmax.f32 %v18520_v49, 0.0  ;;  %v4998_v12 = vpop.permute.xlu1 %4997  ;;  %v14681_v37 = vadd.f32 %v4910_v4, %v14471_v63  ;;  %v18526_v54 = vld [vmem:[#allocation239_spill] sm:$0xff]  ;;  %v18565_v9 = vld [vmem:[#allocation162_spill] sm:$0xff] }
 0x717   : > { %18511 = vst [vmem:[#allocation268_spill] sm:$0xff] %v14650_v62  ;;  %v14673_v46 = vmul.f32 %v14456_v10, %v18519_v41  ;;  %v14684_v30 = vadd.f32 %v4954_v18, %v14476_v0  ;;  %v18523_v51 = vmax.f32 %v18522_v23, 0.0  ;;  %v18525_v14 = vmax.f32 %v18524_v34, 0.0  ;;  %v18529_v63 = vld [vmem:[#allocation123_spill] sm:$0xff]  ;;  %v18532_v18 = vld [vmem:[#allocation261_spill] sm:$0xff] }
 0x718   : > { %18514 = vst [vmem:[#allocation230_spill] sm:$0xff] %v14655_v56  ;;  %v14678_v50 = vmul.f32 %v14456_v10, %v18521_v43  ;;  %v18527_v36 = vmax.f32 %v18526_v54, 0.0  ;;  %v18530_v4 = vmax.f32 %v18529_v63, 0.0  ;;  %v18533_v49 = vmax.f32 %v18532_v18, 0.0  ;;  %v18534_v23 = vld [vmem:[#allocation301_spill] sm:$0xff]  ;;  %v18546_v56 = vld [vmem:[#allocation266_spill] sm:$0xff] }
 0x719   : > { %18517 = vst [vmem:[#allocation216_spill] sm:$0xff] %v14660_v32  ;;  %v14689_v59 = vmul.f32 %v14456_v10, %v18523_v51  ;;  %v14694_v22 = vmul.f32 %v14456_v10, %v18525_v14  ;;  %v18535_v51 = vmax.f32 %v18534_v23, 0.0  ;;  %v18536_v10 = vld [vmem:[#allocation182_spill] sm:$0xff]  ;;  %v18544_v32 = vld [vmem:[#allocation164_spill] sm:$0xff]  ;;  %v18563_v62 = vld [vmem:[#allocation95_spill] sm:$0xff]  ;;  %v18566_v5 = vmax.f32 %v18565_v9, 0.0 }
 0x71a   : > { %v14699_v41 = vmul.f32 %v14478_v3, %v18527_v36  ;;  %v14704_v0 = vmul.f32 %v14478_v3, %v18530_v4  ;;  %v5128_v43 = vmul.f32 %v14508_v31, %v18533_v49  ;;  %v18537_v14 = vmax.f32 %v18536_v10, 0.0  ;;  %v18539_v36 = vld [vmem:[#allocation49_spill] sm:$0xff] }
 0x71b   : > { %v5129_v34 = vmul.f32 %v14508_v31, %v18535_v51  ;;  %v18542_v4 = vld [vmem:[#allocation93_spill] sm:$0xff]  ;;  %v18545_v49 = vmax.f32 %v18544_v32, 0.0 }
 0x71c   : > { %18528 = vst [vmem:[#allocation176_spill] sm:$0xff] %v14699_v41  ;;  %v14715_v54 = vmul.f32 %v14478_v3, %v18537_v14  ;;  %v18540_v41 = vmax.f32 %v18539_v36, 0.0  ;;  %v5276_v51 = vadd.f32 %v5128_v43, %v14311_v1  ;;  %v18547_v14 = vmax.f32 %v18546_v56, 0.0  ;;  %v18548_v36 = vld [vmem:[#allocation197_spill] sm:$0xff] }
 0x71d   : > { %18531 = vst [vmem:[#allocation302_spill] sm:$0xff] %v14704_v0  ;;  %v18543_v0 = vmax.f32 %v18542_v4, 0.0  ;;  %v5131_v23 = vmul.f32 %v14508_v31, %v18545_v49  ;;  %v5320_v10 = vadd.f32 %v5129_v34, %v14316_v28  ;;  %v18550_v4 = vld [vmem:[#allocation156_spill] sm:$0xff]  ;;  %v18552_v28 = vld [vmem:[#allocation139_spill] sm:$0xff]  ;;  %v5038_v34 = vpop.permute.xlu2 %5037  ;;  %v18554_v49 = vld [vmem:[#allocation54_spill] sm:$0xff] }
 0x71e   : > { %18538 = vst [vmem:[#allocation180_spill] sm:$0xff] %v14715_v54  ;;  %v14720_v63 = vmul.f32 %v14478_v3, %v18540_v41  ;;  %v14733_v54 = vmul.f32 %v14554_v26, %v18547_v14  ;;  %v18549_v3 = vmax.f32 %v18548_v36, 0.0  ;;  %v18553_v43 = vmax.f32 %v18552_v28, 0.0  ;;  %v5010_v9 = vpop.permute.xlu1 %5009 }
 0x71f   : > { %v5130_v18 = vmul.f32 %v14508_v31, %v18543_v0  ;;  %v5408_v32 = vadd.f32 %v5131_v23, %v14380_v48  ;;  %v18551_v31 = vmax.f32 %v18550_v4, 0.0  ;;  %v18555_v14 = vmax.f32 %v18554_v49, 0.0 }
 0x720   : > { %18541 = vst [vmem:[#allocation166_spill] sm:$0xff] %v14720_v63  ;;  %v14738_v41 = vmul.f32 %v14554_v26, %v18549_v3  ;;  %v14750_v56 = vmul.f32 %v14554_v26, %v18553_v43  ;;  %v18557_v3 = vld [vmem:[#allocation179_spill] sm:$0xff]  ;;  %v5139_v49 = vmul.f32 %v4986_v61, %v18566_v5 }
 0x721   : > { %v5364_v0 = vadd.f32 %v5130_v18, %v14375_v27  ;;  %v14745_v1 = vmul.f32 %v14554_v26, %v18551_v31  ;;  %v14755_v36 = vmul.f32 %v14568_v6, %v18555_v14  ;;  %v18558_v27 = vmax.f32 %v18557_v3, 0.0  ;;  %v18559_v18 = vld [vmem:[#allocation243_spill] sm:$0xff] }
 0x722   : > { %v18560_v23 = vmax.f32 %v18559_v18, 0.0  ;;  %v18561_v31 = vld [vmem:[#allocation147_spill] sm:$0xff]  ;;  %v18564_v26 = vmax.f32 %v18563_v62, 0.0  ;;  %v5277_v14 = vadd.f32 %v5276_v51, %v14561_v24  ;;  %v18570_v18 = vld [vmem:[#allocation141_spill] sm:$0xff] }
 0x723   : > { %18556 = vst [vmem:[#allocation58_spill] sm:$0xff] %v14755_v36  ;;  %v14760_v48 = vmul.f32 %v14568_v6, %v18558_v27  ;;  %v18562_v63 = vmax.f32 %v18561_v31, 0.0  ;;  %v5321_v36 = vadd.f32 %v5320_v10, %v14566_v44  ;;  %v18567_v3 = vld [vmem:[#allocation319_spill] sm:$0xff]  ;;  %v5365_v62 = vadd.f32 %v5364_v0, %v14575_v15  ;;  %v18573_v24 = vld [vmem:[#allocation81_spill] sm:$0xff] }
 0x724   : > { %v5136_v4 = vmul.f32 %v4986_v61, %v18560_v23  ;;  %v5138_v43 = vmul.f32 %v4986_v61, %v18564_v26  ;;  %v18568_v17 = vmax.f32 %v18567_v3, 0.0  ;;  %v18571_v23 = vmax.f32 %v18570_v18, 0.0  ;;  %v18575_v10 = vld [vmem:[#allocation271_spill] sm:$0xff]  ;;  %v5090_v3 = vpop.permute.xlu0 %5089 }
 0x725   : > { %v5137_v28 = vmul.f32 %v4986_v61, %v18562_v63  ;;  %v5409_v63 = vadd.f32 %v5408_v32, %v14580_v55  ;;  %v18574_v51 = vmax.f32 %v18573_v24, 0.0  ;;  %v18576_v26 = vmax.f32 %v18575_v10, 0.0  ;;  %v18579_v15 = vld [vmem:[#allocation31_spill] sm:$0xff]  ;;  %v18583_v24 = vld [vmem:[#allocation236_spill] sm:$0xff] }
 0x726   : > { %v14775_v27 = vmul.f32 %v14568_v6, %v18568_v17  ;;  %v14780_v31 = vmul.f32 %v14568_v6, %v18571_v23  ;;  %v5278_v5 = vadd.f32 %v5277_v14, %v5136_v4  ;;  %v5366_v18 = vadd.f32 %v5365_v62, %v5138_v43  ;;  %v18577_v6 = vld [vmem:[#allocation91_spill] sm:$0xff]  ;;  %v18581_v4 = vld [vmem:[#allocation56_spill] sm:$0xff] }
 0x727   : > { %v5322_v61 = vadd.f32 %v5321_v36, %v5137_v28  ;;  %v14786_v44 = vmul.f32 %v5026_v19, %v18574_v51  ;;  %v14790_v17 = vmul.f32 %v5026_v19, %v18576_v26  ;;  %v18578_v23 = vmax.f32 %v18577_v6, 0.0 }
 0x728   : > { %18569 = vst [vmem:[#allocation169_spill] sm:$0xff] %v14775_v27  ;;  %v5410_v27 = vadd.f32 %v5409_v63, %v5139_v49  ;;  %v18580_v55 = vmax.f32 %v18579_v15, 0.0  ;;  %v5279_v32 = vadd.f32 %v5278_v5, %v14623_v7  ;;  %v18582_v28 = vmax.f32 %v18581_v4, 0.0  ;;  %v18587_v7 = vld [vmem:[#allocation100_spill] sm:$0xff] }
 0x729   : > { %18572 = vst [vmem:[#allocation248_spill] sm:$0xff] %v14780_v31  ;;  %v14794_v31 = vmul.f32 %v5026_v19, %v18578_v23  ;;  %v5323_v36 = vadd.f32 %v5322_v61, %v14628_v58  ;;  %v18584_v43 = vmax.f32 %v18583_v24, 0.0  ;;  %v5367_v62 = vadd.f32 %v5366_v18, %v14635_v35  ;;  %v18589_v61 = vld [vmem:[#allocation106_spill] sm:$0xff]  ;;  %v18591_v23 = vld [vmem:[#allocation115_spill] sm:$0xff]  ;;  %v5050_v24 = vpop.permute.xlu2 %5049 }
 0x72a   : > { %v14798_v0 = vmul.f32 %v5026_v19, %v18580_v55  ;;  %v14805_v14 = vmul.f32 %v14662_v53, %v18582_v28  ;;  %v5411_v63 = vadd.f32 %v5410_v27, %v14640_v47  ;;  %v18585_v19 = vld [vmem:[#allocation145_spill] sm:$0xff]  ;;  %v18588_v5 = vmax.f32 %v18587_v7, 0.0  ;;  %v18593_v35 = vld [vmem:[#allocation259_spill] sm:$0xff]  ;;  %v18595_v27 = vld [vmem:[#allocation260_spill] sm:$0xff] }
 0x72b   : > { %v14810_v49 = vmul.f32 %v14662_v53, %v18584_v43  ;;  %v18586_v51 = vmax.f32 %v18585_v19, 0.0  ;;  %v18590_v26 = vmax.f32 %v18589_v61, 0.0  ;;  %v18592_v15 = vmax.f32 %v18591_v23, 0.0 }
 0x72c   : > { %v5149_v58 = vmul.f32 %v4998_v12, %v18588_v5  ;;  %v5280_v4 = vadd.f32 %v5279_v32, %v14397_v33  ;;  %v5324_v28 = vadd.f32 %v5323_v36, %v14402_v21  ;;  %v18594_v18 = vmax.f32 %v18593_v35, 0.0  ;;  %v18597_v33 = vld [vmem:[#allocation42_spill] sm:$0xff]  ;;  %v18599_v36 = vld [vmem:[#allocation104_spill] sm:$0xff] }
 0x72d   : > { %v5148_v10 = vmul.f32 %v4998_v12, %v18586_v51  ;;  %v5150_v6 = vmul.f32 %v4998_v12, %v18590_v26  ;;  %v5151_v55 = vmul.f32 %v4998_v12, %v18592_v15  ;;  %v18596_v43 = vmax.f32 %v18595_v27, 0.0  ;;  %v18601_v35 = vld [vmem:[#allocation174_spill] sm:$0xff] }
 0x72e   : > { %v14827_v47 = vmul.f32 %v14662_v53, %v18594_v18  ;;  %v5368_v51 = vadd.f32 %v5367_v62, %v14461_v25  ;;  %v5412_v7 = vadd.f32 %v5411_v63, %v14466_v60  ;;  %v5325_v5 = vadd.f32 %v5324_v28, %v5149_v58  ;;  %v18603_v27 = vld [vmem:[#allocation194_spill] sm:$0xff]  ;;  %v5022_v60 = vpop.permute.xlu1 %5021  ;;  %v18605_v58 = vld [vmem:[#allocation51_spill] sm:$0xff] }
 0x72f   : > { %v14832_v19 = vmul.f32 %v14662_v53, %v18596_v43  ;;  %v5281_v12 = vadd.f32 %v5280_v4, %v5148_v10  ;;  %v18598_v32 = vmax.f32 %v18597_v33, 0.0  ;;  %v18600_v61 = vmax.f32 %v18599_v36, 0.0  ;;  %v18607_v43 = vld [vmem:[#allocation306_spill] sm:$0xff]  ;;  %v18609_v33 = vld [vmem:[#allocation35_spill] sm:$0xff] }
 0x730   : > { %v5369_v23 = vadd.f32 %v5368_v51, %v5150_v6  ;;  %v5413_v15 = vadd.f32 %v5412_v7, %v5151_v55  ;;  %v18602_v18 = vmax.f32 %v18601_v35, 0.0  ;;  %v18604_v25 = vmax.f32 %v18603_v27, 0.0  ;;  %v18611_v36 = vld [vmem:[#allocation114_spill] sm:$0xff]  ;;  %v18615_v35 = vld [vmem:[#allocation116_spill] sm:$0xff] }
 0x731   : > { %v14838_v21 = vmul.f32 %v5038_v34, %v18598_v32  ;;  %v14842_v26 = vmul.f32 %v5038_v34, %v18600_v61  ;;  %v5282_v63 = vadd.f32 %v5281_v12, %v14673_v46  ;;  %v5326_v10 = vadd.f32 %v5325_v5, %v14678_v50  ;;  %v18613_v12 = vld [vmem:[#allocation309_spill] sm:$0xff] }
 0x732   : > { %v14846_v53 = vmul.f32 %v5038_v34, %v18602_v18  ;;  %v14850_v62 = vmul.f32 %v5038_v34, %v18604_v25  ;;  %v18606_v4 = vmax.f32 %v18605_v58, 0.0  ;;  %v18608_v6 = vmax.f32 %v18607_v43, 0.0 }
 0x733   : > { %v5370_v51 = vadd.f32 %v5369_v23, %v14689_v59  ;;  %v5414_v7 = vadd.f32 %v5413_v15, %v14694_v22  ;;  %v18610_v34 = vmax.f32 %v18609_v33, 0.0  ;;  %v18612_v61 = vmax.f32 %v18611_v36, 0.0  ;;  %v18617_v59 = vld [vmem:[#allocation198_spill] sm:$0xff] }
 0x734   : > { %v14856_v28 = vmul.f32 %v5090_v3, %v18606_v4  ;;  %v14860_v55 = vmul.f32 %v5090_v3, %v18608_v6  ;;  %v18614_v50 = vmax.f32 %v18613_v12, 0.0  ;;  %v18616_v18 = vmax.f32 %v18615_v35, 0.0  ;;  %v5102_v4 = vpop.permute.xlu0 %5101  ;;  %v18619_v15 = vld [vmem:[#allocation226_spill] sm:$0xff] }
 0x735   : > { %v5160_v32 = vmul.f32 %v5010_v9, %v18610_v34  ;;  %v5161_v46 = vmul.f32 %v5010_v9, %v18612_v61  ;;  %v5283_v25 = vadd.f32 %v5282_v63, %v14483_v45  ;;  %v5327_v58 = vadd.f32 %v5326_v10, %v14488_v39  ;;  %v18623_v39 = vld [vmem:[#allocation224_spill] sm:$0xff] }
 0x736   : > { %v5162_v5 = vmul.f32 %v5010_v9, %v18614_v50  ;;  %v5163_v27 = vmul.f32 %v5010_v9, %v18616_v18  ;;  %v18618_v23 = vmax.f32 %v18617_v59, 0.0  ;;  %v18620_v43 = vmax.f32 %v18619_v15, 0.0  ;;  %v18621_v9 = vld [vmem:[#allocation125_spill] sm:$0xff]  ;;  %v5062_v50 = vpop.permute.xlu2 %5061 }
 0x737   : > { %v5371_v33 = vadd.f32 %v5370_v51, %v14493_v52  ;;  %v5415_v34 = vadd.f32 %v5414_v7, %v14498_v2  ;;  %v5284_v36 = vadd.f32 %v5283_v25, %v5160_v32  ;;  %v5328_v61 = vadd.f32 %v5327_v58, %v5161_v46  ;;  %v18625_v59 = vld [vmem:[#allocation129_spill] sm:$0xff]  ;;  %v18627_v52 = vld [vmem:[#allocation134_spill] sm:$0xff]  ;;  %v18629_v46 = vld [vmem:[#allocation292_spill] sm:$0xff] }
 0x738   : > { %v14876_v22 = vmul.f32 %v5090_v3, %v18618_v23  ;;  %v14880_v6 = vmul.f32 %v5090_v3, %v18620_v43  ;;  %v18622_v12 = vmax.f32 %v18621_v9, 0.0  ;;  %v18624_v63 = vmax.f32 %v18623_v39, 0.0  ;;  %v18631_v15 = vld [vmem:[#allocation185_spill] sm:$0xff] }
 0x739   : > { %v5372_v35 = vadd.f32 %v5371_v33, %v5162_v5  ;;  %v5416_v18 = vadd.f32 %v5415_v34, %v5163_v27  ;;  %v18626_v3 = vmax.f32 %v18625_v59, 0.0  ;;  %v18628_v51 = vmax.f32 %v18627_v52, 0.0  ;;  %v18633_v34 = vld [vmem:[#allocation79_spill] sm:$0xff] }
 0x73a   : > { %v14886_v45 = vmul.f32 %v5050_v24, %v18622_v12  ;;  %v14890_v10 = vmul.f32 %v5050_v24, %v18624_v63  ;;  %v5285_v7 = vadd.f32 %v5284_v36, %v14733_v54  ;;  %v5329_v32 = vadd.f32 %v5328_v61, %v14738_v41  ;;  %v18635_v12 = vld [vmem:[#allocation171_spill] sm:$0xff]  ;;  %v5034_v36 = vpop.permute.xlu1 %5033  ;;  %v18637_v41 = vld [vmem:[#allocation220_spill] sm:$0xff] }
 0x73b   : > { %v14894_v23 = vmul.f32 %v5050_v24, %v18626_v3  ;;  %v14898_v2 = vmul.f32 %v5050_v24, %v18628_v51  ;;  %v18630_v25 = vmax.f32 %v18629_v46, 0.0  ;;  %v18632_v43 = vmax.f32 %v18631_v15, 0.0  ;;  %v18639_v59 = vld [vmem:[#allocation275_spill] sm:$0xff] }
 0x73c   : > { %v5373_v27 = vadd.f32 %v5372_v35, %v14745_v1  ;;  %v5417_v33 = vadd.f32 %v5416_v18, %v14750_v56  ;;  %v18634_v9 = vmax.f32 %v18633_v34, 0.0  ;;  %v18636_v39 = vmax.f32 %v18635_v12, 0.0  ;;  %v18641_v1 = vld [vmem:[#allocation193_spill] sm:$0xff] }
 0x73d   : > { %v14904_v58 = vmul.f32 %v5102_v4, %v18630_v25  ;;  %v14908_v5 = vmul.f32 %v5102_v4, %v18632_v43  ;;  %v18638_v61 = vmax.f32 %v18637_v41, 0.0  ;;  %v18640_v3 = vmax.f32 %v18639_v59, 0.0  ;;  %v18643_v18 = vld [vmem:[#allocation189_spill] sm:$0xff]  ;;  %v18649_v59 = vld [vmem:[#allocation227_spill] sm:$0xff] }
 0x73e   : > { %v5172_v24 = vmul.f32 %v5022_v60, %v18634_v9  ;;  %v5173_v54 = vmul.f32 %v5022_v60, %v18636_v39  ;;  %v5286_v51 = vadd.f32 %v5285_v7, %v14521_v11  ;;  %v5330_v46 = vadd.f32 %v5329_v32, %v14526_v42  ;;  %v18645_v39 = vld [vmem:[#allocation143_spill] sm:$0xff] }
 0x73f   : > { %v5174_v63 = vmul.f32 %v5022_v60, %v18638_v61  ;;  %v5175_v52 = vmul.f32 %v5022_v60, %v18640_v3  ;;  %v18642_v35 = vmax.f32 %v18641_v1, 0.0  ;;  %v18644_v25 = vmax.f32 %v18643_v18, 0.0  ;;  %v18647_v11 = vld [vmem:[#allocation279_spill] sm:$0xff]  ;;  %v18656_v18 = vld [vmem:[#allocation14_spill] sm:$0xff] }
 0x740   : > { %v5374_v43 = vadd.f32 %v5373_v27, %v14531_v16  ;;  %v5418_v34 = vadd.f32 %v5417_v33, %v14536_v20  ;;  %v5287_v9 = vadd.f32 %v5286_v51, %v5172_v24  ;;  %v5331_v12 = vadd.f32 %v5330_v46, %v5173_v54  ;;  %v18653_v20 = vld [vmem:[#allocation280_spill] sm:$0xff]  ;;  %v5114_v54 = vpop.permute.xlu0 %5113  ;;  %v18655_v51 = vld [vmem:[#allocation265_spill] sm:$0xff] }
 0x741   : > { %v14924_v56 = vmul.f32 %v5102_v4, %v18642_v35  ;;  %v14928_v15 = vmul.f32 %v5102_v4, %v18644_v25  ;;  %v18646_v60 = vmax.f32 %v18645_v39, 0.0  ;;  %v18648_v42 = vmax.f32 %v18647_v11, 0.0  ;;  %v18650_v4 = vld [vmem:[#allocation57_spill] sm:$0xff]  ;;  %v18651_v35 = vld [vmem:[#allocation322_spill] sm:$0xff]  ;;  %v5074_v39 = vpop.permute.xlu2 %5073 }
 0x742   : > { %v5375_v32 = vadd.f32 %v5374_v43, %v5174_v63  ;;  %v5419_v61 = vadd.f32 %v5418_v34, %v5175_v52  ;;  %v4398_v3 = vmax.f32 %v18649_v59, 0.0  ;;  %v4399_v1 = vmax.f32 %v18650_v4, 0.0  ;;  %v18657_v43 = vld [vmem:[#allocation244_spill] sm:$0xff] }
 0x743   : > { %v14934_v41 = vmul.f32 %v5062_v50, %v18646_v60  ;;  %v14938_v7 = vmul.f32 %v5062_v50, %v18648_v42  ;;  %v18652_v16 = vmax.f32 %v18651_v35, 0.0  ;;  %v18654_v33 = vmax.f32 %v18653_v20, 0.0 }
 0x744   : > { %v4400_v46 = vmax.f32 %v18655_v51, 0.0  ;;  %v4401_v25 = vmax.f32 %v18656_v18, 0.0  ;;  %v5288_v63 = vadd.f32 %v5287_v9, %v14786_v44  ;;  %v5332_v52 = vadd.f32 %v5331_v12, %v14790_v17  ;;  %v5046_v9 = vpop.permute.xlu1 %5045 }
 0x745   : > { %v14944_v27 = vmul.f32 %v5062_v50, %v18652_v16  ;;  %v14948_v24 = vmul.f32 %v5062_v50, %v18654_v33  ;;  %v4778_v34 = vmul.f32 %v18657_v43, %v4398_v3  ;;  %v4779_v60 = vmul.f32 %v18657_v43, %v4399_v1  ;;  %v18660_v16 = vld [vmem:[#allocation60_spill] sm:$0xff]  ;;  %v18662_v33 = vld [vmem:[#allocation43_spill] sm:$0xff] }
 0x746   : > { %v5376_v11 = vadd.f32 %v5375_v32, %v14794_v31  ;;  %v5420_v42 = vadd.f32 %v5419_v61, %v14798_v0  ;;  %v4780_v50 = vmul.f32 %v18657_v43, %v4400_v46  ;;  %v4781_v59 = vmul.f32 %v18657_v43, %v4401_v25  ;;  %v18658_v0 = vld [vmem:[#allocation172_spill] sm:$0xff] }
 0x747   : > { %v14961_v4 = vadd.f32 %v14665_v38, %v4778_v34  ;;  %v14964_v35 = vadd.f32 %v14668_v57, %v4779_v60  ;;  %v14966_v44 = vmul.f32 %v5114_v54, %v4398_v3  ;;  %v14968_v17 = vmul.f32 %v5114_v54, %v4399_v1  ;;  %v18664_v3 = vld [vmem:[#allocation150_spill] sm:$0xff] }
 0x748   : > { %v14971_v12 = vadd.f32 %v14681_v37, %v4780_v50  ;;  %v14974_v31 = vadd.f32 %v14684_v30, %v4781_v59  ;;  %v18659_v32 = vmax.f32 %v18658_v0, 0.0  ;;  %v18661_v38 = vmax.f32 %v18660_v16, 0.0 }
 0x749   : > { %v18663_v57 = vmax.f32 %v18662_v33, 0.0  ;;  %v18665_v18 = vmax.f32 %v18664_v3, 0.0  ;;  %v5289_v43 = vadd.f32 %v5288_v63, %v14585_v8  ;;  %v5333_v37 = vadd.f32 %v5332_v52, %v14590_v40  ;;  %v18668_v33 = vld [vmem:[#allocation113_spill] sm:$0xff] }
 0x74a   : > { %v5184_v61 = vmul.f32 %v5034_v36, %v18659_v32  ;;  %v5185_v20 = vmul.f32 %v5034_v36, %v18661_v38  ;;  %v14986_v34 = vmul.f32 %v5114_v54, %v4400_v46  ;;  %v14988_v30 = vmul.f32 %v5114_v54, %v4401_v25  ;;  %v18666_v32 = vld [vmem:[#allocation69_spill] sm:$0xff]  ;;  %v18670_v46 = vld [vmem:[#allocation323_spill] sm:$0xff] }
 0x74b   : > { %v5186_v51 = vmul.f32 %v5034_v36, %v18663_v57  ;;  %v5187_v1 = vmul.f32 %v5034_v36, %v18665_v18  ;;  %v5377_v60 = vadd.f32 %v5376_v11, %v14595_v13  ;;  %v5421_v50 = vadd.f32 %v5420_v42, %v14600_v29  ;;  %v18672_v25 = vld [vmem:[#allocation281_spill] sm:$0xff]  ;;  %v5086_v29 = vpop.permute.xlu2 %5085 }
 0x74c   : > { %v5290_v59 = vadd.f32 %v5289_v43, %v5184_v61  ;;  %v5334_v0 = vadd.f32 %v5333_v37, %v5185_v20  ;;  %v18667_v16 = vmax.f32 %v18666_v32, 0.0  ;;  %v18669_v36 = vmax.f32 %v18668_v33, 0.0  ;;  %v18674_v61 = vld [vmem:[#allocation204_spill] sm:$0xff]  ;;  %v18676_v18 = vld [vmem:[#allocation149_spill] sm:$0xff] }
 0x74d   : > { %v5378_v8 = vadd.f32 %v5377_v60, %v5186_v51  ;;  %v5422_v40 = vadd.f32 %v5421_v50, %v5187_v1  ;;  %v18671_v63 = vmax.f32 %v18670_v46, 0.0  ;;  %v18673_v13 = vmax.f32 %v18672_v25, 0.0  ;;  %v18678_v60 = vld [vmem:[#allocation276_spill] sm:$0xff]  ;;  %v18686_v25 = vld [vmem:[#allocation313_spill] sm:$0xff] }
 0x74e   : > { %v14994_v38 = vmul.f32 %v5074_v39, %v18667_v16  ;;  %v14998_v57 = vmul.f32 %v5074_v39, %v18669_v36  ;;  %v5291_v11 = vadd.f32 %v5290_v59, %v14838_v21  ;;  %v5335_v42 = vadd.f32 %v5334_v0, %v14842_v26  ;;  %v18682_v36 = vld [vmem:[#allocation117_spill] sm:$0xff]  ;;  %v18683_v59 = vld [vmem:[#allocation268_spill] sm:$0xff]  ;;  %v18684_v0 = vld [vmem:[#allocation218_spill] sm:$0xff] }
 0x74f   : > { %v15002_v54 = vmul.f32 %v5074_v39, %v18671_v63  ;;  %v15006_v52 = vmul.f32 %v5074_v39, %v18673_v13  ;;  %v18675_v20 = vmax.f32 %v18674_v61, 0.0  ;;  %v18677_v43 = vmax.f32 %v18676_v18, 0.0  ;;  %v18680_v39 = vld [vmem:[#allocation151_spill] sm:$0xff]  ;;  %v18690_v18 = vld [vmem:[#allocation126_spill] sm:$0xff] }
 0x750   : > { %v5379_v1 = vadd.f32 %v5378_v8, %v14846_v53  ;;  %v5423_v37 = vadd.f32 %v5422_v40, %v14850_v62  ;;  %v18679_v50 = vmax.f32 %v18678_v60, 0.0  ;;  %v18681_v16 = vmax.f32 %v18680_v39, 0.0  ;;  %v5058_v53 = vpop.permute.xlu1 %5057  ;;  %v18688_v62 = vld [vmem:[#allocation230_spill] sm:$0xff]  ;;  %v18689_v40 = vld [vmem:[#allocation216_spill] sm:$0xff] }
 0x751   : > { %v5196_v3 = vmul.f32 %v5046_v9, %v18675_v20  ;;  %v5197_v51 = vmul.f32 %v5046_v9, %v18677_v43  ;;  %v5292_v21 = vadd.f32 %v5291_v11, %v18682_v36  ;;  %v5336_v26 = vadd.f32 %v5335_v42, %v18683_v59  ;;  %v18692_v11 = vld [vmem:[#allocation41_spill] sm:$0xff] }
 0x752   : > { %v5198_v32 = vmul.f32 %v5046_v9, %v18679_v50  ;;  %v5199_v33 = vmul.f32 %v5046_v9, %v18681_v16  ;;  %v18685_v46 = vmax.f32 %v18684_v0, 0.0  ;;  %v18687_v13 = vmax.f32 %v18686_v25, 0.0  ;;  %v18694_v16 = vld [vmem:[#allocation277_spill] sm:$0xff]  ;;  %v18696_v0 = vld [vmem:[#allocation159_spill] sm:$0xff] }
 0x753   : > { %v5380_v8 = vadd.f32 %v5379_v1, %v18688_v62  ;;  %v5424_v20 = vadd.f32 %v5423_v37, %v18689_v40  ;;  %v18691_v43 = vmax.f32 %v18690_v18, 0.0  ;;  %v18693_v60 = vmax.f32 %v18692_v11, 0.0  ;;  %v18698_v62 = vld [vmem:[#allocation38_spill] sm:$0xff]  ;;  %v18699_v37 = vld [vmem:[#allocation152_spill] sm:$0xff]  ;;  %v18700_v18 = vld [vmem:[#allocation217_spill] sm:$0xff] }
 0x754   : > { %v15024_v63 = vmul.f32 %v5086_v29, %v18685_v46  ;;  %v15028_v61 = vmul.f32 %v5086_v29, %v18687_v13  ;;  %v5293_v50 = vadd.f32 %v5292_v21, %v5196_v3  ;;  %v5337_v39 = vadd.f32 %v5336_v26, %v5197_v51  ;;  %v18701_v51 = vld [vmem:[#allocation242_spill] sm:$0xff]  ;;  %v18702_v26 = vld [vmem:[#allocation213_spill] sm:$0xff] }
 0x755   : > { %v15034_v9 = vmul.f32 %v5086_v29, %v18691_v43  ;;  %v15038_v42 = vmul.f32 %v5086_v29, %v18693_v60  ;;  %v18695_v36 = vmax.f32 %v18694_v16, 0.0  ;;  %v18697_v46 = vmax.f32 %v18696_v0, 0.0  ;;  %v18705_v16 = vld [vmem:[#allocation45_spill] sm:$0xff]  ;;  %v18708_v0 = vld [vmem:[#allocation302_spill] sm:$0xff] }
 0x756   : > { %v5381_v13 = vadd.f32 %v5380_v8, %v5198_v32  ;;  %v5425_v1 = vadd.f32 %v5424_v20, %v5199_v33  ;;  %v15046_v40 = vadd.f32 %v18699_v37, %v18698_v62  ;;  %v15050_v43 = vadd.f32 %v18699_v37, %v18700_v18  ;;  %v18703_v20 = vld [vmem:[#allocation46_spill] sm:$0xff]  ;;  %v18709_v18 = vld [vmem:[#allocation180_spill] sm:$0xff] }
 0x757   : > { %v5208_v59 = vmul.f32 %v5058_v53, %v18695_v36  ;;  %v5209_v25 = vmul.f32 %v5058_v53, %v18697_v46  ;;  %v5294_v29 = vadd.f32 %v5293_v50, %v14886_v45  ;;  %v5338_v3 = vadd.f32 %v5337_v39, %v14890_v10  ;;  %v5098_v50 = vpop.permute.xlu2 %5097  ;;  %v18707_v10 = vld [vmem:[#allocation176_spill] sm:$0xff] }
 0x758   : > { %v15056_v21 = vadd.f32 %v18699_v37, %v18701_v51  ;;  %v15060_v32 = vadd.f32 %v18699_v37, %v18702_v26  ;;  %v5382_v33 = vadd.f32 %v5381_v13, %v14894_v23  ;;  %v5426_v8 = vadd.f32 %v5425_v1, %v14898_v2  ;;  %v18710_v23 = vld [vmem:[#allocation166_spill] sm:$0xff]  ;;  %v18711_v2 = vld [vmem:[#allocation85_spill] sm:$0xff] }
 0x759   : > { %v18704_v11 = vmax.f32 %v18703_v20, 0.0  ;;  %v18706_v36 = vmax.f32 %v18705_v16, 0.0  ;;  %v5295_v39 = vadd.f32 %v5294_v29, %v18707_v10  ;;  %v5339_v46 = vadd.f32 %v5338_v3, %v18708_v0  ;;  %v18713_v20 = vld [vmem:[#allocation225_spill] sm:$0xff] }
 0x75a   : > { %v5383_v51 = vadd.f32 %v5382_v33, %v18709_v18  ;;  %v5427_v13 = vadd.f32 %v5426_v8, %v18710_v23  ;;  %v18712_v1 = vmax.f32 %v18711_v2, 0.0  ;;  %v18715_v33 = vld [vmem:[#allocation120_spill] sm:$0xff] }
 0x75b   : > { %v5210_v60 = vmul.f32 %v5058_v53, %v18704_v11  ;;  %v5211_v45 = vmul.f32 %v5058_v53, %v18706_v36  ;;  %v18714_v11 = vmax.f32 %v18713_v20, 0.0  ;;  %v5296_v16 = vadd.f32 %v5295_v39, %v5208_v59  ;;  %v5070_v36 = vpop.permute.xlu1 %5069  ;;  %v18717_v23 = vld [vmem:[#allocation28_spill] sm:$0xff]  ;;  %v18721_v39 = vld [vmem:[#allocation61_spill] sm:$0xff] }
 0x75c   : > { %v15076_v26 = vmul.f32 %v5098_v50, %v18712_v1  ;;  %v5340_v29 = vadd.f32 %v5339_v46, %v5209_v25  ;;  %v18716_v18 = vmax.f32 %v18715_v33, 0.0  ;;  %v18718_v2 = vmax.f32 %v18717_v23, 0.0 }
 0x75d   : > { %v15080_v53 = vmul.f32 %v5098_v50, %v18714_v11  ;;  %v5384_v0 = vadd.f32 %v5383_v51, %v5210_v60  ;;  %v5428_v37 = vadd.f32 %v5427_v13, %v5211_v45  ;;  %v5297_v62 = vadd.f32 %v5296_v16, %v14934_v41  ;;  %v18719_v11 = vld [vmem:[#allocation15_spill] sm:$0xff]  ;;  %v18726_v16 = vld [vmem:[#allocation109_spill] sm:$0xff] }
 0x75e   : > { %v5220_v8 = vmul.f32 %v5070_v36, %v18716_v18  ;;  %v5221_v1 = vmul.f32 %v5070_v36, %v18718_v2  ;;  %v5341_v20 = vadd.f32 %v5340_v29, %v14938_v7  ;;  %v18720_v59 = vmax.f32 %v18719_v11, 0.0  ;;  %v18724_v51 = vld [vmem:[#allocation207_spill] sm:$0xff]  ;;  %v18728_v18 = vld [vmem:[#allocation96_spill] sm:$0xff] }
 0x75f   : > { %v18722_v46 = vmax.f32 %v18721_v39, 0.0  ;;  %v5385_v10 = vadd.f32 %v5384_v0, %v14944_v27  ;;  %v5429_v60 = vadd.f32 %v5428_v37, %v14948_v24  ;;  %v18723_v45 = vmax.f32 %v15046_v40, 0.0  ;;  %v18731_v37 = vld [vmem:[#allocation169_spill] sm:$0xff]  ;;  %v18732_v11 = vld [vmem:[#allocation248_spill] sm:$0xff]  ;;  %v5110_v39 = vpop.permute.xlu2 %5109 }
 0x760   : > { %v5222_v25 = vmul.f32 %v5070_v36, %v18720_v59  ;;  %v18725_v33 = vmax.f32 %v15050_v43, 0.0  ;;  %v18727_v7 = vmax.f32 %v18726_v16, 0.0  ;;  %v18729_v23 = vmax.f32 %v18728_v18, 0.0 }
 0x761   : > { %v5223_v3 = vmul.f32 %v5070_v36, %v18722_v46  ;;  %v4786_v13 = vmul.f32 %v18724_v51, %v18723_v45  ;;  %v18730_v36 = vld [vmem:[#allocation58_spill] sm:$0xff]  ;;  %v5342_v24 = vadd.f32 %v5341_v20, %v14760_v48  ;;  %v5386_v0 = vadd.f32 %v5385_v10, %v18731_v37  ;;  %v18735_v20 = vld [vmem:[#allocation245_spill] sm:$0xff] }
 0x762   : > { %v4787_v41 = vmul.f32 %v18724_v51, %v18725_v33  ;;  %v15104_v29 = vmul.f32 %v5098_v50, %v18727_v7  ;;  %v15108_v2 = vmul.f32 %v5098_v50, %v18729_v23  ;;  %v5298_v27 = vadd.f32 %v5297_v62, %v18730_v36  ;;  %v18737_v36 = vld [vmem:[#allocation39_spill] sm:$0xff] }
 0x763   : > { %v5430_v59 = vadd.f32 %v5429_v60, %v18732_v11  ;;  %v18733_v46 = vmax.f32 %v15056_v21, 0.0  ;;  %v18734_v33 = vmax.f32 %v15060_v32, 0.0  ;;  %v5343_v50 = vadd.f32 %v5342_v24, %v5221_v1  ;;  %v18739_v1 = vld [vmem:[#allocation246_spill] sm:$0xff] }
 0x764   : > { %v5299_v7 = vadd.f32 %v5298_v27, %v5220_v8  ;;  %v15121_v18 = vsel %vm2205_vm0, %v4786_v13, 0.0  ;;  %v15124_v48 = vsel %vm2205_vm0, %v4787_v41, 0.0  ;;  %v5387_v62 = vadd.f32 %v5386_v0, %v5222_v25  ;;  %v18741_v41 = vld [vmem:[#allocation315_spill] sm:$0xff] }
 0x765   : > { %v4788_v45 = vmul.f32 %v18724_v51, %v18733_v46  ;;  %v4789_v16 = vmul.f32 %v18724_v51, %v18734_v33  ;;  %v5431_v10 = vadd.f32 %v5430_v59, %v5223_v3  ;;  %v18736_v60 = vmax.f32 %v18735_v20, 0.0  ;;  %v5082_v3 = vpop.permute.xlu1 %5081  ;;  %v18743_v46 = vld [vmem:[#allocation223_spill] sm:$0xff] }
 0x766   : > { %v18738_v37 = vmax.f32 %v18737_v36, 0.0  ;;  %v5300_v51 = vadd.f32 %v5299_v7, %v14994_v38  ;;  %v5344_v8 = vadd.f32 %v5343_v50, %v14998_v57  ;;  %v18740_v13 = vmax.f32 %v18739_v1, 0.0  ;;  %v18747_v57 = vld [vmem:[#allocation63_spill] sm:$0xff] }
 0x767   : > { %v15128_v23 = vmul.f32 %v5110_v39, %v18736_v60  ;;  %v18742_v24 = vmax.f32 %v18741_v41, 0.0  ;;  %v5388_v0 = vadd.f32 %v5387_v62, %v15002_v54  ;;  %v5432_v59 = vadd.f32 %v5431_v10, %v15006_v52  ;;  %v18745_v60 = vld [vmem:[#allocation30_spill] sm:$0xff] }
 0x768   : > { %v15132_v11 = vmul.f32 %v5110_v39, %v18738_v37  ;;  %v15138_v27 = vmul.f32 %v5110_v39, %v18740_v13  ;;  %v18744_v33 = vmax.f32 %v18743_v46, 0.0  ;;  %v18746_v38 = vmax.f32 %v18745_v60, 0.0  ;;  %v18749_v37 = vld [vmem:[#allocation254_spill] sm:$0xff] }
 0x769   : > { %v15142_v25 = vmul.f32 %v5110_v39, %v18742_v24  ;;  %v18748_v50 = vmax.f32 %v18747_v57, 0.0  ;;  %v18750_v1 = vmax.f32 %v18749_v37, 0.0  ;;  %v5301_v39 = vadd.f32 %v5300_v51, %v14805_v14  ;;  %v5122_v37 = vpop.permute.xlu2 %5121  ;;  %v18753_v14 = vld [vmem:[#allocation253_spill] sm:$0xff] }
 0x76a   : > { %v5232_v20 = vmul.f32 %v5082_v3, %v18744_v33  ;;  %v5233_v7 = vmul.f32 %v5082_v3, %v18746_v38  ;;  %v5345_v41 = vadd.f32 %v5344_v8, %v14810_v49  ;;  %v5389_v54 = vadd.f32 %v5388_v0, %v14827_v47  ;;  %v18751_v33 = vld [vmem:[#allocation73_spill] sm:$0xff]  ;;  %v18752_v38 = vld [vmem:[#allocation274_spill] sm:$0xff] }
 0x76b   : > { %v5234_v36 = vmul.f32 %v5082_v3, %v18748_v50  ;;  %v5235_v13 = vmul.f32 %v5082_v3, %v18750_v1  ;;  %v5433_v52 = vadd.f32 %v5432_v59, %v14832_v19  ;;  %v4914_v62 = vsel %vm2205_vm0, %v4788_v45, 0.0  ;;  %v18754_v49 = vld [vmem:[#allocation238_spill] sm:$0xff] }
 0x76c   : > { %v4958_v10 = vsel %vm2205_vm0, %v4789_v16, 0.0  ;;  %v5302_v24 = vadd.f32 %v5301_v39, %v5232_v20  ;;  %v5346_v46 = vadd.f32 %v5345_v41, %v5233_v7  ;;  %v4402_v60 = vmax.f32 %v18751_v33, 0.0  ;;  %v18760_v41 = vld [vmem:[#allocation203_spill] sm:$0xff] }
 0x76d   : > { %v16006_v57 = vmax.f32 %v18752_v38, 0.0  ;;  %v5390_v50 = vadd.f32 %v5389_v54, %v5234_v36  ;;  %v5434_v3 = vadd.f32 %v5433_v52, %v5235_v13  ;;  %v4404_v51 = vmax.f32 %v18753_v14, 0.0  ;;  %v18757_v36 = vld [vmem:[#allocation304_spill] sm:$0xff]  ;;  %v5094_v39 = vpop.permute.xlu1 %5093 }
 0x76e   : > { %v4405_v8 = vmax.f32 %v18754_v49, 0.0  ;;  %v5303_v47 = vadd.f32 %v5302_v24, %v15024_v63  ;;  %v5347_v19 = vadd.f32 %v5346_v46, %v15028_v61  ;;  %v18755_v45 = vmax.f32 %v15046_v40, 0.0  ;;  %v18762_v24 = vld [vmem:[#allocation250_spill] sm:$0xff] }
 0x76f   : > { %v18756_v0 = vmax.f32 %v15050_v43, 0.0  ;;  %v5391_v20 = vadd.f32 %v5390_v50, %v15034_v9  ;;  %v5435_v7 = vadd.f32 %v5434_v3, %v15038_v42  ;;  %v4782_v1 = vmul.f32 %v18757_v36, %v4402_v60 }
 0x770   : > { %v5272_v16 = vmul.f32 %v5122_v37, %v18755_v45  ;;  %v4783_v63 = vmul.f32 %v18757_v36, %v16006_v57  ;;  %v18758_v61 = vmax.f32 %v15056_v21, 0.0  ;;  %v18759_v40 = vmax.f32 %v15060_v32, 0.0  ;;  %v18764_v32 = vld [vmem:[#allocation316_spill] sm:$0xff] }
 0x771   : > { %v5273_v59 = vmul.f32 %v5122_v37, %v18756_v0  ;;  %v18761_v54 = vmax.f32 %v18760_v41, 0.0  ;;  %v18763_v46 = vmax.f32 %v18762_v24, 0.0  ;;  %v5304_v21 = vadd.f32 %v5303_v47, %v14856_v28  ;;  %v18766_v0 = vld [vmem:[#allocation144_spill] sm:$0xff] }
 0x772   : > { %v15180_v13 = vmul.f32 %v5122_v37, %v18758_v61  ;;  %v15184_v43 = vmul.f32 %v5122_v37, %v18759_v40  ;;  %v15187_v9 = vsel %vm2205_vm0, %v5272_v16, 0.0  ;;  %v5348_v3 = vadd.f32 %v5347_v19, %v14860_v55 }
 0x773   : > { %v15190_v42 = vsel %vm2205_vm0, %v5273_v59, 0.0  ;;  %v5244_v52 = vmul.f32 %v5094_v39, %v18761_v54  ;;  %v5245_v50 = vmul.f32 %v5094_v39, %v18763_v46  ;;  %v18765_v37 = vmax.f32 %v18764_v32, 0.0 }
 0x774   : > { %v18767_v16 = vmax.f32 %v18766_v0, 0.0  ;;  %v5392_v59 = vadd.f32 %v5391_v20, %v14876_v22  ;;  %v5436_v40 = vadd.f32 %v5435_v7, %v14880_v6  ;;  %v4784_v54 = vmul.f32 %v18757_v36, %v4404_v51 }
 0x775   : > { %v5246_v45 = vmul.f32 %v5094_v39, %v18765_v37  ;;  %v5305_v57 = vadd.f32 %v5304_v21, %v5244_v52  ;;  %v5349_v41 = vadd.f32 %v5348_v3, %v5245_v50  ;;  %v4785_v28 = vmul.f32 %v18757_v36, %v4405_v8  ;;  %v18770_v21 = vld [vmem:[#allocation84_spill] sm:$0xff]  ;;  %v18774_v37 = vld [vmem:[#allocation267_spill] sm:$0xff] }
 0x776   : > { %v5247_v61 = vmul.f32 %v5094_v39, %v18767_v16  ;;  %v4825_v19 = vadd.f32 %v14961_v4, %v4782_v1  ;;  %v4869_v39 = vadd.f32 %v14964_v35, %v4783_v63  ;;  %v4913_v20 = vadd.f32 %v14971_v12, %v4784_v54 }
 0x777   : > { %v5393_v55 = vadd.f32 %v5392_v59, %v5246_v45  ;;  %v5306_v22 = vadd.f32 %v5305_v57, %v15076_v26  ;;  %v5350_v6 = vadd.f32 %v5349_v41, %v15080_v53  ;;  %v4957_v7 = vadd.f32 %v14974_v31, %v4785_v28  ;;  %v5106_v57 = vpop.permute.xlu1 %5105 }
 0x778   : > { %v5437_v47 = vadd.f32 %v5436_v40, %v5247_v61  ;;  %v4827_v36 = vadd.f32 %v15121_v18, %v4825_v19  ;;  %v4871_v46 = vadd.f32 %v15124_v48, %v4869_v39  ;;  %v4915_v1 = vadd.f32 %v4914_v62, %v4913_v20  ;;  %v18772_v48 = vld [vmem:[#allocation65_spill] sm:$0xff] }
 0x779   : > { %v5394_v52 = vadd.f32 %v5393_v55, %v15104_v29  ;;  %v5307_v4 = vadd.f32 %v5306_v22, %v14904_v58  ;;  %v5351_v35 = vadd.f32 %v5350_v6, %v14908_v5  ;;  %v4959_v26 = vadd.f32 %v4958_v10, %v4957_v7  ;;  %v18768_v29 = vld [vmem:[#allocation33_spill] sm:$0xff] }
 0x77a   : > { %v5438_v24 = vadd.f32 %v5437_v47, %v15108_v2  ;;  %v4828_v31 = vrot.slane %v4827_v36, 4  ;;  %v4872_v63 = vrot.slane %v4871_v46, 4  ;;  %v18769_v50 = vmax.f32 %v18768_v29, 0.0 }
 0x77b   : > { %v5395_v53 = vadd.f32 %v5394_v52, %v14924_v56  ;;  %v18771_v18 = vmax.f32 %v18770_v21, 0.0  ;;  %v18773_v32 = vmax.f32 %v18772_v48, 0.0  ;;  %v18775_v5 = vmax.f32 %v18774_v37, 0.0 }
 0x77c   : > { %v5439_v12 = vadd.f32 %v5438_v24, %v14928_v15  ;;  %v5256_v2 = vmul.f32 %v5106_v57, %v18769_v50  ;;  %v4829_v10 = vadd.f32 %v4828_v31, %v4827_v36  ;;  %v4873_v45 = vadd.f32 %v4872_v63, %v4871_v46 }
 0x77d   : > { %v5257_v3 = vmul.f32 %v5106_v57, %v18771_v18  ;;  %v5258_v58 = vmul.f32 %v5106_v57, %v18773_v32  ;;  %v5259_v62 = vmul.f32 %v5106_v57, %v18775_v5  ;;  %v4916_v0 = vrot.slane %v4915_v1, 4 }
 0x77e   : > { %v4960_v56 = vrot.slane %v4959_v26, 4  ;;  %v5308_v16 = vadd.f32 %v5307_v4, %v5256_v2  ;;  %v4830_v40 = vrot.slane %v4829_v10, 2  ;;  %v4874_v41 = vrot.slane %v4873_v45, 2 }
 0x77f   : > { %v5352_v15 = vadd.f32 %v5351_v35, %v5257_v3  ;;  %v5396_v61 = vadd.f32 %v5395_v53, %v5258_v58  ;;  %v5440_v59 = vadd.f32 %v5439_v12, %v5259_v62  ;;  %v4917_v54 = vadd.f32 %v4916_v0, %v4915_v1  ;;  %v5118_v46 = vpop.permute.xlu1 %5117 }
 0x780   : > { %v4961_v28 = vadd.f32 %v4960_v56, %v4959_v26  ;;  %v5309_v55 = vadd.f32 %v5308_v16, %v15128_v23  ;;  %v4831_v22 = vadd.f32 %v4830_v40, %v4829_v10  ;;  %v4875_v6 = vadd.f32 %v4874_v41, %v4873_v45 }
 0x781   : > { %v5353_v47 = vadd.f32 %v5352_v15, %v15132_v11  ;;  %v5397_v19 = vadd.f32 %v5396_v61, %v15138_v27  ;;  %v5441_v39 = vadd.f32 %v5440_v59, %v15142_v25  ;;  %v4918_v20 = vrot.slane %v4917_v54, 2 }
 0x782   : > { %v4962_v7 = vrot.slane %v4961_v28, 2  ;;  %v5310_v52 = vadd.f32 %v5309_v55, %v14966_v44  ;;  %v4832_v11 = vrot.slane %v4831_v22, 1  ;;  %v4876_v4 = vrot.slane %v4875_v6, 1 }
 0x783   : > { %v5354_v24 = vadd.f32 %v5353_v47, %v14968_v17  ;;  %v5398_v36 = vadd.f32 %v5397_v19, %v14986_v34  ;;  %v5442_v23 = vadd.f32 %v5441_v39, %v14988_v30  ;;  %v4919_v27 = vadd.f32 %v4918_v20, %v4917_v54  ;;  %v18780_v47 = vld [vmem:[#allocation130_spill] sm:$0xff] }
 0x784   : > { %v4963_v35 = vadd.f32 %v4962_v7, %v4961_v28  ;;  %v5268_v25 = vmul.f32 %v5118_v46, %v4402_v60  ;;  %v18776_v1 = vmax.f32 %v18752_v38, 0.0  ;;  %v5270_v44 = vmul.f32 %v5118_v46, %v4404_v51  ;;  %v18779_v28 = vld [vmem:[#allocation209_spill] sm:$0xff] }
 0x785   : > { %v5271_v17 = vmul.f32 %v5118_v46, %v4405_v8  ;;  %v5400_v34 = vsel %vm2205_vm0, %v15180_v13, 0.0  ;;  %v5444_v30 = vsel %vm2205_vm0, %v15184_v43, 0.0  ;;  %v4920_v57 = vrot.slane %v4919_v27, 1 }
 0x786   : > { %v5269_v26 = vmul.f32 %v5118_v46, %v18776_v1  ;;  %v4964_v53 = vrot.slane %v4963_v35, 1  ;;  %v5311_v33 = vadd.f32 %v5310_v52, %v5268_v25  ;;  %v5399_v38 = vadd.f32 %v5398_v36, %v5270_v44  ;;  %v18781_v52 = vld [vmem:[#allocation40_spill] sm:$0xff] }
 0x787   : > { %v5443_v12 = vadd.f32 %v5442_v23, %v5271_v17  ;;  %v3024_v14 = vlaneseq  ;;  %v4833_v51 = vadd.f32 %v4832_v11, %v4831_v22  ;;  %v4877_v49 = vadd.f32 %v4876_v4, %v4875_v6  ;;  %v18782_v36 = vld [vmem:[#allocation208_spill] sm:$0xff] }
 0x788   : > { %v5355_v60 = vadd.f32 %v5354_v24, %v5269_v26  ;;  %v5313_v8 = vadd.f32 %v15187_v9, %v5311_v33  ;;  %v5401_v43 = vadd.f32 %v5400_v34, %v5399_v38  ;;  %vm3021_vm0 = vcmask 1041408   ;;  %v18783_v46 = vld [vmem:[#allocation312_spill] sm:$0xff] }
 0x789   : > { %v5445_v31 = vadd.f32 %v5444_v30, %v5443_v12  ;;  %v4921_v63 = vadd.f32 %v4920_v57, %v4919_v27  ;;  %v4965_v29 = vadd.f32 %v4964_v53, %v4963_v35  ;;  %v4967_v50 = vstv %s15236_s12  ;;  %v18784_v26 = vld [vmem:[#allocation228_spill] sm:$0xff]  ;;  %v18786_v30 = vld [vmem:[#allocation118_spill] sm:$0xff]  ;;  %s5519_s12 = sshll.u32 %s15278_s30, 4  ;;  %s5520_s12 = int_to_ptr.hbm [resolvable:$true] %s5519_s12 }
 0x78a   : > { %v5357_v13 = vadd.f32 %v15190_v42, %v5355_v60  ;;  %v5314_v2 = vrot.slane %v5313_v8, 4  ;;  %v5402_v18 = vrot.slane %v5401_v43, 4  ;;  %vm15259_vm5 = vcmp.lt.s32.totalorder %v3024_v14, 512  ;;  %v18785_v17 = vld [vmem:[#allocation44_spill] sm:$0xff]  ;;  %s5903_s30 = sshra.s32 %s5520_s12, 4  ;;  %s5904_s30 = int_to_ptr.hbm [resolvable:$true] %s5903_s30 }
 0x78b   : > { %v5446_v3 = vrot.slane %v5445_v31, 4  ;;  %v4968_v9 = vadd.f32 %v4967_v50, %v4833_v51  ;;  %v4969_v42 = vadd.f32 %v4967_v50, %v4877_v49  ;;  %v4970_v32 = vadd.f32 %v4967_v50, %v4921_v63  ;;  %p5910_p3 = scmp.lt.s32.totalorder %s5904_s30, %s15367_s10 }
 0x78c   : > { %v5358_v21 = vrot.slane %v5357_v13, 4  ;;  %v4971_v58 = vadd.f32 %v4967_v50, %v4965_v29  ;;  %v5315_v37 = vadd.f32 %v5314_v2, %v5313_v8  ;;  %v5403_v62 = vadd.f32 %v5402_v18, %v5401_v43 }
 0x78d   : > { %v5447_v10 = vadd.f32 %v5446_v3, %v5445_v31  ;;  %v5453_v45 = vstv %s15254_s18  ;;  %v5462_v0 = vrot.slane %v4969_v42, 7  ;;  %v5463_v56 = vrot.slane %v4970_v32, 6  ;;  %s5905_s18 = scalar_lea.hbm %s5904_s30, 8 }
 0x78e   : > { %v5359_v5 = vadd.f32 %v5358_v21, %v5357_v13  ;;  %v5464_v16 = vrot.slane %v4971_v58, 5  ;;  %v5316_v15 = vrot.slane %v5315_v37, 2  ;;  %v5404_v59 = vrot.slane %v5403_v62, 2  ;;  %p5906_p0 = scmp.ne.s32.totalorder %s5904_s30, %s5905_s18  ;;  %p5911_p4 = scmp.lt.s32.totalorder %s5909_s27, %s5905_s18 }
 0x78f   : > { %v5448_v40 = vrot.slane %v5447_v10, 2  ;;  %v5465_v41 = vsel %vm3017_vm3, %v4968_v9, %v5462_v0  ;;  %v3014_v55 = vrot.slane %v18779_v28, 7  ;;  %v3015_v19 = vrot.slane %v18780_v47, 6 }
 0x790   : > { %v5360_v61 = vrot.slane %v5359_v5, 2  ;;  %v5466_v54 = vsel %vm3019_vm4, %v5463_v56, %v5464_v16  ;;  %v5317_v39 = vadd.f32 %v5316_v15, %v5315_v37  ;;  %v5405_v6 = vadd.f32 %v5404_v59, %v5403_v62  ;;  %p5907_p1 = pnand %p5906_p0, %p6090_p5  ;;  %p5912_p7 = por %p5911_p4, %p5910_p3 }
 0x791   : > { %v5449_v20 = vadd.f32 %v5448_v40, %v5447_v10  ;;  %v5467_v7 = vsel %vm3021_vm0, %v5465_v41, %v5466_v54  ;;  %v3016_v24 = vrot.slane %v18781_v52, 5  ;;  %v3018_v23 = vsel %vm3017_vm3, %v18782_v36, %v3014_v55 }
 0x792   : > { %v5361_v22 = vadd.f32 %v5360_v61, %v5359_v5  ;;  %v3033_v11 = vrot.slane %v18783_v46, 7  ;;  %v5318_v4 = vrot.slane %v5317_v39, 1  ;;  %v5406_v35 = vrot.slane %v5405_v6, 1  ;;  %5469 = vst.msk [vmem:[%s15285_s28] ss:$2 sm:$0xf] %vm15259_vm5, %v5467_v7  ;;  %p5908_p2 = pneg %p5907_p1 }
 0x793   : > { %v5450_v25 = vrot.slane %v5449_v20, 1  ;;  %v3020_v1 = vsel %vm3019_vm4, %v3015_v19, %v3016_v24  ;;  %v3034_v44 = vrot.slane %v18784_v26, 6  ;;  %v3035_v34 = vrot.slane %v18785_v17, 5 }
 0x794   : > { %v5362_v27 = vrot.slane %v5361_v22, 1  ;;  %v3036_v57 = vsel %vm3017_vm3, %v18786_v30, %v3033_v11  ;;  %v5319_v53 = vadd.f32 %v5318_v4, %v5317_v39  ;;  %v5407_v60 = vadd.f32 %v5406_v35, %v5405_v6  ;;  %p5913_p8 = pnand %p5912_p7, %p5908_p2 }
 0x795   : > { %v5451_v38 = vadd.f32 %v5450_v25, %v5449_v20  ;;  %v3022_v12 = vsel %vm3021_vm0, %v3018_v23, %v3020_v1  ;;  %v3037_v14 = vsel %vm3019_vm4, %v3034_v44, %v3035_v34 }
 0x796   : > { %v5363_v33 = vadd.f32 %v5362_v27, %v5361_v22  ;;  %v5456_v49 = vadd.f32 %v5453_v45, %v5407_v60  ;;  %3028 = vst.msk [vmem:[%s391_s21] ss:$2 sm:$0xf] %vm15259_vm5, %v3022_v12  ;;  %v3038_v13 = vsel %vm3021_vm0, %v3036_v57, %v3037_v14  ;;  %v5454_v43 = vadd.f32 %v5453_v45, %v5319_v53 }
 0x797   : > { %v5457_v8 = vadd.f32 %v5453_v45, %v5451_v38  ;;  %5648 = vst.msk [vmem:[%s391_s21 + $0x1] ss:$2 sm:$0xf] %vm15259_vm5, %v3038_v13 }
 0x798   : > { %v5455_v51 = vadd.f32 %v5453_v45, %v5363_v33  ;;  %v5475_v63 = vrot.slane %v5456_v49, 6 }
 0x799   : > { %v5476_v29 = vrot.slane %v5457_v8, 5 }
 0x79a   : > { %v5474_v31 = vrot.slane %v5455_v51, 7 }
 0x79b   : > { %5916 = shalt.err (!%p5913_p8)
}
 0x79c   : > { %5670 = dma.vmem_to_hbm [thread:$0]  (%p6090_p5), %s5518_s11, 128, %s5520_s12, %s5489_s25   ;;  %v5477_v50 = vsel %vm3017_vm3, %v5454_v43, %v5474_v31  ;;  %v5478_v2 = vsel %vm3019_vm4, %v5475_v63, %v5476_v29 }
 0x79d   : > { %v5479_v21 = vsel %vm3021_vm0, %v5477_v50, %v5478_v2  ;;  %s5484_s0 = scalar_lea.sflag [#allocation3], %s15264_s20  ;;  %s5931_s1 = sshra.s32 %s5505_s29, 4  ;;  %s5932_s1 = int_to_ptr.hbm [resolvable:$true] %s5931_s1 }
 0x79e   : > { %5650 = vst.msk [vmem:[%s15285_s28 + $0x1] ss:$2 sm:$0xf] %vm15259_vm5, %v5479_v21  ;;  %s5933_s2 = scalar_lea.hbm %s5932_s1, 8  ;;  %s5937_s12 = scalar_lea.hbm %s15366_s9, 16 }
 0x79f   : > { %p5934_p9 = scmp.ne.s32.totalorder %s5932_s1, %s5933_s2  ;;  %p5938_p12 = scmp.lt.s32.totalorder %s5932_s1, %s15366_s9 }
 0x7a0   : > { %p5939_p13 = scmp.lt.s32.totalorder %s5937_s12, %s5933_s2 }
 0x7a1   : > { %p5935_p10 = pnand %p5934_p9, %p6090_p5 }
 0x7a2   : > { %p5940_p0 = por %p5939_p13, %p5938_p12 }
 0x7a3   : > { %p5936_p11 = pneg %p5935_p10 }
 0x7a5   : > { %p5941_p1 = pnand %p5940_p0, %p5936_p11 }
 0x7a7   : > { %5944 = shalt.err (!%p5941_p1)
}
 0x7a8   : > { %5669 = dma.vmem_to_hbm [thread:$0]  (%p6090_p5), %s5503_s17, 128, %s5505_s29, %s5484_s0  }
 0x7a9 PF: > { %p5691_p2 = scmp.ge.s32.totalorder %s5991_s16, 2  ;;  %s5531_s20 = sand.u32 1, %s5979_s13  }
 0x7aa   : > { %s5532_s28 = scalar_lea.sflag [#allocation3], %s5531_s20 }
 0x7ab   : > { %p5681_p3 = pnand %p5691_p2, %p6094_p6 }
 0x7ad   : > { %p5682_p4 = pneg %p5681_p3 }
 0x7af   : > { %5970 = dma.done.wait (%p5682_p4), %s5532_s28, 128  }
 0x7b0   : > { %5972 = vsyncadd (%p5682_p4), %s5532_s28, 4294967168  ;;  %s5542_s18 = scalar_lea.sflag [#allocation9], %s5531_s20 }
 0x7b1   : > { %5974 = dma.done.wait (%p5682_p4), %s5542_s18, 128  }
 0x7b2   : > { %5976 = vsyncadd (%p5682_p4), %s5542_s18, 4294967168  ;;  %p26_p5 = scmp.ge.s32.totalorder %s6077_s19, 4   ;;  %s18787_s13 = smov %s5983_s14 }
 0x7b3   : > { %s18788_s14 = smov %s5987_s15  ;;  %s18789_s15 = smov %s6088_s22 }
 0x7b4   : > { %s18790_s16 = smov %s6077_s19  ;;  %28 = sbr.rel (!%p26_p5) target bundleno = 11 (0xb), region = 120 }
 0x7b9   :  { %5548 = vsyncpa [#allocation3], 1 }
 0x7ba   :  { %5550 = vsyncpa [#allocation3 + $0x1], 1 }
 0x7bb   :  { %5551 = vsyncpa [#allocation9], 1 }
 0x7bc   :  { %5553 = vsyncpa [#allocation9 + $0x1], 1 }
 0x7bd   :  { %5554 = vsyncpa [#allocation4], 1 }
 0x7be   :  { %5556 = vsyncpa [#allocation4 + $0x1], 1 }
 0x7bf   :  { %5557 = vsyncpa [#allocation6], 1 }

</bundles_post_ra>
